<compile_context>
chip_gen: v7x
topology: tpu7x:2x2x1
jax: 0.10.0
libtpu: 0.0.40
codegen_flags: <defaults>
</compile_context>

<pallas_src>
import functools

import numpy as np
import jax
import jax.numpy as jnp
from jax import lax
from jax.experimental import pallas as pl
from jax.experimental.pallas import tpu as pltpu


# --------------------------- VMEM budget (per-gen) ---------------------------


@functools.lru_cache(maxsize=None)
def _vmem_limit_bytes():
    cap = 64 * 1024 * 1024
    try:
        info = pltpu.get_tpu_info()
        cap = int(getattr(info, "vmem_capacity_bytes", cap))
    except Exception:
        pass
    # Leave headroom for compiler scratch; ~100 MiB on 128-MiB parts, ~48 MiB on v7x.
    return min(max(cap - 16 * 1024 * 1024, 32 * 1024 * 1024), 100 * 1024 * 1024)


def _pick_tile(dim, candidates):
    """Largest MXU/lane-friendly candidate dividing dim, else the full dim."""
    for c in candidates:
        if dim % c == 0:
            return c
    return dim


# ----------------------------- Pallas kernels ------------------------------


def _block_kernel(x_ref, w_ref, m_ref, o_ref, acc_ref, *, taps, eps, slope, inv_hw):
    """Fused 3x3 conv (9 tap matmuls) + InstanceNorm + LeakyReLU for one batch element
    and one Cout tile.

    x_ref:   (P, L, Cin)  bf16  phase-split, row-flattened, padded activation
    w_ref:   (9, Cin, tn) bf16  per-tap weights
    m_ref:   (n_rows, 1)  f32   1.0 on valid output rows, 0.0 on junk columns
    o_ref:   (n_rows, tn) bf16  output (junk rows stored as 0)
    acc_ref: (n_rows, tn) f32   VMEM accumulator
    """
    n_rows = acc_ref.shape[0]

    phase0, off0 = taps[0]
    acc_ref[...] = jnp.dot(x_ref[phase0, pl.ds(off0, n_rows), :], w_ref[0],
                           preferred_element_type=jnp.float32)
    for t, (phase, off) in enumerate(taps[1:], start=1):        # static 9-way unroll
        a = x_ref[phase, pl.ds(off, n_rows), :]                 # (n_rows, Cin) window
        acc_ref[...] += jnp.dot(a, w_ref[t], preferred_element_type=jnp.float32)

    acc = acc_ref[...]                                          # (n_rows, tn) f32
    m = m_ref[...]                                              # (n_rows, 1)  f32
    # InstanceNorm2d(affine=False): biased variance, two-pass, over valid rows only.
    mean = jnp.sum(acc * m, axis=0, keepdims=True) * inv_hw     # (1, tn)
    d = acc - mean
    var = jnp.sum(d * d * m, axis=0, keepdims=True) * inv_hw
    y = d * lax.rsqrt(var + eps)
    y = jnp.where(y >= 0.0, y, slope * y)                       # LeakyReLU(0.2)
    o_ref[...] = (y * m).astype(o_ref.dtype)                    # bf16, junk rows -> 0


def _final_conv_sigmoid_kernel(x_ref, w_ref, o_ref, *, taps):
    """Final bias-free 3x3 conv fused with Sigmoid.  Accumulates directly into the
    resident f32 output block (Cout zero-padded to 128 lanes -> lane-dense stores)."""
    n_rows = o_ref.shape[0]
    phase0, off0 = taps[0]
    o_ref[...] = jnp.dot(x_ref[phase0, pl.ds(off0, n_rows), :], w_ref[0],
                         preferred_element_type=jnp.float32)
    for t, (phase, off) in enumerate(taps[1:], start=1):
        a = x_ref[phase, pl.ds(off, n_rows), :]
        o_ref[...] += jnp.dot(a, w_ref[t], preferred_element_type=jnp.float32)
    o_ref[...] = 1.0 / (1.0 + jnp.exp(-o_ref[...]))


# --------------------------- pallas_call wrappers ---------------------------


def _conv_inorm_lrelu(xf, w_taps, mask, *, taps, n_rows, hw_valid, eps=1e-5, slope=0.2):
    """xf: [B, P, L, Cin] bf16; w_taps: [9, Cin, N] bf16; mask: [n_rows, 1] f32.
    Returns [B, n_rows, N] bf16 (normalized + LeakyReLU, junk rows zeroed)."""
    B, P, L, Cin = xf.shape
    N = w_taps.shape[-1]
    tn = _pick_tile(N, (512, 256, 128))
    grid = (B, N // tn)

    kern = functools.partial(_block_kernel, taps=taps, eps=eps, slope=slope,
                             inv_hw=1.0 / hw_valid)
    cost = pl.CostEstimate(
        flops=2 * B * n_rows * 9 * Cin * N + 10 * B * n_rows * N,
        transcendentals=B * N,
        bytes_accessed=(xf.size * xf.dtype.itemsize
                        + w_taps.size * w_taps.dtype.itemsize
                        + mask.size * 4 + B * n_rows * N * 2),
    )
    return pl.pallas_call(
        kern,
        out_shape=jax.ShapeDtypeStruct((B, n_rows, N), jnp.bfloat16),
        grid=grid,
        in_specs=[
            pl.BlockSpec((None, P, L, Cin), lambda b, j: (b, 0, 0, 0)),
            pl.BlockSpec((9, Cin, tn), lambda b, j: (0, 0, j)),
            pl.BlockSpec((n_rows, 1), lambda b, j: (0, 0)),
        ],
        out_specs=pl.BlockSpec((None, n_rows, tn), lambda b, j: (b, 0, j)),
        scratch_shapes=[pltpu.VMEM((n_rows, tn), jnp.float32)],
        compiler_params=pltpu.CompilerParams(
            dimension_semantics=("parallel", "parallel"),
            vmem_limit_bytes=_vmem_limit_bytes()),
        cost_estimate=cost,
    )(xf, w_taps, mask)


def _final_conv_sigmoid(xf, w_taps, *, taps, n_rows):
    """xf: [B, 1, L, 512] bf16; w_taps: [9, 512, 128] bf16 (col 0 = real weight).
    Returns [B, n_rows, 128] f32 sigmoid output."""
    B, P, L, Cin = xf.shape
    NP = w_taps.shape[-1]
    cost = pl.CostEstimate(
        flops=2 * B * n_rows * 9 * Cin * NP,
        transcendentals=B * n_rows * NP,
        bytes_accessed=(xf.size * xf.dtype.itemsize
                        + w_taps.size * w_taps.dtype.itemsize
                        + B * n_rows * NP * 4),
    )
    return pl.pallas_call(
        functools.partial(_final_conv_sigmoid_kernel, taps=taps),
        out_shape=jax.ShapeDtypeStruct((B, n_rows, NP), jnp.float32),
        grid=(B,),
        in_specs=[
            pl.BlockSpec((None, P, L, Cin), lambda b: (b, 0, 0, 0)),
            pl.BlockSpec((9, Cin, NP), lambda b: (0, 0, 0)),
        ],
        out_specs=pl.BlockSpec((None, n_rows, NP), lambda b: (b, 0, 0)),
        compiler_params=pltpu.CompilerParams(
            dimension_semantics=("parallel",),
            vmem_limit_bytes=_vmem_limit_bytes()),
        cost_estimate=cost,
    )(xf, w_taps)


# ------------------------------ glue (JAX) ----------------------------------


def _phase_flat(x_nhwc, stride):
    """Pad + (stride 2) phase-split + row-flatten the activation for the tap-window
    kernels.  Returns (xf [B,P,L,C], taps [(phase, row_offset)]*9, Ho, Wo, Wrow, n_rows).
    Accumulator row t = ho*Wrow + wo; valid iff (t % Wrow) < Wo.  Total bytes ~1.1x input.
    """
    B, H, W, C = x_nhwc.shape
    xp = jnp.pad(x_nhwc, ((0, 0), (1, 1), (1, 1), (0, 0)))          # zero pad = 1
    if stride == 1:
        Ho, Wo, Wrow = H, W, W + 2
        xf = xp.reshape(B, 1, (H + 2) * (W + 2), C)
        taps = [(0, kh * Wrow + kw) for kh in range(3) for kw in range(3)]
    else:
        assert stride == 2 and H % 2 == 0 and W % 2 == 0
        Ho, Wo = H // 2, W // 2
        Hq, Wq = Ho + 1, Wo + 1
        Wrow = Wq
        phases = [xp[:, p::2, q::2, :].reshape(B, Hq * Wq, C)
                  for p in range(2) for q in range(2)]
        xf = jnp.stack(phases, axis=1)                               # (B, 4, Hq*Wq, C)
        taps = [(2 * (kh % 2) + (kw % 2), (kh // 2) * Wq + (kw // 2))
                for kh in range(3) for kw in range(3)]
    n_rows = Ho * Wrow
    need = n_rows + max(off for _, off in taps)
    if xf.shape[2] < need:                                           # keep tap windows in range
        xf = jnp.pad(xf, ((0, 0), (0, 0), (0, need - xf.shape[2]), (0, 0)))
    return xf, taps, Ho, Wo, Wrow, n_rows


def _valid_mask(n_rows, wrow, wo):
    r = np.arange(n_rows)
    return jnp.asarray(((r % wrow) < wo).astype(np.float32).reshape(n_rows, 1))


def _tap_weights(w, *, cin_total=None, cout_pad_to=None):
    """[Cout, Cin, 3, 3] torch layout -> [9, Cin(_padded), Cout(_padded)] bf16,
    tap-major (kh outer, kw inner) matching _phase_flat's tap ordering."""
    cout, cin = w.shape[0], w.shape[1]
    wt = jnp.transpose(w, (2, 3, 1, 0)).reshape(9, cin, cout)
    if cin_total is not None and cin_total > cin:
        wt = jnp.pad(wt, ((0, 0), (0, cin_total - cin), (0, 0)))
    if cout_pad_to is not None and cout_pad_to > cout:
        wt = jnp.pad(wt, ((0, 0), (0, 0), (0, cout_pad_to - cout)))
    return wt.astype(jnp.bfloat16)


def init_params(key, in_channels):
    """Deterministic synthetic weights (PyTorch conv weight shapes).  Block conv biases
    are omitted: InstanceNorm2d(affine=False) cancels a per-channel bias exactly; the
    final conv has bias=False in the reference."""
    chans = [(in_channels, 64), (64, 128), (128, 256), (256, 512)]
    params = {"blocks": []}
    for cin, cout in chans:
        key, kw = jax.random.split(key)
        w = jax.random.normal(kw, (cout, cin, 3, 3), jnp.float32) / jnp.sqrt(cin * 9)
        params["blocks"].append(w)
    key, kw = jax.random.split(key)
    params["final_w"] = jax.random.normal(kw, (1, 512, 3, 3), jnp.float32) / jnp.sqrt(512 * 9)
    return params


def simple_discriminator_forward(params, img_A, img_B):
    """img_A, img_B: NCHW float32. Returns NCHW float32 sigmoid probabilities."""
    x = jnp.concatenate([img_A, img_B], axis=1)                  # channel concat
    x = jnp.transpose(x, (0, 2, 3, 1)).astype(jnp.bfloat16)      # -> NHWC bf16
    # Pad the tiny input channel count to a multiple of 16 so the first block's per-tap
    # contraction is packing-friendly (zero channels contribute nothing).
    cin0_pad = (-x.shape[-1]) % 16
    if cin0_pad:
        x = jnp.pad(x, ((0, 0), (0, 0), (0, 0), (0, cin0_pad)))

    strides = (2, 2, 2, 1)   # three downsize blocks + one no-downsize block
    for w, stride in zip(params["blocks"], strides):
        B = x.shape[0]
        cout = w.shape[0]
        xf, taps, Ho, Wo, Wrow, n_rows = _phase_flat(x, stride)
        w_taps = _tap_weights(w, cin_total=x.shape[-1])
        mask = _valid_mask(n_rows, Wrow, Wo)
        y = _conv_inorm_lrelu(xf, w_taps, mask, taps=taps, n_rows=n_rows,
                              hw_valid=Ho * Wo)                  # (B, n_rows, cout) bf16
        x = y.reshape(B, Ho, Wrow, cout)[:, :, :Wo, :]           # drop junk columns

    # Final bias-free 3x3 conv + Sigmoid, Cout zero-padded to 128 lanes.
    B = x.shape[0]
    xf, taps, Ho, Wo, Wrow, n_rows = _phase_flat(x, 1)
    wf = _tap_weights(params["final_w"], cout_pad_to=128)        # (9, 512, 128) bf16
    y = _final_conv_sigmoid(xf, wf, taps=taps, n_rows=n_rows)    # (B, n_rows, 128) f32
    y = y.reshape(B, Ho, Wrow, 128)[:, :, :Wo, :1]               # (B, Ho, Wo, 1)
    return jnp.transpose(y, (0, 3, 1, 2))                        # -> NCHW


# --------------------------------- main --------------------------------------

if __name__ == "__main__":
    # forward() concatenates img_A and img_B on the channel axis, so the module's
    # in_channels equals C_A + C_B.  Use 2+2 channels at 16x16 spatial, batch 2.
    key = jax.random.PRNGKey(0)
    k_a, k_b, k_p = jax.random.split(key, 3)

    B, C_half, H, W = 2, 2, 16, 16
    img_A = jax.random.normal(k_a, (B, C_half, H, W), jnp.float32)
    img_B = jax.random.normal(k_b, (B, C_half, H, W), jnp.float32)

    params = init_params(k_p, in_channels=2 * C_half)

    fwd = jax.jit(simple_discriminator_forward)
    out = jax.block_until_ready(fwd(params, img_A, img_B))

    assert out.shape == (B, 1, H // 8, W // 8), out.shape
    assert bool(jnp.all(jnp.isfinite(out)))
    assert bool(jnp.all((out >= 0.0) & (out <= 1.0)))
    print("KERNEL_OK")
</pallas_src>

<mosaic_0001>
module attributes {stable_mosaic.version = 11 : i64} {
  func.func @_block_kernel(%arg0: i32, %arg1: i32, %arg2: memref<1x4x82x16xbf16, #tpu.memory_space<vmem>>, %arg3: memref<9x16x64xbf16, #tpu.memory_space<vmem>>, %arg4: memref<72x1xf32, #tpu.memory_space<vmem>>, %arg5: memref<1x72x64xbf16, #tpu.memory_space<vmem>>, %arg6: memref<72x64xf32, #tpu.memory_space<vmem>>) attributes {dimension_semantics = [#tpu.dimension_semantics<parallel>, #tpu.dimension_semantics<parallel>], iteration_bounds = array<i64: 2, 1>, scalar_prefetch = 0 : i64, scratch_operands = 1 : i64, tpu.core_type = #tpu.core_type<tc>, window_params = [{transform_indices = @transform_0, window_bounds = array<i64: 1, 4, 82, 16>}, {transform_indices = @transform_1, window_bounds = array<i64: 9, 16, 64>}, {pipeline_mode = #tpu.pipeline_mode<synchronous>, transform_indices = @transform_2, window_bounds = array<i64: 72, 1>}, {transform_indices = @transform_3, window_bounds = array<i64: 1, 72, 64>}]} {
    %c0 = arith.constant 0 : index
    %c0_0 = arith.constant 0 : index
    %c0_1 = arith.constant 0 : index
    %c0_2 = arith.constant 0 : index
    %0 = vector.load %arg2[%c0, %c0_0, %c0_1, %c0_2] : memref<1x4x82x16xbf16, #tpu.memory_space<vmem>>, vector<1x1x72x16xbf16>
    %1 = vector.shape_cast %0 : vector<1x1x72x16xbf16> to vector<72x16xbf16>
    %c0_3 = arith.constant 0 : index
    %c0_4 = arith.constant 0 : index
    %c0_5 = arith.constant 0 : index
    %2 = vector.load %arg3[%c0_3, %c0_4, %c0_5] : memref<9x16x64xbf16, #tpu.memory_space<vmem>>, vector<1x16x64xbf16>
    %3 = vector.shape_cast %2 : vector<1x16x64xbf16> to vector<16x64xbf16>
    %cst = arith.constant dense<0.000000e+00> : vector<72x64xf32>
    %4 = tpu.matmul %1, %3, %cst {dimension_numbers = #tpu.dot_dimension_numbers<[1], [0], [0], [1], [0, 0, 1, 1], [], []>} : vector<72x16xbf16>, vector<16x64xbf16>, vector<72x64xf32> -> vector<72x64xf32>
    %c0_6 = arith.constant 0 : index
    %c0_7 = arith.constant 0 : index
    %5 = vector.load %arg6[%c0_6, %c0_7] : memref<72x64xf32, #tpu.memory_space<vmem>>, vector<72x64xf32>
    tpu.vector_store %arg6[%c0_6, %c0_7], %4 {strides = array<i32>} : memref<72x64xf32, #tpu.memory_space<vmem>>, vector<72x64xf32>,
    %c0_8 = arith.constant 0 : index
    %c1 = arith.constant 1 : index
    %c0_9 = arith.constant 0 : index
    %c0_10 = arith.constant 0 : index
    %6 = vector.load %arg2[%c0_8, %c1, %c0_9, %c0_10] : memref<1x4x82x16xbf16, #tpu.memory_space<vmem>>, vector<1x1x72x16xbf16>
    %7 = vector.shape_cast %6 : vector<1x1x72x16xbf16> to vector<72x16xbf16>
    %c0_11 = arith.constant 0 : index
    %c0_12 = arith.constant 0 : index
    %8 = vector.load %arg6[%c0_11, %c0_12] : memref<72x64xf32, #tpu.memory_space<vmem>>, vector<72x64xf32>
    %c1_13 = arith.constant 1 : index
    %c0_14 = arith.constant 0 : index
    %c0_15 = arith.constant 0 : index
    %9 = vector.load %arg3[%c1_13, %c0_14, %c0_15] : memref<9x16x64xbf16, #tpu.memory_space<vmem>>, vector<1x16x64xbf16>
    %10 = vector.shape_cast %9 : vector<1x16x64xbf16> to vector<16x64xbf16>
    %cst_16 = arith.constant dense<0.000000e+00> : vector<72x64xf32>
    %11 = tpu.matmul %7, %10, %cst_16 {dimension_numbers = #tpu.dot_dimension_numbers<[1], [0], [0], [1], [0, 0, 1, 1], [], []>} : vector<72x16xbf16>, vector<16x64xbf16>, vector<72x64xf32> -> vector<72x64xf32>
    %12 = arith.addf %8, %11 : vector<72x64xf32>
    %c0_17 = arith.constant 0 : index
    %c0_18 = arith.constant 0 : index
    %13 = vector.load %arg6[%c0_17, %c0_18] : memref<72x64xf32, #tpu.memory_space<vmem>>, vector<72x64xf32>
    tpu.vector_store %arg6[%c0_17, %c0_18], %12 {strides = array<i32>} : memref<72x64xf32, #tpu.memory_space<vmem>>, vector<72x64xf32>,
    %c0_19 = arith.constant 0 : index
    %c0_20 = arith.constant 0 : index
    %c1_21 = arith.constant 1 : index
    %c0_22 = arith.constant 0 : index
    %14 = vector.load %arg2[%c0_19, %c0_20, %c1_21, %c0_22] : memref<1x4x82x16xbf16, #tpu.memory_space<vmem>>, vector<1x1x72x16xbf16>
    %15 = vector.shape_cast %14 : vector<1x1x72x16xbf16> to vector<72x16xbf16>
    %c0_23 = arith.constant 0 : index
    %c0_24 = arith.constant 0 : index
    %16 = vector.load %arg6[%c0_23, %c0_24] : memref<72x64xf32, #tpu.memory_space<vmem>>, vector<72x64xf32>
    %c2 = arith.constant 2 : index
    %c0_25 = arith.constant 0 : index
    %c0_26 = arith.constant 0 : index
    %17 = vector.load %arg3[%c2, %c0_25, %c0_26] : memref<9x16x64xbf16, #tpu.memory_space<vmem>>, vector<1x16x64xbf16>
    %18 = vector.shape_cast %17 : vector<1x16x64xbf16> to vector<16x64xbf16>
    %cst_27 = arith.constant dense<0.000000e+00> : vector<72x64xf32>
    %19 = tpu.matmul %15, %18, %cst_27 {dimension_numbers = #tpu.dot_dimension_numbers<[1], [0], [0], [1], [0, 0, 1, 1], [], []>} : vector<72x16xbf16>, vector<16x64xbf16>, vector<72x64xf32> -> vector<72x64xf32>
    %20 = arith.addf %16, %19 : vector<72x64xf32>
    %c0_28 = arith.constant 0 : index
    %c0_29 = arith.constant 0 : index
    %21 = vector.load %arg6[%c0_28, %c0_29] : memref<72x64xf32, #tpu.memory_space<vmem>>, vector<72x64xf32>
    tpu.vector_store %arg6[%c0_28, %c0_29], %20 {strides = array<i32>} : memref<72x64xf32, #tpu.memory_space<vmem>>, vector<72x64xf32>,
    %c0_30 = arith.constant 0 : index
    %c2_31 = arith.constant 2 : index
    %c0_32 = arith.constant 0 : index
    %c0_33 = arith.constant 0 : index
    %22 = vector.load %arg2[%c0_30, %c2_31, %c0_32, %c0_33] : memref<1x4x82x16xbf16, #tpu.memory_space<vmem>>, vector<1x1x72x16xbf16>
    %23 = vector.shape_cast %22 : vector<1x1x72x16xbf16> to vector<72x16xbf16>
    %c0_34 = arith.constant 0 : index
    %c0_35 = arith.constant 0 : index
    %24 = vector.load %arg6[%c0_34, %c0_35] : memref<72x64xf32, #tpu.memory_space<vmem>>, vector<72x64xf32>
    %c3 = arith.constant 3 : index
    %c0_36 = arith.constant 0 : index
    %c0_37 = arith.constant 0 : index
    %25 = vector.load %arg3[%c3, %c0_36, %c0_37] : memref<9x16x64xbf16, #tpu.memory_space<vmem>>, vector<1x16x64xbf16>
    %26 = vector.shape_cast %25 : vector<1x16x64xbf16> to vector<16x64xbf16>
    %cst_38 = arith.constant dense<0.000000e+00> : vector<72x64xf32>
    %27 = tpu.matmul %23, %26, %cst_38 {dimension_numbers = #tpu.dot_dimension_numbers<[1], [0], [0], [1], [0, 0, 1, 1], [], []>} : vector<72x16xbf16>, vector<16x64xbf16>, vector<72x64xf32> -> vector<72x64xf32>
    %28 = arith.addf %24, %27 : vector<72x64xf32>
    %c0_39 = arith.constant 0 : index
    %c0_40 = arith.constant 0 : index
    %29 = vector.load %arg6[%c0_39, %c0_40] : memref<72x64xf32, #tpu.memory_space<vmem>>, vector<72x64xf32>
    tpu.vector_store %arg6[%c0_39, %c0_40], %28 {strides = array<i32>} : memref<72x64xf32, #tpu.memory_space<vmem>>, vector<72x64xf32>,
    %c0_41 = arith.constant 0 : index
    %c3_42 = arith.constant 3 : index
    %c0_43 = arith.constant 0 : index
    %c0_44 = arith.constant 0 : index
    %30 = vector.load %arg2[%c0_41, %c3_42, %c0_43, %c0_44] : memref<1x4x82x16xbf16, #tpu.memory_space<vmem>>, vector<1x1x72x16xbf16>
    %31 = vector.shape_cast %30 : vector<1x1x72x16xbf16> to vector<72x16xbf16>
    %c0_45 = arith.constant 0 : index
    %c0_46 = arith.constant 0 : index
    %32 = vector.load %arg6[%c0_45, %c0_46] : memref<72x64xf32, #tpu.memory_space<vmem>>, vector<72x64xf32>
    %c4 = arith.constant 4 : index
    %c0_47 = arith.constant 0 : index
    %c0_48 = arith.constant 0 : index
    %33 = vector.load %arg3[%c4, %c0_47, %c0_48] : memref<9x16x64xbf16, #tpu.memory_space<vmem>>, vector<1x16x64xbf16>
    %34 = vector.shape_cast %33 : vector<1x16x64xbf16> to vector<16x64xbf16>
    %cst_49 = arith.constant dense<0.000000e+00> : vector<72x64xf32>
    %35 = tpu.matmul %31, %34, %cst_49 {dimension_numbers = #tpu.dot_dimension_numbers<[1], [0], [0], [1], [0, 0, 1, 1], [], []>} : vector<72x16xbf16>, vector<16x64xbf16>, vector<72x64xf32> -> vector<72x64xf32>
    %36 = arith.addf %32, %35 : vector<72x64xf32>
    %c0_50 = arith.constant 0 : index
    %c0_51 = arith.constant 0 : index
    %37 = vector.load %arg6[%c0_50, %c0_51] : memref<72x64xf32, #tpu.memory_space<vmem>>, vector<72x64xf32>
    tpu.vector_store %arg6[%c0_50, %c0_51], %36 {strides = array<i32>} : memref<72x64xf32, #tpu.memory_space<vmem>>, vector<72x64xf32>,
    %c0_52 = arith.constant 0 : index
    %c2_53 = arith.constant 2 : index
    %c1_54 = arith.constant 1 : index
    %c0_55 = arith.constant 0 : index
    %38 = vector.load %arg2[%c0_52, %c2_53, %c1_54, %c0_55] : memref<1x4x82x16xbf16, #tpu.memory_space<vmem>>, vector<1x1x72x16xbf16>
    %39 = vector.shape_cast %38 : vector<1x1x72x16xbf16> to vector<72x16xbf16>
    %c0_56 = arith.constant 0 : index
    %c0_57 = arith.constant 0 : index
    %40 = vector.load %arg6[%c0_56, %c0_57] : memref<72x64xf32, #tpu.memory_space<vmem>>, vector<72x64xf32>
    %c5 = arith.constant 5 : index
    %c0_58 = arith.constant 0 : index
    %c0_59 = arith.constant 0 : index
    %41 = vector.load %arg3[%c5, %c0_58, %c0_59] : memref<9x16x64xbf16, #tpu.memory_space<vmem>>, vector<1x16x64xbf16>
    %42 = vector.shape_cast %41 : vector<1x16x64xbf16> to vector<16x64xbf16>
    %cst_60 = arith.constant dense<0.000000e+00> : vector<72x64xf32>
    %43 = tpu.matmul %39, %42, %cst_60 {dimension_numbers = #tpu.dot_dimension_numbers<[1], [0], [0], [1], [0, 0, 1, 1], [], []>} : vector<72x16xbf16>, vector<16x64xbf16>, vector<72x64xf32> -> vector<72x64xf32>
    %44 = arith.addf %40, %43 : vector<72x64xf32>
    %c0_61 = arith.constant 0 : index
    %c0_62 = arith.constant 0 : index
    %45 = vector.load %arg6[%c0_61, %c0_62] : memref<72x64xf32, #tpu.memory_space<vmem>>, vector<72x64xf32>
    tpu.vector_store %arg6[%c0_61, %c0_62], %44 {strides = array<i32>} : memref<72x64xf32, #tpu.memory_space<vmem>>, vector<72x64xf32>,
    %c0_63 = arith.constant 0 : index
    %c0_64 = arith.constant 0 : index
    %c9 = arith.constant 9 : index
    %c0_65 = arith.constant 0 : index
    %46 = vector.load %arg2[%c0_63, %c0_64, %c9, %c0_65] : memref<1x4x82x16xbf16, #tpu.memory_space<vmem>>, vector<1x1x72x16xbf16>
    %47 = vector.shape_cast %46 : vector<1x1x72x16xbf16> to vector<72x16xbf16>
    %c0_66 = arith.constant 0 : index
    %c0_67 = arith.constant 0 : index
    %48 = vector.load %arg6[%c0_66, %c0_67] : memref<72x64xf32, #tpu.memory_space<vmem>>, vector<72x64xf32>
    %c6 = arith.constant 6 : index
    %c0_68 = arith.constant 0 : index
    %c0_69 = arith.constant 0 : index
    %49 = vector.load %arg3[%c6, %c0_68, %c0_69] : memref<9x16x64xbf16, #tpu.memory_space<vmem>>, vector<1x16x64xbf16>
    %50 = vector.shape_cast %49 : vector<1x16x64xbf16> to vector<16x64xbf16>
    %cst_70 = arith.constant dense<0.000000e+00> : vector<72x64xf32>
    %51 = tpu.matmul %47, %50, %cst_70 {dimension_numbers = #tpu.dot_dimension_numbers<[1], [0], [0], [1], [0, 0, 1, 1], [], []>} : vector<72x16xbf16>, vector<16x64xbf16>, vector<72x64xf32> -> vector<72x64xf32>
    %52 = arith.addf %48, %51 : vector<72x64xf32>
    %c0_71 = arith.constant 0 : index
    %c0_72 = arith.constant 0 : index
    %53 = vector.load %arg6[%c0_71, %c0_72] : memref<72x64xf32, #tpu.memory_space<vmem>>, vector<72x64xf32>
    tpu.vector_store %arg6[%c0_71, %c0_72], %52 {strides = array<i32>} : memref<72x64xf32, #tpu.memory_space<vmem>>, vector<72x64xf32>,
    %c0_73 = arith.constant 0 : index
    %c1_74 = arith.constant 1 : index
    %c9_75 = arith.constant 9 : index
    %c0_76 = arith.constant 0 : index
    %54 = vector.load %arg2[%c0_73, %c1_74, %c9_75, %c0_76] : memref<1x4x82x16xbf16, #tpu.memory_space<vmem>>, vector<1x1x72x16xbf16>
    %55 = vector.shape_cast %54 : vector<1x1x72x16xbf16> to vector<72x16xbf16>
    %c0_77 = arith.constant 0 : index
    %c0_78 = arith.constant 0 : index
    %56 = vector.load %arg6[%c0_77, %c0_78] : memref<72x64xf32, #tpu.memory_space<vmem>>, vector<72x64xf32>
    %c7 = arith.constant 7 : index
    %c0_79 = arith.constant 0 : index
    %c0_80 = arith.constant 0 : index
    %57 = vector.load %arg3[%c7, %c0_79, %c0_80] : memref<9x16x64xbf16, #tpu.memory_space<vmem>>, vector<1x16x64xbf16>
    %58 = vector.shape_cast %57 : vector<1x16x64xbf16> to vector<16x64xbf16>
    %cst_81 = arith.constant dense<0.000000e+00> : vector<72x64xf32>
    %59 = tpu.matmul %55, %58, %cst_81 {dimension_numbers = #tpu.dot_dimension_numbers<[1], [0], [0], [1], [0, 0, 1, 1], [], []>} : vector<72x16xbf16>, vector<16x64xbf16>, vector<72x64xf32> -> vector<72x64xf32>
    %60 = arith.addf %56, %59 : vector<72x64xf32>
    %c0_82 = arith.constant 0 : index
    %c0_83 = arith.constant 0 : index
    %61 = vector.load %arg6[%c0_82, %c0_83] : memref<72x64xf32, #tpu.memory_space<vmem>>, vector<72x64xf32>
    tpu.vector_store %arg6[%c0_82, %c0_83], %60 {strides = array<i32>} : memref<72x64xf32, #tpu.memory_space<vmem>>, vector<72x64xf32>,
    %c0_84 = arith.constant 0 : index
    %c0_85 = arith.constant 0 : index
    %c10 = arith.constant 10 : index
    %c0_86 = arith.constant 0 : index
    %62 = vector.load %arg2[%c0_84, %c0_85, %c10, %c0_86] : memref<1x4x82x16xbf16, #tpu.memory_space<vmem>>, vector<1x1x72x16xbf16>
    %63 = vector.shape_cast %62 : vector<1x1x72x16xbf16> to vector<72x16xbf16>
    %c0_87 = arith.constant 0 : index
    %c0_88 = arith.constant 0 : index
    %64 = vector.load %arg6[%c0_87, %c0_88] : memref<72x64xf32, #tpu.memory_space<vmem>>, vector<72x64xf32>
    %c8 = arith.constant 8 : index
    %c0_89 = arith.constant 0 : index
    %c0_90 = arith.constant 0 : index
    %65 = vector.load %arg3[%c8, %c0_89, %c0_90] : memref<9x16x64xbf16, #tpu.memory_space<vmem>>, vector<1x16x64xbf16>
    %66 = vector.shape_cast %65 : vector<1x16x64xbf16> to vector<16x64xbf16>
    %cst_91 = arith.constant dense<0.000000e+00> : vector<72x64xf32>
    %67 = tpu.matmul %63, %66, %cst_91 {dimension_numbers = #tpu.dot_dimension_numbers<[1], [0], [0], [1], [0, 0, 1, 1], [], []>} : vector<72x16xbf16>, vector<16x64xbf16>, vector<72x64xf32> -> vector<72x64xf32>
    %68 = arith.addf %64, %67 : vector<72x64xf32>
    %c0_92 = arith.constant 0 : index
    %c0_93 = arith.constant 0 : index
    %69 = vector.load %arg6[%c0_92, %c0_93] : memref<72x64xf32, #tpu.memory_space<vmem>>, vector<72x64xf32>
    tpu.vector_store %arg6[%c0_92, %c0_93], %68 {strides = array<i32>} : memref<72x64xf32, #tpu.memory_space<vmem>>, vector<72x64xf32>,
    %c0_94 = arith.constant 0 : index
    %c0_95 = arith.constant 0 : index
    %70 = vector.load %arg6[%c0_94, %c0_95] : memref<72x64xf32, #tpu.memory_space<vmem>>, vector<72x64xf32>
    %c0_96 = arith.constant 0 : index
    %c0_97 = arith.constant 0 : index
    %71 = vector.load %arg4[%c0_96, %c0_97] : memref<72x1xf32, #tpu.memory_space<vmem>>, vector<72x1xf32>
    %72 = vector.broadcast %71 : vector<72x1xf32> to vector<72x64xf32>
    %73 = arith.mulf %70, %72 : vector<72x64xf32>
    %cst_98 = arith.constant dense<0.000000e+00> : vector<64xf32>
    %74 = vector.multi_reduction <add>, %73, %cst_98 [0] : vector<72x64xf32> to vector<64xf32>
    %75 = vector.shape_cast %74 : vector<64xf32> to vector<1x64xf32>
    %cst_99 = arith.constant 1.562500e-02 : f32
    %76 = vector.broadcast %cst_99 : f32 to vector<1x64xf32>
    %77 = arith.mulf %75, %76 : vector<1x64xf32>
    %78 = vector.broadcast %77 : vector<1x64xf32> to vector<72x64xf32>
    %79 = arith.subf %70, %78 : vector<72x64xf32>
    %80 = arith.mulf %79, %79 : vector<72x64xf32>
    %81 = vector.broadcast %71 : vector<72x1xf32> to vector<72x64xf32>
    %82 = arith.mulf %80, %81 : vector<72x64xf32>
    %cst_100 = arith.constant dense<0.000000e+00> : vector<64xf32>
    %83 = vector.multi_reduction <add>, %82, %cst_100 [0] : vector<72x64xf32> to vector<64xf32>
    %84 = vector.shape_cast %83 : vector<64xf32> to vector<1x64xf32>
    %cst_101 = arith.constant 1.562500e-02 : f32
    %85 = vector.broadcast %cst_101 : f32 to vector<1x64xf32>
    %86 = arith.mulf %84, %85 : vector<1x64xf32>
    %cst_102 = arith.constant 9.99999974E-6 : f32
    %87 = vector.broadcast %cst_102 : f32 to vector<1x64xf32>
    %88 = arith.addf %86, %87 : vector<1x64xf32>
    %89 = math.rsqrt %88 : vector<1x64xf32>
    %90 = vector.broadcast %89 : vector<1x64xf32> to vector<72x64xf32>
    %91 = arith.mulf %79, %90 : vector<72x64xf32>
    %cst_103 = arith.constant 0.000000e+00 : f32
    %92 = vector.broadcast %cst_103 : f32 to vector<72x64xf32>
    %93 = arith.cmpf oge, %91, %92 : vector<72x64xf32>
    %cst_104 = arith.constant 2.000000e-01 : f32
    %94 = vector.broadcast %cst_104 : f32 to vector<72x64xf32>
    %95 = arith.mulf %94, %91 : vector<72x64xf32>
    %96 = arith.select %93, %91, %95 : vector<72x64xi1>, vector<72x64xf32>
    %97 = vector.broadcast %71 : vector<72x1xf32> to vector<72x64xf32>
    %98 = arith.mulf %96, %97 : vector<72x64xf32>
    %99 = arith.truncf %98 : vector<72x64xf32> to vector<72x64xbf16>
    %c0_105 = arith.constant 0 : index
    %c0_106 = arith.constant 0 : index
    %c0_107 = arith.constant 0 : index
    %100 = vector.load %arg5[%c0_105, %c0_106, %c0_107] : memref<1x72x64xbf16, #tpu.memory_space<vmem>>, vector<1x72x64xbf16>
    %101 = vector.shape_cast %100 : vector<1x72x64xbf16> to vector<72x64xbf16>
    %102 = vector.shape_cast %99 : vector<72x64xbf16> to vector<1x72x64xbf16>
    tpu.vector_store %arg5[%c0_105, %c0_106, %c0_107], %102 {strides = array<i32>} : memref<1x72x64xbf16, #tpu.memory_space<vmem>>, vector<1x72x64xbf16>,
    return
  }
  func.func @transform_0(%arg0: i32, %arg1: i32) -> (i32, i32, i32, i32) {
    %c0_i32 = arith.constant 0 : i32
    %c0_i32_0 = arith.constant 0 : i32
    %c0_i32_1 = arith.constant 0 : i32
    %c0_i32_2 = arith.constant 0 : i32
    return %arg0, %c0_i32, %c0_i32_0, %c0_i32_1 : i32, i32, i32, i32
  }
  func.func @transform_1(%arg0: i32, %arg1: i32) -> (i32, i32, i32) {
    %c0_i32 = arith.constant 0 : i32
    %c0_i32_0 = arith.constant 0 : i32
    %c0_i32_1 = arith.constant 0 : i32
    return %c0_i32, %c0_i32_0, %arg1 : i32, i32, i32
  }
  func.func @transform_2(%arg0: i32, %arg1: i32) -> (i32, i32) {
    %c0_i32 = arith.constant 0 : i32
    %c0_i32_0 = arith.constant 0 : i32
    %c0_i32_1 = arith.constant 0 : i32
    return %c0_i32, %c0_i32_0 : i32, i32
  }
  func.func @transform_3(%arg0: i32, %arg1: i32) -> (i32, i32, i32) {
    %c0_i32 = arith.constant 0 : i32
    %c0_i32_0 = arith.constant 0 : i32
    return %arg0, %c0_i32, %arg1 : i32, i32, i32
  }
}

module attributes {stable_mosaic.version = 11 : i64} {
  func.func @_block_kernel(%arg0: i32, %arg1: i32, %arg2: memref<1x4x26x64xbf16, #tpu.memory_space<vmem>>, %arg3: memref<9x64x128xbf16, #tpu.memory_space<vmem>>, %arg4: memref<20x1xf32, #tpu.memory_space<vmem>>, %arg5: memref<1x20x128xbf16, #tpu.memory_space<vmem>>, %arg6: memref<20x128xf32, #tpu.memory_space<vmem>>) attributes {dimension_semantics = [#tpu.dimension_semantics<parallel>, #tpu.dimension_semantics<parallel>], iteration_bounds = array<i64: 2, 1>, scalar_prefetch = 0 : i64, scratch_operands = 1 : i64, tpu.core_type = #tpu.core_type<tc>, window_params = [{transform_indices = @transform_0, window_bounds = array<i64: 1, 4, 26, 64>}, {transform_indices = @transform_1, window_bounds = array<i64: 9, 64, 128>}, {pipeline_mode = #tpu.pipeline_mode<synchronous>, transform_indices = @transform_2, window_bounds = array<i64: 20, 1>}, {transform_indices = @transform_3, window_bounds = array<i64: 1, 20, 128>}]} {
    %c0 = arith.constant 0 : index
    %c0_0 = arith.constant 0 : index
    %c0_1 = arith.constant 0 : index
    %c0_2 = arith.constant 0 : index
    %0 = vector.load %arg2[%c0, %c0_0, %c0_1, %c0_2] : memref<1x4x26x64xbf16, #tpu.memory_space<vmem>>, vector<1x1x20x64xbf16>
    %1 = vector.shape_cast %0 : vector<1x1x20x64xbf16> to vector<20x64xbf16>
    %c0_3 = arith.constant 0 : index
    %c0_4 = arith.constant 0 : index
    %c0_5 = arith.constant 0 : index
    %2 = vector.load %arg3[%c0_3, %c0_4, %c0_5] : memref<9x64x128xbf16, #tpu.memory_space<vmem>>, vector<1x64x128xbf16>
    %3 = vector.shape_cast %2 : vector<1x64x128xbf16> to vector<64x128xbf16>
    %cst = arith.constant dense<0.000000e+00> : vector<20x128xf32>
    %4 = tpu.matmul %1, %3, %cst {dimension_numbers = #tpu.dot_dimension_numbers<[1], [0], [0], [1], [0, 0, 1, 1], [], []>} : vector<20x64xbf16>, vector<64x128xbf16>, vector<20x128xf32> -> vector<20x128xf32>
    %c0_6 = arith.constant 0 : index
    %c0_7 = arith.constant 0 : index
    %5 = vector.load %arg6[%c0_6, %c0_7] : memref<20x128xf32, #tpu.memory_space<vmem>>, vector<20x128xf32>
    tpu.vector_store %arg6[%c0_6, %c0_7], %4 {strides = array<i32>} : memref<20x128xf32, #tpu.memory_space<vmem>>, vector<20x128xf32>,
    %c0_8 = arith.constant 0 : index
    %c1 = arith.constant 1 : index
    %c0_9 = arith.constant 0 : index
    %c0_10 = arith.constant 0 : index
    %6 = vector.load %arg2[%c0_8, %c1, %c0_9, %c0_10] : memref<1x4x26x64xbf16, #tpu.memory_space<vmem>>, vector<1x1x20x64xbf16>
    %7 = vector.shape_cast %6 : vector<1x1x20x64xbf16> to vector<20x64xbf16>
    %c0_11 = arith.constant 0 : index
    %c0_12 = arith.constant 0 : index
    %8 = vector.load %arg6[%c0_11, %c0_12] : memref<20x128xf32, #tpu.memory_space<vmem>>, vector<20x128xf32>
    %c1_13 = arith.constant 1 : index
    %c0_14 = arith.constant 0 : index
    %c0_15 = arith.constant 0 : index
    %9 = vector.load %arg3[%c1_13, %c0_14, %c0_15] : memref<9x64x128xbf16, #tpu.memory_space<vmem>>, vector<1x64x128xbf16>
    %10 = vector.shape_cast %9 : vector<1x64x128xbf16> to vector<64x128xbf16>
    %cst_16 = arith.constant dense<0.000000e+00> : vector<20x128xf32>
    %11 = tpu.matmul %7, %10, %cst_16 {dimension_numbers = #tpu.dot_dimension_numbers<[1], [0], [0], [1], [0, 0, 1, 1], [], []>} : vector<20x64xbf16>, vector<64x128xbf16>, vector<20x128xf32> -> vector<20x128xf32>
    %12 = arith.addf %8, %11 : vector<20x128xf32>
    %c0_17 = arith.constant 0 : index
    %c0_18 = arith.constant 0 : index
    %13 = vector.load %arg6[%c0_17, %c0_18] : memref<20x128xf32, #tpu.memory_space<vmem>>, vector<20x128xf32>
    tpu.vector_store %arg6[%c0_17, %c0_18], %12 {strides = array<i32>} : memref<20x128xf32, #tpu.memory_space<vmem>>, vector<20x128xf32>,
    %c0_19 = arith.constant 0 : index
    %c0_20 = arith.constant 0 : index
    %c1_21 = arith.constant 1 : index
    %c0_22 = arith.constant 0 : index
    %14 = vector.load %arg2[%c0_19, %c0_20, %c1_21, %c0_22] : memref<1x4x26x64xbf16, #tpu.memory_space<vmem>>, vector<1x1x20x64xbf16>
    %15 = vector.shape_cast %14 : vector<1x1x20x64xbf16> to vector<20x64xbf16>
    %c0_23 = arith.constant 0 : index
    %c0_24 = arith.constant 0 : index
    %16 = vector.load %arg6[%c0_23, %c0_24] : memref<20x128xf32, #tpu.memory_space<vmem>>, vector<20x128xf32>
    %c2 = arith.constant 2 : index
    %c0_25 = arith.constant 0 : index
    %c0_26 = arith.constant 0 : index
    %17 = vector.load %arg3[%c2, %c0_25, %c0_26] : memref<9x64x128xbf16, #tpu.memory_space<vmem>>, vector<1x64x128xbf16>
    %18 = vector.shape_cast %17 : vector<1x64x128xbf16> to vector<64x128xbf16>
    %cst_27 = arith.constant dense<0.000000e+00> : vector<20x128xf32>
    %19 = tpu.matmul %15, %18, %cst_27 {dimension_numbers = #tpu.dot_dimension_numbers<[1], [0], [0], [1], [0, 0, 1, 1], [], []>} : vector<20x64xbf16>, vector<64x128xbf16>, vector<20x128xf32> -> vector<20x128xf32>
    %20 = arith.addf %16, %19 : vector<20x128xf32>
    %c0_28 = arith.constant 0 : index
    %c0_29 = arith.constant 0 : index
    %21 = vector.load %arg6[%c0_28, %c0_29] : memref<20x128xf32, #tpu.memory_space<vmem>>, vector<20x128xf32>
    tpu.vector_store %arg6[%c0_28, %c0_29], %20 {strides = array<i32>} : memref<20x128xf32, #tpu.memory_space<vmem>>, vector<20x128xf32>,
    %c0_30 = arith.constant 0 : index
    %c2_31 = arith.constant 2 : index
    %c0_32 = arith.constant 0 : index
    %c0_33 = arith.constant 0 : index
    %22 = vector.load %arg2[%c0_30, %c2_31, %c0_32, %c0_33] : memref<1x4x26x64xbf16, #tpu.memory_space<vmem>>, vector<1x1x20x64xbf16>
    %23 = vector.shape_cast %22 : vector<1x1x20x64xbf16> to vector<20x64xbf16>
    %c0_34 = arith.constant 0 : index
    %c0_35 = arith.constant 0 : index
    %24 = vector.load %arg6[%c0_34, %c0_35] : memref<20x128xf32, #tpu.memory_space<vmem>>, vector<20x128xf32>
    %c3 = arith.constant 3 : index
    %c0_36 = arith.constant 0 : index
    %c0_37 = arith.constant 0 : index
    %25 = vector.load %arg3[%c3, %c0_36, %c0_37] : memref<9x64x128xbf16, #tpu.memory_space<vmem>>, vector<1x64x128xbf16>
    %26 = vector.shape_cast %25 : vector<1x64x128xbf16> to vector<64x128xbf16>
    %cst_38 = arith.constant dense<0.000000e+00> : vector<20x128xf32>
    %27 = tpu.matmul %23, %26, %cst_38 {dimension_numbers = #tpu.dot_dimension_numbers<[1], [0], [0], [1], [0, 0, 1, 1], [], []>} : vector<20x64xbf16>, vector<64x128xbf16>, vector<20x128xf32> -> vector<20x128xf32>
    %28 = arith.addf %24, %27 : vector<20x128xf32>
    %c0_39 = arith.constant 0 : index
    %c0_40 = arith.constant 0 : index
    %29 = vector.load %arg6[%c0_39, %c0_40] : memref<20x128xf32, #tpu.memory_space<vmem>>, vector<20x128xf32>
    tpu.vector_store %arg6[%c0_39, %c0_40], %28 {strides = array<i32>} : memref<20x128xf32, #tpu.memory_space<vmem>>, vector<20x128xf32>,
    %c0_41 = arith.constant 0 : index
    %c3_42 = arith.constant 3 : index
    %c0_43 = arith.constant 0 : index
    %c0_44 = arith.constant 0 : index
    %30 = vector.load %arg2[%c0_41, %c3_42, %c0_43, %c0_44] : memref<1x4x26x64xbf16, #tpu.memory_space<vmem>>, vector<1x1x20x64xbf16>
    %31 = vector.shape_cast %30 : vector<1x1x20x64xbf16> to vector<20x64xbf16>
    %c0_45 = arith.constant 0 : index
    %c0_46 = arith.constant 0 : index
    %32 = vector.load %arg6[%c0_45, %c0_46] : memref<20x128xf32, #tpu.memory_space<vmem>>, vector<20x128xf32>
    %c4 = arith.constant 4 : index
    %c0_47 = arith.constant 0 : index
    %c0_48 = arith.constant 0 : index
    %33 = vector.load %arg3[%c4, %c0_47, %c0_48] : memref<9x64x128xbf16, #tpu.memory_space<vmem>>, vector<1x64x128xbf16>
    %34 = vector.shape_cast %33 : vector<1x64x128xbf16> to vector<64x128xbf16>
    %cst_49 = arith.constant dense<0.000000e+00> : vector<20x128xf32>
    %35 = tpu.matmul %31, %34, %cst_49 {dimension_numbers = #tpu.dot_dimension_numbers<[1], [0], [0], [1], [0, 0, 1, 1], [], []>} : vector<20x64xbf16>, vector<64x128xbf16>, vector<20x128xf32> -> vector<20x128xf32>
    %36 = arith.addf %32, %35 : vector<20x128xf32>
    %c0_50 = arith.constant 0 : index
    %c0_51 = arith.constant 0 : index
    %37 = vector.load %arg6[%c0_50, %c0_51] : memref<20x128xf32, #tpu.memory_space<vmem>>, vector<20x128xf32>
    tpu.vector_store %arg6[%c0_50, %c0_51], %36 {strides = array<i32>} : memref<20x128xf32, #tpu.memory_space<vmem>>, vector<20x128xf32>,
    %c0_52 = arith.constant 0 : index
    %c2_53 = arith.constant 2 : index
    %c1_54 = arith.constant 1 : index
    %c0_55 = arith.constant 0 : index
    %38 = vector.load %arg2[%c0_52, %c2_53, %c1_54, %c0_55] : memref<1x4x26x64xbf16, #tpu.memory_space<vmem>>, vector<1x1x20x64xbf16>
    %39 = vector.shape_cast %38 : vector<1x1x20x64xbf16> to vector<20x64xbf16>
    %c0_56 = arith.constant 0 : index
    %c0_57 = arith.constant 0 : index
    %40 = vector.load %arg6[%c0_56, %c0_57] : memref<20x128xf32, #tpu.memory_space<vmem>>, vector<20x128xf32>
    %c5 = arith.constant 5 : index
    %c0_58 = arith.constant 0 : index
    %c0_59 = arith.constant 0 : index
    %41 = vector.load %arg3[%c5, %c0_58, %c0_59] : memref<9x64x128xbf16, #tpu.memory_space<vmem>>, vector<1x64x128xbf16>
    %42 = vector.shape_cast %41 : vector<1x64x128xbf16> to vector<64x128xbf16>
    %cst_60 = arith.constant dense<0.000000e+00> : vector<20x128xf32>
    %43 = tpu.matmul %39, %42, %cst_60 {dimension_numbers = #tpu.dot_dimension_numbers<[1], [0], [0], [1], [0, 0, 1, 1], [], []>} : vector<20x64xbf16>, vector<64x128xbf16>, vector<20x128xf32> -> vector<20x128xf32>
    %44 = arith.addf %40, %43 : vector<20x128xf32>
    %c0_61 = arith.constant 0 : index
    %c0_62 = arith.constant 0 : index
    %45 = vector.load %arg6[%c0_61, %c0_62] : memref<20x128xf32, #tpu.memory_space<vmem>>, vector<20x128xf32>
    tpu.vector_store %arg6[%c0_61, %c0_62], %44 {strides = array<i32>} : memref<20x128xf32, #tpu.memory_space<vmem>>, vector<20x128xf32>,
    %c0_63 = arith.constant 0 : index
    %c0_64 = arith.constant 0 : index
    %c5_65 = arith.constant 5 : index
    %c0_66 = arith.constant 0 : index
    %46 = vector.load %arg2[%c0_63, %c0_64, %c5_65, %c0_66] : memref<1x4x26x64xbf16, #tpu.memory_space<vmem>>, vector<1x1x20x64xbf16>
    %47 = vector.shape_cast %46 : vector<1x1x20x64xbf16> to vector<20x64xbf16>
    %c0_67 = arith.constant 0 : index
    %c0_68 = arith.constant 0 : index
    %48 = vector.load %arg6[%c0_67, %c0_68] : memref<20x128xf32, #tpu.memory_space<vmem>>, vector<20x128xf32>
    %c6 = arith.constant 6 : index
    %c0_69 = arith.constant 0 : index
    %c0_70 = arith.constant 0 : index
    %49 = vector.load %arg3[%c6, %c0_69, %c0_70] : memref<9x64x128xbf16, #tpu.memory_space<vmem>>, vector<1x64x128xbf16>
    %50 = vector.shape_cast %49 : vector<1x64x128xbf16> to vector<64x128xbf16>
    %cst_71 = arith.constant dense<0.000000e+00> : vector<20x128xf32>
    %51 = tpu.matmul %47, %50, %cst_71 {dimension_numbers = #tpu.dot_dimension_numbers<[1], [0], [0], [1], [0, 0, 1, 1], [], []>} : vector<20x64xbf16>, vector<64x128xbf16>, vector<20x128xf32> -> vector<20x128xf32>
    %52 = arith.addf %48, %51 : vector<20x128xf32>
    %c0_72 = arith.constant 0 : index
    %c0_73 = arith.constant 0 : index
    %53 = vector.load %arg6[%c0_72, %c0_73] : memref<20x128xf32, #tpu.memory_space<vmem>>, vector<20x128xf32>
    tpu.vector_store %arg6[%c0_72, %c0_73], %52 {strides = array<i32>} : memref<20x128xf32, #tpu.memory_space<vmem>>, vector<20x128xf32>,
    %c0_74 = arith.constant 0 : index
    %c1_75 = arith.constant 1 : index
    %c5_76 = arith.constant 5 : index
    %c0_77 = arith.constant 0 : index
    %54 = vector.load %arg2[%c0_74, %c1_75, %c5_76, %c0_77] : memref<1x4x26x64xbf16, #tpu.memory_space<vmem>>, vector<1x1x20x64xbf16>
    %55 = vector.shape_cast %54 : vector<1x1x20x64xbf16> to vector<20x64xbf16>
    %c0_78 = arith.constant 0 : index
    %c0_79 = arith.constant 0 : index
    %56 = vector.load %arg6[%c0_78, %c0_79] : memref<20x128xf32, #tpu.memory_space<vmem>>, vector<20x128xf32>
    %c7 = arith.constant 7 : index
    %c0_80 = arith.constant 0 : index
    %c0_81 = arith.constant 0 : index
    %57 = vector.load %arg3[%c7, %c0_80, %c0_81] : memref<9x64x128xbf16, #tpu.memory_space<vmem>>, vector<1x64x128xbf16>
    %58 = vector.shape_cast %57 : vector<1x64x128xbf16> to vector<64x128xbf16>
    %cst_82 = arith.constant dense<0.000000e+00> : vector<20x128xf32>
    %59 = tpu.matmul %55, %58, %cst_82 {dimension_numbers = #tpu.dot_dimension_numbers<[1], [0], [0], [1], [0, 0, 1, 1], [], []>} : vector<20x64xbf16>, vector<64x128xbf16>, vector<20x128xf32> -> vector<20x128xf32>
    %60 = arith.addf %56, %59 : vector<20x128xf32>
    %c0_83 = arith.constant 0 : index
    %c0_84 = arith.constant 0 : index
    %61 = vector.load %arg6[%c0_83, %c0_84] : memref<20x128xf32, #tpu.memory_space<vmem>>, vector<20x128xf32>
    tpu.vector_store %arg6[%c0_83, %c0_84], %60 {strides = array<i32>} : memref<20x128xf32, #tpu.memory_space<vmem>>, vector<20x128xf32>,
    %c0_85 = arith.constant 0 : index
    %c0_86 = arith.constant 0 : index
    %c6_87 = arith.constant 6 : index
    %c0_88 = arith.constant 0 : index
    %62 = vector.load %arg2[%c0_85, %c0_86, %c6_87, %c0_88] : memref<1x4x26x64xbf16, #tpu.memory_space<vmem>>, vector<1x1x20x64xbf16>
    %63 = vector.shape_cast %62 : vector<1x1x20x64xbf16> to vector<20x64xbf16>
    %c0_89 = arith.constant 0 : index
    %c0_90 = arith.constant 0 : index
    %64 = vector.load %arg6[%c0_89, %c0_90] : memref<20x128xf32, #tpu.memory_space<vmem>>, vector<20x128xf32>
    %c8 = arith.constant 8 : index
    %c0_91 = arith.constant 0 : index
    %c0_92 = arith.constant 0 : index
    %65 = vector.load %arg3[%c8, %c0_91, %c0_92] : memref<9x64x128xbf16, #tpu.memory_space<vmem>>, vector<1x64x128xbf16>
    %66 = vector.shape_cast %65 : vector<1x64x128xbf16> to vector<64x128xbf16>
    %cst_93 = arith.constant dense<0.000000e+00> : vector<20x128xf32>
    %67 = tpu.matmul %63, %66, %cst_93 {dimension_numbers = #tpu.dot_dimension_numbers<[1], [0], [0], [1], [0, 0, 1, 1], [], []>} : vector<20x64xbf16>, vector<64x128xbf16>, vector<20x128xf32> -> vector<20x128xf32>
    %68 = arith.addf %64, %67 : vector<20x128xf32>
    %c0_94 = arith.constant 0 : index
    %c0_95 = arith.constant 0 : index
    %69 = vector.load %arg6[%c0_94, %c0_95] : memref<20x128xf32, #tpu.memory_space<vmem>>, vector<20x128xf32>
    tpu.vector_store %arg6[%c0_94, %c0_95], %68 {strides = array<i32>} : memref<20x128xf32, #tpu.memory_space<vmem>>, vector<20x128xf32>,
    %c0_96 = arith.constant 0 : index
    %c0_97 = arith.constant 0 : index
    %70 = vector.load %arg6[%c0_96, %c0_97] : memref<20x128xf32, #tpu.memory_space<vmem>>, vector<20x128xf32>
    %c0_98 = arith.constant 0 : index
    %c0_99 = arith.constant 0 : index
    %71 = vector.load %arg4[%c0_98, %c0_99] : memref<20x1xf32, #tpu.memory_space<vmem>>, vector<20x1xf32>
    %72 = vector.broadcast %71 : vector<20x1xf32> to vector<20x128xf32>
    %73 = arith.mulf %70, %72 : vector<20x128xf32>
    %cst_100 = arith.constant dense<0.000000e+00> : vector<128xf32>
    %74 = vector.multi_reduction <add>, %73, %cst_100 [0] : vector<20x128xf32> to vector<128xf32>
    %75 = vector.shape_cast %74 : vector<128xf32> to vector<1x128xf32>
    %cst_101 = arith.constant 6.250000e-02 : f32
    %76 = vector.broadcast %cst_101 : f32 to vector<1x128xf32>
    %77 = arith.mulf %75, %76 : vector<1x128xf32>
    %78 = vector.broadcast %77 : vector<1x128xf32> to vector<20x128xf32>
    %79 = arith.subf %70, %78 : vector<20x128xf32>
    %80 = arith.mulf %79, %79 : vector<20x128xf32>
    %81 = vector.broadcast %71 : vector<20x1xf32> to vector<20x128xf32>
    %82 = arith.mulf %80, %81 : vector<20x128xf32>
    %cst_102 = arith.constant dense<0.000000e+00> : vector<128xf32>
    %83 = vector.multi_reduction <add>, %82, %cst_102 [0] : vector<20x128xf32> to vector<128xf32>
    %84 = vector.shape_cast %83 : vector<128xf32> to vector<1x128xf32>
    %cst_103 = arith.constant 6.250000e-02 : f32
    %85 = vector.broadcast %cst_103 : f32 to vector<1x128xf32>
    %86 = arith.mulf %84, %85 : vector<1x128xf32>
    %cst_104 = arith.constant 9.99999974E-6 : f32
    %87 = vector.broadcast %cst_104 : f32 to vector<1x128xf32>
    %88 = arith.addf %86, %87 : vector<1x128xf32>
    %89 = math.rsqrt %88 : vector<1x128xf32>
    %90 = vector.broadcast %89 : vector<1x128xf32> to vector<20x128xf32>
    %91 = arith.mulf %79, %90 : vector<20x128xf32>
    %cst_105 = arith.constant 0.000000e+00 : f32
    %92 = vector.broadcast %cst_105 : f32 to vector<20x128xf32>
    %93 = arith.cmpf oge, %91, %92 : vector<20x128xf32>
    %cst_106 = arith.constant 2.000000e-01 : f32
    %94 = vector.broadcast %cst_106 : f32 to vector<20x128xf32>
    %95 = arith.mulf %94, %91 : vector<20x128xf32>
    %96 = arith.select %93, %91, %95 : vector<20x128xi1>, vector<20x128xf32>
    %97 = vector.broadcast %71 : vector<20x1xf32> to vector<20x128xf32>
    %98 = arith.mulf %96, %97 : vector<20x128xf32>
    %99 = arith.truncf %98 : vector<20x128xf32> to vector<20x128xbf16>
    %c0_107 = arith.constant 0 : index
    %c0_108 = arith.constant 0 : index
    %c0_109 = arith.constant 0 : index
    %100 = vector.load %arg5[%c0_107, %c0_108, %c0_109] : memref<1x20x128xbf16, #tpu.memory_space<vmem>>, vector<1x20x128xbf16>
    %101 = vector.shape_cast %100 : vector<1x20x128xbf16> to vector<20x128xbf16>
    %102 = vector.shape_cast %99 : vector<20x128xbf16> to vector<1x20x128xbf16>
    tpu.vector_store %arg5[%c0_107, %c0_108, %c0_109], %102 {strides = array<i32>} : memref<1x20x128xbf16, #tpu.memory_space<vmem>>, vector<1x20x128xbf16>,
    return
  }
  func.func @transform_0(%arg0: i32, %arg1: i32) -> (i32, i32, i32, i32) {
    %c0_i32 = arith.constant 0 : i32
    %c0_i32_0 = arith.constant 0 : i32
    %c0_i32_1 = arith.constant 0 : i32
    %c0_i32_2 = arith.constant 0 : i32
    return %arg0, %c0_i32, %c0_i32_0, %c0_i32_1 : i32, i32, i32, i32
  }
  func.func @transform_1(%arg0: i32, %arg1: i32) -> (i32, i32, i32) {
    %c0_i32 = arith.constant 0 : i32
    %c0_i32_0 = arith.constant 0 : i32
    %c0_i32_1 = arith.constant 0 : i32
    return %c0_i32, %c0_i32_0, %arg1 : i32, i32, i32
  }
  func.func @transform_2(%arg0: i32, %arg1: i32) -> (i32, i32) {
    %c0_i32 = arith.constant 0 : i32
    %c0_i32_0 = arith.constant 0 : i32
    %c0_i32_1 = arith.constant 0 : i32
    return %c0_i32, %c0_i32_0 : i32, i32
  }
  func.func @transform_3(%arg0: i32, %arg1: i32) -> (i32, i32, i32) {
    %c0_i32 = arith.constant 0 : i32
    %c0_i32_0 = arith.constant 0 : i32
    return %arg0, %c0_i32, %arg1 : i32, i32, i32
  }
}

module attributes {stable_mosaic.version = 11 : i64} {
  func.func @_block_kernel(%arg0: i32, %arg1: i32, %arg2: memref<1x4x10x128xbf16, #tpu.memory_space<vmem>>, %arg3: memref<9x128x256xbf16, #tpu.memory_space<vmem>>, %arg4: memref<6x1xf32, #tpu.memory_space<vmem>>, %arg5: memref<1x6x256xbf16, #tpu.memory_space<vmem>>, %arg6: memref<6x256xf32, #tpu.memory_space<vmem>>) attributes {dimension_semantics = [#tpu.dimension_semantics<parallel>, #tpu.dimension_semantics<parallel>], iteration_bounds = array<i64: 2, 1>, scalar_prefetch = 0 : i64, scratch_operands = 1 : i64, tpu.core_type = #tpu.core_type<tc>, window_params = [{transform_indices = @transform_0, window_bounds = array<i64: 1, 4, 10, 128>}, {transform_indices = @transform_1, window_bounds = array<i64: 9, 128, 256>}, {pipeline_mode = #tpu.pipeline_mode<synchronous>, transform_indices = @transform_2, window_bounds = array<i64: 6, 1>}, {transform_indices = @transform_3, window_bounds = array<i64: 1, 6, 256>}]} {
    %c0 = arith.constant 0 : index
    %c0_0 = arith.constant 0 : index
    %c0_1 = arith.constant 0 : index
    %c0_2 = arith.constant 0 : index
    %0 = vector.load %arg2[%c0, %c0_0, %c0_1, %c0_2] : memref<1x4x10x128xbf16, #tpu.memory_space<vmem>>, vector<1x1x6x128xbf16>
    %1 = vector.shape_cast %0 : vector<1x1x6x128xbf16> to vector<6x128xbf16>
    %c0_3 = arith.constant 0 : index
    %c0_4 = arith.constant 0 : index
    %c0_5 = arith.constant 0 : index
    %2 = vector.load %arg3[%c0_3, %c0_4, %c0_5] : memref<9x128x256xbf16, #tpu.memory_space<vmem>>, vector<1x128x256xbf16>
    %3 = vector.shape_cast %2 : vector<1x128x256xbf16> to vector<128x256xbf16>
    %cst = arith.constant dense<0.000000e+00> : vector<6x256xf32>
    %4 = tpu.matmul %1, %3, %cst {dimension_numbers = #tpu.dot_dimension_numbers<[1], [0], [0], [1], [0, 0, 1, 1], [], []>} : vector<6x128xbf16>, vector<128x256xbf16>, vector<6x256xf32> -> vector<6x256xf32>
    %c0_6 = arith.constant 0 : index
    %c0_7 = arith.constant 0 : index
    %5 = vector.load %arg6[%c0_6, %c0_7] : memref<6x256xf32, #tpu.memory_space<vmem>>, vector<6x256xf32>
    tpu.vector_store %arg6[%c0_6, %c0_7], %4 {strides = array<i32>} : memref<6x256xf32, #tpu.memory_space<vmem>>, vector<6x256xf32>,
    %c0_8 = arith.constant 0 : index
    %c1 = arith.constant 1 : index
    %c0_9 = arith.constant 0 : index
    %c0_10 = arith.constant 0 : index
    %6 = vector.load %arg2[%c0_8, %c1, %c0_9, %c0_10] : memref<1x4x10x128xbf16, #tpu.memory_space<vmem>>, vector<1x1x6x128xbf16>
    %7 = vector.shape_cast %6 : vector<1x1x6x128xbf16> to vector<6x128xbf16>
    %c0_11 = arith.constant 0 : index
    %c0_12 = arith.constant 0 : index
    %8 = vector.load %arg6[%c0_11, %c0_12] : memref<6x256xf32, #tpu.memory_space<vmem>>, vector<6x256xf32>
    %c1_13 = arith.constant 1 : index
    %c0_14 = arith.constant 0 : index
    %c0_15 = arith.constant 0 : index
    %9 = vector.load %arg3[%c1_13, %c0_14, %c0_15] : memref<9x128x256xbf16, #tpu.memory_space<vmem>>, vector<1x128x256xbf16>
    %10 = vector.shape_cast %9 : vector<1x128x256xbf16> to vector<128x256xbf16>
    %cst_16 = arith.constant dense<0.000000e+00> : vector<6x256xf32>
    %11 = tpu.matmul %7, %10, %cst_16 {dimension_numbers = #tpu.dot_dimension_numbers<[1], [0], [0], [1], [0, 0, 1, 1], [], []>} : vector<6x128xbf16>, vector<128x256xbf16>, vector<6x256xf32> -> vector<6x256xf32>
    %12 = arith.addf %8, %11 : vector<6x256xf32>
    %c0_17 = arith.constant 0 : index
    %c0_18 = arith.constant 0 : index
    %13 = vector.load %arg6[%c0_17, %c0_18] : memref<6x256xf32, #tpu.memory_space<vmem>>, vector<6x256xf32>
    tpu.vector_store %arg6[%c0_17, %c0_18], %12 {strides = array<i32>} : memref<6x256xf32, #tpu.memory_space<vmem>>, vector<6x256xf32>,
    %c0_19 = arith.constant 0 : index
    %c0_20 = arith.constant 0 : index
    %c1_21 = arith.constant 1 : index
    %c0_22 = arith.constant 0 : index
    %14 = vector.load %arg2[%c0_19, %c0_20, %c1_21, %c0_22] : memref<1x4x10x128xbf16, #tpu.memory_space<vmem>>, vector<1x1x6x128xbf16>
    %15 = vector.shape_cast %14 : vector<1x1x6x128xbf16> to vector<6x128xbf16>
    %c0_23 = arith.constant 0 : index
    %c0_24 = arith.constant 0 : index
    %16 = vector.load %arg6[%c0_23, %c0_24] : memref<6x256xf32, #tpu.memory_space<vmem>>, vector<6x256xf32>
    %c2 = arith.constant 2 : index
    %c0_25 = arith.constant 0 : index
    %c0_26 = arith.constant 0 : index
    %17 = vector.load %arg3[%c2, %c0_25, %c0_26] : memref<9x128x256xbf16, #tpu.memory_space<vmem>>, vector<1x128x256xbf16>
    %18 = vector.shape_cast %17 : vector<1x128x256xbf16> to vector<128x256xbf16>
    %cst_27 = arith.constant dense<0.000000e+00> : vector<6x256xf32>
    %19 = tpu.matmul %15, %18, %cst_27 {dimension_numbers = #tpu.dot_dimension_numbers<[1], [0], [0], [1], [0, 0, 1, 1], [], []>} : vector<6x128xbf16>, vector<128x256xbf16>, vector<6x256xf32> -> vector<6x256xf32>
    %20 = arith.addf %16, %19 : vector<6x256xf32>
    %c0_28 = arith.constant 0 : index
    %c0_29 = arith.constant 0 : index
    %21 = vector.load %arg6[%c0_28, %c0_29] : memref<6x256xf32, #tpu.memory_space<vmem>>, vector<6x256xf32>
    tpu.vector_store %arg6[%c0_28, %c0_29], %20 {strides = array<i32>} : memref<6x256xf32, #tpu.memory_space<vmem>>, vector<6x256xf32>,
    %c0_30 = arith.constant 0 : index
    %c2_31 = arith.constant 2 : index
    %c0_32 = arith.constant 0 : index
    %c0_33 = arith.constant 0 : index
    %22 = vector.load %arg2[%c0_30, %c2_31, %c0_32, %c0_33] : memref<1x4x10x128xbf16, #tpu.memory_space<vmem>>, vector<1x1x6x128xbf16>
    %23 = vector.shape_cast %22 : vector<1x1x6x128xbf16> to vector<6x128xbf16>
    %c0_34 = arith.constant 0 : index
    %c0_35 = arith.constant 0 : index
    %24 = vector.load %arg6[%c0_34, %c0_35] : memref<6x256xf32, #tpu.memory_space<vmem>>, vector<6x256xf32>
    %c3 = arith.constant 3 : index
    %c0_36 = arith.constant 0 : index
    %c0_37 = arith.constant 0 : index
    %25 = vector.load %arg3[%c3, %c0_36, %c0_37] : memref<9x128x256xbf16, #tpu.memory_space<vmem>>, vector<1x128x256xbf16>
    %26 = vector.shape_cast %25 : vector<1x128x256xbf16> to vector<128x256xbf16>
    %cst_38 = arith.constant dense<0.000000e+00> : vector<6x256xf32>
    %27 = tpu.matmul %23, %26, %cst_38 {dimension_numbers = #tpu.dot_dimension_numbers<[1], [0], [0], [1], [0, 0, 1, 1], [], []>} : vector<6x128xbf16>, vector<128x256xbf16>, vector<6x256xf32> -> vector<6x256xf32>
    %28 = arith.addf %24, %27 : vector<6x256xf32>
    %c0_39 = arith.constant 0 : index
    %c0_40 = arith.constant 0 : index
    %29 = vector.load %arg6[%c0_39, %c0_40] : memref<6x256xf32, #tpu.memory_space<vmem>>, vector<6x256xf32>
    tpu.vector_store %arg6[%c0_39, %c0_40], %28 {strides = array<i32>} : memref<6x256xf32, #tpu.memory_space<vmem>>, vector<6x256xf32>,
    %c0_41 = arith.constant 0 : index
    %c3_42 = arith.constant 3 : index
    %c0_43 = arith.constant 0 : index
    %c0_44 = arith.constant 0 : index
    %30 = vector.load %arg2[%c0_41, %c3_42, %c0_43, %c0_44] : memref<1x4x10x128xbf16, #tpu.memory_space<vmem>>, vector<1x1x6x128xbf16>
    %31 = vector.shape_cast %30 : vector<1x1x6x128xbf16> to vector<6x128xbf16>
    %c0_45 = arith.constant 0 : index
    %c0_46 = arith.constant 0 : index
    %32 = vector.load %arg6[%c0_45, %c0_46] : memref<6x256xf32, #tpu.memory_space<vmem>>, vector<6x256xf32>
    %c4 = arith.constant 4 : index
    %c0_47 = arith.constant 0 : index
    %c0_48 = arith.constant 0 : index
    %33 = vector.load %arg3[%c4, %c0_47, %c0_48] : memref<9x128x256xbf16, #tpu.memory_space<vmem>>, vector<1x128x256xbf16>
    %34 = vector.shape_cast %33 : vector<1x128x256xbf16> to vector<128x256xbf16>
    %cst_49 = arith.constant dense<0.000000e+00> : vector<6x256xf32>
    %35 = tpu.matmul %31, %34, %cst_49 {dimension_numbers = #tpu.dot_dimension_numbers<[1], [0], [0], [1], [0, 0, 1, 1], [], []>} : vector<6x128xbf16>, vector<128x256xbf16>, vector<6x256xf32> -> vector<6x256xf32>
    %36 = arith.addf %32, %35 : vector<6x256xf32>
    %c0_50 = arith.constant 0 : index
    %c0_51 = arith.constant 0 : index
    %37 = vector.load %arg6[%c0_50, %c0_51] : memref<6x256xf32, #tpu.memory_space<vmem>>, vector<6x256xf32>
    tpu.vector_store %arg6[%c0_50, %c0_51], %36 {strides = array<i32>} : memref<6x256xf32, #tpu.memory_space<vmem>>, vector<6x256xf32>,
    %c0_52 = arith.constant 0 : index
    %c2_53 = arith.constant 2 : index
    %c1_54 = arith.constant 1 : index
    %c0_55 = arith.constant 0 : index
    %38 = vector.load %arg2[%c0_52, %c2_53, %c1_54, %c0_55] : memref<1x4x10x128xbf16, #tpu.memory_space<vmem>>, vector<1x1x6x128xbf16>
    %39 = vector.shape_cast %38 : vector<1x1x6x128xbf16> to vector<6x128xbf16>
    %c0_56 = arith.constant 0 : index
    %c0_57 = arith.constant 0 : index
    %40 = vector.load %arg6[%c0_56, %c0_57] : memref<6x256xf32, #tpu.memory_space<vmem>>, vector<6x256xf32>
    %c5 = arith.constant 5 : index
    %c0_58 = arith.constant 0 : index
    %c0_59 = arith.constant 0 : index
    %41 = vector.load %arg3[%c5, %c0_58, %c0_59] : memref<9x128x256xbf16, #tpu.memory_space<vmem>>, vector<1x128x256xbf16>
    %42 = vector.shape_cast %41 : vector<1x128x256xbf16> to vector<128x256xbf16>
    %cst_60 = arith.constant dense<0.000000e+00> : vector<6x256xf32>
    %43 = tpu.matmul %39, %42, %cst_60 {dimension_numbers = #tpu.dot_dimension_numbers<[1], [0], [0], [1], [0, 0, 1, 1], [], []>} : vector<6x128xbf16>, vector<128x256xbf16>, vector<6x256xf32> -> vector<6x256xf32>
    %44 = arith.addf %40, %43 : vector<6x256xf32>
    %c0_61 = arith.constant 0 : index
    %c0_62 = arith.constant 0 : index
    %45 = vector.load %arg6[%c0_61, %c0_62] : memref<6x256xf32, #tpu.memory_space<vmem>>, vector<6x256xf32>
    tpu.vector_store %arg6[%c0_61, %c0_62], %44 {strides = array<i32>} : memref<6x256xf32, #tpu.memory_space<vmem>>, vector<6x256xf32>,
    %c0_63 = arith.constant 0 : index
    %c0_64 = arith.constant 0 : index
    %c3_65 = arith.constant 3 : index
    %c0_66 = arith.constant 0 : index
    %46 = vector.load %arg2[%c0_63, %c0_64, %c3_65, %c0_66] : memref<1x4x10x128xbf16, #tpu.memory_space<vmem>>, vector<1x1x6x128xbf16>
    %47 = vector.shape_cast %46 : vector<1x1x6x128xbf16> to vector<6x128xbf16>
    %c0_67 = arith.constant 0 : index
    %c0_68 = arith.constant 0 : index
    %48 = vector.load %arg6[%c0_67, %c0_68] : memref<6x256xf32, #tpu.memory_space<vmem>>, vector<6x256xf32>
    %c6 = arith.constant 6 : index
    %c0_69 = arith.constant 0 : index
    %c0_70 = arith.constant 0 : index
    %49 = vector.load %arg3[%c6, %c0_69, %c0_70] : memref<9x128x256xbf16, #tpu.memory_space<vmem>>, vector<1x128x256xbf16>
    %50 = vector.shape_cast %49 : vector<1x128x256xbf16> to vector<128x256xbf16>
    %cst_71 = arith.constant dense<0.000000e+00> : vector<6x256xf32>
    %51 = tpu.matmul %47, %50, %cst_71 {dimension_numbers = #tpu.dot_dimension_numbers<[1], [0], [0], [1], [0, 0, 1, 1], [], []>} : vector<6x128xbf16>, vector<128x256xbf16>, vector<6x256xf32> -> vector<6x256xf32>
    %52 = arith.addf %48, %51 : vector<6x256xf32>
    %c0_72 = arith.constant 0 : index
    %c0_73 = arith.constant 0 : index
    %53 = vector.load %arg6[%c0_72, %c0_73] : memref<6x256xf32, #tpu.memory_space<vmem>>, vector<6x256xf32>
    tpu.vector_store %arg6[%c0_72, %c0_73], %52 {strides = array<i32>} : memref<6x256xf32, #tpu.memory_space<vmem>>, vector<6x256xf32>,
    %c0_74 = arith.constant 0 : index
    %c1_75 = arith.constant 1 : index
    %c3_76 = arith.constant 3 : index
    %c0_77 = arith.constant 0 : index
    %54 = vector.load %arg2[%c0_74, %c1_75, %c3_76, %c0_77] : memref<1x4x10x128xbf16, #tpu.memory_space<vmem>>, vector<1x1x6x128xbf16>
    %55 = vector.shape_cast %54 : vector<1x1x6x128xbf16> to vector<6x128xbf16>
    %c0_78 = arith.constant 0 : index
    %c0_79 = arith.constant 0 : index
    %56 = vector.load %arg6[%c0_78, %c0_79] : memref<6x256xf32, #tpu.memory_space<vmem>>, vector<6x256xf32>
    %c7 = arith.constant 7 : index
    %c0_80 = arith.constant 0 : index
    %c0_81 = arith.constant 0 : index
    %57 = vector.load %arg3[%c7, %c0_80, %c0_81] : memref<9x128x256xbf16, #tpu.memory_space<vmem>>, vector<1x128x256xbf16>
    %58 = vector.shape_cast %57 : vector<1x128x256xbf16> to vector<128x256xbf16>
    %cst_82 = arith.constant dense<0.000000e+00> : vector<6x256xf32>
    %59 = tpu.matmul %55, %58, %cst_82 {dimension_numbers = #tpu.dot_dimension_numbers<[1], [0], [0], [1], [0, 0, 1, 1], [], []>} : vector<6x128xbf16>, vector<128x256xbf16>, vector<6x256xf32> -> vector<6x256xf32>
    %60 = arith.addf %56, %59 : vector<6x256xf32>
    %c0_83 = arith.constant 0 : index
    %c0_84 = arith.constant 0 : index
    %61 = vector.load %arg6[%c0_83, %c0_84] : memref<6x256xf32, #tpu.memory_space<vmem>>, vector<6x256xf32>
    tpu.vector_store %arg6[%c0_83, %c0_84], %60 {strides = array<i32>} : memref<6x256xf32, #tpu.memory_space<vmem>>, vector<6x256xf32>,
    %c0_85 = arith.constant 0 : index
    %c0_86 = arith.constant 0 : index
    %c4_87 = arith.constant 4 : index
    %c0_88 = arith.constant 0 : index
    %62 = vector.load %arg2[%c0_85, %c0_86, %c4_87, %c0_88] : memref<1x4x10x128xbf16, #tpu.memory_space<vmem>>, vector<1x1x6x128xbf16>
    %63 = vector.shape_cast %62 : vector<1x1x6x128xbf16> to vector<6x128xbf16>
    %c0_89 = arith.constant 0 : index
    %c0_90 = arith.constant 0 : index
    %64 = vector.load %arg6[%c0_89, %c0_90] : memref<6x256xf32, #tpu.memory_space<vmem>>, vector<6x256xf32>
    %c8 = arith.constant 8 : index
    %c0_91 = arith.constant 0 : index
    %c0_92 = arith.constant 0 : index
    %65 = vector.load %arg3[%c8, %c0_91, %c0_92] : memref<9x128x256xbf16, #tpu.memory_space<vmem>>, vector<1x128x256xbf16>
    %66 = vector.shape_cast %65 : vector<1x128x256xbf16> to vector<128x256xbf16>
    %cst_93 = arith.constant dense<0.000000e+00> : vector<6x256xf32>
    %67 = tpu.matmul %63, %66, %cst_93 {dimension_numbers = #tpu.dot_dimension_numbers<[1], [0], [0], [1], [0, 0, 1, 1], [], []>} : vector<6x128xbf16>, vector<128x256xbf16>, vector<6x256xf32> -> vector<6x256xf32>
    %68 = arith.addf %64, %67 : vector<6x256xf32>
    %c0_94 = arith.constant 0 : index
    %c0_95 = arith.constant 0 : index
    %69 = vector.load %arg6[%c0_94, %c0_95] : memref<6x256xf32, #tpu.memory_space<vmem>>, vector<6x256xf32>
    tpu.vector_store %arg6[%c0_94, %c0_95], %68 {strides = array<i32>} : memref<6x256xf32, #tpu.memory_space<vmem>>, vector<6x256xf32>,
    %c0_96 = arith.constant 0 : index
    %c0_97 = arith.constant 0 : index
    %70 = vector.load %arg6[%c0_96, %c0_97] : memref<6x256xf32, #tpu.memory_space<vmem>>, vector<6x256xf32>
    %c0_98 = arith.constant 0 : index
    %c0_99 = arith.constant 0 : index
    %71 = vector.load %arg4[%c0_98, %c0_99] : memref<6x1xf32, #tpu.memory_space<vmem>>, vector<6x1xf32>
    %72 = vector.broadcast %71 : vector<6x1xf32> to vector<6x256xf32>
    %73 = arith.mulf %70, %72 : vector<6x256xf32>
    %cst_100 = arith.constant dense<0.000000e+00> : vector<256xf32>
    %74 = vector.multi_reduction <add>, %73, %cst_100 [0] : vector<6x256xf32> to vector<256xf32>
    %75 = vector.shape_cast %74 : vector<256xf32> to vector<1x256xf32>
    %cst_101 = arith.constant 2.500000e-01 : f32
    %76 = vector.broadcast %cst_101 : f32 to vector<1x256xf32>
    %77 = arith.mulf %75, %76 : vector<1x256xf32>
    %78 = vector.broadcast %77 : vector<1x256xf32> to vector<6x256xf32>
    %79 = arith.subf %70, %78 : vector<6x256xf32>
    %80 = arith.mulf %79, %79 : vector<6x256xf32>
    %81 = vector.broadcast %71 : vector<6x1xf32> to vector<6x256xf32>
    %82 = arith.mulf %80, %81 : vector<6x256xf32>
    %cst_102 = arith.constant dense<0.000000e+00> : vector<256xf32>
    %83 = vector.multi_reduction <add>, %82, %cst_102 [0] : vector<6x256xf32> to vector<256xf32>
    %84 = vector.shape_cast %83 : vector<256xf32> to vector<1x256xf32>
    %cst_103 = arith.constant 2.500000e-01 : f32
    %85 = vector.broadcast %cst_103 : f32 to vector<1x256xf32>
    %86 = arith.mulf %84, %85 : vector<1x256xf32>
    %cst_104 = arith.constant 9.99999974E-6 : f32
    %87 = vector.broadcast %cst_104 : f32 to vector<1x256xf32>
    %88 = arith.addf %86, %87 : vector<1x256xf32>
    %89 = math.rsqrt %88 : vector<1x256xf32>
    %90 = vector.broadcast %89 : vector<1x256xf32> to vector<6x256xf32>
    %91 = arith.mulf %79, %90 : vector<6x256xf32>
    %cst_105 = arith.constant 0.000000e+00 : f32
    %92 = vector.broadcast %cst_105 : f32 to vector<6x256xf32>
    %93 = arith.cmpf oge, %91, %92 : vector<6x256xf32>
    %cst_106 = arith.constant 2.000000e-01 : f32
    %94 = vector.broadcast %cst_106 : f32 to vector<6x256xf32>
    %95 = arith.mulf %94, %91 : vector<6x256xf32>
    %96 = arith.select %93, %91, %95 : vector<6x256xi1>, vector<6x256xf32>
    %97 = vector.broadcast %71 : vector<6x1xf32> to vector<6x256xf32>
    %98 = arith.mulf %96, %97 : vector<6x256xf32>
    %99 = arith.truncf %98 : vector<6x256xf32> to vector<6x256xbf16>
    %c0_107 = arith.constant 0 : index
    %c0_108 = arith.constant 0 : index
    %c0_109 = arith.constant 0 : index
    %100 = vector.load %arg5[%c0_107, %c0_108, %c0_109] : memref<1x6x256xbf16, #tpu.memory_space<vmem>>, vector<1x6x256xbf16>
    %101 = vector.shape_cast %100 : vector<1x6x256xbf16> to vector<6x256xbf16>
    %102 = vector.shape_cast %99 : vector<6x256xbf16> to vector<1x6x256xbf16>
    tpu.vector_store %arg5[%c0_107, %c0_108, %c0_109], %102 {strides = array<i32>} : memref<1x6x256xbf16, #tpu.memory_space<vmem>>, vector<1x6x256xbf16>,
    return
  }
  func.func @transform_0(%arg0: i32, %arg1: i32) -> (i32, i32, i32, i32) {
    %c0_i32 = arith.constant 0 : i32
    %c0_i32_0 = arith.constant 0 : i32
    %c0_i32_1 = arith.constant 0 : i32
    %c0_i32_2 = arith.constant 0 : i32
    return %arg0, %c0_i32, %c0_i32_0, %c0_i32_1 : i32, i32, i32, i32
  }
  func.func @transform_1(%arg0: i32, %arg1: i32) -> (i32, i32, i32) {
    %c0_i32 = arith.constant 0 : i32
    %c0_i32_0 = arith.constant 0 : i32
    %c0_i32_1 = arith.constant 0 : i32
    return %c0_i32, %c0_i32_0, %arg1 : i32, i32, i32
  }
  func.func @transform_2(%arg0: i32, %arg1: i32) -> (i32, i32) {
    %c0_i32 = arith.constant 0 : i32
    %c0_i32_0 = arith.constant 0 : i32
    %c0_i32_1 = arith.constant 0 : i32
    return %c0_i32, %c0_i32_0 : i32, i32
  }
  func.func @transform_3(%arg0: i32, %arg1: i32) -> (i32, i32, i32) {
    %c0_i32 = arith.constant 0 : i32
    %c0_i32_0 = arith.constant 0 : i32
    return %arg0, %c0_i32, %arg1 : i32, i32, i32
  }
}

module attributes {stable_mosaic.version = 11 : i64} {
  func.func @_block_kernel(%arg0: i32, %arg1: i32, %arg2: memref<1x1x18x256xbf16, #tpu.memory_space<vmem>>, %arg3: memref<9x256x512xbf16, #tpu.memory_space<vmem>>, %arg4: memref<8x1xf32, #tpu.memory_space<vmem>>, %arg5: memref<1x8x512xbf16, #tpu.memory_space<vmem>>, %arg6: memref<8x512xf32, #tpu.memory_space<vmem>>) attributes {dimension_semantics = [#tpu.dimension_semantics<parallel>, #tpu.dimension_semantics<parallel>], iteration_bounds = array<i64: 2, 1>, scalar_prefetch = 0 : i64, scratch_operands = 1 : i64, tpu.core_type = #tpu.core_type<tc>, window_params = [{transform_indices = @transform_0, window_bounds = array<i64: 1, 1, 18, 256>}, {transform_indices = @transform_1, window_bounds = array<i64: 9, 256, 512>}, {pipeline_mode = #tpu.pipeline_mode<synchronous>, transform_indices = @transform_2, window_bounds = array<i64: 8, 1>}, {transform_indices = @transform_3, window_bounds = array<i64: 1, 8, 512>}]} {
    %c0 = arith.constant 0 : index
    %c0_0 = arith.constant 0 : index
    %c0_1 = arith.constant 0 : index
    %c0_2 = arith.constant 0 : index
    %0 = vector.load %arg2[%c0, %c0_0, %c0_1, %c0_2] : memref<1x1x18x256xbf16, #tpu.memory_space<vmem>>, vector<1x1x8x256xbf16>
    %1 = vector.shape_cast %0 : vector<1x1x8x256xbf16> to vector<8x256xbf16>
    %c0_3 = arith.constant 0 : index
    %c0_4 = arith.constant 0 : index
    %c0_5 = arith.constant 0 : index
    %2 = vector.load %arg3[%c0_3, %c0_4, %c0_5] : memref<9x256x512xbf16, #tpu.memory_space<vmem>>, vector<1x256x512xbf16>
    %3 = vector.shape_cast %2 : vector<1x256x512xbf16> to vector<256x512xbf16>
    %cst = arith.constant dense<0.000000e+00> : vector<8x512xf32>
    %4 = tpu.matmul %1, %3, %cst {dimension_numbers = #tpu.dot_dimension_numbers<[1], [0], [0], [1], [0, 0, 1, 1], [], []>} : vector<8x256xbf16>, vector<256x512xbf16>, vector<8x512xf32> -> vector<8x512xf32>
    %c0_6 = arith.constant 0 : index
    %c0_7 = arith.constant 0 : index
    %5 = vector.load %arg6[%c0_6, %c0_7] : memref<8x512xf32, #tpu.memory_space<vmem>>, vector<8x512xf32>
    tpu.vector_store %arg6[%c0_6, %c0_7], %4 {strides = array<i32>} : memref<8x512xf32, #tpu.memory_space<vmem>>, vector<8x512xf32>,
    %c0_8 = arith.constant 0 : index
    %c0_9 = arith.constant 0 : index
    %c1 = arith.constant 1 : index
    %c0_10 = arith.constant 0 : index
    %6 = vector.load %arg2[%c0_8, %c0_9, %c1, %c0_10] : memref<1x1x18x256xbf16, #tpu.memory_space<vmem>>, vector<1x1x8x256xbf16>
    %7 = vector.shape_cast %6 : vector<1x1x8x256xbf16> to vector<8x256xbf16>
    %c0_11 = arith.constant 0 : index
    %c0_12 = arith.constant 0 : index
    %8 = vector.load %arg6[%c0_11, %c0_12] : memref<8x512xf32, #tpu.memory_space<vmem>>, vector<8x512xf32>
    %c1_13 = arith.constant 1 : index
    %c0_14 = arith.constant 0 : index
    %c0_15 = arith.constant 0 : index
    %9 = vector.load %arg3[%c1_13, %c0_14, %c0_15] : memref<9x256x512xbf16, #tpu.memory_space<vmem>>, vector<1x256x512xbf16>
    %10 = vector.shape_cast %9 : vector<1x256x512xbf16> to vector<256x512xbf16>
    %cst_16 = arith.constant dense<0.000000e+00> : vector<8x512xf32>
    %11 = tpu.matmul %7, %10, %cst_16 {dimension_numbers = #tpu.dot_dimension_numbers<[1], [0], [0], [1], [0, 0, 1, 1], [], []>} : vector<8x256xbf16>, vector<256x512xbf16>, vector<8x512xf32> -> vector<8x512xf32>
    %12 = arith.addf %8, %11 : vector<8x512xf32>
    %c0_17 = arith.constant 0 : index
    %c0_18 = arith.constant 0 : index
    %13 = vector.load %arg6[%c0_17, %c0_18] : memref<8x512xf32, #tpu.memory_space<vmem>>, vector<8x512xf32>
    tpu.vector_store %arg6[%c0_17, %c0_18], %12 {strides = array<i32>} : memref<8x512xf32, #tpu.memory_space<vmem>>, vector<8x512xf32>,
    %c0_19 = arith.constant 0 : index
    %c0_20 = arith.constant 0 : index
    %c2 = arith.constant 2 : index
    %c0_21 = arith.constant 0 : index
    %14 = vector.load %arg2[%c0_19, %c0_20, %c2, %c0_21] : memref<1x1x18x256xbf16, #tpu.memory_space<vmem>>, vector<1x1x8x256xbf16>
    %15 = vector.shape_cast %14 : vector<1x1x8x256xbf16> to vector<8x256xbf16>
    %c0_22 = arith.constant 0 : index
    %c0_23 = arith.constant 0 : index
    %16 = vector.load %arg6[%c0_22, %c0_23] : memref<8x512xf32, #tpu.memory_space<vmem>>, vector<8x512xf32>
    %c2_24 = arith.constant 2 : index
    %c0_25 = arith.constant 0 : index
    %c0_26 = arith.constant 0 : index
    %17 = vector.load %arg3[%c2_24, %c0_25, %c0_26] : memref<9x256x512xbf16, #tpu.memory_space<vmem>>, vector<1x256x512xbf16>
    %18 = vector.shape_cast %17 : vector<1x256x512xbf16> to vector<256x512xbf16>
    %cst_27 = arith.constant dense<0.000000e+00> : vector<8x512xf32>
    %19 = tpu.matmul %15, %18, %cst_27 {dimension_numbers = #tpu.dot_dimension_numbers<[1], [0], [0], [1], [0, 0, 1, 1], [], []>} : vector<8x256xbf16>, vector<256x512xbf16>, vector<8x512xf32> -> vector<8x512xf32>
    %20 = arith.addf %16, %19 : vector<8x512xf32>
    %c0_28 = arith.constant 0 : index
    %c0_29 = arith.constant 0 : index
    %21 = vector.load %arg6[%c0_28, %c0_29] : memref<8x512xf32, #tpu.memory_space<vmem>>, vector<8x512xf32>
    tpu.vector_store %arg6[%c0_28, %c0_29], %20 {strides = array<i32>} : memref<8x512xf32, #tpu.memory_space<vmem>>, vector<8x512xf32>,
    %c0_30 = arith.constant 0 : index
    %c0_31 = arith.constant 0 : index
    %c4 = arith.constant 4 : index
    %c0_32 = arith.constant 0 : index
    %22 = vector.load %arg2[%c0_30, %c0_31, %c4, %c0_32] : memref<1x1x18x256xbf16, #tpu.memory_space<vmem>>, vector<1x1x8x256xbf16>
    %23 = vector.shape_cast %22 : vector<1x1x8x256xbf16> to vector<8x256xbf16>
    %c0_33 = arith.constant 0 : index
    %c0_34 = arith.constant 0 : index
    %24 = vector.load %arg6[%c0_33, %c0_34] : memref<8x512xf32, #tpu.memory_space<vmem>>, vector<8x512xf32>
    %c3 = arith.constant 3 : index
    %c0_35 = arith.constant 0 : index
    %c0_36 = arith.constant 0 : index
    %25 = vector.load %arg3[%c3, %c0_35, %c0_36] : memref<9x256x512xbf16, #tpu.memory_space<vmem>>, vector<1x256x512xbf16>
    %26 = vector.shape_cast %25 : vector<1x256x512xbf16> to vector<256x512xbf16>
    %cst_37 = arith.constant dense<0.000000e+00> : vector<8x512xf32>
    %27 = tpu.matmul %23, %26, %cst_37 {dimension_numbers = #tpu.dot_dimension_numbers<[1], [0], [0], [1], [0, 0, 1, 1], [], []>} : vector<8x256xbf16>, vector<256x512xbf16>, vector<8x512xf32> -> vector<8x512xf32>
    %28 = arith.addf %24, %27 : vector<8x512xf32>
    %c0_38 = arith.constant 0 : index
    %c0_39 = arith.constant 0 : index
    %29 = vector.load %arg6[%c0_38, %c0_39] : memref<8x512xf32, #tpu.memory_space<vmem>>, vector<8x512xf32>
    tpu.vector_store %arg6[%c0_38, %c0_39], %28 {strides = array<i32>} : memref<8x512xf32, #tpu.memory_space<vmem>>, vector<8x512xf32>,
    %c0_40 = arith.constant 0 : index
    %c0_41 = arith.constant 0 : index
    %c5 = arith.constant 5 : index
    %c0_42 = arith.constant 0 : index
    %30 = vector.load %arg2[%c0_40, %c0_41, %c5, %c0_42] : memref<1x1x18x256xbf16, #tpu.memory_space<vmem>>, vector<1x1x8x256xbf16>
    %31 = vector.shape_cast %30 : vector<1x1x8x256xbf16> to vector<8x256xbf16>
    %c0_43 = arith.constant 0 : index
    %c0_44 = arith.constant 0 : index
    %32 = vector.load %arg6[%c0_43, %c0_44] : memref<8x512xf32, #tpu.memory_space<vmem>>, vector<8x512xf32>
    %c4_45 = arith.constant 4 : index
    %c0_46 = arith.constant 0 : index
    %c0_47 = arith.constant 0 : index
    %33 = vector.load %arg3[%c4_45, %c0_46, %c0_47] : memref<9x256x512xbf16, #tpu.memory_space<vmem>>, vector<1x256x512xbf16>
    %34 = vector.shape_cast %33 : vector<1x256x512xbf16> to vector<256x512xbf16>
    %cst_48 = arith.constant dense<0.000000e+00> : vector<8x512xf32>
    %35 = tpu.matmul %31, %34, %cst_48 {dimension_numbers = #tpu.dot_dimension_numbers<[1], [0], [0], [1], [0, 0, 1, 1], [], []>} : vector<8x256xbf16>, vector<256x512xbf16>, vector<8x512xf32> -> vector<8x512xf32>
    %36 = arith.addf %32, %35 : vector<8x512xf32>
    %c0_49 = arith.constant 0 : index
    %c0_50 = arith.constant 0 : index
    %37 = vector.load %arg6[%c0_49, %c0_50] : memref<8x512xf32, #tpu.memory_space<vmem>>, vector<8x512xf32>
    tpu.vector_store %arg6[%c0_49, %c0_50], %36 {strides = array<i32>} : memref<8x512xf32, #tpu.memory_space<vmem>>, vector<8x512xf32>,
    %c0_51 = arith.constant 0 : index
    %c0_52 = arith.constant 0 : index
    %c6 = arith.constant 6 : index
    %c0_53 = arith.constant 0 : index
    %38 = vector.load %arg2[%c0_51, %c0_52, %c6, %c0_53] : memref<1x1x18x256xbf16, #tpu.memory_space<vmem>>, vector<1x1x8x256xbf16>
    %39 = vector.shape_cast %38 : vector<1x1x8x256xbf16> to vector<8x256xbf16>
    %c0_54 = arith.constant 0 : index
    %c0_55 = arith.constant 0 : index
    %40 = vector.load %arg6[%c0_54, %c0_55] : memref<8x512xf32, #tpu.memory_space<vmem>>, vector<8x512xf32>
    %c5_56 = arith.constant 5 : index
    %c0_57 = arith.constant 0 : index
    %c0_58 = arith.constant 0 : index
    %41 = vector.load %arg3[%c5_56, %c0_57, %c0_58] : memref<9x256x512xbf16, #tpu.memory_space<vmem>>, vector<1x256x512xbf16>
    %42 = vector.shape_cast %41 : vector<1x256x512xbf16> to vector<256x512xbf16>
    %cst_59 = arith.constant dense<0.000000e+00> : vector<8x512xf32>
    %43 = tpu.matmul %39, %42, %cst_59 {dimension_numbers = #tpu.dot_dimension_numbers<[1], [0], [0], [1], [0, 0, 1, 1], [], []>} : vector<8x256xbf16>, vector<256x512xbf16>, vector<8x512xf32> -> vector<8x512xf32>
    %44 = arith.addf %40, %43 : vector<8x512xf32>
    %c0_60 = arith.constant 0 : index
    %c0_61 = arith.constant 0 : index
    %45 = vector.load %arg6[%c0_60, %c0_61] : memref<8x512xf32, #tpu.memory_space<vmem>>, vector<8x512xf32>
    tpu.vector_store %arg6[%c0_60, %c0_61], %44 {strides = array<i32>} : memref<8x512xf32, #tpu.memory_space<vmem>>, vector<8x512xf32>,
    %c0_62 = arith.constant 0 : index
    %c0_63 = arith.constant 0 : index
    %c8 = arith.constant 8 : index
    %c0_64 = arith.constant 0 : index
    %46 = vector.load %arg2[%c0_62, %c0_63, %c8, %c0_64] : memref<1x1x18x256xbf16, #tpu.memory_space<vmem>>, vector<1x1x8x256xbf16>
    %47 = vector.shape_cast %46 : vector<1x1x8x256xbf16> to vector<8x256xbf16>
    %c0_65 = arith.constant 0 : index
    %c0_66 = arith.constant 0 : index
    %48 = vector.load %arg6[%c0_65, %c0_66] : memref<8x512xf32, #tpu.memory_space<vmem>>, vector<8x512xf32>
    %c6_67 = arith.constant 6 : index
    %c0_68 = arith.constant 0 : index
    %c0_69 = arith.constant 0 : index
    %49 = vector.load %arg3[%c6_67, %c0_68, %c0_69] : memref<9x256x512xbf16, #tpu.memory_space<vmem>>, vector<1x256x512xbf16>
    %50 = vector.shape_cast %49 : vector<1x256x512xbf16> to vector<256x512xbf16>
    %cst_70 = arith.constant dense<0.000000e+00> : vector<8x512xf32>
    %51 = tpu.matmul %47, %50, %cst_70 {dimension_numbers = #tpu.dot_dimension_numbers<[1], [0], [0], [1], [0, 0, 1, 1], [], []>} : vector<8x256xbf16>, vector<256x512xbf16>, vector<8x512xf32> -> vector<8x512xf32>
    %52 = arith.addf %48, %51 : vector<8x512xf32>
    %c0_71 = arith.constant 0 : index
    %c0_72 = arith.constant 0 : index
    %53 = vector.load %arg6[%c0_71, %c0_72] : memref<8x512xf32, #tpu.memory_space<vmem>>, vector<8x512xf32>
    tpu.vector_store %arg6[%c0_71, %c0_72], %52 {strides = array<i32>} : memref<8x512xf32, #tpu.memory_space<vmem>>, vector<8x512xf32>,
    %c0_73 = arith.constant 0 : index
    %c0_74 = arith.constant 0 : index
    %c9 = arith.constant 9 : index
    %c0_75 = arith.constant 0 : index
    %54 = vector.load %arg2[%c0_73, %c0_74, %c9, %c0_75] : memref<1x1x18x256xbf16, #tpu.memory_space<vmem>>, vector<1x1x8x256xbf16>
    %55 = vector.shape_cast %54 : vector<1x1x8x256xbf16> to vector<8x256xbf16>
    %c0_76 = arith.constant 0 : index
    %c0_77 = arith.constant 0 : index
    %56 = vector.load %arg6[%c0_76, %c0_77] : memref<8x512xf32, #tpu.memory_space<vmem>>, vector<8x512xf32>
    %c7 = arith.constant 7 : index
    %c0_78 = arith.constant 0 : index
    %c0_79 = arith.constant 0 : index
    %57 = vector.load %arg3[%c7, %c0_78, %c0_79] : memref<9x256x512xbf16, #tpu.memory_space<vmem>>, vector<1x256x512xbf16>
    %58 = vector.shape_cast %57 : vector<1x256x512xbf16> to vector<256x512xbf16>
    %cst_80 = arith.constant dense<0.000000e+00> : vector<8x512xf32>
    %59 = tpu.matmul %55, %58, %cst_80 {dimension_numbers = #tpu.dot_dimension_numbers<[1], [0], [0], [1], [0, 0, 1, 1], [], []>} : vector<8x256xbf16>, vector<256x512xbf16>, vector<8x512xf32> -> vector<8x512xf32>
    %60 = arith.addf %56, %59 : vector<8x512xf32>
    %c0_81 = arith.constant 0 : index
    %c0_82 = arith.constant 0 : index
    %61 = vector.load %arg6[%c0_81, %c0_82] : memref<8x512xf32, #tpu.memory_space<vmem>>, vector<8x512xf32>
    tpu.vector_store %arg6[%c0_81, %c0_82], %60 {strides = array<i32>} : memref<8x512xf32, #tpu.memory_space<vmem>>, vector<8x512xf32>,
    %c0_83 = arith.constant 0 : index
    %c0_84 = arith.constant 0 : index
    %c10 = arith.constant 10 : index
    %c0_85 = arith.constant 0 : index
    %62 = vector.load %arg2[%c0_83, %c0_84, %c10, %c0_85] : memref<1x1x18x256xbf16, #tpu.memory_space<vmem>>, vector<1x1x8x256xbf16>
    %63 = vector.shape_cast %62 : vector<1x1x8x256xbf16> to vector<8x256xbf16>
    %c0_86 = arith.constant 0 : index
    %c0_87 = arith.constant 0 : index
    %64 = vector.load %arg6[%c0_86, %c0_87] : memref<8x512xf32, #tpu.memory_space<vmem>>, vector<8x512xf32>
    %c8_88 = arith.constant 8 : index
    %c0_89 = arith.constant 0 : index
    %c0_90 = arith.constant 0 : index
    %65 = vector.load %arg3[%c8_88, %c0_89, %c0_90] : memref<9x256x512xbf16, #tpu.memory_space<vmem>>, vector<1x256x512xbf16>
    %66 = vector.shape_cast %65 : vector<1x256x512xbf16> to vector<256x512xbf16>
    %cst_91 = arith.constant dense<0.000000e+00> : vector<8x512xf32>
    %67 = tpu.matmul %63, %66, %cst_91 {dimension_numbers = #tpu.dot_dimension_numbers<[1], [0], [0], [1], [0, 0, 1, 1], [], []>} : vector<8x256xbf16>, vector<256x512xbf16>, vector<8x512xf32> -> vector<8x512xf32>
    %68 = arith.addf %64, %67 : vector<8x512xf32>
    %c0_92 = arith.constant 0 : index
    %c0_93 = arith.constant 0 : index
    %69 = vector.load %arg6[%c0_92, %c0_93] : memref<8x512xf32, #tpu.memory_space<vmem>>, vector<8x512xf32>
    tpu.vector_store %arg6[%c0_92, %c0_93], %68 {strides = array<i32>} : memref<8x512xf32, #tpu.memory_space<vmem>>, vector<8x512xf32>,
    %c0_94 = arith.constant 0 : index
    %c0_95 = arith.constant 0 : index
    %70 = vector.load %arg6[%c0_94, %c0_95] : memref<8x512xf32, #tpu.memory_space<vmem>>, vector<8x512xf32>
    %c0_96 = arith.constant 0 : index
    %c0_97 = arith.constant 0 : index
    %71 = vector.load %arg4[%c0_96, %c0_97] : memref<8x1xf32, #tpu.memory_space<vmem>>, vector<8x1xf32>
    %72 = vector.broadcast %71 : vector<8x1xf32> to vector<8x512xf32>
    %73 = arith.mulf %70, %72 : vector<8x512xf32>
    %cst_98 = arith.constant dense<0.000000e+00> : vector<512xf32>
    %74 = vector.multi_reduction <add>, %73, %cst_98 [0] : vector<8x512xf32> to vector<512xf32>
    %75 = vector.shape_cast %74 : vector<512xf32> to vector<1x512xf32>
    %cst_99 = arith.constant 2.500000e-01 : f32
    %76 = vector.broadcast %cst_99 : f32 to vector<1x512xf32>
    %77 = arith.mulf %75, %76 : vector<1x512xf32>
    %78 = vector.broadcast %77 : vector<1x512xf32> to vector<8x512xf32>
    %79 = arith.subf %70, %78 : vector<8x512xf32>
    %80 = arith.mulf %79, %79 : vector<8x512xf32>
    %81 = vector.broadcast %71 : vector<8x1xf32> to vector<8x512xf32>
    %82 = arith.mulf %80, %81 : vector<8x512xf32>
    %cst_100 = arith.constant dense<0.000000e+00> : vector<512xf32>
    %83 = vector.multi_reduction <add>, %82, %cst_100 [0] : vector<8x512xf32> to vector<512xf32>
    %84 = vector.shape_cast %83 : vector<512xf32> to vector<1x512xf32>
    %cst_101 = arith.constant 2.500000e-01 : f32
    %85 = vector.broadcast %cst_101 : f32 to vector<1x512xf32>
    %86 = arith.mulf %84, %85 : vector<1x512xf32>
    %cst_102 = arith.constant 9.99999974E-6 : f32
    %87 = vector.broadcast %cst_102 : f32 to vector<1x512xf32>
    %88 = arith.addf %86, %87 : vector<1x512xf32>
    %89 = math.rsqrt %88 : vector<1x512xf32>
    %90 = vector.broadcast %89 : vector<1x512xf32> to vector<8x512xf32>
    %91 = arith.mulf %79, %90 : vector<8x512xf32>
    %cst_103 = arith.constant 0.000000e+00 : f32
    %92 = vector.broadcast %cst_103 : f32 to vector<8x512xf32>
    %93 = arith.cmpf oge, %91, %92 : vector<8x512xf32>
    %cst_104 = arith.constant 2.000000e-01 : f32
    %94 = vector.broadcast %cst_104 : f32 to vector<8x512xf32>
    %95 = arith.mulf %94, %91 : vector<8x512xf32>
    %96 = arith.select %93, %91, %95 : vector<8x512xi1>, vector<8x512xf32>
    %97 = vector.broadcast %71 : vector<8x1xf32> to vector<8x512xf32>
    %98 = arith.mulf %96, %97 : vector<8x512xf32>
    %99 = arith.truncf %98 : vector<8x512xf32> to vector<8x512xbf16>
    %c0_105 = arith.constant 0 : index
    %c0_106 = arith.constant 0 : index
    %c0_107 = arith.constant 0 : index
    %100 = vector.load %arg5[%c0_105, %c0_106, %c0_107] : memref<1x8x512xbf16, #tpu.memory_space<vmem>>, vector<1x8x512xbf16>
    %101 = vector.shape_cast %100 : vector<1x8x512xbf16> to vector<8x512xbf16>
    %102 = vector.shape_cast %99 : vector<8x512xbf16> to vector<1x8x512xbf16>
    tpu.vector_store %arg5[%c0_105, %c0_106, %c0_107], %102 {strides = array<i32>} : memref<1x8x512xbf16, #tpu.memory_space<vmem>>, vector<1x8x512xbf16>,
    return
  }
  func.func @transform_0(%arg0: i32, %arg1: i32) -> (i32, i32, i32, i32) {
    %c0_i32 = arith.constant 0 : i32
    %c0_i32_0 = arith.constant 0 : i32
    %c0_i32_1 = arith.constant 0 : i32
    %c0_i32_2 = arith.constant 0 : i32
    return %arg0, %c0_i32, %c0_i32_0, %c0_i32_1 : i32, i32, i32, i32
  }
  func.func @transform_1(%arg0: i32, %arg1: i32) -> (i32, i32, i32) {
    %c0_i32 = arith.constant 0 : i32
    %c0_i32_0 = arith.constant 0 : i32
    %c0_i32_1 = arith.constant 0 : i32
    return %c0_i32, %c0_i32_0, %arg1 : i32, i32, i32
  }
  func.func @transform_2(%arg0: i32, %arg1: i32) -> (i32, i32) {
    %c0_i32 = arith.constant 0 : i32
    %c0_i32_0 = arith.constant 0 : i32
    %c0_i32_1 = arith.constant 0 : i32
    return %c0_i32, %c0_i32_0 : i32, i32
  }
  func.func @transform_3(%arg0: i32, %arg1: i32) -> (i32, i32, i32) {
    %c0_i32 = arith.constant 0 : i32
    %c0_i32_0 = arith.constant 0 : i32
    return %arg0, %c0_i32, %arg1 : i32, i32, i32
  }
}

module attributes {stable_mosaic.version = 11 : i64} {
  func.func @_final_conv_sigmoid_kernel(%arg0: i32, %arg1: memref<1x1x18x512xbf16, #tpu.memory_space<vmem>>, %arg2: memref<9x512x128xbf16, #tpu.memory_space<vmem>>, %arg3: memref<1x8x128xf32, #tpu.memory_space<vmem>>) attributes {dimension_semantics = [#tpu.dimension_semantics<parallel>], iteration_bounds = array<i64: 2>, scalar_prefetch = 0 : i64, scratch_operands = 0 : i64, tpu.core_type = #tpu.core_type<tc>, window_params = [{transform_indices = @transform_0, window_bounds = array<i64: 1, 1, 18, 512>}, {pipeline_mode = #tpu.pipeline_mode<synchronous>, transform_indices = @transform_1, window_bounds = array<i64: 9, 512, 128>}, {transform_indices = @transform_2, window_bounds = array<i64: 1, 8, 128>}]} {
    %c0 = arith.constant 0 : index
    %c0_0 = arith.constant 0 : index
    %c0_1 = arith.constant 0 : index
    %c0_2 = arith.constant 0 : index
    %0 = vector.load %arg1[%c0, %c0_0, %c0_1, %c0_2] : memref<1x1x18x512xbf16, #tpu.memory_space<vmem>>, vector<1x1x8x512xbf16>
    %1 = vector.shape_cast %0 : vector<1x1x8x512xbf16> to vector<8x512xbf16>
    %c0_3 = arith.constant 0 : index
    %c0_4 = arith.constant 0 : index
    %c0_5 = arith.constant 0 : index
    %2 = vector.load %arg2[%c0_3, %c0_4, %c0_5] : memref<9x512x128xbf16, #tpu.memory_space<vmem>>, vector<1x512x128xbf16>
    %3 = vector.shape_cast %2 : vector<1x512x128xbf16> to vector<512x128xbf16>
    %cst = arith.constant dense<0.000000e+00> : vector<8x128xf32>
    %4 = tpu.matmul %1, %3, %cst {dimension_numbers = #tpu.dot_dimension_numbers<[1], [0], [0], [1], [0, 0, 1, 1], [], []>} : vector<8x512xbf16>, vector<512x128xbf16>, vector<8x128xf32> -> vector<8x128xf32>
    %c0_6 = arith.constant 0 : index
    %c0_7 = arith.constant 0 : index
    %c0_8 = arith.constant 0 : index
    %5 = vector.load %arg3[%c0_6, %c0_7, %c0_8] : memref<1x8x128xf32, #tpu.memory_space<vmem>>, vector<1x8x128xf32>
    %6 = vector.shape_cast %5 : vector<1x8x128xf32> to vector<8x128xf32>
    %7 = vector.shape_cast %4 : vector<8x128xf32> to vector<1x8x128xf32>
    tpu.vector_store %arg3[%c0_6, %c0_7, %c0_8], %7 {strides = array<i32>} : memref<1x8x128xf32, #tpu.memory_space<vmem>>, vector<1x8x128xf32>,
    %c0_9 = arith.constant 0 : index
    %c0_10 = arith.constant 0 : index
    %c1 = arith.constant 1 : index
    %c0_11 = arith.constant 0 : index
    %8 = vector.load %arg1[%c0_9, %c0_10, %c1, %c0_11] : memref<1x1x18x512xbf16, #tpu.memory_space<vmem>>, vector<1x1x8x512xbf16>
    %9 = vector.shape_cast %8 : vector<1x1x8x512xbf16> to vector<8x512xbf16>
    %c0_12 = arith.constant 0 : index
    %c0_13 = arith.constant 0 : index
    %c0_14 = arith.constant 0 : index
    %10 = vector.load %arg3[%c0_12, %c0_13, %c0_14] : memref<1x8x128xf32, #tpu.memory_space<vmem>>, vector<1x8x128xf32>
    %11 = vector.shape_cast %10 : vector<1x8x128xf32> to vector<8x128xf32>
    %c1_15 = arith.constant 1 : index
    %c0_16 = arith.constant 0 : index
    %c0_17 = arith.constant 0 : index
    %12 = vector.load %arg2[%c1_15, %c0_16, %c0_17] : memref<9x512x128xbf16, #tpu.memory_space<vmem>>, vector<1x512x128xbf16>
    %13 = vector.shape_cast %12 : vector<1x512x128xbf16> to vector<512x128xbf16>
    %cst_18 = arith.constant dense<0.000000e+00> : vector<8x128xf32>
    %14 = tpu.matmul %9, %13, %cst_18 {dimension_numbers = #tpu.dot_dimension_numbers<[1], [0], [0], [1], [0, 0, 1, 1], [], []>} : vector<8x512xbf16>, vector<512x128xbf16>, vector<8x128xf32> -> vector<8x128xf32>
    %15 = arith.addf %11, %14 : vector<8x128xf32>
    %c0_19 = arith.constant 0 : index
    %c0_20 = arith.constant 0 : index
    %c0_21 = arith.constant 0 : index
    %16 = vector.load %arg3[%c0_19, %c0_20, %c0_21] : memref<1x8x128xf32, #tpu.memory_space<vmem>>, vector<1x8x128xf32>
    %17 = vector.shape_cast %16 : vector<1x8x128xf32> to vector<8x128xf32>
    %18 = vector.shape_cast %15 : vector<8x128xf32> to vector<1x8x128xf32>
    tpu.vector_store %arg3[%c0_19, %c0_20, %c0_21], %18 {strides = array<i32>} : memref<1x8x128xf32, #tpu.memory_space<vmem>>, vector<1x8x128xf32>,
    %c0_22 = arith.constant 0 : index
    %c0_23 = arith.constant 0 : index
    %c2 = arith.constant 2 : index
    %c0_24 = arith.constant 0 : index
    %19 = vector.load %arg1[%c0_22, %c0_23, %c2, %c0_24] : memref<1x1x18x512xbf16, #tpu.memory_space<vmem>>, vector<1x1x8x512xbf16>
    %20 = vector.shape_cast %19 : vector<1x1x8x512xbf16> to vector<8x512xbf16>
    %c0_25 = arith.constant 0 : index
    %c0_26 = arith.constant 0 : index
    %c0_27 = arith.constant 0 : index
    %21 = vector.load %arg3[%c0_25, %c0_26, %c0_27] : memref<1x8x128xf32, #tpu.memory_space<vmem>>, vector<1x8x128xf32>
    %22 = vector.shape_cast %21 : vector<1x8x128xf32> to vector<8x128xf32>
    %c2_28 = arith.constant 2 : index
    %c0_29 = arith.constant 0 : index
    %c0_30 = arith.constant 0 : index
    %23 = vector.load %arg2[%c2_28, %c0_29, %c0_30] : memref<9x512x128xbf16, #tpu.memory_space<vmem>>, vector<1x512x128xbf16>
    %24 = vector.shape_cast %23 : vector<1x512x128xbf16> to vector<512x128xbf16>
    %cst_31 = arith.constant dense<0.000000e+00> : vector<8x128xf32>
    %25 = tpu.matmul %20, %24, %cst_31 {dimension_numbers = #tpu.dot_dimension_numbers<[1], [0], [0], [1], [0, 0, 1, 1], [], []>} : vector<8x512xbf16>, vector<512x128xbf16>, vector<8x128xf32> -> vector<8x128xf32>
    %26 = arith.addf %22, %25 : vector<8x128xf32>
    %c0_32 = arith.constant 0 : index
    %c0_33 = arith.constant 0 : index
    %c0_34 = arith.constant 0 : index
    %27 = vector.load %arg3[%c0_32, %c0_33, %c0_34] : memref<1x8x128xf32, #tpu.memory_space<vmem>>, vector<1x8x128xf32>
    %28 = vector.shape_cast %27 : vector<1x8x128xf32> to vector<8x128xf32>
    %29 = vector.shape_cast %26 : vector<8x128xf32> to vector<1x8x128xf32>
    tpu.vector_store %arg3[%c0_32, %c0_33, %c0_34], %29 {strides = array<i32>} : memref<1x8x128xf32, #tpu.memory_space<vmem>>, vector<1x8x128xf32>,
    %c0_35 = arith.constant 0 : index
    %c0_36 = arith.constant 0 : index
    %c4 = arith.constant 4 : index
    %c0_37 = arith.constant 0 : index
    %30 = vector.load %arg1[%c0_35, %c0_36, %c4, %c0_37] : memref<1x1x18x512xbf16, #tpu.memory_space<vmem>>, vector<1x1x8x512xbf16>
    %31 = vector.shape_cast %30 : vector<1x1x8x512xbf16> to vector<8x512xbf16>
    %c0_38 = arith.constant 0 : index
    %c0_39 = arith.constant 0 : index
    %c0_40 = arith.constant 0 : index
    %32 = vector.load %arg3[%c0_38, %c0_39, %c0_40] : memref<1x8x128xf32, #tpu.memory_space<vmem>>, vector<1x8x128xf32>
    %33 = vector.shape_cast %32 : vector<1x8x128xf32> to vector<8x128xf32>
    %c3 = arith.constant 3 : index
    %c0_41 = arith.constant 0 : index
    %c0_42 = arith.constant 0 : index
    %34 = vector.load %arg2[%c3, %c0_41, %c0_42] : memref<9x512x128xbf16, #tpu.memory_space<vmem>>, vector<1x512x128xbf16>
    %35 = vector.shape_cast %34 : vector<1x512x128xbf16> to vector<512x128xbf16>
    %cst_43 = arith.constant dense<0.000000e+00> : vector<8x128xf32>
    %36 = tpu.matmul %31, %35, %cst_43 {dimension_numbers = #tpu.dot_dimension_numbers<[1], [0], [0], [1], [0, 0, 1, 1], [], []>} : vector<8x512xbf16>, vector<512x128xbf16>, vector<8x128xf32> -> vector<8x128xf32>
    %37 = arith.addf %33, %36 : vector<8x128xf32>
    %c0_44 = arith.constant 0 : index
    %c0_45 = arith.constant 0 : index
    %c0_46 = arith.constant 0 : index
    %38 = vector.load %arg3[%c0_44, %c0_45, %c0_46] : memref<1x8x128xf32, #tpu.memory_space<vmem>>, vector<1x8x128xf32>
    %39 = vector.shape_cast %38 : vector<1x8x128xf32> to vector<8x128xf32>
    %40 = vector.shape_cast %37 : vector<8x128xf32> to vector<1x8x128xf32>
    tpu.vector_store %arg3[%c0_44, %c0_45, %c0_46], %40 {strides = array<i32>} : memref<1x8x128xf32, #tpu.memory_space<vmem>>, vector<1x8x128xf32>,
    %c0_47 = arith.constant 0 : index
    %c0_48 = arith.constant 0 : index
    %c5 = arith.constant 5 : index
    %c0_49 = arith.constant 0 : index
    %41 = vector.load %arg1[%c0_47, %c0_48, %c5, %c0_49] : memref<1x1x18x512xbf16, #tpu.memory_space<vmem>>, vector<1x1x8x512xbf16>
    %42 = vector.shape_cast %41 : vector<1x1x8x512xbf16> to vector<8x512xbf16>
    %c0_50 = arith.constant 0 : index
    %c0_51 = arith.constant 0 : index
    %c0_52 = arith.constant 0 : index
    %43 = vector.load %arg3[%c0_50, %c0_51, %c0_52] : memref<1x8x128xf32, #tpu.memory_space<vmem>>, vector<1x8x128xf32>
    %44 = vector.shape_cast %43 : vector<1x8x128xf32> to vector<8x128xf32>
    %c4_53 = arith.constant 4 : index
    %c0_54 = arith.constant 0 : index
    %c0_55 = arith.constant 0 : index
    %45 = vector.load %arg2[%c4_53, %c0_54, %c0_55] : memref<9x512x128xbf16, #tpu.memory_space<vmem>>, vector<1x512x128xbf16>
    %46 = vector.shape_cast %45 : vector<1x512x128xbf16> to vector<512x128xbf16>
    %cst_56 = arith.constant dense<0.000000e+00> : vector<8x128xf32>
    %47 = tpu.matmul %42, %46, %cst_56 {dimension_numbers = #tpu.dot_dimension_numbers<[1], [0], [0], [1], [0, 0, 1, 1], [], []>} : vector<8x512xbf16>, vector<512x128xbf16>, vector<8x128xf32> -> vector<8x128xf32>
    %48 = arith.addf %44, %47 : vector<8x128xf32>
    %c0_57 = arith.constant 0 : index
    %c0_58 = arith.constant 0 : index
    %c0_59 = arith.constant 0 : index
    %49 = vector.load %arg3[%c0_57, %c0_58, %c0_59] : memref<1x8x128xf32, #tpu.memory_space<vmem>>, vector<1x8x128xf32>
    %50 = vector.shape_cast %49 : vector<1x8x128xf32> to vector<8x128xf32>
    %51 = vector.shape_cast %48 : vector<8x128xf32> to vector<1x8x128xf32>
    tpu.vector_store %arg3[%c0_57, %c0_58, %c0_59], %51 {strides = array<i32>} : memref<1x8x128xf32, #tpu.memory_space<vmem>>, vector<1x8x128xf32>,
    %c0_60 = arith.constant 0 : index
    %c0_61 = arith.constant 0 : index
    %c6 = arith.constant 6 : index
    %c0_62 = arith.constant 0 : index
    %52 = vector.load %arg1[%c0_60, %c0_61, %c6, %c0_62] : memref<1x1x18x512xbf16, #tpu.memory_space<vmem>>, vector<1x1x8x512xbf16>
    %53 = vector.shape_cast %52 : vector<1x1x8x512xbf16> to vector<8x512xbf16>
    %c0_63 = arith.constant 0 : index
    %c0_64 = arith.constant 0 : index
    %c0_65 = arith.constant 0 : index
    %54 = vector.load %arg3[%c0_63, %c0_64, %c0_65] : memref<1x8x128xf32, #tpu.memory_space<vmem>>, vector<1x8x128xf32>
    %55 = vector.shape_cast %54 : vector<1x8x128xf32> to vector<8x128xf32>
    %c5_66 = arith.constant 5 : index
    %c0_67 = arith.constant 0 : index
    %c0_68 = arith.constant 0 : index
    %56 = vector.load %arg2[%c5_66, %c0_67, %c0_68] : memref<9x512x128xbf16, #tpu.memory_space<vmem>>, vector<1x512x128xbf16>
    %57 = vector.shape_cast %56 : vector<1x512x128xbf16> to vector<512x128xbf16>
    %cst_69 = arith.constant dense<0.000000e+00> : vector<8x128xf32>
    %58 = tpu.matmul %53, %57, %cst_69 {dimension_numbers = #tpu.dot_dimension_numbers<[1], [0], [0], [1], [0, 0, 1, 1], [], []>} : vector<8x512xbf16>, vector<512x128xbf16>, vector<8x128xf32> -> vector<8x128xf32>
    %59 = arith.addf %55, %58 : vector<8x128xf32>
    %c0_70 = arith.constant 0 : index
    %c0_71 = arith.constant 0 : index
    %c0_72 = arith.constant 0 : index
    %60 = vector.load %arg3[%c0_70, %c0_71, %c0_72] : memref<1x8x128xf32, #tpu.memory_space<vmem>>, vector<1x8x128xf32>
    %61 = vector.shape_cast %60 : vector<1x8x128xf32> to vector<8x128xf32>
    %62 = vector.shape_cast %59 : vector<8x128xf32> to vector<1x8x128xf32>
    tpu.vector_store %arg3[%c0_70, %c0_71, %c0_72], %62 {strides = array<i32>} : memref<1x8x128xf32, #tpu.memory_space<vmem>>, vector<1x8x128xf32>,
    %c0_73 = arith.constant 0 : index
    %c0_74 = arith.constant 0 : index
    %c8 = arith.constant 8 : index
    %c0_75 = arith.constant 0 : index
    %63 = vector.load %arg1[%c0_73, %c0_74, %c8, %c0_75] : memref<1x1x18x512xbf16, #tpu.memory_space<vmem>>, vector<1x1x8x512xbf16>
    %64 = vector.shape_cast %63 : vector<1x1x8x512xbf16> to vector<8x512xbf16>
    %c0_76 = arith.constant 0 : index
    %c0_77 = arith.constant 0 : index
    %c0_78 = arith.constant 0 : index
    %65 = vector.load %arg3[%c0_76, %c0_77, %c0_78] : memref<1x8x128xf32, #tpu.memory_space<vmem>>, vector<1x8x128xf32>
    %66 = vector.shape_cast %65 : vector<1x8x128xf32> to vector<8x128xf32>
    %c6_79 = arith.constant 6 : index
    %c0_80 = arith.constant 0 : index
    %c0_81 = arith.constant 0 : index
    %67 = vector.load %arg2[%c6_79, %c0_80, %c0_81] : memref<9x512x128xbf16, #tpu.memory_space<vmem>>, vector<1x512x128xbf16>
    %68 = vector.shape_cast %67 : vector<1x512x128xbf16> to vector<512x128xbf16>
    %cst_82 = arith.constant dense<0.000000e+00> : vector<8x128xf32>
    %69 = tpu.matmul %64, %68, %cst_82 {dimension_numbers = #tpu.dot_dimension_numbers<[1], [0], [0], [1], [0, 0, 1, 1], [], []>} : vector<8x512xbf16>, vector<512x128xbf16>, vector<8x128xf32> -> vector<8x128xf32>
    %70 = arith.addf %66, %69 : vector<8x128xf32>
    %c0_83 = arith.constant 0 : index
    %c0_84 = arith.constant 0 : index
    %c0_85 = arith.constant 0 : index
    %71 = vector.load %arg3[%c0_83, %c0_84, %c0_85] : memref<1x8x128xf32, #tpu.memory_space<vmem>>, vector<1x8x128xf32>
    %72 = vector.shape_cast %71 : vector<1x8x128xf32> to vector<8x128xf32>
    %73 = vector.shape_cast %70 : vector<8x128xf32> to vector<1x8x128xf32>
    tpu.vector_store %arg3[%c0_83, %c0_84, %c0_85], %73 {strides = array<i32>} : memref<1x8x128xf32, #tpu.memory_space<vmem>>, vector<1x8x128xf32>,
    %c0_86 = arith.constant 0 : index
    %c0_87 = arith.constant 0 : index
    %c9 = arith.constant 9 : index
    %c0_88 = arith.constant 0 : index
    %74 = vector.load %arg1[%c0_86, %c0_87, %c9, %c0_88] : memref<1x1x18x512xbf16, #tpu.memory_space<vmem>>, vector<1x1x8x512xbf16>
    %75 = vector.shape_cast %74 : vector<1x1x8x512xbf16> to vector<8x512xbf16>
    %c0_89 = arith.constant 0 : index
    %c0_90 = arith.constant 0 : index
    %c0_91 = arith.constant 0 : index
    %76 = vector.load %arg3[%c0_89, %c0_90, %c0_91] : memref<1x8x128xf32, #tpu.memory_space<vmem>>, vector<1x8x128xf32>
    %77 = vector.shape_cast %76 : vector<1x8x128xf32> to vector<8x128xf32>
    %c7 = arith.constant 7 : index
    %c0_92 = arith.constant 0 : index
    %c0_93 = arith.constant 0 : index
    %78 = vector.load %arg2[%c7, %c0_92, %c0_93] : memref<9x512x128xbf16, #tpu.memory_space<vmem>>, vector<1x512x128xbf16>
    %79 = vector.shape_cast %78 : vector<1x512x128xbf16> to vector<512x128xbf16>
    %cst_94 = arith.constant dense<0.000000e+00> : vector<8x128xf32>
    %80 = tpu.matmul %75, %79, %cst_94 {dimension_numbers = #tpu.dot_dimension_numbers<[1], [0], [0], [1], [0, 0, 1, 1], [], []>} : vector<8x512xbf16>, vector<512x128xbf16>, vector<8x128xf32> -> vector<8x128xf32>
    %81 = arith.addf %77, %80 : vector<8x128xf32>
    %c0_95 = arith.constant 0 : index
    %c0_96 = arith.constant 0 : index
    %c0_97 = arith.constant 0 : index
    %82 = vector.load %arg3[%c0_95, %c0_96, %c0_97] : memref<1x8x128xf32, #tpu.memory_space<vmem>>, vector<1x8x128xf32>
    %83 = vector.shape_cast %82 : vector<1x8x128xf32> to vector<8x128xf32>
    %84 = vector.shape_cast %81 : vector<8x128xf32> to vector<1x8x128xf32>
    tpu.vector_store %arg3[%c0_95, %c0_96, %c0_97], %84 {strides = array<i32>} : memref<1x8x128xf32, #tpu.memory_space<vmem>>, vector<1x8x128xf32>,
    %c0_98 = arith.constant 0 : index
    %c0_99 = arith.constant 0 : index
    %c10 = arith.constant 10 : index
    %c0_100 = arith.constant 0 : index
    %85 = vector.load %arg1[%c0_98, %c0_99, %c10, %c0_100] : memref<1x1x18x512xbf16, #tpu.memory_space<vmem>>, vector<1x1x8x512xbf16>
    %86 = vector.shape_cast %85 : vector<1x1x8x512xbf16> to vector<8x512xbf16>
    %c0_101 = arith.constant 0 : index
    %c0_102 = arith.constant 0 : index
    %c0_103 = arith.constant 0 : index
    %87 = vector.load %arg3[%c0_101, %c0_102, %c0_103] : memref<1x8x128xf32, #tpu.memory_space<vmem>>, vector<1x8x128xf32>
    %88 = vector.shape_cast %87 : vector<1x8x128xf32> to vector<8x128xf32>
    %c8_104 = arith.constant 8 : index
    %c0_105 = arith.constant 0 : index
    %c0_106 = arith.constant 0 : index
    %89 = vector.load %arg2[%c8_104, %c0_105, %c0_106] : memref<9x512x128xbf16, #tpu.memory_space<vmem>>, vector<1x512x128xbf16>
    %90 = vector.shape_cast %89 : vector<1x512x128xbf16> to vector<512x128xbf16>
    %cst_107 = arith.constant dense<0.000000e+00> : vector<8x128xf32>
    %91 = tpu.matmul %86, %90, %cst_107 {dimension_numbers = #tpu.dot_dimension_numbers<[1], [0], [0], [1], [0, 0, 1, 1], [], []>} : vector<8x512xbf16>, vector<512x128xbf16>, vector<8x128xf32> -> vector<8x128xf32>
    %92 = arith.addf %88, %91 : vector<8x128xf32>
    %c0_108 = arith.constant 0 : index
    %c0_109 = arith.constant 0 : index
    %c0_110 = arith.constant 0 : index
    %93 = vector.load %arg3[%c0_108, %c0_109, %c0_110] : memref<1x8x128xf32, #tpu.memory_space<vmem>>, vector<1x8x128xf32>
    %94 = vector.shape_cast %93 : vector<1x8x128xf32> to vector<8x128xf32>
    %95 = vector.shape_cast %92 : vector<8x128xf32> to vector<1x8x128xf32>
    tpu.vector_store %arg3[%c0_108, %c0_109, %c0_110], %95 {strides = array<i32>} : memref<1x8x128xf32, #tpu.memory_space<vmem>>, vector<1x8x128xf32>,
    %c0_111 = arith.constant 0 : index
    %c0_112 = arith.constant 0 : index
    %c0_113 = arith.constant 0 : index
    %96 = vector.load %arg3[%c0_111, %c0_112, %c0_113] : memref<1x8x128xf32, #tpu.memory_space<vmem>>, vector<1x8x128xf32>
    %97 = vector.shape_cast %96 : vector<1x8x128xf32> to vector<8x128xf32>
    %cst_114 = arith.constant 0.000000e+00 : f32
    %98 = vector.broadcast %cst_114 : f32 to vector<8x128xf32>
    %99 = arith.subf %98, %97 : vector<8x128xf32>
    %100 = math.exp %99 : vector<8x128xf32>
    %cst_115 = arith.constant 1.000000e+00 : f32
    %101 = vector.broadcast %cst_115 : f32 to vector<8x128xf32>
    %102 = arith.addf %101, %100 : vector<8x128xf32>
    %cst_116 = arith.constant 1.000000e+00 : f32
    %103 = vector.broadcast %cst_116 : f32 to vector<8x128xf32>
    %104 = arith.divf %103, %102 : vector<8x128xf32>
    %c0_117 = arith.constant 0 : index
    %c0_118 = arith.constant 0 : index
    %c0_119 = arith.constant 0 : index
    %105 = vector.load %arg3[%c0_117, %c0_118, %c0_119] : memref<1x8x128xf32, #tpu.memory_space<vmem>>, vector<1x8x128xf32>
    %106 = vector.shape_cast %105 : vector<1x8x128xf32> to vector<8x128xf32>
    %107 = vector.shape_cast %104 : vector<8x128xf32> to vector<1x8x128xf32>
    tpu.vector_store %arg3[%c0_117, %c0_118, %c0_119], %107 {strides = array<i32>} : memref<1x8x128xf32, #tpu.memory_space<vmem>>, vector<1x8x128xf32>,
    return
  }
  func.func @transform_0(%arg0: i32) -> (i32, i32, i32, i32) {
    %c0_i32 = arith.constant 0 : i32
    %c0_i32_0 = arith.constant 0 : i32
    %c0_i32_1 = arith.constant 0 : i32
    %c0_i32_2 = arith.constant 0 : i32
    return %arg0, %c0_i32, %c0_i32_0, %c0_i32_1 : i32, i32, i32, i32
  }
  func.func @transform_1(%arg0: i32) -> (i32, i32, i32) {
    %c0_i32 = arith.constant 0 : i32
    %c0_i32_0 = arith.constant 0 : i32
    %c0_i32_1 = arith.constant 0 : i32
    %c0_i32_2 = arith.constant 0 : i32
    return %c0_i32, %c0_i32_0, %c0_i32_1 : i32, i32, i32
  }
  func.func @transform_2(%arg0: i32) -> (i32, i32, i32) {
    %c0_i32 = arith.constant 0 : i32
    %c0_i32_0 = arith.constant 0 : i32
    %c0_i32_1 = arith.constant 0 : i32
    return %arg0, %c0_i32, %c0_i32_0 : i32, i32, i32
  }
}

</mosaic_0001>

<bundles_post_ra>
// kernel: simple_discriminator_forward.6
= control target key start
LH: loop header
LB: loop body
LE: loop exit
PB: predicated region body
PF: predicated region fallthrough
CT: control target
= control target key end

     0   :  { %s1894_s12 = smov 0   ;;  %s1896_s13 = smov 0   ;;  %s2097_s0 = inlined_call_operand.vmem [shape: bf16[2,4,26,64], index: 0, kind: input, shape index: {}]   ;;  %s2098_s1 = inlined_call_operand.vmem [shape: bf16[9,64,128], index: 1, kind: input, shape index: {}]   ;;  %s2099_s2 = inlined_call_operand.vmem [shape: f32[20,1], index: 2, kind: input, shape index: {}]   ;;  %s2100_s3 = inlined_call_operand.vmem [shape: bf16[2,20,128], index: 3, kind: output, shape index: {}]  }
   0x1   :  { %s1898_s14 = smov 0  }
   0x2 LB: > { %s25_s15 = sadd.s32 1, %s1867_s13  ;;  %p1433_p0 = scmp.ge.s32.totalorder %s1871_s14, 1  ;;  %s1871_s14 = sphi %s1898_s14, %s13_s14   ;;  %s1867_s13 = sphi %s1896_s13, %s2102_s13   ;;  %s1863_s12 = sphi %s1894_s12, %s2101_s12  }
   0x3   : > { %p27_p1 = scmp.ge.s32.totalorder %s25_s15, 2  ;;  %p160_p2 = scmp.lt.s32.totalorder %s1871_s14, 3 }
   0x5   : > { %s2104_s15 = smov (%p27_p1, %s25_s15), 0  ;;  %p161_p3 = pnand %p1433_p0, %p160_p2 }
   0x6   : > { %v1793_v0 = vld [vmem:[%s2098_s1] sm:$0xff] (!%p161_p3)   ;;  %p191_p4 = scmp.lt.s32.totalorder (!%p161_p3), %s1863_s12, 1  ;;  %v1794_v1 = vld [vmem:[%s2098_s1 + $0x8] sm:$0xff] (!%p161_p3)   ;;  %v1796_v3 = vld [vmem:[%s2098_s1 + $0x10] sm:$0xff] (!%p161_p3)   ;;  %vm252_vm0 = vcmask (!%p161_p3), 523264   ;;  %v1873_v6 = vmov (!%p161_p3), 0  }
   0x7   : > { %164 = sbr.rel (%p161_p3) target bundleno = 390 (0x186), region = 32  ;;  %1657 = vmatprep.subr.bf16.mxu0 (!%p161_p3), %v1793_v0  ;;  %v1795_v2 = vld [vmem:[%s2098_s1 + $0x20] sm:$0xff] (!%p161_p3)   ;;  %v1797_v4 = vld [vmem:[%s2098_s1 + $0x28] sm:$0xff] (!%p161_p3)   ;;  %v1799_v5 = vld [vmem:[%s2098_s1 + $0x30] sm:$0xff] (!%p161_p3)   ;;  %1791 = vset.pattern.permute.xlu0 (!%p161_p3), %v1873_v6  ;;  %vm441_vm1 = vsmask.f32 (!%p161_p3), 7424 }
   0x8   : > { %1658 = vmatpush3.bf16.msra.mxu0 (!%p161_p3), %v1793_v0  ;;  %1669 = vmatprep.subr.bf16.mxu1 (!%p161_p3), %v1795_v2  ;;  %v1798_v8 = vld [vmem:[%s2098_s1 + $0x18] sm:$0xff] (!%p161_p3)   ;;  %v1802_v11 = vld [vmem:[%s2098_s1 + $0x40] sm:$0xff] (!%p161_p3)   ;;  %v1805_v15 = vld [vmem:[%s2098_s1 + $0x48] sm:$0xff] (!%p161_p3)   ;;  %vm905_vm2 = vsmask.f32 (!%p161_p3), 5376  ;;  %vm1160_vm3 = vcmask (!%p161_p3), 1044480  }
   0x9   : > { %1659 = vmatprep.subr.bf16.mxu0 (!%p161_p3), %v1794_v1  ;;  %1670 = vmatpush3.bf16.msra.mxu1 (!%p161_p3), %v1795_v2  ;;  %v1803_v9 = vld [vmem:[%s2098_s1 + $0x38] sm:$0xff] (!%p161_p3)   ;;  %v1808_v14 = vld [vmem:[%s2098_s1 + $0x60] sm:$0xff] (!%p161_p3)   ;;  %v1810_v16 = vld [vmem:[%s2098_s1 + $0x68] sm:$0xff] (!%p161_p3)   ;;  %vm1273_vm4 = vcmask (!%p161_p3), 1043456  }
   0xa   : > { %1671 = vmatprep.subr.bf16.mxu1 (!%p161_p3), %v1797_v4  ;;  %1792 = vset.pattern.permute.xlu1 (!%p161_p3), %v1873_v6  ;;  %v1807_v19 = vld [vmem:[%s2098_s1 + $0x50] sm:$0xff] (!%p161_p3)   ;;  %v1809_v23 = vld [vmem:[%s2098_s1 + $0x58] sm:$0xff] (!%p161_p3)   ;;  %v1814_v32 = vld [vmem:[%s2098_s1 + $0x80] sm:$0xff] (!%p161_p3)  }
   0xb   : > { %v1813_v26 = vld [vmem:[%s2098_s1 + $0x70] sm:$0xff] (!%p161_p3)   ;;  %v1815_v30 = vld [vmem:[%s2098_s1 + $0x78] sm:$0xff] (!%p161_p3)   ;;  %v1820_v35 = vld [vmem:[%s2098_s1 + $0xa0] sm:$0xff] (!%p161_p3)  }
   0xc   : > { %1660 = vmatpush3.bf16.msra.mxu0 (!%p161_p3), %v1794_v1  ;;  %v1816_v37 = vld [vmem:[%s2098_s1 + $0x88] sm:$0xff] (!%p161_p3)   ;;  %v1819_v38 = vld [vmem:[%s2098_s1 + $0x90] sm:$0xff] (!%p161_p3)   ;;  %v1821_v46 = vld [vmem:[%s2098_s1 + $0x98] sm:$0xff] (!%p161_p3)  }
   0xd   : > { %1661 = vmatprep.subr.bf16.mxu0 (!%p161_p3), %v1796_v3  ;;  %1672 = vmatpush3.bf16.msra.mxu1 (!%p161_p3), %v1797_v4  ;;  %v1822_v39 = vld [vmem:[%s2098_s1 + $0xa8] sm:$0xff] (!%p161_p3)   ;;  %v1825_v42 = vld [vmem:[%s2098_s1 + $0xb0] sm:$0xff] (!%p161_p3)   ;;  %v1827_v47 = vld [vmem:[%s2098_s1 + $0xb8] sm:$0xff] (!%p161_p3)  }
   0xe   : > { %s2106_s12 = smov (!%p191_p4, %s1863_s12), 1  ;;  %1673 = vmatprep.subr.bf16.mxu1 %v1799_v5  ;;  %v1826_v52 = vld [vmem:[%s2098_s1 + $0xc0] sm:$0xff]   ;;  %v1828_v62 = vld [vmem:[%s2098_s1 + $0xc8] sm:$0xff]  }
   0xf   : > { %s1594_s26 = sshll.u32 %s2106_s12, 6  ;;  %v1832_v57 = vld [vmem:[%s2098_s1 + $0xe0] sm:$0xff]   ;;  %v1834_v4 = vld [vmem:[%s2098_s1 + $0xe8] sm:$0xff]   ;;  %s1765_s4 = smul.u32 12, %s2106_s12 }
  0x10   : > { %s1933_s29 = scalar_lea.vmem %s2097_s0, %s1594_s26  ;;  %1662 = vmatpush3.bf16.msra.mxu0 %v1796_v3 }
  0x11   : > { %v1800_v7 = vld [vmem:[%s1933_s29] sm:$0xff]   ;;  %v1804_v10 = vld [vmem:[%s1933_s29 + $0x10] sm:$0xff]   ;;  %1663 = vmatprep.subr.bf16.mxu0 %v1798_v8  ;;  %1674 = vmatpush3.bf16.msra.mxu1 %v1799_v5  ;;  %v1801_v12 = vld [vmem:[%s1933_s29 + $0x8] ss:$0 sps:$4 sm:$0x33]   ;;  %s207_s7 = scalar_lea.vmem %s2100_s3, %s1765_s4 }
  0x12   : > { %1665 = vmatprep.mubr.msk.bf16.mxu0 %vm252_vm0, %v1800_v7  ;;  %1677 = vmatprep.mubr.msk.bf16.mxu1 %vm252_vm0, %v1804_v10  ;;  %v1806_v13 = vld [vmem:[%s1933_s29 + $0x18] ss:$0 sps:$4 sm:$0x33]   ;;  %v1811_v17 = vld [vmem:[%s1933_s29] sm:$0xff]   ;;  %v1823_v36 = vld [vmem:[%s1933_s29 + $0x30] sm:$0xff]  }
  0x13   : > { %1675 = vmatprep.subr.bf16.mxu1 %v1803_v9  ;;  %v1812_v18 = vld [vmem:[%s1933_s29 + $0x8] ss:$0 sps:$4 sm:$0x77]   ;;  %v443_v20 = vshrl.u32 %v1811_v17, 16  ;;  %v445_v21 = vshll.u32 %v1811_v17, 16  ;;  %v1817_v28 = vld [vmem:[%s1933_s29 + $0x20] sm:$0xff]  }
  0x14   : > { %1664 = vmatpush3.bf16.msra.mxu0 %v1798_v8  ;;  %v450_v22 = vshll.u32 %v1812_v18, 16  ;;  %v454_v29 = vshrl.u32 %v1812_v18, 16  ;;  %v1818_v34 = vld [vmem:[%s1933_s29 + $0x28] ss:$0 sps:$4 sm:$0x33]   ;;  %v1829_v40 = vld [vmem:[%s1933_s29 + $0x20] sm:$0xff]  }
  0x15   : > { %1681 = vmatprep.subr.bf16.mxu0 %v1802_v11  ;;  %1676 = vmatpush3.bf16.msra.mxu1 %v1803_v9  ;;  %v447_v24 = vrot.slane %v445_v21, 1  ;;  %v1830_v41 = vld [vmem:[%s1933_s29 + $0x28] ss:$0 sps:$4 sm:$0x77]   ;;  %v781_v43 = vshrl.u32 %v1829_v40, 16  ;;  %v783_v44 = vshll.u32 %v1829_v40, 16 }
  0x16   : > { %1693 = vmatprep.subr.bf16.mxu1 %v1808_v14  ;;  %v452_v25 = vrot.slane %v450_v22, 1  ;;  %v788_v45 = vshll.u32 %v1830_v41, 16  ;;  %v1835_v51 = vld [vmem:[%s1933_s29] sm:$0xfc]   ;;  %v1836_v53 = vld [vmem:[%s1933_s29 + $0x8] sm:$0x1f]  }
  0x17   : > { %1666 = vmatmul.mubr.msk.bf16.vlgmr.msra.gmra.mrb[0].mxu0 %vm252_vm0, %v1801_v12  ;;  %v448_v27 = vor.u32 %v447_v24, %v443_v20  ;;  %v785_v48 = vrot.slane %v783_v44, 1  ;;  %v1824_v54 = vld [vmem:[%s1933_s29 + $0x38] ss:$0 sps:$4 sm:$0x33]   ;;  %v792_v56 = vshrl.u32 %v1830_v41, 16  ;;  %v907_v58 = vshrl.u32 %v1835_v51, 16 }
  0x18   : > { %1682 = vmatpush3.bf16.msra.mxu0 %v1802_v11  ;;  %1678 = vmatmul.mubr.msk.bf16.vlgmr.msra.gmra.mrb[0].mxu1 %vm252_vm0, %v1806_v13  ;;  %v456_v33 = vor.u32 %v454_v29, %v452_v25  ;;  %v790_v49 = vrot.slane %v788_v45, 1  ;;  %v910_v59 = vshll.u32 %v1835_v51, 16  ;;  %v915_v60 = vshrl.u32 %v1836_v53, 16  ;;  %v1841_v7 = vld [vmem:[%s1933_s29 + $0x10] sm:$0xfc]   ;;  %v1833_v20 = vld [vmem:[%s2098_s1 + $0xd8] sm:$0xff]  }
  0x19   : > { %1683 = vmatprep.subr.bf16.mxu0 %v1805_v15  ;;  %1694 = vmatpush3.bf16.msra.mxu1 %v1808_v14  ;;  %v453_v31 = vsel %vm441_vm1, %v448_v27, %v452_v25  ;;  %v786_v50 = vor.u32 %v785_v48, %v781_v43  ;;  %v918_v61 = vshll.u32 %v1836_v53, 16  ;;  %v909_v63 = vrot.slane %v907_v58, 2  ;;  %v1842_v8 = vld [vmem:[%s1933_s29 + $0x18] sm:$0x1f]   ;;  %v1831_v9 = vld [vmem:[%s2098_s1 + $0xd0] sm:$0xff]   ;;  %v1251_v22 = vld [vmem:[%s2099_s2] sm:$0xff] }
  0x1a   : > { %1695 = vmatprep.subr.bf16.mxu1 %v1810_v16  ;;  %1701 = vmatprep.mubr.msk.bf16.mxu1 %vm252_vm0, %v1817_v28  ;;  %v912_v0 = vrot.slane %v910_v59, 3  ;;  %v917_v1 = vrot.slane %v915_v60, 2  ;;  %v794_v3 = vor.u32 %v792_v56, %v790_v49  ;;  %v1034_v11 = vshrl.u32 %v1841_v7, 16  ;;  %v1837_v17 = vld [vmem:[%s2098_s1 + $0xf0] sm:$0xff]   ;;  %v1845_v24 = vld [vmem:[%s1933_s29] sm:$0xf8]  }
  0x1b   : > { %1689 = vmatprep.mubr.msk.bf16.mxu0 %vm252_vm0, %v453_v31  ;;  %v791_v55 = vsel %vm441_vm1, %v786_v50, %v790_v49  ;;  %v920_v2 = vrot.slane %v918_v61, 3  ;;  %v1037_v12 = vshll.u32 %v1841_v7, 16  ;;  %v1042_v13 = vshrl.u32 %v1842_v8, 16  ;;  %v1846_v25 = vld [vmem:[%s1933_s29 + $0x8] sm:$0x1f]   ;;  %1256 = vperm.xlu0 %1791, %v1251_v22   ;;  %v1839_v28 = vld [vmem:[%s2098_s1 + $0xf8] sm:$0xff]  }
  0x1c   : > { %1684 = vmatpush3.bf16.msra.mxu0 %v1805_v15  ;;  %v913_v5 = vor.u32 %v912_v0, %v909_v63  ;;  %v1045_v14 = vshll.u32 %v1842_v8, 16  ;;  %v1036_v15 = vrot.slane %v1034_v11, 2  ;;  %v1252_v27 = vld [vmem:[%s2099_s2 + $0x8] sm:$0xff]  ;;  %v1161_v31 = vrot.slane %v1845_v24, 3 }
  0x1d   : > { %1685 = vmatprep.subr.bf16.mxu0 %v1807_v19  ;;  %1696 = vmatpush3.bf16.msra.mxu1 %v1810_v16  ;;  %v921_v6 = vor.u32 %v920_v2, %v917_v1  ;;  %v1039_v16 = vrot.slane %v1037_v12, 3  ;;  %v1044_v18 = vrot.slane %v1042_v13, 2 }
  0x1e   : > { %1697 = vmatprep.subr.bf16.mxu1 %v1813_v26 }
  0x1f   : > { %v922_v10 = vsel %vm905_vm2, %v913_v5, %v921_v6  ;;  %v1040_v21 = vor.u32 %v1039_v16, %v1036_v15  ;;  %1261 = vperm.xlu0 %1791, %v1252_v27  }
  0x20   : > { %1686 = vmatpush3.bf16.msra.mxu0 %v1807_v19  ;;  %v1047_v19 = vrot.slane %v1045_v14, 3 }
  0x21   : > { %1687 = vmatprep.subr.bf16.mxu0 %v1809_v23  ;;  %1698 = vmatpush3.bf16.msra.mxu1 %v1813_v26  ;;  %v1253_v26 = vld [vmem:[%s2099_s2 + $0x10] sm:$0xf] }
  0x22   : > { %1699 = vmatprep.subr.bf16.mxu1 %v1815_v30  ;;  %1266 = vperm.xlu1 %1792, %v1253_v26  }
  0x24   : > { %1688 = vmatpush3.bf16.msra.mxu0 %v1809_v23  ;;  %v1048_v23 = vor.u32 %v1047_v19, %v1044_v18 }
  0x25   : > { %1705 = vmatprep.subr.bf16.mxu0 %v1814_v32  ;;  %1700 = vmatpush3.bf16.msra.mxu1 %v1815_v30  ;;  %v1838_v30 = vld [vmem:[%s2098_s1 + $0x100] sm:$0xff]  }
  0x26   : > { %1717 = vmatprep.subr.bf16.mxu1 %v1820_v35  ;;  %v1049_v29 = vsel %vm905_vm2, %v1040_v21, %v1048_v23 }
  0x27   : > { %1690 = vmatmul.mubr.msk.bf16.vlgmr.msra.gmra.mrb[4].mxu0 %vm252_vm0, %v456_v33  ;;  %v1840_v33 = vld [vmem:[%s2098_s1 + $0x108] sm:$0xff]  }
  0x28   : > { %1706 = vmatpush3.bf16.msra.mxu0 %v1814_v32  ;;  %1713 = vmatprep.mubr.msk.bf16.mxu0 %vm252_vm0, %v1823_v36  ;;  %v1162_v32 = vrot.slane %v1846_v25, 3  ;;  %v1844_v36 = vld [vmem:[%s2098_s1 + $0x118] sm:$0xff]  }
  0x29   : > { %1707 = vmatprep.subr.bf16.mxu0 %v1816_v37  ;;  %1702 = vmatmul.mubr.msk.bf16.vlgmr.msra.gmra.mrb[4].mxu1 %vm252_vm0, %v1818_v34 }
  0x2a   : > { %1718 = vmatpush3.bf16.msra.mxu1 %v1820_v35  ;;  %1725 = vmatprep.mubr.msk.bf16.mxu1 %vm252_vm0, %v791_v55  ;;  %v1163_v34 = vsel %vm1160_vm3, %v1161_v31, %v1162_v32  ;;  %v1843_v35 = vld [vmem:[%s2098_s1 + $0x110] sm:$0xff]  }
  0x2b   : > { %1719 = vmatprep.subr.bf16.mxu1 %v1822_v39 }
  0x2c   : > { %1708 = vmatpush3.bf16.msra.mxu0 %v1816_v37 }
  0x2d   : > { %1709 = vmatprep.subr.bf16.mxu0 %v1819_v38 }
  0x2e   : > { %1720 = vmatpush3.bf16.msra.mxu1 %v1822_v39 }
  0x2f   : > { %1721 = vmatprep.subr.bf16.mxu1 %v1825_v42 }
  0x30   : > { %1710 = vmatpush3.bf16.msra.mxu0 %v1819_v38 }
  0x31   : > { %1711 = vmatprep.subr.bf16.mxu0 %v1821_v46 }
  0x32   : > { %1722 = vmatpush3.bf16.msra.mxu1 %v1825_v42 }
  0x33   : > { %1723 = vmatprep.subr.bf16.mxu1 %v1827_v47 }
  0x34   : > { %1712 = vmatpush3.bf16.msra.mxu0 %v1821_v46 }
  0x35   : > { %1729 = vmatprep.subr.bf16.mxu0 %v1826_v52 }
  0x36   : > { %1724 = vmatpush3.bf16.msra.mxu1 %v1827_v47 }
  0x37   : > { %1714 = vmatmul.mubr.msk.bf16.vlgmr.msra.gmra.mrb[8].mxu0 %vm252_vm0, %v1824_v54  ;;  %1741 = vmatprep.subr.bf16.mxu1 %v1832_v57 }
  0x38   : > { %1730 = vmatpush3.bf16.msra.mxu0 %v1826_v52  ;;  %1737 = vmatprep.mubr.msk.bf16.mxu0 %vm252_vm0, %v922_v10 }
  0x39   : > { %1731 = vmatprep.subr.bf16.mxu0 %v1828_v62  ;;  %1726 = vmatmul.mubr.msk.bf16.vlgmr.msra.gmra.mrb[8].mxu1 %vm252_vm0, %v794_v3 }
  0x3a   : > { %1742 = vmatpush3.bf16.msra.mxu1 %v1832_v57  ;;  %1749 = vmatprep.mubr.msk.bf16.mxu1 %vm252_vm0, %v1049_v29 }
  0x3b   : > { %1743 = vmatprep.subr.bf16.mxu1 %v1834_v4 }
  0x3c   : > { %1732 = vmatpush3.bf16.msra.mxu0 %v1828_v62 }
  0x3d   : > { %1733 = vmatprep.subr.bf16.mxu0 %v1831_v9 }
  0x3e   : > { %1744 = vmatpush3.bf16.msra.mxu1 %v1834_v4 }
  0x3f   : > { %1745 = vmatprep.subr.bf16.mxu1 %v1837_v17 }
  0x40   : > { %1734 = vmatpush3.bf16.msra.mxu0 %v1831_v9 }
  0x41   : > { %1735 = vmatprep.subr.bf16.mxu0 %v1833_v20 }
  0x42   : > { %1746 = vmatpush3.bf16.msra.mxu1 %v1837_v17 }
  0x43   : > { %1747 = vmatprep.subr.bf16.mxu1 %v1839_v28 }
  0x44   : > { %1736 = vmatpush3.bf16.msra.mxu0 %v1833_v20 }
  0x45   : > { %1753 = vmatprep.subr.bf16.mxu0 %v1838_v30 }
  0x46   : > { %1748 = vmatpush3.bf16.msra.mxu1 %v1839_v28 }
  0x47   : > { %1738 = vmatmul.mubr.msk.bf16.vlgmr.msra.gmra.mrb[12].mxu0 %vm252_vm0, %v921_v6 }
  0x48   : > { %1754 = vmatpush3.bf16.msra.mxu0 %v1838_v30  ;;  %1761 = vmatprep.mubr.msk.bf16.mxu0 %vm252_vm0, %v1163_v34 }
  0x49   : > { %1755 = vmatprep.subr.bf16.mxu0 %v1840_v33  ;;  %1750 = vmatmul.mubr.msk.bf16.vlgmr.msra.gmra.mrb[12].mxu1 %vm252_vm0, %v1048_v23 }
  0x4c   : > { %1756 = vmatpush3.bf16.msra.mxu0 %v1840_v33 }
  0x4d   : > { %1757 = vmatprep.subr.bf16.mxu0 %v1843_v35 }
  0x50   : > { %1758 = vmatpush3.bf16.msra.mxu0 %v1843_v35 }
  0x51   : > { %1759 = vmatprep.subr.bf16.mxu0 %v1844_v36 }
  0x54   : > { %1760 = vmatpush3.bf16.msra.mxu0 %v1844_v36 }
  0x57   : > { %1762 = vmatmul.mubr.msk.bf16.vlgmr.msra.gmra.mrb[16].mxu0 %vm252_vm0, %v1162_v32 }
  0x9a   : > { %v2077_v31 = vpop.permute.xlu0 %1256 }
  0xea   : > { %v1667_v37 = vpop.f32.mrb[0].mxu0 }
  0xeb   : > { %309 = vst [vmem:[#allocation2 + $0x10] sm:$0xf] %v1667_v37  ;;  %v293_v38 = vpop.f32.mrb[1].mxu0  ;;  %v1679_v40 = vpop.f32.mrb[0].mxu1 }
  0xec   : > { %v1668_v39 = vpop.f32.mrb[2].mxu0  ;;  %v398_v42 = vpop.f32.mrb[1].mxu1 }
  0xed   : > { %v296_v41 = vpop.f32.mrb[3].mxu0  ;;  %v412_v43 = vadd.f32 %v398_v42, %v293_v38  ;;  %v1680_v44 = vpop.f32.mrb[2].mxu1 }
  0xee   : > { %v401_v45 = vpop.f32.mrb[3].mxu1  ;;  %v1262_v37 = vpop.permute.xlu0 %1261 }
  0xef   : > { %v413_v46 = vadd.f32 %v401_v45, %v296_v41 }
  0xf2   : > { %v316_v47 = vld [vmem:[#allocation2 + $0x10] sm:$0xf] }
  0xf3   : > { %v414_v48 = vadd.f32 %v1679_v40, %v316_v47 }
  0xf5   : > { %417 = vst [vmem:[#allocation2 + $0x10] sm:$0xf] %v414_v48 }
  0xfa   : > { %v1691_v49 = vpop.f32.mrb[4].mxu0 }
  0xfb   : > { %v521_v50 = vpop.f32.mrb[5].mxu0 }
  0xfc   : > { %v423_v51 = vld [vmem:[#allocation2 + $0x10] sm:$0xf]  ;;  %v535_v52 = vadd.f32 %v521_v50, %v412_v43  ;;  %v1692_v53 = vpop.f32.mrb[6].mxu0  ;;  %v1703_v54 = vpop.f32.mrb[4].mxu1 }
  0xfd   : > { %v537_v55 = vadd.f32 %v1691_v49, %v423_v51  ;;  %v524_v56 = vpop.f32.mrb[7].mxu0  ;;  %v629_v57 = vpop.f32.mrb[5].mxu1 }
  0xfe   : > { %v536_v58 = vadd.f32 %v524_v56, %v413_v46  ;;  %v643_v59 = vadd.f32 %v629_v57, %v535_v52  ;;  %v1704_v60 = vpop.f32.mrb[6].mxu1  ;;  %v1267_v46 = vpop.permute.xlu1 %1266 }
  0xff   : > { %540 = vst [vmem:[#allocation2 + $0x10] sm:$0xf] %v537_v55  ;;  %v632_v61 = vpop.f32.mrb[7].mxu1 }
 0x100   : > { %v644_v62 = vadd.f32 %v632_v61, %v536_v58 }
 0x106   : > { %v547_v63 = vld [vmem:[#allocation2 + $0x10] sm:$0xf] }
 0x107   : > { %v645_v0 = vadd.f32 %v1703_v54, %v547_v63 }
 0x109   : > { %648 = vst [vmem:[#allocation2 + $0x10] sm:$0xf] %v645_v0 }
 0x10a   : > { %v1715_v1 = vpop.f32.mrb[8].mxu0 }
 0x10b   : > { %v737_v2 = vpop.f32.mrb[9].mxu0 }
 0x10c   : > { %v751_v3 = vadd.f32 %v737_v2, %v643_v59  ;;  %v1716_v4 = vpop.f32.mrb[10].mxu0  ;;  %v1727_v5 = vpop.f32.mrb[8].mxu1 }
 0x10d   : > { %v740_v6 = vpop.f32.mrb[11].mxu0  ;;  %v859_v7 = vpop.f32.mrb[9].mxu1 }
 0x10e   : > { %v752_v8 = vadd.f32 %v740_v6, %v644_v62  ;;  %v873_v9 = vadd.f32 %v859_v7, %v751_v3  ;;  %v1728_v10 = vpop.f32.mrb[10].mxu1 }
 0x10f   : > { %v862_v11 = vpop.f32.mrb[11].mxu1 }
 0x110   : > { %v655_v12 = vld [vmem:[#allocation2 + $0x10] sm:$0xf]  ;;  %v874_v13 = vadd.f32 %v862_v11, %v752_v8 }
 0x111   : > { %v753_v14 = vadd.f32 %v1715_v1, %v655_v12 }
 0x113   : > { %756 = vst [vmem:[#allocation2 + $0x10] sm:$0xf] %v753_v14 }
 0x11a   : > { %v762_v15 = vld [vmem:[#allocation2 + $0x10] sm:$0xf]  ;;  %v1739_v16 = vpop.f32.mrb[12].mxu0 }
 0x11b   : > { %v875_v17 = vadd.f32 %v1727_v5, %v762_v15  ;;  %v987_v18 = vpop.f32.mrb[13].mxu0 }
 0x11c   : > { %v1001_v19 = vadd.f32 %v987_v18, %v873_v9  ;;  %v1740_v20 = vpop.f32.mrb[14].mxu0  ;;  %v1751_v21 = vpop.f32.mrb[12].mxu1 }
 0x11d   : > { %878 = vst [vmem:[#allocation2 + $0x10] sm:$0xf] %v875_v17  ;;  %v990_v22 = vpop.f32.mrb[15].mxu0  ;;  %v1114_v23 = vpop.f32.mrb[13].mxu1 }
 0x11e   : > { %v1002_v24 = vadd.f32 %v990_v22, %v874_v13  ;;  %v1128_v25 = vadd.f32 %v1114_v23, %v1001_v19  ;;  %v1752_v26 = vpop.f32.mrb[14].mxu1 }
 0x11f   : > { %v1117_v27 = vpop.f32.mrb[15].mxu1 }
 0x120   : > { %v1129_v28 = vadd.f32 %v1117_v27, %v1002_v24 }
 0x124   : > { %v885_v29 = vld [vmem:[#allocation2 + $0x10] sm:$0xf] }
 0x125   : > { %v1003_v30 = vadd.f32 %v1739_v16, %v885_v29 }
 0x127   : > { %1006 = vst [vmem:[#allocation2 + $0x10] sm:$0xf] %v1003_v30 }
 0x12a   : > { %v1763_v32 = vpop.f32.mrb[16].mxu0 }
 0x12b   : > { %v1228_v33 = vpop.f32.mrb[17].mxu0 }
 0x12c   : > { %v1242_v34 = vadd.f32 %v1228_v33, %v1128_v25  ;;  %v1764_v35 = vpop.f32.mrb[18].mxu0 }
 0x12d   : > { %v1231_v36 = vpop.f32.mrb[19].mxu0 }
 0x12e   : > { %v1013_v38 = vld [vmem:[#allocation2 + $0x10] sm:$0xf]  ;;  %v1243_v39 = vadd.f32 %v1231_v36, %v1129_v28  ;;  %v1269_v41 = vmul.f32 %v2077_v31, %v1242_v34 }
 0x12f   : > { %v1130_v40 = vadd.f32 %v1751_v21, %v1013_v38 }
 0x130   : > { %v1270_v42 = vmul.f32 %v1262_v37, %v1243_v39 }
 0x131   : > { %1133 = vst [vmem:[#allocation2 + $0x10] sm:$0xf] %v1130_v40 }
 0x132   : > { %v1272_v43 = vadd.f32 %v1270_v42, %v1269_v41 }
 0x138   : > { %v1140_v44 = vld [vmem:[#allocation2 + $0x10] sm:$0xf] }
 0x139   : > { %v1244_v45 = vadd.f32 %v1763_v32, %v1140_v44 }
 0x13b   : > { %1247 = vst [vmem:[#allocation2 + $0x10] sm:$0xf] %v1244_v45 }
 0x142   : > { %v1250_v47 = vld [vmem:[#allocation2 + $0x10] sm:$0xf] }
 0x143   : > { %v1271_v48 = vmul.f32 %v1267_v46, %v1250_v47 }
 0x145   : > { %v1274_v49 = vsel %vm1273_vm4, %v1271_v48, 0.0 }
 0x146   : > { %v1275_v50 = vadd.f32 %v1274_v49, %v1272_v43 }
 0x148   : > { %v1276_v51 = vrot.slane %v1275_v50, 4 }
 0x14a   : > { %v1277_v52 = vadd.f32 %v1276_v51, %v1275_v50 }
 0x14c   : > { %v1278_v53 = vrot.slane %v1277_v52, 2 }
 0x14e   : > { %v1279_v54 = vadd.f32 %v1278_v53, %v1277_v52 }
 0x150   : > { %v1280_v55 = vrot.slane %v1279_v54, 1 }
 0x152   : > { %v1281_v56 = vadd.f32 %v1280_v55, %v1279_v54 }
 0x154   : > { %v1282_v57 = vmul.f32 0.0625, %v1281_v56 }
 0x156   : > { %v1283_v58 = vsub.f32 %v1242_v34, %v1282_v57  ;;  %v1284_v59 = vsub.f32 %v1243_v39, %v1282_v57  ;;  %v1285_v60 = vsub.f32 %v1250_v47, %v1282_v57 }
 0x158   : > { %v1286_v61 = vmul.f32 %v1283_v58, %v1283_v58  ;;  %v1287_v62 = vmul.f32 %v1284_v59, %v1284_v59  ;;  %v1288_v63 = vmul.f32 %v1285_v60, %v1285_v60 }
 0x15a   : > { %v1289_v0 = vmul.f32 %v1286_v61, %v2077_v31  ;;  %v1290_v1 = vmul.f32 %v1287_v62, %v1262_v37  ;;  %v1291_v2 = vmul.f32 %v1288_v63, %v1267_v46 }
 0x15c   : > { %v1292_v3 = vadd.f32 %v1290_v1, %v1289_v0  ;;  %v1293_v4 = vsel %vm1273_vm4, %v1291_v2, 0.0 }
 0x15e   : > { %v1294_v5 = vadd.f32 %v1293_v4, %v1292_v3 }
 0x160   : > { %v1295_v6 = vrot.slane %v1294_v5, 4 }
 0x162   : > { %v1296_v7 = vadd.f32 %v1295_v6, %v1294_v5 }
 0x164   : > { %v1297_v8 = vrot.slane %v1296_v7, 2 }
 0x166   : > { %v1298_v9 = vadd.f32 %v1297_v8, %v1296_v7 }
 0x168   : > { %v1299_v10 = vrot.slane %v1298_v9, 1 }
 0x16a   : > { %v1300_v11 = vadd.f32 %v1299_v10, %v1298_v9 }
 0x16c   : > { %v1301_v12 = vmul.f32 0.0625, %v1300_v11 }
 0x16e   : > { %v1302_v13 = vadd.f32 1e-05, %v1301_v12 }
 0x170   : > { %1847 = vrsqrt.f32 %v1302_v13 }
 0x17a   : > { %v1848_v14 = vpop.eup %1847 }
 0x17b   : > { %v1304_v15 = vmul.f32 %v1848_v14, %v1283_v58  ;;  %v1305_v16 = vmul.f32 %v1848_v14, %v1284_v59  ;;  %v1306_v17 = vmul.f32 %v1848_v14, %v1285_v60 }
 0x17d   : > { %vm1307_vm5 = vcmp.ge.f32.partialorder %v1304_v15, 0.0  ;;  %vm1308_vm6 = vcmp.ge.f32.partialorder %v1305_v16, 0.0  ;;  %vm1309_vm7 = vcmp.ge.f32.partialorder %v1306_v17, 0.0  ;;  %v1310_v18 = vmul.f32 0.2, %v1304_v15 }
 0x17e   : > { %v1311_v19 = vmul.f32 0.2, %v1305_v16  ;;  %v1312_v20 = vmul.f32 0.2, %v1306_v17 }
 0x17f   : > { %v1313_v21 = vsel %vm1307_vm5, %v1304_v15, %v1310_v18 }
 0x180   : > { %v1314_v22 = vsel %vm1308_vm6, %v1305_v16, %v1311_v19  ;;  %v1315_v23 = vsel %vm1309_vm7, %v1306_v17, %v1312_v20  ;;  %v1316_v24 = vmul.f32 %v1313_v21, %v2077_v31 }
 0x181   : > { %v1317_v25 = vmul.f32 %v1314_v22, %v1262_v37  ;;  %v1318_v26 = vmul.f32 %v1315_v23, %v1267_v46 }
 0x183   : > { %v1597_v27 = vpack.c.bf16 %v1318_v26, %v1318_v26  ;;  %v1601_v28 = vpack.c.bf16 %v1317_v25, %v1316_v24 }
 0x185   : > { %1602 = vst [vmem:[%s207_s7] sm:$0xff] %v1601_v28   ;;  %1334 = vst [vmem:[%s207_s7 + $0x8] sm:$0x3] %v1597_v27 }
 0x186 PF: > { %s13_s14 = sadd.s32 1, %s1871_s14   ;;  %s2101_s12 = smov %s1867_s13 }
 0x187   : > { %p10_p5 = scmp.ge.s32.totalorder %s13_s14, 4   ;;  %s2102_s13 = smov %s2104_s15 }
 0x189   :  { %12 = sbr.rel (!%p10_p5) target bundleno = 2 (0x2), region = 76 }

// kernel: simple_discriminator_forward.5
= control target key start
LH: loop header
LB: loop body
LE: loop exit
PB: predicated region body
PF: predicated region fallthrough
CT: control target
= control target key end

     0   :  { %s2684_s12 = smov 0   ;;  %s2686_s13 = smov 0   ;;  %s3239_s0 = inlined_call_operand.vmem [shape: bf16[2,4,82,16], index: 0, kind: input, shape index: {}]   ;;  %s3240_s1 = inlined_call_operand.vmem [shape: bf16[9,16,64], index: 1, kind: input, shape index: {}]   ;;  %s3241_s2 = inlined_call_operand.vmem [shape: f32[72,1], index: 2, kind: input, shape index: {}]   ;;  %s3242_s3 = inlined_call_operand.vmem [shape: bf16[2,72,64], index: 3, kind: output, shape index: {}]  }
   0x1   :  { %s2688_s14 = smov 0  }
   0x2 LB: > { %s25_s15 = sadd.s32 1, %s2655_s13  ;;  %p2111_p0 = scmp.ge.s32.totalorder %s2659_s14, 1  ;;  %s2659_s14 = sphi %s2688_s14, %s13_s14   ;;  %s2655_s13 = sphi %s2686_s13, %s3244_s13   ;;  %s2651_s12 = sphi %s2684_s12, %s3243_s12  }
   0x3   : > { %p27_p1 = scmp.ge.s32.totalorder %s25_s15, 2  ;;  %p160_p2 = scmp.lt.s32.totalorder %s2659_s14, 3 }
   0x5   : > { %s3246_s15 = smov (%p27_p1, %s25_s15), 0  ;;  %p161_p3 = pnand %p2111_p0, %p160_p2 }
   0x6   : > { %v2581_v0 = vld [vmem:[%s3240_s1] sm:$0xff] (!%p161_p3)   ;;  %v2661_v1 = vmov (!%p161_p3), 0.0   ;;  %p191_p4 = scmp.lt.s32.totalorder (!%p161_p3), %s2651_s12, 1  ;;  %vm2662_vm0 = vmmov (!%p161_p3), 0   ;;  %v2584_v2 = vld [vmem:[%s3240_s1 + $0x8] sm:$0xff] (!%p161_p3)   ;;  %vm249_vm1 = vcmask (!%p161_p3), 130048  }
   0x7   : > { %164 = sbr.rel (%p161_p3) target bundleno = 506 (0x1fa), region = 32  ;;  %2548 = vmatprep.subr.bf16.mxu1 (!%p161_p3), %v2661_v1  ;;  %2350 = vmatprep.subr.bf16.mxu0 (!%p161_p3), %v2661_v1  ;;  %v2585_v3 = vld [vmem:[%s3240_s1 + $0x10] sm:$0xff] (!%p161_p3)   ;;  %v2590_v16 = vld [vmem:[%s3240_s1 + $0x18] sm:$0xff] (!%p161_p3)   ;;  %vm550_vm2 = vsmask.f32 (!%p161_p3), 7424  ;;  %v2594_v21 = vld [vmem:[%s3240_s1 + $0x20] sm:$0xff] (!%p161_p3)  }
   0x8   : > { %2549 = vmatpush3.bf16.msra.mxu1 (!%p161_p3), %v2581_v0  ;;  %2351 = vmatpush3.bf16.msra.mxu0 (!%p161_p3), %v2581_v0  ;;  %vm1651_vm3 = vcmask (!%p161_p3), 1046528   ;;  %vm337_vm4 = vcmask (!%p161_p3), 523264   ;;  %vm2003_vm8 = vcmask (!%p161_p3), 519168  }
   0x9   : > { %2352 = vmatprep.mubr.msk.bf16.mxu0 (!%p161_p3), %vm2662_vm0, %v2661_v1  ;;  %2364 = vmatprep.mubr.msk.bf16.mxu1 (!%p161_p3), %vm2662_vm0, %v2661_v1 }
   0xa   : > { %2372 = vmatprep.subr.bf16.mxu1 (!%p161_p3), %v2661_v1  ;;  %2394 = vmatprep.subr.bf16.mxu0 (!%p161_p3), %v2661_v1 }
   0xe   : > { %s3248_s12 = smov (!%p191_p4, %s2651_s12), 1 }
   0xf   : > { %s2550_s18 = smul.u32 176, %s3248_s12 }
  0x11   : > { %s2722_s23 = scalar_lea.vmem %s3239_s0, %s2550_s18 }
  0x12   : > { %v2582_v4 = vld [vmem:[%s2722_s23] sm:$0xff]   ;;  %v2583_v5 = vld [vmem:[%s2722_s23 + $0x18] sm:$0xff]   ;;  %v2586_v6 = vld [vmem:[%s2722_s23 + $0x8] sm:$0xff]  }
  0x13   : > { %2353 = vmatmul.mubr.msk.bf16.vlgmr.msra.gmra.mrb[0].mxu0 %vm249_vm1, %v2582_v4  ;;  %2365 = vmatmul.mubr.msk.bf16.vlgmr.msra.gmra.mrb[0].mxu1 %vm249_vm1, %v2583_v5  ;;  %v2587_v7 = vld [vmem:[%s2722_s23 + $0x20] ss:$0 sps:$4 sm:$0xff]   ;;  %v2593_v9 = vld [vmem:[%s2722_s23 + $0x8] sm:$0xff]   ;;  %v2588_v11 = vld [vmem:[%s2722_s23 + $0x10] sm:$0xff]  }
  0x14   : > { %2395 = vmatpush3.bf16.msra.mxu0 %v2585_v3  ;;  %2373 = vmatpush3.bf16.msra.mxu1 %v2584_v2  ;;  %v2592_v8 = vld [vmem:[%s2722_s23] sm:$0xff]   ;;  %v2589_v12 = vld [vmem:[%s2722_s23 + $0x2c] sm:$0xff]   ;;  %v559_v15 = vshll.u32 %v2593_v9, 16  ;;  %v2758_v20 = vld [vmem:[%s2722_s23 + $0x18] sm:$0xff]   ;;  %v563_v25 = vshrl.u32 %v2593_v9, 16 }
  0x15   : > { %2356 = vmatprep.mubr.msk.bf16.mxu0 %vm2662_vm0, %v2661_v1  ;;  %2368 = vmatprep.mubr.msk.bf16.mxu1 %vm2662_vm0, %v2661_v1  ;;  %v554_v10 = vshll.u32 %v2592_v8, 16  ;;  %v552_v13 = vshrl.u32 %v2592_v8, 16  ;;  %v2596_v17 = vld [vmem:[%s2722_s23 + $0x10] sm:$0xff]   ;;  %v575_v26 = vshll.u32 %v2758_v20, 16  ;;  %v2613_v29 = vld [vmem:[%s2722_s23 + $0x58] sm:$0xff]   ;;  %v2614_v30 = vld [vmem:[%s2722_s23 + $0x60] sm:$0xff]  }
  0x16   : > { %2416 = vmatprep.subr.bf16.mxu1 %v2661_v1  ;;  %2438 = vmatprep.subr.bf16.mxu0 %v2661_v1  ;;  %v561_v19 = vrot.slane %v559_v15, 1  ;;  %v2591_v22 = vld [vmem:[%s2722_s23 + $0x34] sm:$0xff]   ;;  %v567_v23 = vshll.u32 %v2596_v17, 16  ;;  %v571_v28 = vshrl.u32 %v2596_v17, 16  ;;  %v579_v33 = vshrl.u32 %v2758_v20, 16  ;;  %v2616_v37 = vld [vmem:[%s2722_s23 + $0x68] sm:$0xff]  }
  0x17   : > { %v556_v14 = vrot.slane %v554_v10, 1  ;;  %v2773_v32 = vrot.slane %v575_v26, 1  ;;  %v1061_v34 = vshrl.u32 %v2613_v29, 16  ;;  %v1063_v35 = vshll.u32 %v2613_v29, 16  ;;  %v2617_v39 = vld [vmem:[%s2722_s23 + $0x4] sm:$0xff]   ;;  %v2595_v40 = vld [vmem:[%s2722_s23 + $0x3c] sm:$0xff]  }
  0x18   : > { %v569_v27 = vrot.slane %v567_v23, 1  ;;  %v565_v31 = vor.u32 %v563_v25, %v561_v19  ;;  %v1068_v36 = vshll.u32 %v2614_v30, 16  ;;  %v1072_v38 = vshrl.u32 %v2614_v30, 16  ;;  %v2618_v44 = vld [vmem:[%s2722_s23 + $0xc] sm:$0xff]   ;;  %v2788_v54 = vld [vmem:[%s2722_s23 + $0x20] sm:$0x1f]  }
  0x19   : > { %v557_v18 = vor.u32 %v556_v14, %v552_v13  ;;  %v1065_v41 = vrot.slane %v1063_v35, 1  ;;  %v1076_v43 = vshll.u32 %v2616_v37, 16  ;;  %v1258_v46 = vshrl.u32 %v2617_v39, 16  ;;  %v2620_v52 = vld [vmem:[%s2722_s23 + $0x70] sm:$0xff]   ;;  %v2623_v62 = vld [vmem:[%s2722_s23 + $0x1c] sm:$0xff]  }
  0x1a   : > { %v1070_v42 = vrot.slane %v1068_v36, 1  ;;  %v570_v45 = vsel %vm550_vm2, %v565_v31, %v569_v27  ;;  %v1260_v47 = vshll.u32 %v2617_v39, 16  ;;  %v1265_v51 = vshll.u32 %v2618_v44, 16  ;;  %v2621_v61 = vld [vmem:[%s2722_s23 + $0x14] sm:$0xff]  }
  0x1b   : > { %2357 = vmatmul.mubr.msk.bf16.gmra.mrb[4].mxu0 %vm249_vm1, %v2586_v6  ;;  %2369 = vmatmul.mubr.msk.bf16.gmra.mrb[4].mxu1 %vm249_vm1, %v2587_v7  ;;  %v562_v24 = vsel %vm550_vm2, %v557_v18, %v561_v19  ;;  %v1066_v48 = vor.u32 %v1065_v41, %v1061_v34  ;;  %v1078_v50 = vrot.slane %v1076_v43, 1  ;;  %v573_v53 = vor.u32 %v571_v28, %v569_v27  ;;  %v2805_v6 = vld [vmem:[%s2722_s23 + $0x78] sm:$0x1f]   ;;  %v2597_v7 = vld [vmem:[%s2722_s23 + $0x44] sm:$0xff]  }
  0x1c   : > { %2360 = vmatprep.mubr.msk.bf16.mxu0 %vm2662_vm0, %v2661_v1  ;;  %2374 = vmatprep.mubr.msk.bf16.mxu1 %vm2662_vm0, %v2661_v1  ;;  %v1074_v49 = vor.u32 %v1072_v38, %v1070_v42  ;;  %v1262_v55 = vrot.slane %v1260_v47, 1  ;;  %v1080_v56 = vshrl.u32 %v2616_v37, 16  ;;  %v1267_v59 = vrot.slane %v1265_v51, 1  ;;  %v2626_v28 = vld [vmem:[%s2722_s23 + $0x38] sm:$0xff]   ;;  %v2627_v37 = vld [vmem:[%s2722_s23 + $0x40] sm:$0xff]   ;;  %v2630_v41 = vld [vmem:[%s2722_s23 + $0x48] sm:$0xff]  }
  0x1d   : > { %v2792_v57 = vsel %vm550_vm2, %v1066_v48, %v1070_v42  ;;  %v1084_v60 = vshll.u32 %v2620_v52, 16  ;;  %v1269_v2 = vshrl.u32 %v2618_v44, 16  ;;  %v1088_v3 = vshrl.u32 %v2620_v52, 16  ;;  %v2599_v42 = vld [vmem:[%s2722_s23 + $0x4c] ss:$0 sps:$4 sm:$0xff]  }
  0x1e   : > { %v2795_v58 = vsel %vm550_vm2, %v1074_v49, %v1078_v50  ;;  %v1263_v63 = vor.u32 %v1262_v55, %v1258_v46  ;;  %v1082_v0 = vor.u32 %v1080_v56, %v1078_v50  ;;  %v1273_v5 = vshll.u32 %v2621_v61, 16  ;;  %v2862_v56 = vld [vmem:[%s2722_s23 + $0x50] sm:$0x1f]  }
  0x1f   : > { %v1086_v4 = vrot.slane %v1084_v60, 1  ;;  %v1271_v9 = vor.u32 %v1269_v2, %v1267_v59  ;;  %v1277_v10 = vshrl.u32 %v2621_v61, 16  ;;  %v1092_v15 = vshll.u32 %v2805_v6, 16 }
  0x20   : > { %v2809_v8 = vsel %vm550_vm2, %v1263_v63, %v1267_v59  ;;  %v1275_v13 = vrot.slane %v1273_v5, 1  ;;  %v578_v17 = vsel %vm550_vm2, %v573_v53, %v2773_v32  ;;  %v583_v18 = vshll.u32 %v2788_v54, 16  ;;  %v2603_v5 = vld [vmem:[%s2722_s23 + $0x60] sm:$0xff]  }
  0x21   : > { %v1090_v14 = vor.u32 %v1088_v3, %v1086_v4  ;;  %v581_v31 = vor.u32 %v579_v33, %v2773_v32  ;;  %v1462_v20 = vshll.u32 %v2626_v28, 16  ;;  %v1470_v33 = vshll.u32 %v2627_v37, 16  ;;  %v2602_v3 = vld [vmem:[%s3240_s1 + $0x28] sm:$0xff]  }
  0x22   : > { %v2823_v23 = vsel %vm550_vm2, %v1271_v9, %v1275_v13  ;;  %v1279_v25 = vor.u32 %v1277_v10, %v1275_v13  ;;  %v585_v38 = vrot.slane %v583_v18, 1  ;;  %v1474_v46 = vshrl.u32 %v2627_v37, 16  ;;  %v2607_v9 = vld [vmem:[%s2722_s23 + $0x8c] sm:$0xff]   ;;  %v2615_v18 = vld [vmem:[%s3240_s1 + $0x38] sm:$0xff]  }
  0x23   : > { %2361 = vmatmul.mubr.msk.bf16.gmra.mrb[8].mxu0 %vm249_vm1, %v2588_v11  ;;  %2375 = vmatmul.mubr.msk.bf16.vlgmr.msra.gmra.mrb[8].mxu1 %vm249_vm1, %v2589_v12  ;;  %v1281_v11 = vshll.u32 %v2623_v62, 16  ;;  %v2812_v12 = vsel %vm550_vm2, %v1082_v0, %v1086_v4  ;;  %v1464_v44 = vrot.slane %v1462_v20, 1  ;;  %v1478_v50 = vshll.u32 %v2630_v41, 16  ;;  %v2604_v4 = vld [vmem:[%s2722_s23 + $0x84] sm:$0xff]   ;;  %v2608_v13 = vld [vmem:[%s2722_s23 + $0x70] sm:$0xff]  }
  0x24   : > { %2396 = vmatprep.mubr.msk.bf16.mxu0 %vm2662_vm0, %v2661_v1  ;;  %2417 = vmatpush3.bf16.msra.mxu1 %v2590_v16  ;;  %v2816_v16 = vld [vmem:[%s2722_s23 + $0x24] sm:$0x1f]   ;;  %v586_v47 = vsel %vm550_vm2, %v581_v31, %v585_v38  ;;  %v1482_v52 = vshrl.u32 %v2630_v41, 16  ;;  %v587_v59 = vshrl.u32 %v2788_v54, 16  ;;  %v2601_v54 = vld [vmem:[%s2722_s23 + $0x58] sm:$0xff]   ;;  %v2629_v31 = vld [vmem:[%s2722_s23 + $0xc] sm:$0xff]  }
  0x25   : > { %2378 = vmatprep.mubr.msk.bf16.mxu1 %vm2662_vm0, %v2661_v1  ;;  %2460 = vmatprep.subr.bf16.mxu1 %v2661_v1  ;;  %v1283_v19 = vrot.slane %v1281_v11, 1  ;;  %v1289_v26 = vshll.u32 %v2816_v16, 16  ;;  %v1480_v55 = vrot.slane %v1478_v50, 1  ;;  %v2606_v10 = vld [vmem:[%s2722_s23 + $0x68] sm:$0xff]   ;;  %v2609_v11 = vld [vmem:[%s2722_s23 + $0x94] sm:$0xff]  }
  0x26   : > { %v589_v0 = vor.u32 %v587_v59, %v585_v38 }
  0x27   : > { %v2838_v35 = vsel %vm550_vm2, %v1279_v25, %v1283_v19  ;;  %v2840_v36 = vrot.slane %v1289_v26, 1  ;;  %v1484_v61 = vor.u32 %v1482_v52, %v1480_v55  ;;  %v1787_v25 = vld [vmem:[%s3241_s2 + $0x30] sm:$0xff] }
  0x2b   : > { %2397 = vmatmul.mubr.msk.bf16.vlgmr.msra.gmra.mrb[12].mxu0 %vm249_vm1, %v562_v24  ;;  %2379 = vmatmul.mubr.msk.bf16.gmra.mrb[12].mxu1 %vm249_vm1, %v2591_v22  ;;  %v2625_v22 = vld [vmem:[%s2722_s23 + $0x30] sm:$0xff]   ;;  %v2825_v24 = vrot.slane %v1092_v15, 1  ;;  %v2610_v15 = vld [vmem:[%s2722_s23 + $0x78] ss:$0 sps:$4 sm:$0xff]  }
  0x2c   : > { %2439 = vmatpush3.bf16.msra.mxu0 %v2594_v21  ;;  %2382 = vmatprep.mubr.msk.bf16.mxu1 %vm2662_vm0, %v2661_v1  ;;  %v1285_v21 = vshrl.u32 %v2623_v62, 16  ;;  %v1455_v29 = vshrl.u32 %v2625_v22, 16  ;;  %v1457_v30 = vshll.u32 %v2625_v22, 16  ;;  %v1486_v62 = vshll.u32 %v2862_v56, 16  ;;  %v1785_v22 = vld [vmem:[%s3241_s2 + $0x20] sm:$0xff] }
  0x2d   : > { %2400 = vmatprep.mubr.msk.bf16.mxu0 %vm2662_vm0, %v2661_v1  ;;  %2482 = vmatprep.subr.bf16.mxu0 %v2661_v1  ;;  %v2835_v34 = vsel %vm550_vm2, %v1090_v14, %v2825_v24  ;;  %v2611_v14 = vld [vmem:[%s2722_s23 + $0x9c] sm:$0xff]  }
  0x2e   : > { %v1287_v27 = vor.u32 %v1285_v21, %v1283_v19  ;;  %v1459_v39 = vrot.slane %v1457_v30, 1  ;;  %v2875_v63 = vrot.slane %v1486_v62, 1  ;;  %v2619_v19 = vld [vmem:[%s3240_s1 + $0x40] sm:$0xff]  }
  0x2f   : > { %v1781_v21 = vld [vmem:[%s3241_s2] sm:$0xff] }
  0x30   : > { %v2850_v32 = vsel %vm550_vm2, %v1287_v27, %v2840_v36  ;;  %v1460_v43 = vor.u32 %v1459_v39, %v1455_v29  ;;  %v2880_v2 = vsel %vm550_vm2, %v1484_v61, %v2875_v63  ;;  %v1789_v27 = vld [vmem:[%s3241_s2 + $0x40] sm:$0xff] }
  0x31   : > { %v2628_v30 = vld [vmem:[%s2722_s23 + $0x4] sm:$0xfe]   ;;  %v2633_v39 = vld [vmem:[%s2722_s23 + $0x1c] sm:$0xff]  }
  0x32   : > { %v2856_v48 = vsel %vm550_vm2, %v1460_v43, %v1464_v44  ;;  %v1657_v20 = vrot.slane %v2633_v39, 1 }
  0x33   : > { %2401 = vmatmul.mubr.msk.bf16.gmra.mrb[16].mxu0 %vm249_vm1, %v570_v45  ;;  %2383 = vmatmul.mubr.msk.bf16.gmra.mrb[16].mxu1 %vm249_vm1, %v2595_v40  ;;  %v1466_v40 = vshrl.u32 %v2626_v28, 16  ;;  %v1472_v45 = vrot.slane %v1470_v33, 1  ;;  %v1293_v28 = vshrl.u32 %v2816_v16, 16  ;;  %v1652_v16 = vrot.slane %v2628_v30, 1 }
  0x34   : > { %2404 = vmatprep.mubr.msk.bf16.mxu0 %vm2662_vm0, %v2661_v1  ;;  %2386 = vmatprep.mubr.msk.bf16.mxu1 %vm2662_vm0, %v2661_v1  ;;  %v1490_v33 = vshrl.u32 %v2862_v56, 16 }
  0x35   : > { %v1468_v49 = vor.u32 %v1466_v40, %v1464_v44  ;;  %v1476_v51 = vor.u32 %v1474_v46, %v1472_v45  ;;  %v1295_v29 = vor.u32 %v1293_v28, %v2840_v36  ;;  %v2631_v36 = vld [vmem:[%s2722_s23 + $0x14] sm:$0xff]  }
  0x36   : > { %v1655_v37 = vrot.slane %v2631_v36, 1 }
  0x37   : > { %v2859_v53 = vsel %vm550_vm2, %v1468_v49, %v1472_v45  ;;  %v2870_v60 = vsel %vm550_vm2, %v1476_v51, %v1480_v55 }
  0x38   : > { %v1658_v40 = vsel %vm1651_vm3, %v1655_v37, %v1657_v20 }
  0x3b   : > { %2405 = vmatmul.mubr.msk.bf16.gmra.mrb[20].mxu0 %vm249_vm1, %v578_v17  ;;  %2387 = vmatmul.mubr.msk.bf16.gmra.mrb[20].mxu1 %vm249_vm1, %v2597_v7  ;;  %v2605_v7 = vld [vmem:[%s3240_s1 + $0x30] sm:$0xff]   ;;  %v2612_v17 = vld [vmem:[%s2722_s23 + $0xa4] ss:$0 sps:$4 sm:$0xff]  }
  0x3c   : > { %2408 = vmatprep.mubr.msk.bf16.mxu0 %vm2662_vm0, %v2661_v1  ;;  %2390 = vmatprep.mubr.msk.bf16.mxu1 %vm2662_vm0, %v2661_v1 }
  0x43   : > { %2409 = vmatmul.mubr.msk.bf16.gmra.mrb[24].mxu0 %vm249_vm1, %v586_v47  ;;  %2391 = vmatmul.mubr.msk.bf16.gmra.mrb[24].mxu1 %vm249_vm1, %v2599_v42  ;;  %v1492_v42 = vor.u32 %v1490_v33, %v2875_v63 }
  0x44   : > { %2412 = vmatprep.mubr.msk.bf16.mxu0 %vm2662_vm0, %v2661_v1  ;;  %2418 = vmatprep.mubr.msk.bf16.mxu1 %vm2662_vm0, %v2661_v1 }
  0x4b   : > { %2413 = vmatmul.mubr.msk.bf16.gmra.mrb[28].mxu0 %vm249_vm1, %v589_v0  ;;  %2419 = vmatmul.mubr.msk.bf16.vlgmr.msra.gmra.mrb[28].mxu1 %vm249_vm1, %v2601_v54 }
  0x4c   : > { %2440 = vmatprep.mubr.msk.bf16.mxu0 %vm2662_vm0, %v2661_v1  ;;  %2461 = vmatpush3.bf16.msra.mxu1 %v2602_v3 }
  0x4d   : > { %2422 = vmatprep.mubr.msk.bf16.mxu1 %vm2662_vm0, %v2661_v1  ;;  %2504 = vmatprep.subr.bf16.mxu1 %v2661_v1 }
  0x53   : > { %2441 = vmatmul.mubr.msk.bf16.vlgmr.msra.gmra.mrb[32].mxu0 %vm249_vm1, %v2604_v4  ;;  %2423 = vmatmul.mubr.msk.bf16.gmra.mrb[32].mxu1 %vm249_vm1, %v2603_v5 }
  0x54   : > { %2483 = vmatpush3.bf16.msra.mxu0 %v2605_v7  ;;  %2426 = vmatprep.mubr.msk.bf16.mxu1 %vm2662_vm0, %v2661_v1 }
  0x55   : > { %2444 = vmatprep.mubr.msk.bf16.mxu0 %vm2662_vm0, %v2661_v1  ;;  %2526 = vmatprep.subr.bf16.mxu0 %v2661_v1 }
  0x5b   : > { %2445 = vmatmul.mubr.msk.bf16.gmra.mrb[36].mxu0 %vm249_vm1, %v2607_v9  ;;  %2427 = vmatmul.mubr.msk.bf16.gmra.mrb[36].mxu1 %vm249_vm1, %v2606_v10 }
  0x5c   : > { %2448 = vmatprep.mubr.msk.bf16.mxu0 %vm2662_vm0, %v2661_v1  ;;  %2430 = vmatprep.mubr.msk.bf16.mxu1 %vm2662_vm0, %v2661_v1 }
  0x63   : > { %2449 = vmatmul.mubr.msk.bf16.gmra.mrb[40].mxu0 %vm249_vm1, %v2609_v11  ;;  %2431 = vmatmul.mubr.msk.bf16.gmra.mrb[40].mxu1 %vm249_vm1, %v2608_v13 }
  0x64   : > { %2452 = vmatprep.mubr.msk.bf16.mxu0 %vm2662_vm0, %v2661_v1  ;;  %2434 = vmatprep.mubr.msk.bf16.mxu1 %vm2662_vm0, %v2661_v1 }
  0x6b   : > { %2453 = vmatmul.mubr.msk.bf16.gmra.mrb[44].mxu0 %vm249_vm1, %v2611_v14  ;;  %2435 = vmatmul.mubr.msk.bf16.gmra.mrb[44].mxu1 %vm249_vm1, %v2610_v15 }
  0x6c   : > { %2456 = vmatprep.mubr.msk.bf16.mxu0 %vm2662_vm0, %v2661_v1  ;;  %2462 = vmatprep.mubr.msk.bf16.mxu1 %vm2662_vm0, %v2661_v1 }
  0x73   : > { %2457 = vmatmul.mubr.msk.bf16.gmra.mrb[48].mxu0 %vm249_vm1, %v2612_v17  ;;  %2463 = vmatmul.mubr.msk.bf16.vlgmr.msra.gmra.mrb[48].mxu1 %vm249_vm1, %v2792_v57  ;;  %v2663_v57 = vmov 0  }
  0x74   : > { %2484 = vmatprep.mubr.msk.bf16.mxu0 %vm2662_vm0, %v2661_v1  ;;  %2505 = vmatpush3.bf16.msra.mxu1 %v2615_v18 }
  0x75   : > { %2466 = vmatprep.mubr.msk.bf16.mxu1 %vm2662_vm0, %v2661_v1  ;;  %2579 = vset.pattern.permute.xlu0 %v2663_v57 }
  0x76   : > { %2580 = vset.pattern.permute.xlu1 %v2663_v57  ;;  %1792 = vperm.xlu0 %2579, %v1781_v21  }
  0x7b   : > { %2485 = vmatmul.mubr.msk.bf16.vlgmr.msra.gmra.mrb[52].mxu0 %vm249_vm1, %v2809_v8  ;;  %2467 = vmatmul.mubr.msk.bf16.gmra.mrb[52].mxu1 %vm249_vm1, %v2795_v58  ;;  %v1782_v58 = vld [vmem:[%s3241_s2 + $0x8] sm:$0xff]  ;;  %v1783_v8 = vld [vmem:[%s3241_s2 + $0x10] sm:$0xff] }
  0x7c   : > { %2527 = vmatpush3.bf16.msra.mxu0 %v2619_v19  ;;  %2470 = vmatprep.mubr.msk.bf16.mxu1 %vm2662_vm0, %v2661_v1 }
  0x7d   : > { %2488 = vmatprep.mubr.msk.bf16.mxu0 %vm2662_vm0, %v2661_v1  ;;  %1797 = vperm.xlu0 %2579, %v1782_v58  }
  0x7e   : > { %1802 = vperm.xlu1 %2580, %v1783_v8  }
  0x81   : > { %1812 = vperm.xlu0 %2579, %v1785_v22  }
  0x83   : > { %2489 = vmatmul.mubr.msk.bf16.gmra.mrb[56].mxu0 %vm249_vm1, %v2823_v23  ;;  %2471 = vmatmul.mubr.msk.bf16.gmra.mrb[56].mxu1 %vm249_vm1, %v2812_v12  ;;  %v1096_v12 = vshrl.u32 %v2805_v6, 16  ;;  %v1784_v23 = vld [vmem:[%s3241_s2 + $0x18] sm:$0xff]  ;;  %v1786_v6 = vld [vmem:[%s3241_s2 + $0x28] sm:$0xff] }
  0x84   : > { %2492 = vmatprep.mubr.msk.bf16.mxu0 %vm2662_vm0, %v2661_v1  ;;  %2474 = vmatprep.mubr.msk.bf16.mxu1 %vm2662_vm0, %v2661_v1 }
  0x85   : > { %1807 = vperm.xlu1 %2580, %v1784_v23   ;;  %1822 = vperm.xlu0 %2579, %v1787_v25   ;;  %v1098_v26 = vor.u32 %v1096_v12, %v2825_v24  ;;  %v1788_v24 = vld [vmem:[%s3241_s2 + $0x38] sm:$0xff] }
  0x89   : > { %1817 = vperm.xlu1 %2580, %v1786_v6   ;;  %1832 = vperm.xlu0 %2579, %v1789_v27  }
  0x8b   : > { %2493 = vmatmul.mubr.msk.bf16.gmra.mrb[60].mxu0 %vm249_vm1, %v2838_v35  ;;  %2475 = vmatmul.mubr.msk.bf16.gmra.mrb[60].mxu1 %vm249_vm1, %v2835_v34  ;;  %v1653_v34 = vrot.slane %v2629_v31, 1 }
  0x8c   : > { %2496 = vmatprep.mubr.msk.bf16.mxu0 %vm2662_vm0, %v2661_v1  ;;  %2478 = vmatprep.mubr.msk.bf16.mxu1 %vm2662_vm0, %v2661_v1 }
  0x8d   : > { %1827 = vperm.xlu1 %2580, %v1788_v24   ;;  %v1654_v35 = vsel %vm1651_vm3, %v1652_v16, %v1653_v34  ;;  %v1656_v38 = vsel %vm1651_vm3, %v1653_v34, %v1655_v37 }
  0x93   : > { %2497 = vmatmul.mubr.msk.bf16.gmra.mrb[64].mxu0 %vm249_vm1, %v2850_v32  ;;  %2479 = vmatmul.mubr.msk.bf16.gmra.mrb[64].mxu1 %vm249_vm1, %v1098_v26  ;;  %v2634_v32 = vld [vmem:[%s2722_s23 + $0x24] sm:$0x1f]   ;;  %s2551_s23 = smul.u32 36, %s3248_s12 }
  0x94   : > { %2500 = vmatprep.mubr.msk.bf16.mxu0 %vm2662_vm0, %v2661_v1  ;;  %2506 = vmatprep.mubr.msk.bf16.mxu1 %vm2662_vm0, %v2661_v1  ;;  %v1659_v41 = vrot.slane %v2634_v32, 1 }
  0x95   : > { %s207_s8 = scalar_lea.vmem %s3242_s3, %s2551_s23 }
  0x96   : > { %v1660_v43 = vsel %vm1651_vm3, %v1657_v20, %v1659_v41 }
  0x9b   : > { %2501 = vmatmul.mubr.msk.bf16.gmra.mrb[68].mxu0 %vm249_vm1, %v1295_v29  ;;  %2507 = vmatmul.mubr.msk.bf16.vlgmr.msra.gmra.mrb[68].mxu1 %vm249_vm1, %v2856_v48 }
  0x9c   : > { %2528 = vmatprep.mubr.msk.bf16.mxu0 %vm2662_vm0, %v2661_v1  ;;  %2510 = vmatprep.mubr.msk.bf16.mxu1 %vm2662_vm0, %v2661_v1 }
  0xa3   : > { %2529 = vmatmul.mubr.msk.bf16.vlgmr.msra.gmra.mrb[72].mxu0 %vm249_vm1, %v1654_v35  ;;  %2511 = vmatmul.mubr.msk.bf16.gmra.mrb[72].mxu1 %vm249_vm1, %v2859_v53 }
  0xa4   : > { %2532 = vmatprep.mubr.msk.bf16.mxu0 %vm2662_vm0, %v2661_v1  ;;  %2514 = vmatprep.mubr.msk.bf16.mxu1 %vm2662_vm0, %v2661_v1 }
  0xab   : > { %2533 = vmatmul.mubr.msk.bf16.gmra.mrb[76].mxu0 %vm249_vm1, %v1656_v38  ;;  %2515 = vmatmul.mubr.msk.bf16.gmra.mrb[76].mxu1 %vm249_vm1, %v2870_v60 }
  0xac   : > { %2536 = vmatprep.mubr.msk.bf16.mxu0 %vm2662_vm0, %v2661_v1  ;;  %2518 = vmatprep.mubr.msk.bf16.mxu1 %vm2662_vm0, %v2661_v1 }
  0xb3   : > { %2537 = vmatmul.mubr.msk.bf16.gmra.mrb[80].mxu0 %vm249_vm1, %v1658_v40  ;;  %2519 = vmatmul.mubr.msk.bf16.gmra.mrb[80].mxu1 %vm249_vm1, %v2880_v2 }
  0xb4   : > { %2540 = vmatprep.mubr.msk.bf16.mxu0 %vm2662_vm0, %v2661_v1  ;;  %2522 = vmatprep.mubr.msk.bf16.mxu1 %vm2662_vm0, %v2661_v1 }
  0xbb   : > { %2541 = vmatmul.mubr.msk.bf16.gmra.mrb[84].mxu0 %vm249_vm1, %v1660_v43  ;;  %2523 = vmatmul.mubr.msk.bf16.gmra.mrb[84].mxu1 %vm249_vm1, %v1492_v42 }
  0xbc   : > { %2544 = vmatprep.mubr.msk.bf16.mxu0 %vm2662_vm0, %v2661_v1 }
  0xc3   : > { %2545 = vmatmul.mubr.msk.bf16.gmra.mrb[88].mxu0 %vm249_vm1, %v1659_v41 }
  0xe6   : > { %v299_v44 = vpop.f32.mrb[0].mxu0  ;;  %v323_v45 = vpop.f32.mrb[0].mxu1 }
  0xe7   : > { %338 = vst.msk [vmem:[#allocation2] sm:$0xff] %vm337_vm4, %v299_v44  ;;  %v2354_v46 = vpop.f32.mrb[1].mxu0  ;;  %344 = vst.msk [vmem:[#allocation2 + $0x30] sm:$0xff] %vm337_vm4, %v323_v45  ;;  %v2366_v47 = vpop.f32.mrb[1].mxu1 }
  0xe8   : > { %v302_v48 = vpop.f32.mrb[2].mxu0  ;;  %v326_v49 = vpop.f32.mrb[2].mxu1 }
  0xe9   : > { %339 = vst.msk [vmem:[#allocation2 + $0x8] sm:$0xff] %vm337_vm4, %v302_v48  ;;  %v2355_v50 = vpop.f32.mrb[3].mxu0  ;;  %345 = vst.msk [vmem:[#allocation2 + $0x38] sm:$0xff] %vm337_vm4, %v326_v49  ;;  %v2367_v51 = vpop.f32.mrb[3].mxu1 }
  0xee   : > { %v307_v1 = vpop.f32.mrb[4].mxu0  ;;  %v331_v52 = vpop.f32.mrb[4].mxu1  ;;  %v357_v63 = vld [vmem:[#allocation2] sm:$0xff]  ;;  %v363_v41 = vld [vmem:[#allocation2 + $0x30] sm:$0xff] }
  0xef   : > { %340 = vst.msk [vmem:[#allocation2 + $0x10] sm:$0xff] %vm337_vm4, %v307_v1  ;;  %v2358_v53 = vpop.f32.mrb[5].mxu0  ;;  %346 = vst.msk [vmem:[#allocation2 + $0x40] sm:$0xff] %vm337_vm4, %v331_v52  ;;  %v2370_v55 = vpop.f32.mrb[5].mxu1 }
  0xf0   : > { %v310_v56 = vpop.f32.mrb[6].mxu0  ;;  %v334_v59 = vpop.f32.mrb[6].mxu1  ;;  %v358_v5 = vld [vmem:[#allocation2 + $0x8] sm:$0xff]  ;;  %v364_v48 = vld [vmem:[#allocation2 + $0x38] sm:$0xff] }
  0xf1   : > { %341 = vst.msk [vmem:[#allocation2 + $0x18] sm:$0xff] %vm337_vm4, %v310_v56  ;;  %v2359_v60 = vpop.f32.mrb[7].mxu0  ;;  %v2371_v61 = vpop.f32.mrb[7].mxu1 }
  0xf6   : > { %v315_v62 = vpop.f32.mrb[8].mxu0  ;;  %v447_v0 = vpop.f32.mrb[8].mxu1  ;;  %v359_v14 = vld [vmem:[#allocation2 + $0x10] sm:$0xff]  ;;  %v365_v59 = vld [vmem:[#allocation2 + $0x40] sm:$0xff] }
  0xf7   : > { %342 = vst.msk [vmem:[#allocation2 + $0x20] sm:$0xff] %vm337_vm4, %v315_v62  ;;  %v2362_v54 = vpop.f32.mrb[9].mxu0  ;;  %v485_v2 = vadd.f32 %v447_v0, %v357_v63  ;;  %v2376_v3 = vpop.f32.mrb[9].mxu1 }
  0xf8   : > { %v318_v4 = vpop.f32.mrb[10].mxu0  ;;  %v450_v7 = vpop.f32.mrb[10].mxu1  ;;  %v360_v58 = vld [vmem:[#allocation2 + $0x18] sm:$0xff] }
  0xf9   : > { %343 = vst.msk [vmem:[#allocation2 + $0x28] sm:$0xff] %vm337_vm4, %v318_v4  ;;  %v2363_v9 = vpop.f32.mrb[11].mxu0  ;;  %494 = vst.msk [vmem:[#allocation2] sm:$0xff] %vm337_vm4, %v485_v2  ;;  %v486_v10 = vadd.f32 %v450_v7, %v358_v5  ;;  %v2377_v11 = vpop.f32.mrb[11].mxu1 }
  0xfb   : > { %495 = vst.msk [vmem:[#allocation2 + $0x8] sm:$0xff] %vm337_vm4, %v486_v10 }
  0xfe   : > { %v645_v13 = vpop.f32.mrb[12].mxu0  ;;  %v455_v15 = vpop.f32.mrb[12].mxu1  ;;  %v361_v28 = vld [vmem:[#allocation2 + $0x20] sm:$0xff] }
  0xff   : > { %v2398_v17 = vpop.f32.mrb[13].mxu0  ;;  %v487_v18 = vadd.f32 %v455_v15, %v359_v14  ;;  %v2380_v19 = vpop.f32.mrb[13].mxu1 }
 0x100   : > { %v648_v57 = vpop.f32.mrb[14].mxu0  ;;  %v513_v21 = vld [vmem:[#allocation2] sm:$0xff]  ;;  %v458_v8 = vpop.f32.mrb[14].mxu1  ;;  %v362_v35 = vld [vmem:[#allocation2 + $0x28] sm:$0xff] }
 0x101   : > { %v2399_v22 = vpop.f32.mrb[15].mxu0  ;;  %496 = vst.msk [vmem:[#allocation2 + $0x10] sm:$0xff] %vm337_vm4, %v487_v18  ;;  %v683_v12 = vadd.f32 %v645_v13, %v513_v21  ;;  %v488_v23 = vadd.f32 %v458_v8, %v360_v58  ;;  %v2381_v25 = vpop.f32.mrb[15].mxu1 }
 0x102   : > { %v514_v26 = vld [vmem:[#allocation2 + $0x8] sm:$0xff] }
 0x103   : > { %692 = vst.msk [vmem:[#allocation2] sm:$0xff] %vm337_vm4, %v683_v12  ;;  %497 = vst.msk [vmem:[#allocation2 + $0x18] sm:$0xff] %vm337_vm4, %v488_v23  ;;  %v684_v6 = vadd.f32 %v648_v57, %v514_v26 }
 0x105   : > { %693 = vst.msk [vmem:[#allocation2 + $0x8] sm:$0xff] %vm337_vm4, %v684_v6 }
 0x106   : > { %v653_v27 = vpop.f32.mrb[16].mxu0  ;;  %v463_v24 = vpop.f32.mrb[16].mxu1 }
 0x107   : > { %v2402_v29 = vpop.f32.mrb[17].mxu0  ;;  %v489_v30 = vadd.f32 %v463_v24, %v361_v28  ;;  %v2384_v31 = vpop.f32.mrb[17].mxu1 }
 0x108   : > { %v656_v16 = vpop.f32.mrb[18].mxu0  ;;  %v515_v34 = vld [vmem:[#allocation2 + $0x10] sm:$0xff]  ;;  %v466_v36 = vpop.f32.mrb[18].mxu1 }
 0x109   : > { %v2403_v37 = vpop.f32.mrb[19].mxu0  ;;  %498 = vst.msk [vmem:[#allocation2 + $0x20] sm:$0xff] %vm337_vm4, %v489_v30  ;;  %v685_v38 = vadd.f32 %v653_v27, %v515_v34  ;;  %v490_v39 = vadd.f32 %v466_v36, %v362_v35  ;;  %v2385_v20 = vpop.f32.mrb[19].mxu1 }
 0x10a   : > { %v516_v40 = vld [vmem:[#allocation2 + $0x18] sm:$0xff]  ;;  %v711_v11 = vld [vmem:[#allocation2] sm:$0xff] }
 0x10b   : > { %694 = vst.msk [vmem:[#allocation2 + $0x10] sm:$0xff] %vm337_vm4, %v685_v38  ;;  %499 = vst.msk [vmem:[#allocation2 + $0x28] sm:$0xff] %vm337_vm4, %v490_v39  ;;  %v686_v32 = vadd.f32 %v656_v16, %v516_v40 }
 0x10c   : > { %v712_v57 = vld [vmem:[#allocation2 + $0x8] sm:$0xff] }
 0x10d   : > { %695 = vst.msk [vmem:[#allocation2 + $0x18] sm:$0xff] %vm337_vm4, %v686_v32 }
 0x10e   : > { %v661_v33 = vpop.f32.mrb[20].mxu0  ;;  %v471_v42 = vpop.f32.mrb[20].mxu1 }
 0x10f   : > { %v2406_v43 = vpop.f32.mrb[21].mxu0  ;;  %v491_v44 = vadd.f32 %v471_v42, %v363_v41  ;;  %v2388_v45 = vpop.f32.mrb[21].mxu1 }
 0x110   : > { %v664_v46 = vpop.f32.mrb[22].mxu0  ;;  %v517_v47 = vld [vmem:[#allocation2 + $0x20] sm:$0xff]  ;;  %v474_v49 = vpop.f32.mrb[22].mxu1 }
 0x111   : > { %v2407_v50 = vpop.f32.mrb[23].mxu0  ;;  %500 = vst.msk [vmem:[#allocation2 + $0x30] sm:$0xff] %vm337_vm4, %v491_v44  ;;  %v687_v51 = vadd.f32 %v661_v33, %v517_v47  ;;  %v492_v1 = vadd.f32 %v474_v49, %v364_v48  ;;  %v2389_v52 = vpop.f32.mrb[23].mxu1 }
 0x112   : > { %v518_v53 = vld [vmem:[#allocation2 + $0x28] sm:$0xff]  ;;  %v713_v25 = vld [vmem:[#allocation2 + $0x10] sm:$0xff] }
 0x113   : > { %696 = vst.msk [vmem:[#allocation2 + $0x20] sm:$0xff] %vm337_vm4, %v687_v51  ;;  %501 = vst.msk [vmem:[#allocation2 + $0x38] sm:$0xff] %vm337_vm4, %v492_v1  ;;  %v688_v55 = vadd.f32 %v664_v46, %v518_v53 }
 0x114   : > { %v714_v30 = vld [vmem:[#allocation2 + $0x18] sm:$0xff] }
 0x115   : > { %697 = vst.msk [vmem:[#allocation2 + $0x28] sm:$0xff] %vm337_vm4, %v688_v55 }
 0x116   : > { %v669_v56 = vpop.f32.mrb[24].mxu0  ;;  %v479_v60 = vpop.f32.mrb[24].mxu1 }
 0x117   : > { %v2410_v61 = vpop.f32.mrb[25].mxu0  ;;  %v493_v62 = vadd.f32 %v479_v60, %v365_v59  ;;  %v2392_v63 = vpop.f32.mrb[25].mxu1 }
 0x118   : > { %v672_v0 = vpop.f32.mrb[26].mxu0  ;;  %v519_v54 = vld [vmem:[#allocation2 + $0x30] sm:$0xff]  ;;  %v482_v2 = vpop.f32.mrb[26].mxu1 }
 0x119   : > { %v2411_v3 = vpop.f32.mrb[27].mxu0  ;;  %502 = vst.msk [vmem:[#allocation2 + $0x40] sm:$0xff] %vm337_vm4, %v493_v62  ;;  %v689_v4 = vadd.f32 %v669_v56, %v519_v54  ;;  %v2393_v5 = vpop.f32.mrb[27].mxu1 }
 0x11a   : > { %v520_v7 = vld [vmem:[#allocation2 + $0x38] sm:$0xff]  ;;  %v715_v20 = vld [vmem:[#allocation2 + $0x20] sm:$0xff] }
 0x11b   : > { %698 = vst.msk [vmem:[#allocation2 + $0x30] sm:$0xff] %vm337_vm4, %v689_v4  ;;  %v690_v9 = vadd.f32 %v672_v0, %v520_v7 }
 0x11c   : > { %v716_v44 = vld [vmem:[#allocation2 + $0x28] sm:$0xff] }
 0x11d   : > { %699 = vst.msk [vmem:[#allocation2 + $0x38] sm:$0xff] %vm337_vm4, %v690_v9 }
 0x11e   : > { %v677_v10 = vpop.f32.mrb[28].mxu0  ;;  %v801_v13 = vpop.f32.mrb[28].mxu1 }
 0x11f   : > { %v2414_v14 = vpop.f32.mrb[29].mxu0  ;;  %v839_v15 = vadd.f32 %v801_v13, %v711_v11  ;;  %v2420_v17 = vpop.f32.mrb[29].mxu1 }
 0x120   : > { %v680_v18 = vpop.f32.mrb[30].mxu0  ;;  %v521_v19 = vld [vmem:[#allocation2 + $0x40] sm:$0xff]  ;;  %v804_v21 = vpop.f32.mrb[30].mxu1 }
 0x121   : > { %v2415_v58 = vpop.f32.mrb[31].mxu0  ;;  %v691_v8 = vadd.f32 %v677_v10, %v521_v19  ;;  %848 = vst.msk [vmem:[#allocation2] sm:$0xff] %vm337_vm4, %v839_v15  ;;  %v840_v22 = vadd.f32 %v804_v21, %v712_v57  ;;  %v2421_v12 = vpop.f32.mrb[31].mxu1 }
 0x122   : > { %v717_v52 = vld [vmem:[#allocation2 + $0x30] sm:$0xff] }
 0x123   : > { %700 = vst.msk [vmem:[#allocation2 + $0x40] sm:$0xff] %vm337_vm4, %v691_v8  ;;  %849 = vst.msk [vmem:[#allocation2 + $0x8] sm:$0xff] %vm337_vm4, %v840_v22 }
 0x124   : > { %v718_v62 = vld [vmem:[#allocation2 + $0x38] sm:$0xff] }
 0x126   : > { %v957_v23 = vpop.f32.mrb[32].mxu0  ;;  %v809_v26 = vpop.f32.mrb[32].mxu1 }
 0x127   : > { %v2442_v6 = vpop.f32.mrb[33].mxu0  ;;  %v841_v27 = vadd.f32 %v809_v26, %v713_v25  ;;  %v2424_v28 = vpop.f32.mrb[33].mxu1 }
 0x128   : > { %v960_v24 = vpop.f32.mrb[34].mxu0  ;;  %v867_v29 = vld [vmem:[#allocation2] sm:$0xff]  ;;  %v812_v31 = vpop.f32.mrb[34].mxu1 }
 0x129   : > { %v2443_v16 = vpop.f32.mrb[35].mxu0  ;;  %850 = vst.msk [vmem:[#allocation2 + $0x10] sm:$0xff] %vm337_vm4, %v841_v27  ;;  %v995_v34 = vadd.f32 %v957_v23, %v867_v29  ;;  %v842_v35 = vadd.f32 %v812_v31, %v714_v30  ;;  %v2425_v36 = vpop.f32.mrb[35].mxu1 }
 0x12a   : > { %v868_v37 = vld [vmem:[#allocation2 + $0x8] sm:$0xff]  ;;  %v719_v9 = vld [vmem:[#allocation2 + $0x40] sm:$0xff] }
 0x12b   : > { %1004 = vst.msk [vmem:[#allocation2] sm:$0xff] %vm337_vm4, %v995_v34  ;;  %851 = vst.msk [vmem:[#allocation2 + $0x18] sm:$0xff] %vm337_vm4, %v842_v35  ;;  %v996_v38 = vadd.f32 %v960_v24, %v868_v37 }
 0x12d   : > { %1005 = vst.msk [vmem:[#allocation2 + $0x8] sm:$0xff] %vm337_vm4, %v996_v38 }
 0x12e   : > { %v965_v39 = vpop.f32.mrb[36].mxu0  ;;  %v817_v40 = vpop.f32.mrb[36].mxu1 }
 0x12f   : > { %v2446_v32 = vpop.f32.mrb[37].mxu0  ;;  %v843_v33 = vadd.f32 %v817_v40, %v715_v20  ;;  %v2428_v41 = vpop.f32.mrb[37].mxu1 }
 0x130   : > { %v968_v42 = vpop.f32.mrb[38].mxu0  ;;  %v869_v43 = vld [vmem:[#allocation2 + $0x10] sm:$0xff]  ;;  %v820_v45 = vpop.f32.mrb[38].mxu1 }
 0x131   : > { %v2447_v46 = vpop.f32.mrb[39].mxu0  ;;  %852 = vst.msk [vmem:[#allocation2 + $0x20] sm:$0xff] %vm337_vm4, %v843_v33  ;;  %v997_v47 = vadd.f32 %v965_v39, %v869_v43  ;;  %v844_v48 = vadd.f32 %v820_v45, %v716_v44  ;;  %v2429_v49 = vpop.f32.mrb[39].mxu1 }
 0x132   : > { %v870_v50 = vld [vmem:[#allocation2 + $0x18] sm:$0xff]  ;;  %v1023_v12 = vld [vmem:[#allocation2] sm:$0xff] }
 0x133   : > { %1006 = vst.msk [vmem:[#allocation2 + $0x10] sm:$0xff] %vm337_vm4, %v997_v47  ;;  %853 = vst.msk [vmem:[#allocation2 + $0x28] sm:$0xff] %vm337_vm4, %v844_v48  ;;  %v998_v51 = vadd.f32 %v968_v42, %v870_v50 }
 0x134   : > { %v1024_v24 = vld [vmem:[#allocation2 + $0x8] sm:$0xff] }
 0x135   : > { %1007 = vst.msk [vmem:[#allocation2 + $0x18] sm:$0xff] %vm337_vm4, %v998_v51 }
 0x136   : > { %v973_v1 = vpop.f32.mrb[40].mxu0  ;;  %v825_v53 = vpop.f32.mrb[40].mxu1 }
 0x137   : > { %v2450_v55 = vpop.f32.mrb[41].mxu0  ;;  %v845_v56 = vadd.f32 %v825_v53, %v717_v52  ;;  %v2432_v59 = vpop.f32.mrb[41].mxu1 }
 0x138   : > { %v976_v60 = vpop.f32.mrb[42].mxu0  ;;  %v871_v61 = vld [vmem:[#allocation2 + $0x20] sm:$0xff]  ;;  %v828_v63 = vpop.f32.mrb[42].mxu1 }
 0x139   : > { %v2451_v0 = vpop.f32.mrb[43].mxu0  ;;  %854 = vst.msk [vmem:[#allocation2 + $0x30] sm:$0xff] %vm337_vm4, %v845_v56  ;;  %v999_v54 = vadd.f32 %v973_v1, %v871_v61  ;;  %v846_v2 = vadd.f32 %v828_v63, %v718_v62  ;;  %v2433_v3 = vpop.f32.mrb[43].mxu1 }
 0x13a   : > { %v872_v4 = vld [vmem:[#allocation2 + $0x28] sm:$0xff]  ;;  %v1025_v36 = vld [vmem:[#allocation2 + $0x10] sm:$0xff] }
 0x13b   : > { %1008 = vst.msk [vmem:[#allocation2 + $0x20] sm:$0xff] %vm337_vm4, %v999_v54  ;;  %855 = vst.msk [vmem:[#allocation2 + $0x38] sm:$0xff] %vm337_vm4, %v846_v2  ;;  %v1000_v5 = vadd.f32 %v976_v60, %v872_v4 }
 0x13c   : > { %v1026_v33 = vld [vmem:[#allocation2 + $0x18] sm:$0xff] }
 0x13d   : > { %1009 = vst.msk [vmem:[#allocation2 + $0x28] sm:$0xff] %vm337_vm4, %v1000_v5 }
 0x13e   : > { %v981_v7 = vpop.f32.mrb[44].mxu0  ;;  %v833_v10 = vpop.f32.mrb[44].mxu1 }
 0x13f   : > { %v2454_v11 = vpop.f32.mrb[45].mxu0  ;;  %v847_v13 = vadd.f32 %v833_v10, %v719_v9  ;;  %v2436_v14 = vpop.f32.mrb[45].mxu1 }
 0x140   : > { %v984_v15 = vpop.f32.mrb[46].mxu0  ;;  %v873_v17 = vld [vmem:[#allocation2 + $0x30] sm:$0xff]  ;;  %v836_v18 = vpop.f32.mrb[46].mxu1 }
 0x141   : > { %v2455_v19 = vpop.f32.mrb[47].mxu0  ;;  %856 = vst.msk [vmem:[#allocation2 + $0x40] sm:$0xff] %vm337_vm4, %v847_v13  ;;  %v1001_v57 = vadd.f32 %v981_v7, %v873_v17  ;;  %v2437_v21 = vpop.f32.mrb[47].mxu1 }
 0x142   : > { %v874_v58 = vld [vmem:[#allocation2 + $0x38] sm:$0xff]  ;;  %v1027_v49 = vld [vmem:[#allocation2 + $0x20] sm:$0xff] }
 0x143   : > { %1010 = vst.msk [vmem:[#allocation2 + $0x30] sm:$0xff] %vm337_vm4, %v1001_v57  ;;  %v1002_v8 = vadd.f32 %v984_v15, %v874_v58 }
 0x144   : > { %v1028_v56 = vld [vmem:[#allocation2 + $0x28] sm:$0xff] }
 0x145   : > { %1011 = vst.msk [vmem:[#allocation2 + $0x38] sm:$0xff] %vm337_vm4, %v1002_v8 }
 0x146   : > { %v989_v22 = vpop.f32.mrb[48].mxu0  ;;  %v1154_v23 = vpop.f32.mrb[48].mxu1 }
 0x147   : > { %v2458_v25 = vpop.f32.mrb[49].mxu0  ;;  %v1192_v26 = vadd.f32 %v1154_v23, %v1023_v12  ;;  %v2464_v6 = vpop.f32.mrb[49].mxu1 }
 0x148   : > { %v992_v27 = vpop.f32.mrb[50].mxu0  ;;  %v875_v28 = vld [vmem:[#allocation2 + $0x40] sm:$0xff]  ;;  %v1157_v29 = vpop.f32.mrb[50].mxu1 }
 0x149   : > { %v2459_v30 = vpop.f32.mrb[51].mxu0  ;;  %v1003_v31 = vadd.f32 %v989_v22, %v875_v28  ;;  %1201 = vst.msk [vmem:[#allocation2] sm:$0xff] %vm337_vm4, %v1192_v26  ;;  %v1193_v16 = vadd.f32 %v1157_v29, %v1024_v24  ;;  %v2465_v34 = vpop.f32.mrb[51].mxu1 }
 0x14a   : > { %v1029_v3 = vld [vmem:[#allocation2 + $0x30] sm:$0xff] }
 0x14b   : > { %1012 = vst.msk [vmem:[#allocation2 + $0x40] sm:$0xff] %vm337_vm4, %v1003_v31  ;;  %1202 = vst.msk [vmem:[#allocation2 + $0x8] sm:$0xff] %vm337_vm4, %v1193_v16 }
 0x14c   : > { %v1030_v13 = vld [vmem:[#allocation2 + $0x38] sm:$0xff] }
 0x14e   : > { %v1351_v35 = vpop.f32.mrb[52].mxu0  ;;  %v1162_v37 = vpop.f32.mrb[52].mxu1 }
 0x14f   : > { %v2486_v38 = vpop.f32.mrb[53].mxu0  ;;  %v1194_v39 = vadd.f32 %v1162_v37, %v1025_v36  ;;  %v2468_v20 = vpop.f32.mrb[53].mxu1 }
 0x150   : > { %v1354_v40 = vpop.f32.mrb[54].mxu0  ;;  %v1220_v32 = vld [vmem:[#allocation2] sm:$0xff]  ;;  %v1165_v41 = vpop.f32.mrb[54].mxu1 }
 0x151   : > { %v2487_v42 = vpop.f32.mrb[55].mxu0  ;;  %1203 = vst.msk [vmem:[#allocation2 + $0x10] sm:$0xff] %vm337_vm4, %v1194_v39  ;;  %v1389_v43 = vadd.f32 %v1351_v35, %v1220_v32  ;;  %v1195_v44 = vadd.f32 %v1165_v41, %v1026_v33  ;;  %v2469_v45 = vpop.f32.mrb[55].mxu1 }
 0x152   : > { %v1221_v46 = vld [vmem:[#allocation2 + $0x8] sm:$0xff]  ;;  %v1031_v8 = vld [vmem:[#allocation2 + $0x40] sm:$0xff] }
 0x153   : > { %1398 = vst.msk [vmem:[#allocation2] sm:$0xff] %vm337_vm4, %v1389_v43  ;;  %1204 = vst.msk [vmem:[#allocation2 + $0x18] sm:$0xff] %vm337_vm4, %v1195_v44  ;;  %v1390_v47 = vadd.f32 %v1354_v40, %v1221_v46 }
 0x155   : > { %1399 = vst.msk [vmem:[#allocation2 + $0x8] sm:$0xff] %vm337_vm4, %v1390_v47 }
 0x156   : > { %v1359_v48 = vpop.f32.mrb[56].mxu0  ;;  %v1170_v50 = vpop.f32.mrb[56].mxu1 }
 0x157   : > { %v2490_v51 = vpop.f32.mrb[57].mxu0  ;;  %v1196_v1 = vadd.f32 %v1170_v50, %v1027_v49  ;;  %v2472_v52 = vpop.f32.mrb[57].mxu1 }
 0x158   : > { %v1362_v53 = vpop.f32.mrb[58].mxu0  ;;  %v1222_v55 = vld [vmem:[#allocation2 + $0x10] sm:$0xff]  ;;  %v1173_v59 = vpop.f32.mrb[58].mxu1 }
 0x159   : > { %v2491_v60 = vpop.f32.mrb[59].mxu0  ;;  %1205 = vst.msk [vmem:[#allocation2 + $0x20] sm:$0xff] %vm337_vm4, %v1196_v1  ;;  %v1391_v61 = vadd.f32 %v1359_v48, %v1222_v55  ;;  %v1197_v62 = vadd.f32 %v1173_v59, %v1028_v56  ;;  %v2473_v63 = vpop.f32.mrb[59].mxu1 }
 0x15a   : > { %v1223_v0 = vld [vmem:[#allocation2 + $0x18] sm:$0xff]  ;;  %v1417_v34 = vld [vmem:[#allocation2] sm:$0xff]  ;;  %v3117_v63 = vpop.permute.xlu0 %1792 }
 0x15b   : > { %1400 = vst.msk [vmem:[#allocation2 + $0x10] sm:$0xff] %vm337_vm4, %v1391_v61  ;;  %1206 = vst.msk [vmem:[#allocation2 + $0x28] sm:$0xff] %vm337_vm4, %v1197_v62  ;;  %v1392_v54 = vadd.f32 %v1362_v53, %v1223_v0 }
 0x15c   : > { %v1418_v40 = vld [vmem:[#allocation2 + $0x8] sm:$0xff] }
 0x15d   : > { %1401 = vst.msk [vmem:[#allocation2 + $0x18] sm:$0xff] %vm337_vm4, %v1392_v54 }
 0x15e   : > { %v1367_v2 = vpop.f32.mrb[60].mxu0  ;;  %v1178_v4 = vpop.f32.mrb[60].mxu1 }
 0x15f   : > { %v2494_v5 = vpop.f32.mrb[61].mxu0  ;;  %v1198_v7 = vadd.f32 %v1178_v4, %v1029_v3  ;;  %v2476_v9 = vpop.f32.mrb[61].mxu1 }
 0x160   : > { %v1370_v10 = vpop.f32.mrb[62].mxu0  ;;  %v1224_v11 = vld [vmem:[#allocation2 + $0x20] sm:$0xff]  ;;  %v1181_v14 = vpop.f32.mrb[62].mxu1 }
 0x161   : > { %v2495_v15 = vpop.f32.mrb[63].mxu0  ;;  %1207 = vst.msk [vmem:[#allocation2 + $0x30] sm:$0xff] %vm337_vm4, %v1198_v7  ;;  %v1393_v17 = vadd.f32 %v1367_v2, %v1224_v11  ;;  %v1199_v18 = vadd.f32 %v1181_v14, %v1030_v13  ;;  %v2477_v19 = vpop.f32.mrb[63].mxu1 }
 0x162   : > { %v1225_v57 = vld [vmem:[#allocation2 + $0x28] sm:$0xff]  ;;  %v1419_v45 = vld [vmem:[#allocation2 + $0x10] sm:$0xff]  ;;  %v3122_v19 = vpop.permute.xlu0 %1797 }
 0x163   : > { %1402 = vst.msk [vmem:[#allocation2 + $0x20] sm:$0xff] %vm337_vm4, %v1393_v17  ;;  %1208 = vst.msk [vmem:[#allocation2 + $0x38] sm:$0xff] %vm337_vm4, %v1199_v18  ;;  %v1394_v21 = vadd.f32 %v1370_v10, %v1225_v57 }
 0x164   : > { %v1420_v1 = vld [vmem:[#allocation2 + $0x18] sm:$0xff] }
 0x165   : > { %1403 = vst.msk [vmem:[#allocation2 + $0x28] sm:$0xff] %vm337_vm4, %v1394_v21  ;;  %v3125_v21 = vpop.permute.xlu1 %1802 }
 0x166   : > { %v1375_v58 = vpop.f32.mrb[64].mxu0  ;;  %v1186_v22 = vpop.f32.mrb[64].mxu1 }
 0x167   : > { %v2498_v12 = vpop.f32.mrb[65].mxu0  ;;  %v1200_v23 = vadd.f32 %v1186_v22, %v1031_v8  ;;  %v2480_v25 = vpop.f32.mrb[65].mxu1 }
 0x168   : > { %v1378_v26 = vpop.f32.mrb[66].mxu0  ;;  %v1226_v6 = vld [vmem:[#allocation2 + $0x30] sm:$0xff]  ;;  %v1189_v27 = vpop.f32.mrb[66].mxu1 }
 0x169   : > { %v2499_v28 = vpop.f32.mrb[67].mxu0  ;;  %1209 = vst.msk [vmem:[#allocation2 + $0x40] sm:$0xff] %vm337_vm4, %v1200_v23  ;;  %v1395_v24 = vadd.f32 %v1375_v58, %v1226_v6  ;;  %v2481_v29 = vpop.f32.mrb[67].mxu1 }
 0x16a   : > { %v1227_v30 = vld [vmem:[#allocation2 + $0x38] sm:$0xff]  ;;  %v1421_v0 = vld [vmem:[#allocation2 + $0x20] sm:$0xff] }
 0x16b   : > { %1404 = vst.msk [vmem:[#allocation2 + $0x30] sm:$0xff] %vm337_vm4, %v1395_v24  ;;  %v1396_v31 = vadd.f32 %v1378_v26, %v1227_v30 }
 0x16c   : > { %v1422_v9 = vld [vmem:[#allocation2 + $0x28] sm:$0xff] }
 0x16d   : > { %1405 = vst.msk [vmem:[#allocation2 + $0x38] sm:$0xff] %vm337_vm4, %v1396_v31 }
 0x16e   : > { %v1383_v16 = vpop.f32.mrb[68].mxu0  ;;  %v1548_v35 = vpop.f32.mrb[68].mxu1 }
 0x16f   : > { %v2502_v36 = vpop.f32.mrb[69].mxu0  ;;  %v1586_v37 = vadd.f32 %v1548_v35, %v1417_v34  ;;  %v2508_v38 = vpop.f32.mrb[69].mxu1 }
 0x170   : > { %v1386_v39 = vpop.f32.mrb[70].mxu0  ;;  %v1228_v20 = vld [vmem:[#allocation2 + $0x40] sm:$0xff]  ;;  %v1551_v32 = vpop.f32.mrb[70].mxu1 }
 0x171   : > { %v2503_v33 = vpop.f32.mrb[71].mxu0  ;;  %v1397_v41 = vadd.f32 %v1383_v16, %v1228_v20  ;;  %1595 = vst.msk [vmem:[#allocation2] sm:$0xff] %vm337_vm4, %v1586_v37  ;;  %v1587_v42 = vadd.f32 %v1551_v32, %v1418_v40  ;;  %v2509_v43 = vpop.f32.mrb[71].mxu1 }
 0x172   : > { %v1423_v58 = vld [vmem:[#allocation2 + $0x30] sm:$0xff]  ;;  %v3143_v20 = vpop.permute.xlu1 %1807 }
 0x173   : > { %1406 = vst.msk [vmem:[#allocation2 + $0x40] sm:$0xff] %vm337_vm4, %v1397_v41  ;;  %1596 = vst.msk [vmem:[#allocation2 + $0x8] sm:$0xff] %vm337_vm4, %v1587_v42 }
 0x174   : > { %v1424_v27 = vld [vmem:[#allocation2 + $0x38] sm:$0xff] }
 0x176   : > { %v1716_v44 = vpop.f32.mrb[72].mxu0  ;;  %v1556_v46 = vpop.f32.mrb[72].mxu1 }
 0x177   : > { %v2530_v47 = vpop.f32.mrb[73].mxu0  ;;  %v1588_v48 = vadd.f32 %v1556_v46, %v1419_v45  ;;  %v2512_v49 = vpop.f32.mrb[73].mxu1 }
 0x178   : > { %v1719_v50 = vpop.f32.mrb[74].mxu0  ;;  %v1614_v51 = vld [vmem:[#allocation2] sm:$0xff]  ;;  %v1559_v52 = vpop.f32.mrb[74].mxu1 }
 0x179   : > { %v2531_v53 = vpop.f32.mrb[75].mxu0  ;;  %1597 = vst.msk [vmem:[#allocation2 + $0x10] sm:$0xff] %vm337_vm4, %v1588_v48  ;;  %v1754_v55 = vadd.f32 %v1716_v44, %v1614_v51  ;;  %v1589_v56 = vadd.f32 %v1559_v52, %v1420_v1  ;;  %v2513_v59 = vpop.f32.mrb[75].mxu1 }
 0x17a   : > { %v1615_v60 = vld [vmem:[#allocation2 + $0x8] sm:$0xff]  ;;  %v1425_v33 = vld [vmem:[#allocation2 + $0x40] sm:$0xff] }
 0x17b   : > { %1763 = vst.msk [vmem:[#allocation2] sm:$0xff] %vm337_vm4, %v1754_v55  ;;  %1598 = vst.msk [vmem:[#allocation2 + $0x18] sm:$0xff] %vm337_vm4, %v1589_v56  ;;  %v1755_v61 = vadd.f32 %v1719_v50, %v1615_v60  ;;  %v3153_v56 = vpop.permute.xlu0 %1812 }
 0x17d   : > { %1764 = vst.msk [vmem:[#allocation2 + $0x8] sm:$0xff] %vm337_vm4, %v1755_v61 }
 0x17e   : > { %v1724_v62 = vpop.f32.mrb[76].mxu0  ;;  %v1564_v54 = vpop.f32.mrb[76].mxu1 }
 0x17f   : > { %v2534_v2 = vpop.f32.mrb[77].mxu0  ;;  %v1590_v3 = vadd.f32 %v1564_v54, %v1421_v0  ;;  %v2516_v4 = vpop.f32.mrb[77].mxu1 }
 0x180   : > { %v1727_v5 = vpop.f32.mrb[78].mxu0  ;;  %v1616_v7 = vld [vmem:[#allocation2 + $0x10] sm:$0xff]  ;;  %v1567_v10 = vpop.f32.mrb[78].mxu1 }
 0x181   : > { %v2535_v11 = vpop.f32.mrb[79].mxu0  ;;  %1599 = vst.msk [vmem:[#allocation2 + $0x20] sm:$0xff] %vm337_vm4, %v1590_v3  ;;  %v1756_v13 = vadd.f32 %v1724_v62, %v1616_v7  ;;  %v1591_v14 = vadd.f32 %v1567_v10, %v1422_v9  ;;  %v2517_v15 = vpop.f32.mrb[79].mxu1 }
 0x182   : > { %v1617_v17 = vld [vmem:[#allocation2 + $0x18] sm:$0xff]  ;;  %v3130_v16 = vld [vmem:[#allocation2] sm:$0xff]  ;;  %v3159_v4 = vpop.permute.xlu1 %1817 }
 0x183   : > { %1765 = vst.msk [vmem:[#allocation2 + $0x10] sm:$0xff] %vm337_vm4, %v1756_v13  ;;  %1600 = vst.msk [vmem:[#allocation2 + $0x28] sm:$0xff] %vm337_vm4, %v1591_v14  ;;  %v1757_v18 = vadd.f32 %v1727_v5, %v1617_v17  ;;  %v1835_v38 = vmul.f32 %v3117_v63, %v3130_v16  ;;  %v3163_v17 = vpop.permute.xlu0 %1822 }
 0x184   : > { %v3127_v26 = vld [vmem:[#allocation2 + $0x8] sm:$0xff] }
 0x185   : > { %1766 = vst.msk [vmem:[#allocation2 + $0x18] sm:$0xff] %vm337_vm4, %v1757_v18  ;;  %v1836_v36 = vmul.f32 %v3122_v19, %v3127_v26  ;;  %v1844_v50 = vsel %vm337_vm4, %v1835_v38, 0.0 }
 0x186   : > { %v1732_v57 = vpop.f32.mrb[80].mxu0  ;;  %v1572_v8 = vpop.f32.mrb[80].mxu1 }
 0x187   : > { %v2538_v22 = vpop.f32.mrb[81].mxu0  ;;  %v1592_v12 = vadd.f32 %v1572_v8, %v1423_v58  ;;  %v2520_v23 = vpop.f32.mrb[81].mxu1  ;;  %v1845_v43 = vsel %vm337_vm4, %v1836_v36, 0.0 }
 0x188   : > { %v1735_v25 = vpop.f32.mrb[82].mxu0  ;;  %v1618_v6 = vld [vmem:[#allocation2 + $0x20] sm:$0xff]  ;;  %v1575_v28 = vpop.f32.mrb[82].mxu1  ;;  %v1846_v55 = vadd.f32 %v1845_v43, %v1844_v50 }
 0x189   : > { %v2539_v24 = vpop.f32.mrb[83].mxu0  ;;  %1601 = vst.msk [vmem:[#allocation2 + $0x30] sm:$0xff] %vm337_vm4, %v1592_v12  ;;  %v1758_v29 = vadd.f32 %v1732_v57, %v1618_v6  ;;  %v1593_v30 = vadd.f32 %v1575_v28, %v1424_v27  ;;  %v2521_v31 = vpop.f32.mrb[83].mxu1 }
 0x18a   : > { %v3132_v34 = vld [vmem:[#allocation2 + $0x10] sm:$0xff]  ;;  %v1619_v35 = vld [vmem:[#allocation2 + $0x28] sm:$0xff]  ;;  %v3168_v22 = vpop.permute.xlu1 %1827  ;;  %v3173_v24 = vpop.permute.xlu0 %1832 }
 0x18b   : > { %1767 = vst.msk [vmem:[#allocation2 + $0x20] sm:$0xff] %vm337_vm4, %v1758_v29  ;;  %1602 = vst.msk [vmem:[#allocation2 + $0x38] sm:$0xff] %vm337_vm4, %v1593_v30  ;;  %v1759_v37 = vadd.f32 %v1735_v25, %v1619_v35  ;;  %v1837_v39 = vmul.f32 %v3125_v21, %v3132_v34 }
 0x18c   : > { %v3145_v32 = vld [vmem:[#allocation2 + $0x18] sm:$0xff] }
 0x18d   : > { %1768 = vst.msk [vmem:[#allocation2 + $0x28] sm:$0xff] %vm337_vm4, %v1759_v37  ;;  %v1847_v51 = vsel %vm337_vm4, %v1837_v39, 0.0  ;;  %v1838_v1 = vmul.f32 %v3143_v20, %v3145_v32 }
 0x18e   : > { %v1740_v40 = vpop.f32.mrb[84].mxu0  ;;  %v1580_v41 = vpop.f32.mrb[84].mxu1  ;;  %v1848_v0 = vadd.f32 %v1847_v51, %v1846_v55 }
 0x18f   : > { %v2542_v42 = vpop.f32.mrb[85].mxu0  ;;  %v1594_v44 = vadd.f32 %v1580_v41, %v1425_v33  ;;  %v2524_v45 = vpop.f32.mrb[85].mxu1  ;;  %v1849_v2 = vsel %vm337_vm4, %v1838_v1, 0.0 }
 0x190   : > { %v1743_v46 = vpop.f32.mrb[86].mxu0  ;;  %v1620_v47 = vld [vmem:[#allocation2 + $0x30] sm:$0xff]  ;;  %v1583_v48 = vpop.f32.mrb[86].mxu1  ;;  %v1850_v11 = vadd.f32 %v1849_v2, %v1848_v0 }
 0x191   : > { %v2543_v49 = vpop.f32.mrb[87].mxu0  ;;  %1603 = vst.msk [vmem:[#allocation2 + $0x40] sm:$0xff] %vm337_vm4, %v1594_v44  ;;  %v1760_v52 = vadd.f32 %v1740_v40, %v1620_v47  ;;  %v2525_v53 = vpop.f32.mrb[87].mxu1 }
 0x192   : > { %v1776_v59 = vld [vmem:[#allocation2 + $0x20] sm:$0xff]  ;;  %v1621_v60 = vld [vmem:[#allocation2 + $0x38] sm:$0xff] }
 0x193   : > { %v1839_v61 = vmul.f32 %v3153_v56, %v1776_v59  ;;  %1769 = vst.msk [vmem:[#allocation2 + $0x30] sm:$0xff] %vm337_vm4, %v1760_v52  ;;  %v1761_v62 = vadd.f32 %v1743_v46, %v1621_v60 }
 0x194   : > { %v1777_v54 = vld [vmem:[#allocation2 + $0x28] sm:$0xff] }
 0x195   : > { %1770 = vst.msk [vmem:[#allocation2 + $0x38] sm:$0xff] %vm337_vm4, %v1761_v62  ;;  %v1851_v7 = vsel %vm337_vm4, %v1839_v61, 0.0  ;;  %v1840_v9 = vmul.f32 %v3159_v4, %v1777_v54 }
 0x196   : > { %v1748_v3 = vpop.f32.mrb[88].mxu0  ;;  %v1852_v18 = vadd.f32 %v1851_v7, %v1850_v11 }
 0x197   : > { %v2546_v5 = vpop.f32.mrb[89].mxu0  ;;  %v1853_v58 = vsel %vm337_vm4, %v1840_v9, 0.0 }
 0x198   : > { %v1751_v10 = vpop.f32.mrb[90].mxu0  ;;  %v1622_v13 = vld [vmem:[#allocation2 + $0x40] sm:$0xff]  ;;  %v1854_v6 = vadd.f32 %v1853_v58, %v1852_v18 }
 0x199   : > { %v2547_v14 = vpop.f32.mrb[91].mxu0  ;;  %v1762_v15 = vadd.f32 %v1748_v3, %v1622_v13 }
 0x19a   : > { %v1778_v57 = vld [vmem:[#allocation2 + $0x30] sm:$0xff] }
 0x19b   : > { %v1841_v8 = vmul.f32 %v3163_v17, %v1778_v57  ;;  %1771 = vst.msk [vmem:[#allocation2 + $0x40] sm:$0xff] %vm337_vm4, %v1762_v15 }
 0x19c   : > { %v1779_v12 = vld [vmem:[#allocation2 + $0x38] sm:$0xff] }
 0x19d   : > { %v1842_v23 = vmul.f32 %v3168_v22, %v1779_v12  ;;  %v1855_v25 = vsel %vm337_vm4, %v1841_v8, 0.0 }
 0x19e   : > { %v1856_v27 = vadd.f32 %v1855_v25, %v1854_v6 }
 0x19f   : > { %v1857_v28 = vsel %vm337_vm4, %v1842_v23, 0.0 }
 0x1a0   : > { %v1858_v31 = vadd.f32 %v1857_v28, %v1856_v27 }
 0x1a2   : > { %v1780_v29 = vld [vmem:[#allocation2 + $0x40] sm:$0xff] }
 0x1a3   : > { %v1843_v30 = vmul.f32 %v3173_v24, %v1780_v29 }
 0x1a5   : > { %v1859_v35 = vsel %vm337_vm4, %v1843_v30, 0.0 }
 0x1a6   : > { %v1860_v36 = vadd.f32 %v1859_v35, %v1858_v31 }
 0x1a8   : > { %v1861_v37 = vrot.slane %v1860_v36, 4 }
 0x1aa   : > { %v1862_v38 = vadd.f32 %v1861_v37, %v1860_v36 }
 0x1ac   : > { %v1863_v39 = vrot.slane %v1862_v38, 2 }
 0x1ae   : > { %v1864_v40 = vadd.f32 %v1863_v39, %v1862_v38 }
 0x1b0   : > { %v1865_v33 = vrot.slane %v1864_v40, 1 }
 0x1b2   : > { %v1866_v41 = vadd.f32 %v1865_v33, %v1864_v40 }
 0x1b4   : > { %v1867_v42 = vmul.f32 0.015625, %v1866_v41 }
 0x1b6   : > { %v1868_v43 = vsub.f32 %v3130_v16, %v1867_v42  ;;  %v1869_v44 = vsub.f32 %v3127_v26, %v1867_v42  ;;  %v1870_v45 = vsub.f32 %v3132_v34, %v1867_v42  ;;  %v1871_v46 = vsub.f32 %v3145_v32, %v1867_v42 }
 0x1b7   : > { %v1872_v47 = vsub.f32 %v1776_v59, %v1867_v42  ;;  %v1873_v51 = vsub.f32 %v1777_v54, %v1867_v42  ;;  %v1874_v55 = vsub.f32 %v1778_v57, %v1867_v42  ;;  %v1875_v61 = vsub.f32 %v1779_v12, %v1867_v42 }
 0x1b8   : > { %v1877_v48 = vmul.f32 %v1868_v43, %v1868_v43  ;;  %v1878_v49 = vmul.f32 %v1869_v44, %v1869_v44  ;;  %v1879_v50 = vmul.f32 %v1870_v45, %v1870_v45  ;;  %v1880_v1 = vmul.f32 %v1871_v46, %v1871_v46 }
 0x1b9   : > { %v1881_v60 = vmul.f32 %v1872_v47, %v1872_v47  ;;  %v1882_v34 = vmul.f32 %v1873_v51, %v1873_v51  ;;  %v1876_v0 = vsub.f32 %v1780_v29, %v1867_v42  ;;  %v1883_v54 = vmul.f32 %v1874_v55, %v1874_v55 }
 0x1ba   : > { %v1886_v52 = vmul.f32 %v1877_v48, %v3117_v63  ;;  %v1887_v53 = vmul.f32 %v1878_v49, %v3122_v19  ;;  %v1888_v16 = vmul.f32 %v1879_v50, %v3125_v21  ;;  %v1889_v32 = vmul.f32 %v1880_v1, %v3143_v20 }
 0x1bb   : > { %v1890_v2 = vmul.f32 %v1881_v60, %v3153_v56  ;;  %v1884_v7 = vmul.f32 %v1875_v61, %v1875_v61  ;;  %v1891_v9 = vmul.f32 %v1882_v34, %v3159_v4  ;;  %v1885_v13 = vmul.f32 %v1876_v0, %v1876_v0 }
 0x1bc   : > { %v1895_v26 = vsel %vm337_vm4, %v1886_v52, 0.0  ;;  %v1896_v59 = vsel %vm337_vm4, %v1887_v53, 0.0  ;;  %v1898_v3 = vsel %vm337_vm4, %v1888_v16, 0.0  ;;  %v1900_v10 = vsel %vm337_vm4, %v1889_v32, 0.0 }
 0x1bd   : > { %v1897_v62 = vadd.f32 %v1896_v59, %v1895_v26  ;;  %v1892_v14 = vmul.f32 %v1883_v54, %v3163_v17  ;;  %v1902_v15 = vsel %vm337_vm4, %v1890_v2, 0.0  ;;  %v1893_v57 = vmul.f32 %v1884_v7, %v3168_v22 }
 0x1be   : > { %v1904_v58 = vsel %vm337_vm4, %v1891_v9, 0.0  ;;  %v1894_v12 = vmul.f32 %v1885_v13, %v3173_v24 }
 0x1bf   : > { %v1899_v5 = vadd.f32 %v1898_v3, %v1897_v62  ;;  %v1906_v23 = vsel %vm337_vm4, %v1892_v14, 0.0  ;;  %v1908_v6 = vsel %vm337_vm4, %v1893_v57, 0.0 }
 0x1c0   : > { %v1910_v28 = vsel %vm337_vm4, %v1894_v12, 0.0 }
 0x1c1   : > { %v1901_v11 = vadd.f32 %v1900_v10, %v1899_v5 }
 0x1c3   : > { %v1903_v18 = vadd.f32 %v1902_v15, %v1901_v11 }
 0x1c5   : > { %v1905_v8 = vadd.f32 %v1904_v58, %v1903_v18 }
 0x1c7   : > { %v1907_v25 = vadd.f32 %v1906_v23, %v1905_v8 }
 0x1c9   : > { %v1909_v27 = vadd.f32 %v1908_v6, %v1907_v25 }
 0x1cb   : > { %v1911_v29 = vadd.f32 %v1910_v28, %v1909_v27 }
 0x1cd   : > { %v1912_v30 = vrot.slane %v1911_v29, 4 }
 0x1cf   : > { %v1913_v31 = vadd.f32 %v1912_v30, %v1911_v29 }
 0x1d1   : > { %v1914_v35 = vrot.slane %v1913_v31, 2 }
 0x1d3   : > { %v1915_v36 = vadd.f32 %v1914_v35, %v1913_v31 }
 0x1d5   : > { %v1916_v37 = vrot.slane %v1915_v36, 1 }
 0x1d7   : > { %v1917_v38 = vadd.f32 %v1916_v37, %v1915_v36 }
 0x1d9   : > { %v1918_v39 = vmul.f32 0.015625, %v1917_v38 }
 0x1db   : > { %v1919_v40 = vadd.f32 1e-05, %v1918_v39 }
 0x1dd   : > { %2635 = vrsqrt.f32 %v1919_v40 }
 0x1e7   : > { %v2636_v33 = vpop.eup %2635 }
 0x1e8   : > { %v1921_v41 = vmul.f32 %v2636_v33, %v1868_v43  ;;  %v1922_v42 = vmul.f32 %v2636_v33, %v1869_v44  ;;  %v1923_v48 = vmul.f32 %v2636_v33, %v1870_v45  ;;  %v1924_v49 = vmul.f32 %v2636_v33, %v1871_v46 }
 0x1e9   : > { %v1925_v50 = vmul.f32 %v2636_v33, %v1872_v47  ;;  %v1926_v1 = vmul.f32 %v2636_v33, %v1873_v51  ;;  %v1927_v52 = vmul.f32 %v2636_v33, %v1874_v55  ;;  %v1928_v53 = vmul.f32 %v2636_v33, %v1875_v61 }
 0x1ea   : > { %v1929_v60 = vmul.f32 %v2636_v33, %v1876_v0  ;;  %vm1930_vm5 = vcmp.ge.f32.partialorder %v1921_v41, 0.0  ;;  %vm1931_vm6 = vcmp.ge.f32.partialorder %v1922_v42, 0.0  ;;  %vm1932_vm7 = vcmp.ge.f32.partialorder %v1923_v48, 0.0 }
 0x1eb   : > { %vm1933_vm9 = vcmp.ge.f32.partialorder %v1924_v49, 0.0  ;;  %vm1934_vm10 = vcmp.ge.f32.partialorder %v1925_v50, 0.0  ;;  %vm1935_vm11 = vcmp.ge.f32.partialorder %v1926_v1, 0.0  ;;  %vm1936_vm12 = vcmp.ge.f32.partialorder %v1927_v52, 0.0 }
 0x1ec   : > { %vm1937_vm13 = vcmp.ge.f32.partialorder %v1928_v53, 0.0  ;;  %vm1938_vm14 = vcmp.ge.f32.partialorder %v1929_v60, 0.0  ;;  %v1939_v43 = vmul.f32 0.2, %v1921_v41  ;;  %v1940_v44 = vmul.f32 0.2, %v1922_v42 }
 0x1ed   : > { %v1941_v45 = vmul.f32 0.2, %v1923_v48  ;;  %v1942_v46 = vmul.f32 0.2, %v1924_v49  ;;  %v1943_v47 = vmul.f32 0.2, %v1925_v50 }
 0x1ee   : > { %v1944_v51 = vmul.f32 0.2, %v1926_v1  ;;  %v1945_v55 = vmul.f32 0.2, %v1927_v52  ;;  %v1946_v16 = vmul.f32 0.2, %v1928_v53  ;;  %v1948_v26 = vsel %vm1930_vm5, %v1921_v41, %v1939_v43 }
 0x1ef   : > { %v1947_v61 = vmul.f32 0.2, %v1929_v60  ;;  %v1949_v34 = vsel %vm1931_vm6, %v1922_v42, %v1940_v44  ;;  %v1950_v32 = vsel %vm1932_vm7, %v1923_v48, %v1941_v45  ;;  %v1951_v59 = vsel %vm1933_vm9, %v1924_v49, %v1942_v46 }
 0x1f0   : > { %v1952_v62 = vsel %vm1934_vm10, %v1925_v50, %v1943_v47  ;;  %v1953_v0 = vsel %vm1935_vm11, %v1926_v1, %v1944_v51  ;;  %v1954_v54 = vsel %vm1936_vm12, %v1927_v52, %v1945_v55  ;;  %v1955_v2 = vsel %vm1937_vm13, %v1928_v53, %v1946_v16 }
 0x1f1   : > { %v1956_v3 = vsel %vm1938_vm14, %v1929_v60, %v1947_v61  ;;  %v1957_v5 = vmul.f32 %v1948_v26, %v3117_v63  ;;  %v1958_v7 = vmul.f32 %v1949_v34, %v3122_v19  ;;  %v1959_v9 = vmul.f32 %v1950_v32, %v3125_v21 }
 0x1f2   : > { %v1960_v10 = vmul.f32 %v1951_v59, %v3143_v20  ;;  %v1961_v11 = vmul.f32 %v1952_v62, %v3153_v56  ;;  %v1962_v13 = vmul.f32 %v1953_v0, %v3159_v4  ;;  %v1963_v14 = vmul.f32 %v1954_v54, %v3163_v17 }
 0x1f3   : > { %v1964_v15 = vmul.f32 %v1955_v2, %v3168_v22  ;;  %v1965_v63 = vmul.f32 %v1956_v3, %v3173_v24  ;;  %v2287_v18 = vpack.c.bf16 %v1957_v5, %v1957_v5  ;;  %v2288_v19 = vpack.c.bf16 %v1958_v7, %v1958_v7 }
 0x1f4   : > { %v2289_v57 = vpack.c.bf16 %v1959_v9, %v1959_v9  ;;  %v2290_v21 = vpack.c.bf16 %v1960_v10, %v1960_v10  ;;  %v2291_v58 = vpack.c.bf16 %v1961_v11, %v1961_v11  ;;  %v2292_v8 = vpack.c.bf16 %v1962_v13, %v1962_v13 }
 0x1f5   : > { %v2293_v12 = vpack.c.bf16 %v1963_v14, %v1963_v14  ;;  %v2294_v23 = vpack.c.bf16 %v1964_v15, %v1964_v15  ;;  %v2295_v25 = vpack.c.bf16 %v1965_v63, %v1965_v63  ;;  %2004 = vst.msk [vmem:[%s207_s8] sm:$0xf] %vm2003_vm8, %v2287_v18  ;;  %2005 = vst.msk [vmem:[%s207_s8 + $0x4] sm:$0xf] %vm2003_vm8, %v2288_v19 }
 0x1f6   : > { %2006 = vst.msk [vmem:[%s207_s8 + $0x8] sm:$0xf] %vm2003_vm8, %v2289_v57  ;;  %2007 = vst.msk [vmem:[%s207_s8 + $0xc] sm:$0xf] %vm2003_vm8, %v2290_v21 }
 0x1f7   : > { %2008 = vst.msk [vmem:[%s207_s8 + $0x10] sm:$0xf] %vm2003_vm8, %v2291_v58  ;;  %2009 = vst.msk [vmem:[%s207_s8 + $0x14] sm:$0xf] %vm2003_vm8, %v2292_v8 }
 0x1f8   : > { %2010 = vst.msk [vmem:[%s207_s8 + $0x18] sm:$0xf] %vm2003_vm8, %v2293_v12  ;;  %2011 = vst.msk [vmem:[%s207_s8 + $0x1c] sm:$0xf] %vm2003_vm8, %v2294_v23 }
 0x1f9   : > { %2012 = vst.msk [vmem:[%s207_s8 + $0x20] sm:$0xf] %vm2003_vm8, %v2295_v25 }
 0x1fa PF: > { %s13_s14 = sadd.s32 1, %s2659_s14   ;;  %s3243_s12 = smov %s2655_s13 }
 0x1fb   : > { %p10_p5 = scmp.ge.s32.totalorder %s13_s14, 4   ;;  %s3244_s13 = smov %s3246_s15 }
 0x1fd   :  { %12 = sbr.rel (!%p10_p5) target bundleno = 2 (0x2), region = 76 }

// kernel: simple_discriminator_forward.7
= control target key start
LH: loop header
LB: loop body
LE: loop exit
PB: predicated region body
PF: predicated region fallthrough
CT: control target
= control target key end

     0   :  { %s2343_s12 = smov 0   ;;  %s2345_s13 = smov 0   ;;  %s2846_s0 = inlined_call_operand.vmem [shape: bf16[2,4,10,128], index: 0, kind: input, shape index: {}]   ;;  %s2847_s1 = inlined_call_operand.vmem [shape: bf16[9,128,256], index: 1, kind: input, shape index: {}]   ;;  %s2848_s2 = inlined_call_operand.vmem [shape: f32[6,1], index: 2, kind: input, shape index: {}]   ;;  %s2849_s3 = inlined_call_operand.vmem [shape: bf16[2,6,256], index: 3, kind: output, shape index: {}]  }
   0x1   :  { %s2347_s14 = smov 0  }
   0x2 LB: > { %s25_s15 = sadd.s32 1, %s2316_s13  ;;  %p1753_p0 = scmp.ge.s32.totalorder %s2320_s14, 1  ;;  %s2320_s14 = sphi %s2347_s14, %s13_s14   ;;  %s2316_s13 = sphi %s2345_s13, %s2851_s13   ;;  %s2312_s12 = sphi %s2343_s12, %s2850_s12  }
   0x3   : > { %p27_p1 = scmp.ge.s32.totalorder %s25_s15, 2  ;;  %p162_p2 = scmp.lt.s32.totalorder %s2320_s14, 3 }
   0x5   : > { %s2853_s15 = smov (%p27_p1, %s25_s15), 0  ;;  %p163_p3 = pnand %p1753_p0, %p162_p2 }
   0x6   : > { %v2073_v0 = vld [vmem:[%s2847_s1 + $0x4] ss:$8 sps:$4 sm:$0xff] (!%p163_p3)   ;;  %v2075_v1 = vld [vmem:[%s2847_s1] ss:$8 sps:$4 sm:$0xff] (!%p163_p3)   ;;  %v2322_v2 = vmov (!%p163_p3), 0   ;;  %p195_p4 = scmp.lt.s32.totalorder (!%p163_p3), %s2312_s12, 1 }
   0x7   : > { %166 = sbr.rel (%p163_p3) target bundleno = 452 (0x1c4), region = 32  ;;  %346 = vmatprep.mubr.bf16.mxu0 (!%p163_p3), %v2322_v2  ;;  %490 = vmatprep.mubr.bf16.mxu1 (!%p163_p3), %v2322_v2  ;;  %v2076_v3 = vld [vmem:[%s2847_s1 + $0x14] ss:$8 sps:$4 sm:$0xff] (!%p163_p3)   ;;  %v2078_v4 = vld [vmem:[%s2847_s1 + $0x10] ss:$8 sps:$4 sm:$0xff] (!%p163_p3)   ;;  %vm1590_vm0 = vcmask (!%p163_p3), 1045504  }
   0x8   : > { %314 = vmatprep.subr.bf16.mxu0 (!%p163_p3), %v2073_v0  ;;  %2072 = vset.pattern.permute.xlu0 (!%p163_p3), %v2322_v2  ;;  %v2079_v5 = vld [vmem:[%s2847_s1 + $0x24] ss:$8 sps:$4 sm:$0xff] (!%p163_p3)   ;;  %v2084_v7 = vld [vmem:[%s2847_s1 + $0x80] ss:$8 sps:$4 sm:$0xff] (!%p163_p3)   ;;  %v2087_v9 = vld [vmem:[%s2847_s1 + $0x94] ss:$8 sps:$4 sm:$0xff] (!%p163_p3)  }
   0x9   : > { %315 = vmatpush1.bf16.msra.mxu0 (!%p163_p3), %v2075_v1  ;;  %v2081_v6 = vld [vmem:[%s2847_s1 + $0x84] ss:$8 sps:$4 sm:$0xff] (!%p163_p3)   ;;  %v2083_v8 = vld [vmem:[%s2847_s1 + $0x20] ss:$8 sps:$4 sm:$0xff] (!%p163_p3)   ;;  %v2090_v10 = vld [vmem:[%s2847_s1 + $0x90] ss:$8 sps:$4 sm:$0xff] (!%p163_p3)  }
   0xa   : > { %316 = vmatprep.subr.bf16.mxu0 (!%p163_p3), %v2076_v3  ;;  %458 = vmatprep.subr.bf16.mxu1 (!%p163_p3), %v2081_v6  ;;  %v2085_v11 = vld [vmem:[%s2847_s1 + $0x34] ss:$8 sps:$4 sm:$0xff] (!%p163_p3)   ;;  %v2093_v12 = vld [vmem:[%s2847_s1 + $0xa4] ss:$8 sps:$4 sm:$0xff] (!%p163_p3)   ;;  %v2089_v13 = vld [vmem:[%s2847_s1 + $0x30] ss:$8 sps:$4 sm:$0xff] (!%p163_p3)  }
   0xb   : > { %459 = vmatpush1.bf16.msra.mxu1 (!%p163_p3), %v2084_v7  ;;  %v2096_v14 = vld [vmem:[%s2847_s1 + $0xa0] ss:$8 sps:$4 sm:$0xff] (!%p163_p3)   ;;  %v2091_v15 = vld [vmem:[%s2847_s1 + $0x44] ss:$8 sps:$4 sm:$0xff] (!%p163_p3)   ;;  %v2099_v16 = vld [vmem:[%s2847_s1 + $0xb4] ss:$8 sps:$4 sm:$0xff] (!%p163_p3)  }
   0xc   : > { %460 = vmatprep.subr.bf16.mxu1 (!%p163_p3), %v2087_v9  ;;  %v2095_v17 = vld [vmem:[%s2847_s1 + $0x40] ss:$8 sps:$4 sm:$0xff] (!%p163_p3)   ;;  %v2097_v18 = vld [vmem:[%s2847_s1 + $0x54] ss:$8 sps:$4 sm:$0xff] (!%p163_p3)   ;;  %v2102_v19 = vld [vmem:[%s2847_s1 + $0xb0] ss:$8 sps:$4 sm:$0xff] (!%p163_p3)  }
   0xd   : > { %317 = vmatpush1.bf16.msra.mxu0 (!%p163_p3), %v2078_v4  ;;  %v2105_v20 = vld [vmem:[%s2847_s1 + $0xc4] ss:$8 sps:$4 sm:$0xff] (!%p163_p3)   ;;  %v2101_v21 = vld [vmem:[%s2847_s1 + $0x50] ss:$8 sps:$4 sm:$0xff] (!%p163_p3)   ;;  %v2108_v23 = vld [vmem:[%s2847_s1 + $0xc0] ss:$8 sps:$4 sm:$0xff] (!%p163_p3)  }
   0xe   : > { %318 = vmatprep.subr.bf16.mxu0 %v2079_v5  ;;  %v2103_v22 = vld [vmem:[%s2847_s1 + $0x64] ss:$8 sps:$4 sm:$0xff]   ;;  %s2855_s12 = smov (!%p195_p4, %s2312_s12), 1  ;;  %v2111_v24 = vld [vmem:[%s2847_s1 + $0xd4] ss:$8 sps:$4 sm:$0xff]  }
   0xf   : > { %461 = vmatpush1.bf16.msra.mxu1 %v2090_v10  ;;  %v2107_v25 = vld [vmem:[%s2847_s1 + $0x60] ss:$8 sps:$4 sm:$0xff]   ;;  %v2114_v26 = vld [vmem:[%s2847_s1 + $0xd0] ss:$8 sps:$4 sm:$0xff]   ;;  %s2044_s22 = sshll.u32 %s2855_s12, 5 }
  0x10   : > { %462 = vmatprep.subr.bf16.mxu1 %v2093_v12  ;;  %v2109_v27 = vld [vmem:[%s2847_s1 + $0x74] ss:$8 sps:$4 sm:$0xff]   ;;  %v2115_v28 = vld [vmem:[%s2847_s1 + $0xe4] ss:$8 sps:$4 sm:$0xff]   ;;  %v2113_v29 = vld [vmem:[%s2847_s1 + $0x70] ss:$8 sps:$4 sm:$0xff]   ;;  %s2463_s4 = scalar_lea.vmem %s2846_s0, %s2044_s22 }
  0x11   : > { %319 = vmatpush1.bf16.msra.mxu0 %v2083_v8  ;;  %v2120_v30 = vld [vmem:[%s2847_s1 + $0xe0] ss:$8 sps:$4 sm:$0xff]   ;;  %v2119_v31 = vld [vmem:[%s2847_s1 + $0x104] ss:$8 sps:$4 sm:$0xff]   ;;  %v2121_v32 = vld [vmem:[%s2847_s1 + $0xf4] ss:$8 sps:$4 sm:$0xff]  }
  0x12   : > { %320 = vmatprep.subr.bf16.mxu0 %v2085_v11  ;;  %v217_v33 = vld [vmem:[%s2463_s4] sm:$0x7]  ;;  %v2126_v35 = vld [vmem:[%s2847_s1 + $0xf0] ss:$8 sps:$4 sm:$0xff]   ;;  %v2125_v36 = vld [vmem:[%s2847_s1 + $0x114] ss:$8 sps:$4 sm:$0xff]  }
  0x13   : > { %463 = vmatpush1.bf16.msra.mxu1 %v2096_v14  ;;  %v2117_v34 = vld [vmem:[%s2847_s1 + $0x100] ss:$8 sps:$4 sm:$0xff]   ;;  %v2132_v37 = vld [vmem:[%s2847_s1 + $0x184] ss:$8 sps:$4 sm:$0xff]   ;;  %v2123_v38 = vld [vmem:[%s2847_s1 + $0x110] ss:$8 sps:$4 sm:$0xff]  }
  0x14   : > { %464 = vmatprep.subr.bf16.mxu1 %v2099_v16  ;;  %v1774_v39 = vld [vmem:[%s2463_s4 + $0x8] sm:$0x7]  ;;  %v2129_v41 = vld [vmem:[%s2847_s1 + $0x124] ss:$8 sps:$4 sm:$0xff]   ;;  %v2138_v42 = vld [vmem:[%s2847_s1 + $0x194] ss:$8 sps:$4 sm:$0xff]  }
  0x15   : > { %321 = vmatpush1.bf16.msra.mxu0 %v2089_v13  ;;  %v2130_v40 = vld [vmem:[%s2847_s1 + $0x180] ss:$8 sps:$4 sm:$0xff]   ;;  %v2136_v44 = vld [vmem:[%s2847_s1 + $0x190] ss:$8 sps:$4 sm:$0xff]   ;;  %v2135_v45 = vld [vmem:[%s2847_s1 + $0x134] ss:$8 sps:$4 sm:$0xff]  }
  0x16   : > { %322 = vmatprep.subr.bf16.mxu0 %v2091_v15  ;;  %v2127_v43 = vld [vmem:[%s2847_s1 + $0x120] ss:$8 sps:$4 sm:$0xff]   ;;  %v2144_v46 = vld [vmem:[%s2847_s1 + $0x1a4] ss:$8 sps:$4 sm:$0xff]   ;;  %v2133_v47 = vld [vmem:[%s2847_s1 + $0x130] ss:$8 sps:$4 sm:$0xff]  }
  0x17   : > { %465 = vmatpush1.bf16.msra.mxu1 %v2102_v19  ;;  %v2142_v48 = vld [vmem:[%s2847_s1 + $0x1a0] ss:$8 sps:$4 sm:$0xff]   ;;  %v2141_v49 = vld [vmem:[%s2847_s1 + $0x144] ss:$8 sps:$4 sm:$0xff]   ;;  %v2150_v50 = vld [vmem:[%s2847_s1 + $0x1b4] ss:$8 sps:$4 sm:$0xff]  }
  0x18   : > { %466 = vmatprep.subr.bf16.mxu1 %v2105_v20  ;;  %v2139_v51 = vld [vmem:[%s2847_s1 + $0x140] ss:$8 sps:$4 sm:$0xff]   ;;  %v2147_v52 = vld [vmem:[%s2847_s1 + $0x154] ss:$8 sps:$4 sm:$0xff]   ;;  %v2148_v53 = vld [vmem:[%s2847_s1 + $0x1b0] ss:$8 sps:$4 sm:$0xff]  }
  0x19   : > { %323 = vmatpush1.bf16.msra.mxu0 %v2095_v17  ;;  %v2156_v54 = vld [vmem:[%s2847_s1 + $0x1c4] ss:$8 sps:$4 sm:$0xff]   ;;  %v2145_v55 = vld [vmem:[%s2847_s1 + $0x150] ss:$8 sps:$4 sm:$0xff]   ;;  %v2163_v57 = vld [vmem:[%s2463_s4] ss:$0 sps:$4 sm:$0xff]  }
  0x1a   : > { %324 = vmatprep.subr.bf16.mxu0 %v2097_v18  ;;  %v2153_v56 = vld [vmem:[%s2847_s1 + $0x164] ss:$8 sps:$4 sm:$0xff]   ;;  %v2154_v58 = vld [vmem:[%s2847_s1 + $0x1c0] ss:$8 sps:$4 sm:$0xff]   ;;  %v2162_v59 = vld [vmem:[%s2847_s1 + $0x1d4] ss:$8 sps:$4 sm:$0xff]  }
  0x1b   : > { %467 = vmatpush1.bf16.msra.mxu1 %v2108_v23  ;;  %v2151_v60 = vld [vmem:[%s2847_s1 + $0x160] ss:$8 sps:$4 sm:$0xff]   ;;  %v2159_v61 = vld [vmem:[%s2847_s1 + $0x174] ss:$8 sps:$4 sm:$0xff]   ;;  %v529_v62 = vshll.u32 %v2163_v57, 16  ;;  %v527_v3 = vshrl.u32 %v2163_v57, 16 }
  0x1c   : > { %468 = vmatprep.subr.bf16.mxu1 %v2111_v24  ;;  %v2160_v63 = vld [vmem:[%s2847_s1 + $0x1d0] ss:$8 sps:$4 sm:$0xff]   ;;  %v2169_v0 = vld [vmem:[%s2847_s1 + $0x1e4] ss:$8 sps:$4 sm:$0xff]   ;;  %v2167_v6 = vld [vmem:[%s2847_s1 + $0x1e0] ss:$8 sps:$4 sm:$0xff]  }
  0x1d   : > { %325 = vmatpush1.bf16.msra.mxu0 %v2101_v21  ;;  %v2157_v1 = vld [vmem:[%s2847_s1 + $0x170] ss:$8 sps:$4 sm:$0xff]   ;;  %v531_v4 = vrot.slane %v529_v62, 1  ;;  %v2166_v5 = vld [vmem:[%s2847_s1 + $0x204] ss:$8 sps:$4 sm:$0xff]  }
  0x1e   : > { %326 = vmatprep.subr.bf16.mxu0 %v2103_v22  ;;  %v2175_v7 = vld [vmem:[%s2847_s1 + $0x1f4] ss:$8 sps:$4 sm:$0xff]   ;;  %v2164_v9 = vld [vmem:[%s2847_s1 + $0x200] ss:$8 sps:$4 sm:$0xff]   ;;  %v2173_v10 = vld [vmem:[%s2847_s1 + $0x1f0] ss:$8 sps:$4 sm:$0xff]  }
  0x1f   : > { %469 = vmatpush1.bf16.msra.mxu1 %v2114_v26  ;;  %v532_v8 = vor.u32 %v531_v4, %v527_v3  ;;  %v2172_v11 = vld [vmem:[%s2847_s1 + $0x214] ss:$8 sps:$4 sm:$0xff]   ;;  %v2181_v12 = vld [vmem:[%s2847_s1 + $0x284] ss:$8 sps:$4 sm:$0xff]   ;;  %v2170_v13 = vld [vmem:[%s2847_s1 + $0x210] ss:$8 sps:$4 sm:$0xff]  }
  0x20   : > { %470 = vmatprep.subr.bf16.mxu1 %v2115_v28  ;;  %v1840_v14 = vld [vmem:[%s2463_s4 + $0x10] sm:$0x7]  ;;  %v2179_v15 = vld [vmem:[%s2847_s1 + $0x280] ss:$8 sps:$4 sm:$0xff]   ;;  %v2178_v16 = vld [vmem:[%s2847_s1 + $0x224] ss:$8 sps:$4 sm:$0xff]  }
  0x21   : > { %327 = vmatpush1.bf16.msra.mxu0 %v2107_v25  ;;  %v2187_v17 = vld [vmem:[%s2847_s1 + $0x294] ss:$8 sps:$4 sm:$0xff]   ;;  %v2176_v18 = vld [vmem:[%s2847_s1 + $0x220] ss:$8 sps:$4 sm:$0xff]   ;;  %v2185_v20 = vld [vmem:[%s2847_s1 + $0x290] ss:$8 sps:$4 sm:$0xff]  }
  0x22   : > { %328 = vmatprep.subr.bf16.mxu0 %v2109_v27  ;;  %v2184_v19 = vld [vmem:[%s2847_s1 + $0x234] ss:$8 sps:$4 sm:$0xff]   ;;  %v2193_v21 = vld [vmem:[%s2847_s1 + $0x2a4] ss:$8 sps:$4 sm:$0xff]   ;;  %v2182_v22 = vld [vmem:[%s2847_s1 + $0x230] ss:$8 sps:$4 sm:$0xff]  }
  0x23   : > { %471 = vmatpush1.bf16.msra.mxu1 %v2120_v30  ;;  %v2190_v23 = vld [vmem:[%s2847_s1 + $0x244] ss:$8 sps:$4 sm:$0xff]   ;;  %v2191_v24 = vld [vmem:[%s2847_s1 + $0x2a0] ss:$8 sps:$4 sm:$0xff]   ;;  %v2199_v25 = vld [vmem:[%s2847_s1 + $0x2b4] ss:$8 sps:$4 sm:$0xff]  }
  0x24   : > { %472 = vmatprep.subr.bf16.mxu1 %v2121_v32  ;;  %v2188_v26 = vld [vmem:[%s2847_s1 + $0x240] ss:$8 sps:$4 sm:$0xff]   ;;  %v2196_v27 = vld [vmem:[%s2847_s1 + $0x254] ss:$8 sps:$4 sm:$0xff]   ;;  %v2197_v28 = vld [vmem:[%s2847_s1 + $0x2b0] ss:$8 sps:$4 sm:$0xff]  }
  0x25   : > { %329 = vmatpush1.bf16.msra.mxu0 %v2113_v29  ;;  %v2205_v29 = vld [vmem:[%s2847_s1 + $0x2c4] ss:$8 sps:$4 sm:$0xff]   ;;  %v2194_v30 = vld [vmem:[%s2847_s1 + $0x250] ss:$8 sps:$4 sm:$0xff]   ;;  %v2203_v32 = vld [vmem:[%s2847_s1 + $0x2c0] ss:$8 sps:$4 sm:$0xff]  }
  0x26   : > { %614 = vmatprep.subr.bf16.mxu0 %v2119_v31  ;;  %v2202_v31 = vld [vmem:[%s2847_s1 + $0x264] ss:$8 sps:$4 sm:$0xff]   ;;  %v2234_v57 = vld [vmem:[%s2847_s1 + $0x390] ss:$8 sps:$4 sm:$0xff]   ;;  %v2245_v3 = vld [vmem:[%s2847_s1 + $0x354] ss:$8 sps:$4 sm:$0xff]  }
  0x27   : > { %473 = vmatpush1.bf16.msra.mxu1 %v2126_v35  ;;  %v2227_v35 = vld [vmem:[%s2463_s4 + $0x10] ss:$0 sps:$4 sm:$0xff]   ;;  %v2239_v62 = vld [vmem:[%s2847_s1 + $0x344] ss:$8 sps:$4 sm:$0xff]  }
  0x28   : > { %347 = vmatmul.mubr.bf16.vlgmr.msra.gmra.mrb[0].mxu0 %v217_v33  ;;  %760 = vmatprep.subr.bf16.mxu1 %v2132_v37  ;;  %v2211_v33 = vld [vmem:[%s2847_s1 + $0x2d4] ss:$8 sps:$4 sm:$0xff]   ;;  %v2209_v37 = vld [vmem:[%s2847_s1 + $0x2d0] ss:$8 sps:$4 sm:$0xff]   ;;  %v2254_v4 = vld [vmem:[%s2847_s1 + $0x3c4] ss:$8 sps:$4 sm:$0xff]  }
  0x29   : > { %615 = vmatpush1.bf16.msra.mxu0 %v2117_v34  ;;  %646 = vmatprep.mubr.bf16.mxu0 %v2322_v2  ;;  %v2200_v34 = vld [vmem:[%s2847_s1 + $0x260] ss:$8 sps:$4 sm:$0xff]  }
  0x2a   : > { %616 = vmatprep.subr.bf16.mxu0 %v2125_v36  ;;  %491 = vmatmul.mubr.bf16.vlgmr.msra.gmra.mrb[0].mxu1 %v1774_v39  ;;  %v2208_v36 = vld [vmem:[%s2847_s1 + $0x274] ss:$8 sps:$4 sm:$0xff]   ;;  %v977_v39 = vshll.u32 %v2227_v35, 16 }
  0x2b   : > { %761 = vmatpush1.bf16.msra.mxu1 %v2130_v40  ;;  %792 = vmatprep.mubr.bf16.mxu1 %v2322_v2  ;;  %v2206_v40 = vld [vmem:[%s2847_s1 + $0x270] ss:$8 sps:$4 sm:$0xff]  }
  0x2c   : > { %762 = vmatprep.subr.bf16.mxu1 %v2138_v42  ;;  %v2214_v42 = vld [vmem:[%s2847_s1 + $0x304] ss:$8 sps:$4 sm:$0xff]  }
  0x2d   : > { %617 = vmatpush1.bf16.msra.mxu0 %v2123_v38  ;;  %v2217_v38 = vld [vmem:[%s2847_s1 + $0x2e4] ss:$8 sps:$4 sm:$0xff]  }
  0x2e   : > { %618 = vmatprep.subr.bf16.mxu0 %v2129_v41  ;;  %v2215_v41 = vld [vmem:[%s2847_s1 + $0x2e0] ss:$8 sps:$4 sm:$0xff]  }
  0x2f   : > { %763 = vmatpush1.bf16.msra.mxu1 %v2136_v44  ;;  %v1873_v44 = vld [vmem:[%s2463_s4 + $0x18] sm:$0x7] }
  0x30   : > { %764 = vmatprep.subr.bf16.mxu1 %v2144_v46  ;;  %v975_v46 = vshrl.u32 %v2227_v35, 16  ;;  %v2274_v35 = vld [vmem:[%s2847_s1 + $0x420] ss:$8 sps:$4 sm:$0xff]  }
  0x31   : > { %619 = vmatpush1.bf16.msra.mxu0 %v2127_v43  ;;  %v2223_v43 = vld [vmem:[%s2847_s1 + $0x2f4] ss:$8 sps:$4 sm:$0xff]  }
  0x32   : > { %620 = vmatprep.subr.bf16.mxu0 %v2135_v45  ;;  %v2212_v45 = vld [vmem:[%s2847_s1 + $0x300] ss:$8 sps:$4 sm:$0xff]  }
  0x33   : > { %765 = vmatpush1.bf16.msra.mxu1 %v2142_v48  ;;  %v2221_v48 = vld [vmem:[%s2847_s1 + $0x2f0] ss:$8 sps:$4 sm:$0xff]  }
  0x34   : > { %766 = vmatprep.subr.bf16.mxu1 %v2150_v50  ;;  %v2230_v50 = vld [vmem:[%s2847_s1 + $0x384] ss:$8 sps:$4 sm:$0xff]  }
  0x35   : > { %621 = vmatpush1.bf16.msra.mxu0 %v2133_v47  ;;  %v979_v47 = vrot.slane %v977_v39, 1  ;;  %v2286_v39 = vld [vmem:[%s2847_s1 + $0x454] ss:$8 sps:$4 sm:$0xff]  }
  0x36   : > { %622 = vmatprep.subr.bf16.mxu0 %v2141_v49  ;;  %v2220_v49 = vld [vmem:[%s2847_s1 + $0x314] ss:$8 sps:$4 sm:$0xff]  }
  0x37   : > { %767 = vmatpush1.bf16.msra.mxu1 %v2148_v53  ;;  %v2228_v53 = vld [vmem:[%s2847_s1 + $0x380] ss:$8 sps:$4 sm:$0xff]  }
  0x38   : > { %768 = vmatprep.subr.bf16.mxu1 %v2156_v54  ;;  %v2226_v54 = vld [vmem:[%s2847_s1 + $0x324] ss:$8 sps:$4 sm:$0xff]  }
  0x39   : > { %623 = vmatpush1.bf16.msra.mxu0 %v2139_v51  ;;  %v2218_v51 = vld [vmem:[%s2847_s1 + $0x310] ss:$8 sps:$4 sm:$0xff]  }
  0x3a   : > { %624 = vmatprep.subr.bf16.mxu0 %v2147_v52  ;;  %v980_v52 = vor.u32 %v979_v47, %v975_v46 }
  0x3b   : > { %769 = vmatpush1.bf16.msra.mxu1 %v2154_v58  ;;  %v2233_v58 = vld [vmem:[%s2847_s1 + $0x334] ss:$8 sps:$4 sm:$0xff]  }
  0x3c   : > { %770 = vmatprep.subr.bf16.mxu1 %v2162_v59  ;;  %v2242_v59 = vld [vmem:[%s2847_s1 + $0x3a4] ss:$8 sps:$4 sm:$0xff]  }
  0x3d   : > { %625 = vmatpush1.bf16.msra.mxu0 %v2145_v55  ;;  %v2236_v55 = vld [vmem:[%s2847_s1 + $0x394] ss:$8 sps:$4 sm:$0xff]  }
  0x3e   : > { %626 = vmatprep.subr.bf16.mxu0 %v2153_v56  ;;  %v2224_v56 = vld [vmem:[%s2847_s1 + $0x320] ss:$8 sps:$4 sm:$0xff]  }
  0x3f   : > { %771 = vmatpush1.bf16.msra.mxu1 %v2160_v63  ;;  %v2248_v63 = vld [vmem:[%s2847_s1 + $0x3b4] ss:$8 sps:$4 sm:$0xff]  }
  0x40   : > { %772 = vmatprep.subr.bf16.mxu1 %v2169_v0  ;;  %v2237_v0 = vld [vmem:[%s2847_s1 + $0x340] ss:$8 sps:$4 sm:$0xff]  }
  0x41   : > { %627 = vmatpush1.bf16.msra.mxu0 %v2151_v60  ;;  %v2231_v60 = vld [vmem:[%s2847_s1 + $0x330] ss:$8 sps:$4 sm:$0xff]  }
  0x42   : > { %628 = vmatprep.subr.bf16.mxu0 %v2159_v61  ;;  %v2240_v61 = vld [vmem:[%s2847_s1 + $0x3a0] ss:$8 sps:$4 sm:$0xff]  }
  0x43   : > { %773 = vmatpush1.bf16.msra.mxu1 %v2167_v6  ;;  %v2243_v6 = vld [vmem:[%s2847_s1 + $0x350] ss:$8 sps:$4 sm:$0xff]  }
  0x44   : > { %774 = vmatprep.subr.bf16.mxu1 %v2175_v7  ;;  %v2252_v7 = vld [vmem:[%s2847_s1 + $0x3c0] ss:$8 sps:$4 sm:$0xff]  }
  0x45   : > { %629 = vmatpush1.bf16.msra.mxu0 %v2157_v1  ;;  %v2246_v1 = vld [vmem:[%s2847_s1 + $0x3b0] ss:$8 sps:$4 sm:$0xff]  }
  0x46   : > { %906 = vmatprep.subr.bf16.mxu0 %v2166_v5  ;;  %v2261_v5 = vld [vmem:[%s2463_s4] sm:$0x1e]  }
  0x47   : > { %775 = vmatpush1.bf16.msra.mxu1 %v2173_v10  ;;  %v1134_v10 = vshrl.u32 %v2261_v5, 16 }
  0x48   : > { %647 = vmatmul.mubr.bf16.vlgmr.msra.gmra.mrb[4].mxu0 %v532_v8  ;;  %1062 = vmatprep.subr.bf16.mxu1 %v2181_v12  ;;  %v2251_v8 = vld [vmem:[%s2847_s1 + $0x364] ss:$8 sps:$4 sm:$0xff]  }
  0x49   : > { %907 = vmatpush1.bf16.msra.mxu0 %v2164_v9  ;;  %938 = vmatprep.mubr.bf16.mxu0 %v2322_v2  ;;  %v2260_v9 = vld [vmem:[%s2847_s1 + $0x3d4] ss:$8 sps:$4 sm:$0xff]   ;;  %v2277_v12 = vld [vmem:[%s2463_s4 + $0x8] sm:$0x1e]  }
  0x4a   : > { %908 = vmatprep.subr.bf16.mxu0 %v2172_v11  ;;  %793 = vmatmul.mubr.bf16.vlgmr.msra.gmra.mrb[4].mxu1 %v1840_v14  ;;  %v1137_v11 = vshll.u32 %v2261_v5, 16  ;;  %v2258_v14 = vld [vmem:[%s2847_s1 + $0x3d0] ss:$8 sps:$4 sm:$0xff]  }
  0x4b   : > { %1063 = vmatpush1.bf16.msra.mxu1 %v2179_v15  ;;  %1094 = vmatprep.mubr.bf16.mxu1 %v2322_v2  ;;  %v2257_v15 = vld [vmem:[%s2847_s1 + $0x374] ss:$8 sps:$4 sm:$0xff]  }
  0x4c   : > { %1064 = vmatprep.subr.bf16.mxu1 %v2187_v17  ;;  %v1136_v17 = vrot.slane %v1134_v10, 1 }
  0x4d   : > { %909 = vmatpush1.bf16.msra.mxu0 %v2170_v13  ;;  %v2249_v13 = vld [vmem:[%s2847_s1 + $0x360] ss:$8 sps:$4 sm:$0xff]  }
  0x4e   : > { %910 = vmatprep.subr.bf16.mxu0 %v2178_v16  ;;  %v2267_v16 = vld [vmem:[%s2847_s1 + $0x3e4] ss:$8 sps:$4 sm:$0xff]  }
  0x4f   : > { %1065 = vmatpush1.bf16.msra.mxu1 %v2185_v20  ;;  %v1297_v20 = vshll.u32 %v2277_v12, 16 }
  0x50   : > { %1066 = vmatprep.subr.bf16.mxu1 %v2193_v21  ;;  %v2255_v21 = vld [vmem:[%s2847_s1 + $0x370] ss:$8 sps:$4 sm:$0xff]  }
  0x51   : > { %911 = vmatpush1.bf16.msra.mxu0 %v2176_v18  ;;  %v1139_v18 = vrot.slane %v1137_v11, 2 }
  0x52   : > { %912 = vmatprep.subr.bf16.mxu0 %v2184_v19  ;;  %v1294_v19 = vshrl.u32 %v2277_v12, 16 }
  0x53   : > { %1067 = vmatpush1.bf16.msra.mxu1 %v2191_v24  ;;  %v2273_v24 = vld [vmem:[%s2847_s1 + $0x3f4] ss:$8 sps:$4 sm:$0xff]  }
  0x54   : > { %1068 = vmatprep.subr.bf16.mxu1 %v2199_v25  ;;  %v1140_v25 = vor.u32 %v1139_v18, %v1136_v17 }
  0x55   : > { %913 = vmatpush1.bf16.msra.mxu0 %v2182_v22  ;;  %v2265_v22 = vld [vmem:[%s2847_s1 + $0x3e0] ss:$8 sps:$4 sm:$0xff]  }
  0x56   : > { %914 = vmatprep.subr.bf16.mxu0 %v2190_v23  ;;  %v2264_v23 = vld [vmem:[%s2847_s1 + $0x404] ss:$8 sps:$4 sm:$0xff]  }
  0x57   : > { %1069 = vmatpush1.bf16.msra.mxu1 %v2197_v28  ;;  %v2262_v28 = vld [vmem:[%s2847_s1 + $0x400] ss:$8 sps:$4 sm:$0xff]  }
  0x58   : > { %1070 = vmatprep.subr.bf16.mxu1 %v2205_v29  ;;  %v2271_v29 = vld [vmem:[%s2847_s1 + $0x3f0] ss:$8 sps:$4 sm:$0xff]  }
  0x59   : > { %915 = vmatpush1.bf16.msra.mxu0 %v2188_v26  ;;  %v1296_v26 = vrot.slane %v1294_v19, 1 }
  0x5a   : > { %916 = vmatprep.subr.bf16.mxu0 %v2196_v27  ;;  %v1299_v27 = vrot.slane %v1297_v20, 2 }
  0x5b   : > { %1071 = vmatpush1.bf16.msra.mxu1 %v2203_v32 }
  0x5c   : > { %1072 = vmatprep.subr.bf16.mxu1 %v2211_v33  ;;  %v1300_v32 = vor.u32 %v1299_v27, %v1296_v26  ;;  %v2268_v33 = vld [vmem:[%s2847_s1 + $0x410] ss:$8 sps:$4 sm:$0xff]  }
  0x5d   : > { %917 = vmatpush1.bf16.msra.mxu0 %v2194_v30  ;;  %v1582_v30 = vld [vmem:[%s2848_s2] sm:$0x3f] }
  0x5e   : > { %918 = vmatprep.subr.bf16.mxu0 %v2202_v31  ;;  %v2270_v31 = vld [vmem:[%s2847_s1 + $0x414] ss:$8 sps:$4 sm:$0xff]   ;;  %1585 = vperm.xlu0 %2072, %v1582_v30  }
  0x5f   : > { %1073 = vmatpush1.bf16.msra.mxu1 %v2209_v37  ;;  %v2278_v37 = vld [vmem:[%s2847_s1 + $0x430] ss:$8 sps:$4 sm:$0xff]  }
  0x60   : > { %1074 = vmatprep.subr.bf16.mxu1 %v2217_v38  ;;  %v2281_v38 = vld [vmem:[%s2847_s1 + $0x440] ss:$8 sps:$4 sm:$0xff]  }
  0x61   : > { %919 = vmatpush1.bf16.msra.mxu0 %v2200_v34  ;;  %v2276_v34 = vld [vmem:[%s2847_s1 + $0x424] ss:$8 sps:$4 sm:$0xff]  }
  0x62   : > { %920 = vmatprep.subr.bf16.mxu0 %v2208_v36  ;;  %v2280_v36 = vld [vmem:[%s2847_s1 + $0x434] ss:$8 sps:$4 sm:$0xff]  }
  0x63   : > { %1075 = vmatpush1.bf16.msra.mxu1 %v2215_v41  ;;  %v2289_v41 = vld [vmem:[%s2847_s1 + $0x464] ss:$8 sps:$4 sm:$0xff]  }
  0x64   : > { %1076 = vmatprep.subr.bf16.mxu1 %v2223_v43  ;;  %v2292_v43 = vld [vmem:[%s2847_s1 + $0x474] ss:$8 sps:$4 sm:$0xff]  }
  0x65   : > { %921 = vmatpush1.bf16.msra.mxu0 %v2206_v40  ;;  %v2284_v40 = vld [vmem:[%s2847_s1 + $0x450] ss:$8 sps:$4 sm:$0xff]  }
  0x66   : > { %1222 = vmatprep.subr.bf16.mxu0 %v2214_v42  ;;  %v2287_v42 = vld [vmem:[%s2847_s1 + $0x460] ss:$8 sps:$4 sm:$0xff]  }
  0x67   : > { %1077 = vmatpush1.bf16.msra.mxu1 %v2221_v48 }
  0x68   : > { %939 = vmatmul.mubr.bf16.vlgmr.msra.gmra.mrb[8].mxu0 %v1873_v44  ;;  %1382 = vmatprep.subr.bf16.mxu1 %v2230_v50  ;;  %v2293_v44 = vld [vmem:[%s2463_s4] sm:$0x1c]   ;;  %s2045_s4 = sshll.u32 %s2855_s12, 3 }
  0x69   : > { %1223 = vmatpush1.bf16.msra.mxu0 %v2212_v45  ;;  %1254 = vmatprep.mubr.bf16.mxu0 %v2322_v2  ;;  %v2290_v45 = vld [vmem:[%s2847_s1 + $0x470] ss:$8 sps:$4 sm:$0xff]   ;;  %v1453_v46 = vrot.slane %v2293_v44, 2  ;;  %s214_s23 = scalar_lea.vmem %s2849_s3, %s2045_s4 }
  0x6a   : > { %1224 = vmatprep.subr.bf16.mxu0 %v2220_v49  ;;  %1095 = vmatmul.mubr.bf16.vlgmr.msra.gmra.mrb[8].mxu1 %v980_v52 }
  0x6b   : > { %1383 = vmatpush1.bf16.msra.mxu1 %v2228_v53  ;;  %1414 = vmatprep.mubr.bf16.mxu1 %v2322_v2 }
  0x6c   : > { %1384 = vmatprep.subr.bf16.mxu1 %v2236_v55 }
  0x6d   : > { %1225 = vmatpush1.bf16.msra.mxu0 %v2218_v51 }
  0x6e   : > { %1226 = vmatprep.subr.bf16.mxu0 %v2226_v54 }
  0x6f   : > { %1385 = vmatpush1.bf16.msra.mxu1 %v2234_v57 }
  0x70   : > { %1386 = vmatprep.subr.bf16.mxu1 %v2242_v59 }
  0x71   : > { %1227 = vmatpush1.bf16.msra.mxu0 %v2224_v56 }
  0x72   : > { %1228 = vmatprep.subr.bf16.mxu0 %v2233_v58 }
  0x73   : > { %1387 = vmatpush1.bf16.msra.mxu1 %v2240_v61 }
  0x74   : > { %1388 = vmatprep.subr.bf16.mxu1 %v2248_v63 }
  0x75   : > { %1229 = vmatpush1.bf16.msra.mxu0 %v2231_v60 }
  0x76   : > { %1230 = vmatprep.subr.bf16.mxu0 %v2239_v62 }
  0x77   : > { %1389 = vmatpush1.bf16.msra.mxu1 %v2246_v1 }
  0x78   : > { %1390 = vmatprep.subr.bf16.mxu1 %v2254_v4 }
  0x79   : > { %1231 = vmatpush1.bf16.msra.mxu0 %v2237_v0 }
  0x7a   : > { %1232 = vmatprep.subr.bf16.mxu0 %v2245_v3 }
  0x7b   : > { %1391 = vmatpush1.bf16.msra.mxu1 %v2252_v7 }
  0x7c   : > { %1392 = vmatprep.subr.bf16.mxu1 %v2260_v9 }
  0x7d   : > { %1233 = vmatpush1.bf16.msra.mxu0 %v2243_v6 }
  0x7e   : > { %1234 = vmatprep.subr.bf16.mxu0 %v2251_v8 }
  0x7f   : > { %1393 = vmatpush1.bf16.msra.mxu1 %v2258_v14 }
  0x80   : > { %1394 = vmatprep.subr.bf16.mxu1 %v2267_v16 }
  0x81   : > { %1235 = vmatpush1.bf16.msra.mxu0 %v2249_v13 }
  0x82   : > { %1236 = vmatprep.subr.bf16.mxu0 %v2257_v15 }
  0x83   : > { %1395 = vmatpush1.bf16.msra.mxu1 %v2265_v22 }
  0x84   : > { %1396 = vmatprep.subr.bf16.mxu1 %v2273_v24 }
  0x85   : > { %1237 = vmatpush1.bf16.msra.mxu0 %v2255_v21 }
  0x86   : > { %1535 = vmatprep.subr.bf16.mxu0 %v2264_v23 }
  0x87   : > { %1397 = vmatpush1.bf16.msra.mxu1 %v2271_v29 }
  0x88   : > { %1255 = vmatmul.mubr.bf16.vlgmr.msra.gmra.mrb[12].mxu0 %v1140_v25 }
  0x89   : > { %1536 = vmatpush1.bf16.msra.mxu0 %v2262_v28  ;;  %1567 = vmatprep.mubr.bf16.mxu0 %v2322_v2  ;;  %v2283_v2 = vld [vmem:[%s2847_s1 + $0x444] ss:$8 sps:$4 sm:$0xff]  }
  0x8a   : > { %1537 = vmatprep.subr.bf16.mxu0 %v2270_v31  ;;  %1415 = vmatmul.mubr.bf16.vlgmr.msra.gmra.mrb[12].mxu1 %v1300_v32 }
  0x8d   : > { %1538 = vmatpush1.bf16.msra.mxu0 %v2268_v33 }
  0x8e   : > { %1539 = vmatprep.subr.bf16.mxu0 %v2276_v34 }
  0x91   : > { %1540 = vmatpush1.bf16.msra.mxu0 %v2274_v35 }
  0x92   : > { %1541 = vmatprep.subr.bf16.mxu0 %v2280_v36 }
  0x95   : > { %1542 = vmatpush1.bf16.msra.mxu0 %v2278_v37 }
  0x96   : > { %1543 = vmatprep.subr.bf16.mxu0 %v2283_v2 }
  0x99   : > { %1544 = vmatpush1.bf16.msra.mxu0 %v2281_v38 }
  0x9a   : > { %1545 = vmatprep.subr.bf16.mxu0 %v2286_v39 }
  0x9d   : > { %1546 = vmatpush1.bf16.msra.mxu0 %v2284_v40 }
  0x9e   : > { %1547 = vmatprep.subr.bf16.mxu0 %v2289_v41 }
  0xa1   : > { %1548 = vmatpush1.bf16.msra.mxu0 %v2287_v42 }
  0xa2   : > { %1549 = vmatprep.subr.bf16.mxu0 %v2292_v43 }
  0xa5   : > { %1550 = vmatpush1.bf16.msra.mxu0 %v2290_v45 }
  0xa8   : > { %1568 = vmatmul.mubr.bf16.vlgmr.msra.gmra.mrb[16].mxu0 %v1453_v46 }
  0xfb   : > { %v348_v47 = vpop.f32.mrb[0].mxu0 }
  0xfc   : > { %355 = vst [vmem:[#allocation2] sm:$0x3f] %v348_v47  ;;  %v350_v48 = vpop.f32.mrb[1].mxu0 }
  0xfd   : > { %356 = vst [vmem:[#allocation2 + $0x8] sm:$0x3f] %v350_v48  ;;  %v352_v49 = vpop.f32.mrb[2].mxu0  ;;  %v492_v51 = vpop.f32.mrb[0].mxu1 }
  0xfe   : > { %v353_v50 = vpop.f32.mrb[3].mxu0  ;;  %v494_v52 = vpop.f32.mrb[1].mxu1 }
  0xff   : > { %v496_v53 = vpop.f32.mrb[2].mxu1 }
 0x100   : > { %v497_v54 = vpop.f32.mrb[3].mxu1 }
 0x103   : > { %v359_v55 = vld [vmem:[#allocation2] sm:$0x3f] }
 0x104   : > { %v499_v56 = vadd.f32 %v492_v51, %v359_v55  ;;  %v360_v57 = vld [vmem:[#allocation2 + $0x8] sm:$0x3f]  ;;  %v1586_v51 = vpop.permute.xlu0 %1585 }
 0x105   : > { %v500_v58 = vadd.f32 %v494_v52, %v360_v57 }
 0x106   : > { %501 = vst [vmem:[#allocation2] sm:$0x3f] %v499_v56 }
 0x107   : > { %502 = vst [vmem:[#allocation2 + $0x8] sm:$0x3f] %v500_v58 }
 0x10d   : > { %v504_v59 = vld [vmem:[#allocation2] sm:$0x3f] }
 0x10e   : > { %v505_v62 = vld [vmem:[#allocation2 + $0x8] sm:$0x3f] }
 0x11b   : > { %v648_v60 = vpop.f32.mrb[4].mxu0 }
 0x11c   : > { %v655_v61 = vadd.f32 %v648_v60, %v504_v59  ;;  %v650_v63 = vpop.f32.mrb[5].mxu0 }
 0x11d   : > { %v656_v0 = vadd.f32 %v650_v63, %v505_v62  ;;  %v652_v1 = vpop.f32.mrb[6].mxu0  ;;  %v794_v4 = vpop.f32.mrb[4].mxu1 }
 0x11e   : > { %657 = vst [vmem:[#allocation2] sm:$0x3f] %v655_v61  ;;  %v653_v3 = vpop.f32.mrb[7].mxu0  ;;  %v796_v5 = vpop.f32.mrb[5].mxu1 }
 0x11f   : > { %658 = vst [vmem:[#allocation2 + $0x8] sm:$0x3f] %v656_v0  ;;  %v798_v6 = vpop.f32.mrb[6].mxu1 }
 0x120   : > { %v799_v7 = vpop.f32.mrb[7].mxu1 }
 0x125   : > { %v661_v8 = vld [vmem:[#allocation2] sm:$0x3f] }
 0x126   : > { %v801_v9 = vadd.f32 %v794_v4, %v661_v8  ;;  %v662_v10 = vld [vmem:[#allocation2 + $0x8] sm:$0x3f] }
 0x127   : > { %v802_v11 = vadd.f32 %v796_v5, %v662_v10 }
 0x128   : > { %803 = vst [vmem:[#allocation2] sm:$0x3f] %v801_v9 }
 0x129   : > { %804 = vst [vmem:[#allocation2 + $0x8] sm:$0x3f] %v802_v11 }
 0x12f   : > { %v807_v12 = vld [vmem:[#allocation2] sm:$0x3f] }
 0x130   : > { %v808_v15 = vld [vmem:[#allocation2 + $0x8] sm:$0x3f] }
 0x13b   : > { %v940_v13 = vpop.f32.mrb[8].mxu0 }
 0x13c   : > { %v947_v14 = vadd.f32 %v940_v13, %v807_v12  ;;  %v942_v16 = vpop.f32.mrb[9].mxu0 }
 0x13d   : > { %v948_v17 = vadd.f32 %v942_v16, %v808_v15  ;;  %v944_v18 = vpop.f32.mrb[10].mxu0  ;;  %v1096_v20 = vpop.f32.mrb[8].mxu1 }
 0x13e   : > { %949 = vst [vmem:[#allocation2] sm:$0x3f] %v947_v14  ;;  %v945_v19 = vpop.f32.mrb[11].mxu0  ;;  %v1098_v21 = vpop.f32.mrb[9].mxu1 }
 0x13f   : > { %950 = vst [vmem:[#allocation2 + $0x8] sm:$0x3f] %v948_v17  ;;  %v1100_v22 = vpop.f32.mrb[10].mxu1 }
 0x140   : > { %v1101_v23 = vpop.f32.mrb[11].mxu1 }
 0x145   : > { %v952_v24 = vld [vmem:[#allocation2] sm:$0x3f] }
 0x146   : > { %v1103_v25 = vadd.f32 %v1096_v20, %v952_v24  ;;  %v953_v26 = vld [vmem:[#allocation2 + $0x8] sm:$0x3f] }
 0x147   : > { %v1104_v27 = vadd.f32 %v1098_v21, %v953_v26 }
 0x148   : > { %1105 = vst [vmem:[#allocation2] sm:$0x3f] %v1103_v25 }
 0x149   : > { %1106 = vst [vmem:[#allocation2 + $0x8] sm:$0x3f] %v1104_v27 }
 0x14f   : > { %v1109_v28 = vld [vmem:[#allocation2] sm:$0x3f] }
 0x150   : > { %v1110_v31 = vld [vmem:[#allocation2 + $0x8] sm:$0x3f] }
 0x15b   : > { %v1256_v29 = vpop.f32.mrb[12].mxu0 }
 0x15c   : > { %v1263_v30 = vadd.f32 %v1256_v29, %v1109_v28  ;;  %v1258_v32 = vpop.f32.mrb[13].mxu0 }
 0x15d   : > { %v1264_v33 = vadd.f32 %v1258_v32, %v1110_v31  ;;  %v1260_v34 = vpop.f32.mrb[14].mxu0  ;;  %v1416_v36 = vpop.f32.mrb[12].mxu1 }
 0x15e   : > { %1265 = vst [vmem:[#allocation2] sm:$0x3f] %v1263_v30  ;;  %v1261_v35 = vpop.f32.mrb[15].mxu0  ;;  %v1418_v37 = vpop.f32.mrb[13].mxu1 }
 0x15f   : > { %1266 = vst [vmem:[#allocation2 + $0x8] sm:$0x3f] %v1264_v33  ;;  %v1420_v2 = vpop.f32.mrb[14].mxu1 }
 0x160   : > { %v1421_v38 = vpop.f32.mrb[15].mxu1 }
 0x165   : > { %v1269_v39 = vld [vmem:[#allocation2] sm:$0x3f] }
 0x166   : > { %v1423_v40 = vadd.f32 %v1416_v36, %v1269_v39  ;;  %v1270_v41 = vld [vmem:[#allocation2 + $0x8] sm:$0x3f] }
 0x167   : > { %v1424_v42 = vadd.f32 %v1418_v37, %v1270_v41 }
 0x168   : > { %1425 = vst [vmem:[#allocation2] sm:$0x3f] %v1423_v40 }
 0x169   : > { %1426 = vst [vmem:[#allocation2 + $0x8] sm:$0x3f] %v1424_v42 }
 0x16f   : > { %v1429_v43 = vld [vmem:[#allocation2] sm:$0x3f] }
 0x170   : > { %v1430_v46 = vld [vmem:[#allocation2 + $0x8] sm:$0x3f] }
 0x17b   : > { %v1569_v44 = vpop.f32.mrb[16].mxu0 }
 0x17c   : > { %v1576_v45 = vadd.f32 %v1569_v44, %v1429_v43  ;;  %v1571_v47 = vpop.f32.mrb[17].mxu0 }
 0x17d   : > { %v1577_v48 = vadd.f32 %v1571_v47, %v1430_v46  ;;  %v1573_v49 = vpop.f32.mrb[18].mxu0 }
 0x17e   : > { %1578 = vst [vmem:[#allocation2] sm:$0x3f] %v1576_v45  ;;  %v1574_v50 = vpop.f32.mrb[19].mxu0 }
 0x17f   : > { %1579 = vst [vmem:[#allocation2 + $0x8] sm:$0x3f] %v1577_v48 }
 0x185   : > { %v1580_v52 = vld [vmem:[#allocation2] sm:$0x3f] }
 0x186   : > { %v1581_v53 = vld [vmem:[#allocation2 + $0x8] sm:$0x3f]  ;;  %v1588_v54 = vmul.f32 %v1586_v51, %v1580_v52 }
 0x187   : > { %v1589_v55 = vmul.f32 %v1586_v51, %v1581_v53 }
 0x188   : > { %v1591_v56 = vsel %vm1590_vm0, %v1588_v54, 0.0 }
 0x189   : > { %v1592_v57 = vrot.slane %v1591_v56, 4  ;;  %v1598_v58 = vsel %vm1590_vm0, %v1589_v55, 0.0 }
 0x18a   : > { %v1599_v59 = vrot.slane %v1598_v58, 4 }
 0x18b   : > { %v1593_v60 = vadd.f32 %v1592_v57, %v1591_v56 }
 0x18c   : > { %v1600_v61 = vadd.f32 %v1599_v59, %v1598_v58 }
 0x18d   : > { %v1594_v62 = vrot.slane %v1593_v60, 2 }
 0x18e   : > { %v1601_v63 = vrot.slane %v1600_v61, 2 }
 0x18f   : > { %v1595_v0 = vadd.f32 %v1594_v62, %v1593_v60 }
 0x190   : > { %v1602_v1 = vadd.f32 %v1601_v63, %v1600_v61 }
 0x191   : > { %v1596_v3 = vrot.slane %v1595_v0, 1 }
 0x192   : > { %v1603_v4 = vrot.slane %v1602_v1, 1 }
 0x193   : > { %v1597_v5 = vadd.f32 %v1596_v3, %v1595_v0 }
 0x194   : > { %v1604_v6 = vadd.f32 %v1603_v4, %v1602_v1 }
 0x195   : > { %v1605_v7 = vmul.f32 0.25, %v1597_v5 }
 0x196   : > { %v1606_v8 = vmul.f32 0.25, %v1604_v6 }
 0x197   : > { %v1607_v9 = vsub.f32 %v1580_v52, %v1605_v7 }
 0x198   : > { %v1608_v10 = vsub.f32 %v1581_v53, %v1606_v8 }
 0x199   : > { %v1609_v11 = vmul.f32 %v1607_v9, %v1607_v9 }
 0x19a   : > { %v1610_v12 = vmul.f32 %v1608_v10, %v1608_v10 }
 0x19b   : > { %v1611_v13 = vmul.f32 %v1609_v11, %v1586_v51 }
 0x19c   : > { %v1612_v14 = vmul.f32 %v1610_v12, %v1586_v51 }
 0x19d   : > { %v1613_v15 = vsel %vm1590_vm0, %v1611_v13, 0.0 }
 0x19e   : > { %v1614_v16 = vrot.slane %v1613_v15, 4  ;;  %v1620_v17 = vsel %vm1590_vm0, %v1612_v14, 0.0 }
 0x19f   : > { %v1621_v18 = vrot.slane %v1620_v17, 4 }
 0x1a0   : > { %v1615_v19 = vadd.f32 %v1614_v16, %v1613_v15 }
 0x1a1   : > { %v1622_v20 = vadd.f32 %v1621_v18, %v1620_v17 }
 0x1a2   : > { %v1616_v21 = vrot.slane %v1615_v19, 2 }
 0x1a3   : > { %v1623_v22 = vrot.slane %v1622_v20, 2 }
 0x1a4   : > { %v1617_v23 = vadd.f32 %v1616_v21, %v1615_v19 }
 0x1a5   : > { %v1624_v24 = vadd.f32 %v1623_v22, %v1622_v20 }
 0x1a6   : > { %v1618_v25 = vrot.slane %v1617_v23, 1 }
 0x1a7   : > { %v1625_v26 = vrot.slane %v1624_v24, 1 }
 0x1a8   : > { %v1619_v27 = vadd.f32 %v1618_v25, %v1617_v23 }
 0x1a9   : > { %v1626_v28 = vadd.f32 %v1625_v26, %v1624_v24 }
 0x1aa   : > { %v1627_v29 = vmul.f32 0.25, %v1619_v27 }
 0x1ab   : > { %v1628_v30 = vmul.f32 0.25, %v1626_v28 }
 0x1ac   : > { %v1629_v31 = vadd.f32 1e-05, %v1627_v29 }
 0x1ad   : > { %v1630_v32 = vadd.f32 1e-05, %v1628_v30 }
 0x1ae   : > { %2294 = vrsqrt.f32 %v1629_v31 }
 0x1af   : > { %2296 = vrsqrt.f32 %v1630_v32 }
 0x1b8   : > { %v2295_v33 = vpop.eup %2294 }
 0x1b9   : > { %v2297_v34 = vpop.eup %2296  ;;  %v1633_v35 = vmul.f32 %v2295_v33, %v1607_v9 }
 0x1ba   : > { %v1634_v36 = vmul.f32 %v2297_v34, %v1608_v10 }
 0x1bb   : > { %vm1635_vm1 = vcmp.ge.f32.partialorder %v1633_v35, 0.0  ;;  %v1637_v37 = vmul.f32 0.2, %v1633_v35 }
 0x1bc   : > { %vm1636_vm2 = vcmp.ge.f32.partialorder %v1634_v36, 0.0  ;;  %v1638_v2 = vmul.f32 0.2, %v1634_v36 }
 0x1bd   : > { %v1639_v38 = vsel %vm1635_vm1, %v1633_v35, %v1637_v37 }
 0x1be   : > { %v1640_v39 = vsel %vm1636_vm2, %v1634_v36, %v1638_v2  ;;  %v1641_v40 = vmul.f32 %v1639_v38, %v1586_v51 }
 0x1bf   : > { %v1642_v41 = vmul.f32 %v1640_v39, %v1586_v51 }
 0x1c1   : > { %v2046_v42 = vpack.c.bf16 %v1642_v41, %v1641_v40 }
 0x1c3   : > { %1651 = vst [vmem:[%s214_s23] sm:$0x77] %v2046_v42 }
 0x1c4 PF: > { %s13_s14 = sadd.s32 1, %s2320_s14   ;;  %s2850_s12 = smov %s2316_s13 }
 0x1c5   : > { %p10_p5 = scmp.ge.s32.totalorder %s13_s14, 4   ;;  %s2851_s13 = smov %s2853_s15 }
 0x1c7   :  { %12 = sbr.rel (!%p10_p5) target bundleno = 2 (0x2), region = 76 }

// kernel: simple_discriminator_forward.8
= control target key start
LH: loop header
LB: loop body
LE: loop exit
PB: predicated region body
PF: predicated region fallthrough
CT: control target
= control target key end

     0   :  { %s7047_s12 = smov 0   ;;  %s7049_s13 = smov 0   ;;  %s8873_s0 = inlined_call_operand.vmem [shape: bf16[2,1,18,256], index: 0, kind: input, shape index: {}]   ;;  %s8874_s1 = inlined_call_operand.vmem [shape: bf16[9,256,512], index: 1, kind: input, shape index: {}]   ;;  %s8875_s2 = inlined_call_operand.vmem [shape: f32[8,1], index: 2, kind: input, shape index: {}]   ;;  %s8876_s3 = inlined_call_operand.vmem [shape: bf16[2,8,512], index: 3, kind: output, shape index: {}]  }
   0x1   :  { %s7051_s14 = smov 0  }
   0x2 LB: > { %s25_s15 = sadd.s32 1, %s7020_s13  ;;  %p4899_p0 = scmp.ge.s32.totalorder %s7024_s14, 1  ;;  %s7024_s14 = sphi %s7051_s14, %s13_s14   ;;  %s7020_s13 = sphi %s7049_s13, %s8878_s13   ;;  %s7016_s12 = sphi %s7047_s12, %s8877_s12  }
   0x3   : > { %p27_p1 = scmp.ge.s32.totalorder %s25_s15, 2  ;;  %p162_p2 = scmp.lt.s32.totalorder %s7024_s14, 3 }
   0x5   : > { %s8880_s15 = smov (%p27_p1, %s25_s15), 0  ;;  %p163_p3 = pnand %p4899_p0, %p162_p2 }
   0x6   : > { %v6107_v0 = vld [vmem:[%s8874_s1 + $0x4] ss:$16 sps:$4 sm:$0xff] (!%p163_p3)   ;;  %v6109_v1 = vld [vmem:[%s8874_s1 + $0xc] ss:$16 sps:$4 sm:$0xff] (!%p163_p3)   ;;  %v6111_v2 = vld [vmem:[%s8874_s1] ss:$16 sps:$4 sm:$0xff] (!%p163_p3)  }
   0x7   : > { %166 = sbr.rel (%p163_p3) target bundleno = 857 (0x359), region = 32  ;;  %608 = vmatprep.subr.bf16.mxu0 (!%p163_p3), %v6107_v0  ;;  %v6112_v3 = vld [vmem:[%s8874_s1 + $0x8] ss:$16 sps:$4 sm:$0xff] (!%p163_p3)   ;;  %649 = vmatprep.subr.bf16.mxu1 (!%p163_p3), %v6109_v1  ;;  %v6113_v4 = vld [vmem:[%s8874_s1 + $0x24] ss:$16 sps:$4 sm:$0xff] (!%p163_p3)   ;;  %p195_p4 = scmp.lt.s32.totalorder (!%p163_p3), %s7016_s12, 1 }
   0x8   : > { %609 = vmatpush1.bf16.msra.mxu0 (!%p163_p3), %v6111_v2  ;;  %650 = vmatpush1.bf16.msra.mxu1 (!%p163_p3), %v6112_v3  ;;  %v6115_v5 = vld [vmem:[%s8874_s1 + $0x2c] ss:$16 sps:$4 sm:$0xff] (!%p163_p3)   ;;  %v6117_v6 = vld [vmem:[%s8874_s1 + $0x20] ss:$16 sps:$4 sm:$0xff] (!%p163_p3)   ;;  %v6118_v7 = vld [vmem:[%s8874_s1 + $0x28] ss:$16 sps:$4 sm:$0xff] (!%p163_p3)  }
   0x9   : > { %610 = vmatprep.subr.bf16.mxu0 (!%p163_p3), %v6113_v4  ;;  %651 = vmatprep.subr.bf16.mxu1 (!%p163_p3), %v6115_v5  ;;  %v6119_v8 = vld [vmem:[%s8874_s1 + $0x44] ss:$16 sps:$4 sm:$0xff] (!%p163_p3)   ;;  %v6121_v9 = vld [vmem:[%s8874_s1 + $0x4c] ss:$16 sps:$4 sm:$0xff] (!%p163_p3)   ;;  %v6123_v10 = vld [vmem:[%s8874_s1 + $0x40] ss:$16 sps:$4 sm:$0xff] (!%p163_p3)  }
   0xa   : > { %v6124_v11 = vld [vmem:[%s8874_s1 + $0x48] ss:$16 sps:$4 sm:$0xff] (!%p163_p3)   ;;  %v6125_v12 = vld [vmem:[%s8874_s1 + $0x64] ss:$16 sps:$4 sm:$0xff] (!%p163_p3)   ;;  %v6127_v13 = vld [vmem:[%s8874_s1 + $0x6c] ss:$16 sps:$4 sm:$0xff] (!%p163_p3)  }
   0xb   : > { %v6129_v14 = vld [vmem:[%s8874_s1 + $0x60] ss:$16 sps:$4 sm:$0xff] (!%p163_p3)   ;;  %v6130_v15 = vld [vmem:[%s8874_s1 + $0x68] ss:$16 sps:$4 sm:$0xff] (!%p163_p3)   ;;  %v6131_v16 = vld [vmem:[%s8874_s1 + $0x84] ss:$16 sps:$4 sm:$0xff] (!%p163_p3)  }
   0xc   : > { %611 = vmatpush1.bf16.msra.mxu0 (!%p163_p3), %v6117_v6  ;;  %652 = vmatpush1.bf16.msra.mxu1 (!%p163_p3), %v6118_v7  ;;  %v6133_v17 = vld [vmem:[%s8874_s1 + $0x8c] ss:$16 sps:$4 sm:$0xff] (!%p163_p3)   ;;  %v6135_v18 = vld [vmem:[%s8874_s1 + $0x80] ss:$16 sps:$4 sm:$0xff] (!%p163_p3)   ;;  %v6136_v19 = vld [vmem:[%s8874_s1 + $0x88] ss:$16 sps:$4 sm:$0xff] (!%p163_p3)  }
   0xd   : > { %612 = vmatprep.subr.bf16.mxu0 (!%p163_p3), %v6119_v8  ;;  %653 = vmatprep.subr.bf16.mxu1 (!%p163_p3), %v6121_v9  ;;  %v6137_v20 = vld [vmem:[%s8874_s1 + $0xa4] ss:$16 sps:$4 sm:$0xff] (!%p163_p3)   ;;  %v6139_v21 = vld [vmem:[%s8874_s1 + $0xac] ss:$16 sps:$4 sm:$0xff] (!%p163_p3)   ;;  %v6141_v22 = vld [vmem:[%s8874_s1 + $0xa0] ss:$16 sps:$4 sm:$0xff] (!%p163_p3)  }
   0xe   : > { %v6142_v23 = vld [vmem:[%s8874_s1 + $0xa8] ss:$16 sps:$4 sm:$0xff]   ;;  %v6143_v24 = vld [vmem:[%s8874_s1 + $0xc4] ss:$16 sps:$4 sm:$0xff]   ;;  %v6145_v25 = vld [vmem:[%s8874_s1 + $0xcc] ss:$16 sps:$4 sm:$0xff]  }
   0xf   : > { %v6147_v26 = vld [vmem:[%s8874_s1 + $0xc0] ss:$16 sps:$4 sm:$0xff]   ;;  %v6148_v27 = vld [vmem:[%s8874_s1 + $0xc8] ss:$16 sps:$4 sm:$0xff]   ;;  %v6149_v28 = vld [vmem:[%s8874_s1 + $0xe4] ss:$16 sps:$4 sm:$0xff]  }
  0x10   : > { %613 = vmatpush1.bf16.msra.mxu0 %v6123_v10  ;;  %654 = vmatpush1.bf16.msra.mxu1 %v6124_v11  ;;  %v6151_v29 = vld [vmem:[%s8874_s1 + $0xec] ss:$16 sps:$4 sm:$0xff]   ;;  %v6153_v30 = vld [vmem:[%s8874_s1 + $0xe0] ss:$16 sps:$4 sm:$0xff]   ;;  %v6154_v31 = vld [vmem:[%s8874_s1 + $0xe8] ss:$16 sps:$4 sm:$0xff]  }
  0x11   : > { %614 = vmatprep.subr.bf16.mxu0 %v6125_v12  ;;  %655 = vmatprep.subr.bf16.mxu1 %v6127_v13  ;;  %v6155_v32 = vld [vmem:[%s8874_s1 + $0x104] ss:$16 sps:$4 sm:$0xff]   ;;  %v6157_v33 = vld [vmem:[%s8874_s1 + $0x10c] ss:$16 sps:$4 sm:$0xff]   ;;  %v6159_v34 = vld [vmem:[%s8874_s1 + $0x100] ss:$16 sps:$4 sm:$0xff]  }
  0x12   : > { %v6160_v35 = vld [vmem:[%s8874_s1 + $0x108] ss:$16 sps:$4 sm:$0xff]   ;;  %s8882_s12 = smov (!%p195_p4, %s7016_s12), 1  ;;  %v6161_v36 = vld [vmem:[%s8874_s1 + $0x124] ss:$16 sps:$4 sm:$0xff]  }
  0x13   : > { %v6163_v37 = vld [vmem:[%s8874_s1 + $0x12c] ss:$16 sps:$4 sm:$0xff]   ;;  %v6165_v38 = vld [vmem:[%s8874_s1 + $0x120] ss:$16 sps:$4 sm:$0xff]   ;;  %s6080_s25 = smul.u32 24, %s8882_s12 }
  0x14   : > { %615 = vmatpush1.bf16.msra.mxu0 %v6129_v14  ;;  %656 = vmatpush1.bf16.msra.mxu1 %v6130_v15  ;;  %v6166_v39 = vld [vmem:[%s8874_s1 + $0x128] ss:$16 sps:$4 sm:$0xff]   ;;  %v6167_v40 = vld [vmem:[%s8874_s1 + $0x144] ss:$16 sps:$4 sm:$0xff]   ;;  %v6169_v41 = vld [vmem:[%s8874_s1 + $0x14c] ss:$16 sps:$4 sm:$0xff]  }
  0x15   : > { %616 = vmatprep.subr.bf16.mxu0 %v6131_v16  ;;  %657 = vmatprep.subr.bf16.mxu1 %v6133_v17  ;;  %v6171_v42 = vld [vmem:[%s8874_s1 + $0x140] ss:$16 sps:$4 sm:$0xff]   ;;  %v6172_v43 = vld [vmem:[%s8874_s1 + $0x148] ss:$16 sps:$4 sm:$0xff]   ;;  %s7207_s11 = scalar_lea.vmem %s8873_s0, %s6080_s25  ;;  %v6173_v44 = vld [vmem:[%s8874_s1 + $0x164] ss:$16 sps:$4 sm:$0xff]  }
  0x16   : > { %v6175_v45 = vld [vmem:[%s8874_s1 + $0x16c] ss:$16 sps:$4 sm:$0xff]   ;;  %v7216_v46 = vld [vmem:[%s7207_s11] sm:$0xff]  ;;  %v6178_v49 = vld [vmem:[%s8874_s1 + $0x168] ss:$16 sps:$4 sm:$0xff]  }
  0x17   : > { %v6177_v47 = vld [vmem:[%s8874_s1 + $0x160] ss:$16 sps:$4 sm:$0xff]   ;;  %v4904_v48 = vcombine.high %v7216_v46, %v7216_v46  ;;  %v6179_v50 = vld [vmem:[%s8874_s1 + $0x184] ss:$16 sps:$4 sm:$0xff]   ;;  %v6181_v51 = vld [vmem:[%s8874_s1 + $0x18c] ss:$16 sps:$4 sm:$0xff]   ;;  %v4903_v4 = vcombine.low %v7216_v46, %v7216_v46 }
  0x18   : > { %617 = vmatpush1.bf16.msra.mxu0 %v6135_v18  ;;  %658 = vmatpush1.bf16.msra.mxu1 %v6136_v19  ;;  %v6183_v52 = vld [vmem:[%s8874_s1 + $0x180] ss:$16 sps:$4 sm:$0xff]   ;;  %v6184_v53 = vld [vmem:[%s8874_s1 + $0x188] ss:$16 sps:$4 sm:$0xff]   ;;  %v6185_v54 = vld [vmem:[%s8874_s1 + $0x1a4] ss:$16 sps:$4 sm:$0xff]  }
  0x19   : > { %618 = vmatprep.subr.bf16.mxu0 %v6137_v20  ;;  %659 = vmatprep.subr.bf16.mxu1 %v6139_v21  ;;  %v6187_v55 = vld [vmem:[%s8874_s1 + $0x1ac] ss:$16 sps:$4 sm:$0xff]   ;;  %v6189_v56 = vld [vmem:[%s8874_s1 + $0x1a0] ss:$16 sps:$4 sm:$0xff]   ;;  %v6190_v57 = vld [vmem:[%s8874_s1 + $0x1a8] ss:$16 sps:$4 sm:$0xff]  }
  0x1a   : > { %640 = vmatprep.mubr.bf16.mxu0 %v4904_v48  ;;  %681 = vmatprep.mubr.bf16.mxu1 %v4904_v48  ;;  %v6191_v58 = vld [vmem:[%s8874_s1 + $0x1c4] ss:$16 sps:$4 sm:$0xff]   ;;  %v6193_v59 = vld [vmem:[%s8874_s1 + $0x1cc] ss:$16 sps:$4 sm:$0xff]   ;;  %v6195_v60 = vld [vmem:[%s8874_s1 + $0x1c0] ss:$16 sps:$4 sm:$0xff]  }
  0x1b   : > { %v6196_v61 = vld [vmem:[%s8874_s1 + $0x1c8] ss:$16 sps:$4 sm:$0xff]   ;;  %v6197_v62 = vld [vmem:[%s8874_s1 + $0x1e4] ss:$16 sps:$4 sm:$0xff]   ;;  %v6199_v63 = vld [vmem:[%s8874_s1 + $0x1ec] ss:$16 sps:$4 sm:$0xff]  }
  0x1c   : > { %619 = vmatpush1.bf16.msra.mxu0 %v6141_v22  ;;  %660 = vmatpush1.bf16.msra.mxu1 %v6142_v23  ;;  %v6201_v0 = vld [vmem:[%s8874_s1 + $0x1e0] ss:$16 sps:$4 sm:$0xff]   ;;  %v6202_v1 = vld [vmem:[%s8874_s1 + $0x1e8] ss:$16 sps:$4 sm:$0xff]   ;;  %v6207_v2 = vld [vmem:[%s8874_s1 + $0x204] ss:$16 sps:$4 sm:$0xff]  }
  0x1d   : > { %620 = vmatprep.subr.bf16.mxu0 %v6143_v24  ;;  %661 = vmatprep.subr.bf16.mxu1 %v6145_v25  ;;  %v6210_v3 = vld [vmem:[%s8874_s1 + $0x20c] ss:$16 sps:$4 sm:$0xff]   ;;  %v6205_v5 = vld [vmem:[%s8874_s1 + $0x200] ss:$16 sps:$4 sm:$0xff]   ;;  %v6208_v6 = vld [vmem:[%s8874_s1 + $0x208] ss:$16 sps:$4 sm:$0xff]  }
  0x1e   : > { %v6213_v7 = vld [vmem:[%s8874_s1 + $0x224] ss:$16 sps:$4 sm:$0xff]   ;;  %v6216_v8 = vld [vmem:[%s8874_s1 + $0x22c] ss:$16 sps:$4 sm:$0xff]   ;;  %v6211_v9 = vld [vmem:[%s8874_s1 + $0x220] ss:$16 sps:$4 sm:$0xff]  }
  0x1f   : > { %v6214_v10 = vld [vmem:[%s8874_s1 + $0x228] ss:$16 sps:$4 sm:$0xff]   ;;  %v6219_v11 = vld [vmem:[%s8874_s1 + $0x244] ss:$16 sps:$4 sm:$0xff]   ;;  %v6222_v12 = vld [vmem:[%s8874_s1 + $0x24c] ss:$16 sps:$4 sm:$0xff]  }
  0x20   : > { %621 = vmatpush1.bf16.msra.mxu0 %v6147_v26  ;;  %662 = vmatpush1.bf16.msra.mxu1 %v6148_v27  ;;  %v6217_v13 = vld [vmem:[%s8874_s1 + $0x240] ss:$16 sps:$4 sm:$0xff]   ;;  %v6220_v14 = vld [vmem:[%s8874_s1 + $0x248] ss:$16 sps:$4 sm:$0xff]   ;;  %v6225_v15 = vld [vmem:[%s8874_s1 + $0x264] ss:$16 sps:$4 sm:$0xff]  }
  0x21   : > { %622 = vmatprep.subr.bf16.mxu0 %v6149_v28  ;;  %663 = vmatprep.subr.bf16.mxu1 %v6151_v29  ;;  %v6228_v16 = vld [vmem:[%s8874_s1 + $0x26c] ss:$16 sps:$4 sm:$0xff]   ;;  %v6223_v17 = vld [vmem:[%s8874_s1 + $0x260] ss:$16 sps:$4 sm:$0xff]   ;;  %v6226_v18 = vld [vmem:[%s8874_s1 + $0x268] ss:$16 sps:$4 sm:$0xff]  }
  0x22   : > { %v6231_v19 = vld [vmem:[%s8874_s1 + $0x284] ss:$16 sps:$4 sm:$0xff]   ;;  %v6234_v20 = vld [vmem:[%s8874_s1 + $0x28c] ss:$16 sps:$4 sm:$0xff]   ;;  %v6229_v21 = vld [vmem:[%s8874_s1 + $0x280] ss:$16 sps:$4 sm:$0xff]  }
  0x23   : > { %v6232_v22 = vld [vmem:[%s8874_s1 + $0x288] ss:$16 sps:$4 sm:$0xff]   ;;  %v6237_v23 = vld [vmem:[%s8874_s1 + $0x2a4] ss:$16 sps:$4 sm:$0xff]   ;;  %v6240_v24 = vld [vmem:[%s8874_s1 + $0x2ac] ss:$16 sps:$4 sm:$0xff]  }
  0x24   : > { %623 = vmatpush1.bf16.msra.mxu0 %v6153_v30  ;;  %664 = vmatpush1.bf16.msra.mxu1 %v6154_v31  ;;  %v6235_v25 = vld [vmem:[%s8874_s1 + $0x2a0] ss:$16 sps:$4 sm:$0xff]   ;;  %v6238_v26 = vld [vmem:[%s8874_s1 + $0x2a8] ss:$16 sps:$4 sm:$0xff]   ;;  %v6243_v27 = vld [vmem:[%s8874_s1 + $0x2c4] ss:$16 sps:$4 sm:$0xff]  }
  0x25   : > { %624 = vmatprep.subr.bf16.mxu0 %v6155_v32  ;;  %665 = vmatprep.subr.bf16.mxu1 %v6157_v33  ;;  %v6246_v28 = vld [vmem:[%s8874_s1 + $0x2cc] ss:$16 sps:$4 sm:$0xff]   ;;  %v6241_v31 = vld [vmem:[%s8874_s1 + $0x2c0] ss:$16 sps:$4 sm:$0xff]   ;;  %v6244_v32 = vld [vmem:[%s8874_s1 + $0x2c8] ss:$16 sps:$4 sm:$0xff]  }
  0x26   : > { %v7355_v29 = vld [vmem:[%s7207_s11 + $0x8] sm:$0x11]  ;;  %v6249_v33 = vld [vmem:[%s8874_s1 + $0x2e4] ss:$16 sps:$4 sm:$0xff]   ;;  %v6259_v48 = vld [vmem:[%s8874_s1 + $0x320] ss:$16 sps:$4 sm:$0xff]  }
  0x27   : > { %v5034_v30 = vcombine.high %v7216_v46, %v7355_v29 }
  0x28   : > { %625 = vmatpush1.bf16.msra.mxu0 %v6159_v34  ;;  %666 = vmatpush1.bf16.msra.mxu1 %v6160_v35 }
  0x29   : > { %626 = vmatprep.subr.bf16.mxu0 %v6161_v36  ;;  %667 = vmatprep.subr.bf16.mxu1 %v6163_v37  ;;  %v781_v34 = vshrl.u32 %v5034_v30, 16  ;;  %v783_v35 = vshll.u32 %v5034_v30, 16  ;;  %v6252_v36 = vld [vmem:[%s8874_s1 + $0x2ec] ss:$16 sps:$4 sm:$0xff]   ;;  %v6321_v30 = vld [vmem:[%s8874_s1 + $0x460] ss:$16 sps:$4 sm:$0xff]  }
  0x2b   : > { %v785_v37 = vrot.slane %v783_v35, 1  ;;  %v6330_v35 = vld [vmem:[%s8874_s1 + $0x488] ss:$16 sps:$4 sm:$0xff]  }
  0x2c   : > { %627 = vmatpush1.bf16.msra.mxu0 %v6165_v38  ;;  %668 = vmatpush1.bf16.msra.mxu1 %v6166_v39  ;;  %v6247_v38 = vld [vmem:[%s8874_s1 + $0x2e0] ss:$16 sps:$4 sm:$0xff]   ;;  %v6250_v39 = vld [vmem:[%s8874_s1 + $0x2e8] ss:$16 sps:$4 sm:$0xff]  }
  0x2d   : > { %628 = vmatprep.subr.bf16.mxu0 %v6167_v40  ;;  %669 = vmatprep.subr.bf16.mxu1 %v6169_v41  ;;  %v6255_v40 = vld [vmem:[%s8874_s1 + $0x304] ss:$16 sps:$4 sm:$0xff]   ;;  %v786_v41 = vor.u32 %v785_v37, %v781_v34  ;;  %v6327_v34 = vld [vmem:[%s8874_s1 + $0x480] ss:$16 sps:$4 sm:$0xff]   ;;  %v6338_v37 = vld [vmem:[%s8874_s1 + $0x4ac] ss:$16 sps:$4 sm:$0xff]  }
  0x30   : > { %629 = vmatpush1.bf16.msra.mxu0 %v6171_v42  ;;  %670 = vmatpush1.bf16.msra.mxu1 %v6172_v43  ;;  %v6258_v42 = vld [vmem:[%s8874_s1 + $0x30c] ss:$16 sps:$4 sm:$0xff]   ;;  %v6253_v43 = vld [vmem:[%s8874_s1 + $0x300] ss:$16 sps:$4 sm:$0xff]  }
  0x31   : > { %630 = vmatprep.subr.bf16.mxu0 %v6173_v44  ;;  %671 = vmatprep.subr.bf16.mxu1 %v6175_v45  ;;  %v6256_v44 = vld [vmem:[%s8874_s1 + $0x308] ss:$16 sps:$4 sm:$0xff]   ;;  %v6261_v45 = vld [vmem:[%s8874_s1 + $0x324] ss:$16 sps:$4 sm:$0xff]  }
  0x34   : > { %631 = vmatpush1.bf16.msra.mxu0 %v6177_v47  ;;  %672 = vmatpush1.bf16.msra.mxu1 %v6178_v49  ;;  %v6264_v47 = vld [vmem:[%s8874_s1 + $0x32c] ss:$16 sps:$4 sm:$0xff]   ;;  %v6262_v49 = vld [vmem:[%s8874_s1 + $0x328] ss:$16 sps:$4 sm:$0xff]  }
  0x35   : > { %632 = vmatprep.subr.bf16.mxu0 %v6179_v50  ;;  %673 = vmatprep.subr.bf16.mxu1 %v6181_v51  ;;  %v6267_v50 = vld [vmem:[%s8874_s1 + $0x344] ss:$16 sps:$4 sm:$0xff]   ;;  %v6270_v51 = vld [vmem:[%s8874_s1 + $0x34c] ss:$16 sps:$4 sm:$0xff]  }
  0x38   : > { %633 = vmatpush1.bf16.msra.mxu0 %v6183_v52  ;;  %674 = vmatpush1.bf16.msra.mxu1 %v6184_v53  ;;  %v6265_v52 = vld [vmem:[%s8874_s1 + $0x340] ss:$16 sps:$4 sm:$0xff]   ;;  %v6268_v53 = vld [vmem:[%s8874_s1 + $0x348] ss:$16 sps:$4 sm:$0xff]  }
  0x39   : > { %634 = vmatprep.subr.bf16.mxu0 %v6185_v54  ;;  %675 = vmatprep.subr.bf16.mxu1 %v6187_v55  ;;  %v6273_v54 = vld [vmem:[%s8874_s1 + $0x364] ss:$16 sps:$4 sm:$0xff]   ;;  %v6276_v55 = vld [vmem:[%s8874_s1 + $0x36c] ss:$16 sps:$4 sm:$0xff]  }
  0x3c   : > { %635 = vmatpush1.bf16.msra.mxu0 %v6189_v56  ;;  %676 = vmatpush1.bf16.msra.mxu1 %v6190_v57  ;;  %v6271_v56 = vld [vmem:[%s8874_s1 + $0x360] ss:$16 sps:$4 sm:$0xff]   ;;  %v6274_v57 = vld [vmem:[%s8874_s1 + $0x368] ss:$16 sps:$4 sm:$0xff]  }
  0x3d   : > { %636 = vmatprep.subr.bf16.mxu0 %v6191_v58  ;;  %677 = vmatprep.subr.bf16.mxu1 %v6193_v59  ;;  %v6279_v58 = vld [vmem:[%s8874_s1 + $0x384] ss:$16 sps:$4 sm:$0xff]   ;;  %v6282_v59 = vld [vmem:[%s8874_s1 + $0x38c] ss:$16 sps:$4 sm:$0xff]  }
  0x40   : > { %637 = vmatpush1.bf16.msra.mxu0 %v6195_v60  ;;  %678 = vmatpush1.bf16.msra.mxu1 %v6196_v61  ;;  %v6277_v60 = vld [vmem:[%s8874_s1 + $0x380] ss:$16 sps:$4 sm:$0xff]   ;;  %v6280_v61 = vld [vmem:[%s8874_s1 + $0x388] ss:$16 sps:$4 sm:$0xff]  }
  0x41   : > { %638 = vmatprep.subr.bf16.mxu0 %v6197_v62  ;;  %679 = vmatprep.subr.bf16.mxu1 %v6199_v63  ;;  %v6285_v62 = vld [vmem:[%s8874_s1 + $0x3a4] ss:$16 sps:$4 sm:$0xff]   ;;  %v6288_v63 = vld [vmem:[%s8874_s1 + $0x3ac] ss:$16 sps:$4 sm:$0xff]  }
  0x44   : > { %639 = vmatpush1.bf16.msra.mxu0 %v6201_v0  ;;  %680 = vmatpush1.bf16.msra.mxu1 %v6202_v1  ;;  %v6283_v0 = vld [vmem:[%s8874_s1 + $0x3a0] ss:$16 sps:$4 sm:$0xff]   ;;  %v5033_v1 = vcombine.low %v7216_v46, %v7355_v29  ;;  %v6326_v29 = vld [vmem:[%s8874_s1 + $0x46c] ss:$16 sps:$4 sm:$0xff]  }
  0x45   : > { %1109 = vmatprep.subr.bf16.mxu0 %v6207_v2  ;;  %1150 = vmatprep.subr.bf16.mxu1 %v6210_v3  ;;  %v6286_v2 = vld [vmem:[%s8874_s1 + $0x3a8] ss:$16 sps:$4 sm:$0xff]   ;;  %v6291_v3 = vld [vmem:[%s8874_s1 + $0x3c4] ss:$16 sps:$4 sm:$0xff]   ;;  %v6289_v46 = vld [vmem:[%s8874_s1 + $0x3c0] ss:$16 sps:$4 sm:$0xff]  }
  0x47   : > { %641 = vmatmul.mubr.bf16.vlgmr.msra.gmra.mrb[0].mxu0 %v4903_v4  ;;  %682 = vmatmul.mubr.bf16.vlgmr.msra.gmra.mrb[0].mxu1 %v4903_v4  ;;  %v6294_v4 = vld [vmem:[%s8874_s1 + $0x3cc] ss:$16 sps:$4 sm:$0xff]  }
  0x48   : > { %1110 = vmatpush1.bf16.msra.mxu0 %v6205_v5  ;;  %1151 = vmatpush1.bf16.msra.mxu1 %v6208_v6  ;;  %v776_v5 = vshll.u32 %v5033_v1, 16  ;;  %v6292_v6 = vld [vmem:[%s8874_s1 + $0x3c8] ss:$16 sps:$4 sm:$0xff]  }
  0x49   : > { %1111 = vmatprep.subr.bf16.mxu0 %v6213_v7  ;;  %1152 = vmatprep.subr.bf16.mxu1 %v6216_v8  ;;  %v6297_v7 = vld [vmem:[%s8874_s1 + $0x3e4] ss:$16 sps:$4 sm:$0xff]   ;;  %v6300_v8 = vld [vmem:[%s8874_s1 + $0x3ec] ss:$16 sps:$4 sm:$0xff]  }
  0x4a   : > { %1141 = vmatprep.mubr.bf16.mxu0 %v786_v41  ;;  %1182 = vmatprep.mubr.bf16.mxu1 %v786_v41  ;;  %v6344_v41 = vld [vmem:[%s8874_s1 + $0x4cc] ss:$16 sps:$4 sm:$0xff]  }
  0x4c   : > { %1112 = vmatpush1.bf16.msra.mxu0 %v6211_v9  ;;  %1153 = vmatpush1.bf16.msra.mxu1 %v6214_v10  ;;  %v6295_v9 = vld [vmem:[%s8874_s1 + $0x3e0] ss:$16 sps:$4 sm:$0xff]   ;;  %v774_v10 = vshrl.u32 %v5033_v1, 16  ;;  %v6377_v1 = vld [vmem:[%s8874_s1 + $0x584] ss:$16 sps:$4 sm:$0xff]  }
  0x4d   : > { %1113 = vmatprep.subr.bf16.mxu0 %v6219_v11  ;;  %1154 = vmatprep.subr.bf16.mxu1 %v6222_v12  ;;  %v778_v11 = vrot.slane %v776_v5, 1  ;;  %v6298_v12 = vld [vmem:[%s8874_s1 + $0x3e8] ss:$16 sps:$4 sm:$0xff]   ;;  %v6386_v5 = vld [vmem:[%s8874_s1 + $0x5ac] ss:$16 sps:$4 sm:$0xff]  }
  0x50   : > { %1114 = vmatpush1.bf16.msra.mxu0 %v6217_v13  ;;  %1155 = vmatpush1.bf16.msra.mxu1 %v6220_v14  ;;  %v6305_v13 = vld [vmem:[%s8874_s1 + $0x404] ss:$16 sps:$4 sm:$0xff]   ;;  %v6308_v14 = vld [vmem:[%s8874_s1 + $0x40c] ss:$16 sps:$4 sm:$0xff]  }
  0x51   : > { %1115 = vmatprep.subr.bf16.mxu0 %v6225_v15  ;;  %1156 = vmatprep.subr.bf16.mxu1 %v6228_v16  ;;  %v6303_v15 = vld [vmem:[%s8874_s1 + $0x400] ss:$16 sps:$4 sm:$0xff]   ;;  %v6306_v16 = vld [vmem:[%s8874_s1 + $0x408] ss:$16 sps:$4 sm:$0xff]  }
  0x54   : > { %1116 = vmatpush1.bf16.msra.mxu0 %v6223_v17  ;;  %1157 = vmatpush1.bf16.msra.mxu1 %v6226_v18  ;;  %v779_v17 = vor.u32 %v778_v11, %v774_v10  ;;  %v6311_v18 = vld [vmem:[%s8874_s1 + $0x424] ss:$16 sps:$4 sm:$0xff]   ;;  %v6387_v10 = vld [vmem:[%s8874_s1 + $0x5c0] ss:$16 sps:$4 sm:$0xff]   ;;  %v6390_v11 = vld [vmem:[%s8874_s1 + $0x5c8] ss:$16 sps:$4 sm:$0xff]  }
  0x55   : > { %1117 = vmatprep.subr.bf16.mxu0 %v6231_v19  ;;  %1158 = vmatprep.subr.bf16.mxu1 %v6234_v20  ;;  %v6314_v19 = vld [vmem:[%s8874_s1 + $0x42c] ss:$16 sps:$4 sm:$0xff]  }
  0x56   : > { %v6401_v20 = vld [vmem:[%s7207_s11 + $0x4] ss:$8 sps:$4 sm:$0x1e]  }
  0x58   : > { %1118 = vmatpush1.bf16.msra.mxu0 %v6229_v21  ;;  %1159 = vmatpush1.bf16.msra.mxu1 %v6232_v22  ;;  %v6309_v21 = vld [vmem:[%s8874_s1 + $0x420] ss:$16 sps:$4 sm:$0xff]   ;;  %v6312_v22 = vld [vmem:[%s8874_s1 + $0x428] ss:$16 sps:$4 sm:$0xff]  }
  0x59   : > { %1119 = vmatprep.subr.bf16.mxu0 %v6237_v23  ;;  %1160 = vmatprep.subr.bf16.mxu1 %v6240_v24  ;;  %v6317_v23 = vld [vmem:[%s8874_s1 + $0x444] ss:$16 sps:$4 sm:$0xff]   ;;  %v1279_v24 = vrot.slane %v6401_v20, 1 }
  0x5c   : > { %1120 = vmatpush1.bf16.msra.mxu0 %v6235_v25  ;;  %1161 = vmatpush1.bf16.msra.mxu1 %v6238_v26  ;;  %v6320_v25 = vld [vmem:[%s8874_s1 + $0x44c] ss:$16 sps:$4 sm:$0xff]   ;;  %v6315_v26 = vld [vmem:[%s8874_s1 + $0x440] ss:$16 sps:$4 sm:$0xff]  }
  0x5d   : > { %1121 = vmatprep.subr.bf16.mxu0 %v6243_v27  ;;  %1162 = vmatprep.subr.bf16.mxu1 %v6246_v28  ;;  %v6318_v27 = vld [vmem:[%s8874_s1 + $0x448] ss:$16 sps:$4 sm:$0xff]   ;;  %v6323_v28 = vld [vmem:[%s8874_s1 + $0x464] ss:$16 sps:$4 sm:$0xff]  }
  0x60   : > { %1122 = vmatpush1.bf16.msra.mxu0 %v6241_v31  ;;  %1163 = vmatpush1.bf16.msra.mxu1 %v6244_v32  ;;  %v6324_v31 = vld [vmem:[%s8874_s1 + $0x468] ss:$16 sps:$4 sm:$0xff]   ;;  %v6329_v32 = vld [vmem:[%s8874_s1 + $0x484] ss:$16 sps:$4 sm:$0xff]  }
  0x61   : > { %1123 = vmatprep.subr.bf16.mxu0 %v6249_v33  ;;  %1164 = vmatprep.subr.bf16.mxu1 %v6252_v36  ;;  %v6332_v33 = vld [vmem:[%s8874_s1 + $0x48c] ss:$16 sps:$4 sm:$0xff]   ;;  %v6335_v36 = vld [vmem:[%s8874_s1 + $0x4a4] ss:$16 sps:$4 sm:$0xff]  }
  0x64   : > { %1124 = vmatpush1.bf16.msra.mxu0 %v6247_v38  ;;  %1165 = vmatpush1.bf16.msra.mxu1 %v6250_v39  ;;  %v6333_v38 = vld [vmem:[%s8874_s1 + $0x4a0] ss:$16 sps:$4 sm:$0xff]   ;;  %v6336_v39 = vld [vmem:[%s8874_s1 + $0x4a8] ss:$16 sps:$4 sm:$0xff]  }
  0x65   : > { %1125 = vmatprep.subr.bf16.mxu0 %v6255_v40  ;;  %1166 = vmatprep.subr.bf16.mxu1 %v6258_v42  ;;  %v6341_v40 = vld [vmem:[%s8874_s1 + $0x4c4] ss:$16 sps:$4 sm:$0xff]   ;;  %v6339_v42 = vld [vmem:[%s8874_s1 + $0x4c0] ss:$16 sps:$4 sm:$0xff]  }
  0x68   : > { %1126 = vmatpush1.bf16.msra.mxu0 %v6253_v43  ;;  %1167 = vmatpush1.bf16.msra.mxu1 %v6256_v44  ;;  %v6342_v43 = vld [vmem:[%s8874_s1 + $0x4c8] ss:$16 sps:$4 sm:$0xff]   ;;  %v6347_v44 = vld [vmem:[%s8874_s1 + $0x4e4] ss:$16 sps:$4 sm:$0xff]  }
  0x69   : > { %1127 = vmatprep.subr.bf16.mxu0 %v6261_v45  ;;  %1168 = vmatprep.subr.bf16.mxu1 %v6264_v47  ;;  %v6350_v45 = vld [vmem:[%s8874_s1 + $0x4ec] ss:$16 sps:$4 sm:$0xff]   ;;  %v6345_v47 = vld [vmem:[%s8874_s1 + $0x4e0] ss:$16 sps:$4 sm:$0xff]  }
  0x6c   : > { %1128 = vmatpush1.bf16.msra.mxu0 %v6259_v48  ;;  %1169 = vmatpush1.bf16.msra.mxu1 %v6262_v49  ;;  %v6348_v48 = vld [vmem:[%s8874_s1 + $0x4e8] ss:$16 sps:$4 sm:$0xff]   ;;  %v6353_v49 = vld [vmem:[%s8874_s1 + $0x504] ss:$16 sps:$4 sm:$0xff]  }
  0x6d   : > { %1129 = vmatprep.subr.bf16.mxu0 %v6267_v50  ;;  %1170 = vmatprep.subr.bf16.mxu1 %v6270_v51  ;;  %v6356_v50 = vld [vmem:[%s8874_s1 + $0x50c] ss:$16 sps:$4 sm:$0xff]   ;;  %v6351_v51 = vld [vmem:[%s8874_s1 + $0x500] ss:$16 sps:$4 sm:$0xff]  }
  0x70   : > { %1130 = vmatpush1.bf16.msra.mxu0 %v6265_v52  ;;  %1171 = vmatpush1.bf16.msra.mxu1 %v6268_v53  ;;  %v6354_v52 = vld [vmem:[%s8874_s1 + $0x508] ss:$16 sps:$4 sm:$0xff]   ;;  %v6359_v53 = vld [vmem:[%s8874_s1 + $0x524] ss:$16 sps:$4 sm:$0xff]  }
  0x71   : > { %1131 = vmatprep.subr.bf16.mxu0 %v6273_v54  ;;  %1172 = vmatprep.subr.bf16.mxu1 %v6276_v55  ;;  %v6362_v54 = vld [vmem:[%s8874_s1 + $0x52c] ss:$16 sps:$4 sm:$0xff]   ;;  %v6357_v55 = vld [vmem:[%s8874_s1 + $0x520] ss:$16 sps:$4 sm:$0xff]  }
  0x74   : > { %1132 = vmatpush1.bf16.msra.mxu0 %v6271_v56  ;;  %1173 = vmatpush1.bf16.msra.mxu1 %v6274_v57  ;;  %v6360_v56 = vld [vmem:[%s8874_s1 + $0x528] ss:$16 sps:$4 sm:$0xff]   ;;  %v6365_v57 = vld [vmem:[%s8874_s1 + $0x544] ss:$16 sps:$4 sm:$0xff]  }
  0x75   : > { %1133 = vmatprep.subr.bf16.mxu0 %v6279_v58  ;;  %1174 = vmatprep.subr.bf16.mxu1 %v6282_v59  ;;  %v6368_v58 = vld [vmem:[%s8874_s1 + $0x54c] ss:$16 sps:$4 sm:$0xff]   ;;  %v6363_v59 = vld [vmem:[%s8874_s1 + $0x540] ss:$16 sps:$4 sm:$0xff]  }
  0x78   : > { %1134 = vmatpush1.bf16.msra.mxu0 %v6277_v60  ;;  %1175 = vmatpush1.bf16.msra.mxu1 %v6280_v61  ;;  %v6366_v60 = vld [vmem:[%s8874_s1 + $0x548] ss:$16 sps:$4 sm:$0xff]   ;;  %v6371_v61 = vld [vmem:[%s8874_s1 + $0x564] ss:$16 sps:$4 sm:$0xff]  }
  0x79   : > { %1135 = vmatprep.subr.bf16.mxu0 %v6285_v62  ;;  %1176 = vmatprep.subr.bf16.mxu1 %v6288_v63  ;;  %v6374_v62 = vld [vmem:[%s8874_s1 + $0x56c] ss:$16 sps:$4 sm:$0xff]   ;;  %v6369_v63 = vld [vmem:[%s8874_s1 + $0x560] ss:$16 sps:$4 sm:$0xff]  }
  0x7c   : > { %1136 = vmatpush1.bf16.msra.mxu0 %v6283_v0  ;;  %1177 = vmatpush1.bf16.msra.mxu1 %v6286_v2  ;;  %v6372_v0 = vld [vmem:[%s8874_s1 + $0x568] ss:$16 sps:$4 sm:$0xff]   ;;  %v6380_v2 = vld [vmem:[%s8874_s1 + $0x58c] ss:$16 sps:$4 sm:$0xff]  }
  0x7d   : > { %1137 = vmatprep.subr.bf16.mxu0 %v6291_v3  ;;  %1178 = vmatprep.subr.bf16.mxu1 %v6294_v4  ;;  %v6375_v3 = vld [vmem:[%s8874_s1 + $0x580] ss:$16 sps:$4 sm:$0xff]   ;;  %v6378_v4 = vld [vmem:[%s8874_s1 + $0x588] ss:$16 sps:$4 sm:$0xff]  }
  0x80   : > { %1138 = vmatpush1.bf16.msra.mxu0 %v6289_v46  ;;  %1179 = vmatpush1.bf16.msra.mxu1 %v6292_v6  ;;  %v6383_v46 = vld [vmem:[%s8874_s1 + $0x5a4] ss:$16 sps:$4 sm:$0xff]   ;;  %v6381_v6 = vld [vmem:[%s8874_s1 + $0x5a0] ss:$16 sps:$4 sm:$0xff]  }
  0x81   : > { %1139 = vmatprep.subr.bf16.mxu0 %v6297_v7  ;;  %1180 = vmatprep.subr.bf16.mxu1 %v6300_v8  ;;  %v6384_v7 = vld [vmem:[%s8874_s1 + $0x5a8] ss:$16 sps:$4 sm:$0xff]   ;;  %v6389_v8 = vld [vmem:[%s8874_s1 + $0x5c4] ss:$16 sps:$4 sm:$0xff]  }
  0x84   : > { %1140 = vmatpush1.bf16.msra.mxu0 %v6295_v9  ;;  %1181 = vmatpush1.bf16.msra.mxu1 %v6298_v12  ;;  %v6392_v9 = vld [vmem:[%s8874_s1 + $0x5cc] ss:$16 sps:$4 sm:$0xff]   ;;  %v6395_v12 = vld [vmem:[%s8874_s1 + $0x5e4] ss:$16 sps:$4 sm:$0xff]  }
  0x85   : > { %1602 = vmatprep.subr.bf16.mxu0 %v6305_v13  ;;  %1643 = vmatprep.subr.bf16.mxu1 %v6308_v14  ;;  %v6398_v13 = vld [vmem:[%s8874_s1 + $0x5ec] ss:$16 sps:$4 sm:$0xff]   ;;  %v6393_v14 = vld [vmem:[%s8874_s1 + $0x5e0] ss:$16 sps:$4 sm:$0xff]  }
  0x87   : > { %1142 = vmatmul.mubr.bf16.vlgmr.msra.gmra.mrb[0].mxu0 %v779_v17  ;;  %1183 = vmatmul.mubr.bf16.vlgmr.msra.gmra.mrb[0].mxu1 %v779_v17  ;;  %v6404_v17 = vld [vmem:[%s8874_s1 + $0x604] ss:$16 sps:$4 sm:$0xff]  }
  0x88   : > { %1603 = vmatpush1.bf16.msra.mxu0 %v6303_v15  ;;  %1644 = vmatpush1.bf16.msra.mxu1 %v6306_v16  ;;  %v6399_v15 = vld [vmem:[%s7207_s11] ss:$8 sps:$4 sm:$0x1e]  }
  0x89   : > { %1604 = vmatprep.subr.bf16.mxu0 %v6311_v18  ;;  %1645 = vmatprep.subr.bf16.mxu1 %v6314_v19  ;;  %v6396_v16 = vld [vmem:[%s8874_s1 + $0x5e8] ss:$16 sps:$4 sm:$0xff]   ;;  %v6407_v18 = vld [vmem:[%s8874_s1 + $0x60c] ss:$16 sps:$4 sm:$0xff]   ;;  %v1278_v20 = vrot.slane %v6399_v15, 1 }
  0x8a   : > { %1634 = vmatprep.mubr.bf16.mxu0 %v1279_v24  ;;  %1675 = vmatprep.mubr.bf16.mxu1 %v1279_v24  ;;  %v6500_v19 = vld [vmem:[%s7207_s11 + $0x4] ss:$8 sps:$4 sm:$0x3c]   ;;  %v6486_v15 = vld [vmem:[%s8874_s1 + $0x7c0] ss:$16 sps:$4 sm:$0xff]  }
  0x8b   : > { %v6413_v24 = vld [vmem:[%s8874_s1 + $0x62c] ss:$16 sps:$4 sm:$0xff]  }
  0x8c   : > { %1605 = vmatpush1.bf16.msra.mxu0 %v6309_v21  ;;  %1646 = vmatpush1.bf16.msra.mxu1 %v6312_v22  ;;  %v6402_v21 = vld [vmem:[%s8874_s1 + $0x600] ss:$16 sps:$4 sm:$0xff]   ;;  %v6405_v22 = vld [vmem:[%s8874_s1 + $0x608] ss:$16 sps:$4 sm:$0xff]  }
  0x8d   : > { %1606 = vmatprep.subr.bf16.mxu0 %v6317_v23  ;;  %1647 = vmatprep.subr.bf16.mxu1 %v6320_v25  ;;  %v6410_v23 = vld [vmem:[%s8874_s1 + $0x624] ss:$16 sps:$4 sm:$0xff]   ;;  %v1772_v25 = vrot.slane %v6500_v19, 2 }
  0x90   : > { %1607 = vmatpush1.bf16.msra.mxu0 %v6315_v26  ;;  %1648 = vmatpush1.bf16.msra.mxu1 %v6318_v27  ;;  %v6408_v26 = vld [vmem:[%s8874_s1 + $0x620] ss:$16 sps:$4 sm:$0xff]   ;;  %v6411_v27 = vld [vmem:[%s8874_s1 + $0x628] ss:$16 sps:$4 sm:$0xff]  }
  0x91   : > { %1608 = vmatprep.subr.bf16.mxu0 %v6323_v28  ;;  %1649 = vmatprep.subr.bf16.mxu1 %v6326_v29  ;;  %v6416_v28 = vld [vmem:[%s8874_s1 + $0x644] ss:$16 sps:$4 sm:$0xff]   ;;  %v6419_v29 = vld [vmem:[%s8874_s1 + $0x64c] ss:$16 sps:$4 sm:$0xff]  }
  0x94   : > { %1609 = vmatpush1.bf16.msra.mxu0 %v6321_v30  ;;  %1650 = vmatpush1.bf16.msra.mxu1 %v6324_v31  ;;  %v6414_v30 = vld [vmem:[%s8874_s1 + $0x640] ss:$16 sps:$4 sm:$0xff]   ;;  %v6417_v31 = vld [vmem:[%s8874_s1 + $0x648] ss:$16 sps:$4 sm:$0xff]  }
  0x95   : > { %1610 = vmatprep.subr.bf16.mxu0 %v6329_v32  ;;  %1651 = vmatprep.subr.bf16.mxu1 %v6332_v33  ;;  %v6422_v32 = vld [vmem:[%s8874_s1 + $0x664] ss:$16 sps:$4 sm:$0xff]   ;;  %v6425_v33 = vld [vmem:[%s8874_s1 + $0x66c] ss:$16 sps:$4 sm:$0xff]  }
  0x98   : > { %1611 = vmatpush1.bf16.msra.mxu0 %v6327_v34  ;;  %1652 = vmatpush1.bf16.msra.mxu1 %v6330_v35  ;;  %v6420_v34 = vld [vmem:[%s8874_s1 + $0x660] ss:$16 sps:$4 sm:$0xff]   ;;  %v6423_v35 = vld [vmem:[%s8874_s1 + $0x668] ss:$16 sps:$4 sm:$0xff]  }
  0x99   : > { %1612 = vmatprep.subr.bf16.mxu0 %v6335_v36  ;;  %1653 = vmatprep.subr.bf16.mxu1 %v6338_v37  ;;  %v6428_v36 = vld [vmem:[%s8874_s1 + $0x684] ss:$16 sps:$4 sm:$0xff]   ;;  %v6431_v37 = vld [vmem:[%s8874_s1 + $0x68c] ss:$16 sps:$4 sm:$0xff]  }
  0x9c   : > { %1613 = vmatpush1.bf16.msra.mxu0 %v6333_v38  ;;  %1654 = vmatpush1.bf16.msra.mxu1 %v6336_v39  ;;  %v6426_v38 = vld [vmem:[%s8874_s1 + $0x680] ss:$16 sps:$4 sm:$0xff]   ;;  %v6429_v39 = vld [vmem:[%s8874_s1 + $0x688] ss:$16 sps:$4 sm:$0xff]  }
  0x9d   : > { %1614 = vmatprep.subr.bf16.mxu0 %v6341_v40  ;;  %1655 = vmatprep.subr.bf16.mxu1 %v6344_v41  ;;  %v6434_v40 = vld [vmem:[%s8874_s1 + $0x6a4] ss:$16 sps:$4 sm:$0xff]   ;;  %v6437_v41 = vld [vmem:[%s8874_s1 + $0x6ac] ss:$16 sps:$4 sm:$0xff]  }
  0xa0   : > { %1615 = vmatpush1.bf16.msra.mxu0 %v6339_v42  ;;  %1656 = vmatpush1.bf16.msra.mxu1 %v6342_v43  ;;  %v6432_v42 = vld [vmem:[%s8874_s1 + $0x6a0] ss:$16 sps:$4 sm:$0xff]   ;;  %v6435_v43 = vld [vmem:[%s8874_s1 + $0x6a8] ss:$16 sps:$4 sm:$0xff]  }
  0xa1   : > { %1616 = vmatprep.subr.bf16.mxu0 %v6347_v44  ;;  %1657 = vmatprep.subr.bf16.mxu1 %v6350_v45  ;;  %v6440_v44 = vld [vmem:[%s8874_s1 + $0x6c4] ss:$16 sps:$4 sm:$0xff]   ;;  %v6443_v45 = vld [vmem:[%s8874_s1 + $0x6cc] ss:$16 sps:$4 sm:$0xff]  }
  0xa4   : > { %1617 = vmatpush1.bf16.msra.mxu0 %v6345_v47  ;;  %1658 = vmatpush1.bf16.msra.mxu1 %v6348_v48  ;;  %v6438_v47 = vld [vmem:[%s8874_s1 + $0x6c0] ss:$16 sps:$4 sm:$0xff]   ;;  %v6441_v48 = vld [vmem:[%s8874_s1 + $0x6c8] ss:$16 sps:$4 sm:$0xff]  }
  0xa5   : > { %1618 = vmatprep.subr.bf16.mxu0 %v6353_v49  ;;  %1659 = vmatprep.subr.bf16.mxu1 %v6356_v50  ;;  %v6446_v49 = vld [vmem:[%s8874_s1 + $0x6e4] ss:$16 sps:$4 sm:$0xff]   ;;  %v6449_v50 = vld [vmem:[%s8874_s1 + $0x6ec] ss:$16 sps:$4 sm:$0xff]  }
  0xa8   : > { %1619 = vmatpush1.bf16.msra.mxu0 %v6351_v51  ;;  %1660 = vmatpush1.bf16.msra.mxu1 %v6354_v52  ;;  %v6444_v51 = vld [vmem:[%s8874_s1 + $0x6e0] ss:$16 sps:$4 sm:$0xff]   ;;  %v6447_v52 = vld [vmem:[%s8874_s1 + $0x6e8] ss:$16 sps:$4 sm:$0xff]  }
  0xa9   : > { %1620 = vmatprep.subr.bf16.mxu0 %v6359_v53  ;;  %1661 = vmatprep.subr.bf16.mxu1 %v6362_v54  ;;  %v6452_v53 = vld [vmem:[%s8874_s1 + $0x704] ss:$16 sps:$4 sm:$0xff]   ;;  %v6455_v54 = vld [vmem:[%s8874_s1 + $0x70c] ss:$16 sps:$4 sm:$0xff]  }
  0xac   : > { %1621 = vmatpush1.bf16.msra.mxu0 %v6357_v55  ;;  %1662 = vmatpush1.bf16.msra.mxu1 %v6360_v56  ;;  %v6450_v55 = vld [vmem:[%s8874_s1 + $0x700] ss:$16 sps:$4 sm:$0xff]   ;;  %v6453_v56 = vld [vmem:[%s8874_s1 + $0x708] ss:$16 sps:$4 sm:$0xff]  }
  0xad   : > { %1622 = vmatprep.subr.bf16.mxu0 %v6365_v57  ;;  %1663 = vmatprep.subr.bf16.mxu1 %v6368_v58  ;;  %v6458_v57 = vld [vmem:[%s8874_s1 + $0x724] ss:$16 sps:$4 sm:$0xff]   ;;  %v6461_v58 = vld [vmem:[%s8874_s1 + $0x72c] ss:$16 sps:$4 sm:$0xff]  }
  0xb0   : > { %1623 = vmatpush1.bf16.msra.mxu0 %v6363_v59  ;;  %1664 = vmatpush1.bf16.msra.mxu1 %v6366_v60  ;;  %v6456_v59 = vld [vmem:[%s8874_s1 + $0x720] ss:$16 sps:$4 sm:$0xff]   ;;  %v6459_v60 = vld [vmem:[%s8874_s1 + $0x728] ss:$16 sps:$4 sm:$0xff]  }
  0xb1   : > { %1624 = vmatprep.subr.bf16.mxu0 %v6371_v61  ;;  %1665 = vmatprep.subr.bf16.mxu1 %v6374_v62  ;;  %v6464_v61 = vld [vmem:[%s8874_s1 + $0x744] ss:$16 sps:$4 sm:$0xff]   ;;  %v6467_v62 = vld [vmem:[%s8874_s1 + $0x74c] ss:$16 sps:$4 sm:$0xff]  }
  0xb4   : > { %1625 = vmatpush1.bf16.msra.mxu0 %v6369_v63  ;;  %1666 = vmatpush1.bf16.msra.mxu1 %v6372_v0  ;;  %v6462_v63 = vld [vmem:[%s8874_s1 + $0x740] ss:$16 sps:$4 sm:$0xff]   ;;  %v6465_v0 = vld [vmem:[%s8874_s1 + $0x748] ss:$16 sps:$4 sm:$0xff]  }
  0xb5   : > { %1626 = vmatprep.subr.bf16.mxu0 %v6377_v1  ;;  %1667 = vmatprep.subr.bf16.mxu1 %v6380_v2  ;;  %v6470_v1 = vld [vmem:[%s8874_s1 + $0x764] ss:$16 sps:$4 sm:$0xff]   ;;  %v6473_v2 = vld [vmem:[%s8874_s1 + $0x76c] ss:$16 sps:$4 sm:$0xff]  }
  0xb8   : > { %1627 = vmatpush1.bf16.msra.mxu0 %v6375_v3  ;;  %1668 = vmatpush1.bf16.msra.mxu1 %v6378_v4  ;;  %v6468_v3 = vld [vmem:[%s8874_s1 + $0x760] ss:$16 sps:$4 sm:$0xff]   ;;  %v6471_v4 = vld [vmem:[%s8874_s1 + $0x768] ss:$16 sps:$4 sm:$0xff]  }
  0xb9   : > { %1628 = vmatprep.subr.bf16.mxu0 %v6383_v46  ;;  %1669 = vmatprep.subr.bf16.mxu1 %v6386_v5  ;;  %v6476_v46 = vld [vmem:[%s8874_s1 + $0x784] ss:$16 sps:$4 sm:$0xff]   ;;  %v6479_v5 = vld [vmem:[%s8874_s1 + $0x78c] ss:$16 sps:$4 sm:$0xff]  }
  0xbc   : > { %1629 = vmatpush1.bf16.msra.mxu0 %v6381_v6  ;;  %1670 = vmatpush1.bf16.msra.mxu1 %v6384_v7  ;;  %v6474_v6 = vld [vmem:[%s8874_s1 + $0x780] ss:$16 sps:$4 sm:$0xff]   ;;  %v6477_v7 = vld [vmem:[%s8874_s1 + $0x788] ss:$16 sps:$4 sm:$0xff]  }
  0xbd   : > { %1630 = vmatprep.subr.bf16.mxu0 %v6389_v8  ;;  %1671 = vmatprep.subr.bf16.mxu1 %v6392_v9  ;;  %v6482_v8 = vld [vmem:[%s8874_s1 + $0x7a4] ss:$16 sps:$4 sm:$0xff]   ;;  %v6485_v9 = vld [vmem:[%s8874_s1 + $0x7ac] ss:$16 sps:$4 sm:$0xff]  }
  0xc0   : > { %1631 = vmatpush1.bf16.msra.mxu0 %v6387_v10  ;;  %1672 = vmatpush1.bf16.msra.mxu1 %v6390_v11  ;;  %v6480_v10 = vld [vmem:[%s8874_s1 + $0x7a0] ss:$16 sps:$4 sm:$0xff]   ;;  %v6483_v11 = vld [vmem:[%s8874_s1 + $0x7a8] ss:$16 sps:$4 sm:$0xff]  }
  0xc1   : > { %1632 = vmatprep.subr.bf16.mxu0 %v6395_v12  ;;  %1673 = vmatprep.subr.bf16.mxu1 %v6398_v13  ;;  %v6488_v12 = vld [vmem:[%s8874_s1 + $0x7c4] ss:$16 sps:$4 sm:$0xff]   ;;  %v6491_v13 = vld [vmem:[%s8874_s1 + $0x7cc] ss:$16 sps:$4 sm:$0xff]  }
  0xc4   : > { %1633 = vmatpush1.bf16.msra.mxu0 %v6393_v14  ;;  %1674 = vmatpush1.bf16.msra.mxu1 %v6396_v16  ;;  %v6599_v14 = vld [vmem:[%s7207_s11 + $0x4] ss:$8 sps:$4 sm:$0x7c]   ;;  %v6489_v16 = vld [vmem:[%s8874_s1 + $0x7c8] ss:$16 sps:$4 sm:$0xff]  }
  0xc5   : > { %2095 = vmatprep.subr.bf16.mxu0 %v6404_v17  ;;  %2136 = vmatprep.subr.bf16.mxu1 %v6407_v18  ;;  %v6494_v17 = vld [vmem:[%s8874_s1 + $0x7e4] ss:$16 sps:$4 sm:$0xff]   ;;  %v6497_v18 = vld [vmem:[%s8874_s1 + $0x7ec] ss:$16 sps:$4 sm:$0xff]   ;;  %v2273_v19 = vshrl.u32 %v6599_v14, 16 }
  0xc7   : > { %1635 = vmatmul.mubr.bf16.vlgmr.msra.gmra.mrb[0].mxu0 %v1278_v20  ;;  %1676 = vmatmul.mubr.bf16.vlgmr.msra.gmra.mrb[0].mxu1 %v1278_v20  ;;  %v2276_v20 = vshll.u32 %v6599_v14, 16  ;;  %v6573_v14 = vld [vmem:[%s8874_s1 + $0x980] ss:$16 sps:$4 sm:$0xff]  }
  0xc8   : > { %2096 = vmatpush1.bf16.msra.mxu0 %v6402_v21  ;;  %2137 = vmatpush1.bf16.msra.mxu1 %v6405_v22  ;;  %v6498_v21 = vld [vmem:[%s7207_s11] ss:$8 sps:$4 sm:$0x3c]  }
  0xc9   : > { %2097 = vmatprep.subr.bf16.mxu0 %v6410_v23  ;;  %2138 = vmatprep.subr.bf16.mxu1 %v6413_v24  ;;  %v6492_v22 = vld [vmem:[%s8874_s1 + $0x7e0] ss:$16 sps:$4 sm:$0xff]   ;;  %v6495_v23 = vld [vmem:[%s8874_s1 + $0x7e8] ss:$16 sps:$4 sm:$0xff]   ;;  %v6503_v24 = vld [vmem:[%s8874_s1 + $0x804] ss:$16 sps:$4 sm:$0xff]  }
  0xca   : > { %2127 = vmatprep.mubr.bf16.mxu0 %v1772_v25  ;;  %2168 = vmatprep.mubr.bf16.mxu1 %v1772_v25  ;;  %v6506_v25 = vld [vmem:[%s8874_s1 + $0x80c] ss:$16 sps:$4 sm:$0xff]  }
  0xcc   : > { %2098 = vmatpush1.bf16.msra.mxu0 %v6408_v26  ;;  %2139 = vmatpush1.bf16.msra.mxu1 %v6411_v27  ;;  %v2275_v26 = vrot.slane %v2273_v19, 2  ;;  %v2278_v27 = vrot.slane %v2276_v20, 3  ;;  %v6579_v19 = vld [vmem:[%s8874_s1 + $0x9a0] ss:$16 sps:$4 sm:$0xff]   ;;  %v6582_v20 = vld [vmem:[%s8874_s1 + $0x9a8] ss:$16 sps:$4 sm:$0xff]  }
  0xcd   : > { %2099 = vmatprep.subr.bf16.mxu0 %v6416_v28  ;;  %2140 = vmatprep.subr.bf16.mxu1 %v6419_v29  ;;  %v1771_v28 = vrot.slane %v6498_v21, 2  ;;  %v6501_v29 = vld [vmem:[%s8874_s1 + $0x800] ss:$16 sps:$4 sm:$0xff]   ;;  %v6587_v21 = vld [vmem:[%s8874_s1 + $0x9c4] ss:$16 sps:$4 sm:$0xff]  }
  0xd0   : > { %2100 = vmatpush1.bf16.msra.mxu0 %v6414_v30  ;;  %2141 = vmatpush1.bf16.msra.mxu1 %v6417_v31  ;;  %v6504_v30 = vld [vmem:[%s8874_s1 + $0x808] ss:$16 sps:$4 sm:$0xff]   ;;  %v6509_v31 = vld [vmem:[%s8874_s1 + $0x824] ss:$16 sps:$4 sm:$0xff]  }
  0xd1   : > { %2101 = vmatprep.subr.bf16.mxu0 %v6422_v32  ;;  %2142 = vmatprep.subr.bf16.mxu1 %v6425_v33  ;;  %v6512_v32 = vld [vmem:[%s8874_s1 + $0x82c] ss:$16 sps:$4 sm:$0xff]   ;;  %v2279_v33 = vor.u32 %v2278_v27, %v2275_v26  ;;  %v6588_v26 = vld [vmem:[%s8874_s1 + $0x9c8] ss:$16 sps:$4 sm:$0xff]   ;;  %v6593_v27 = vld [vmem:[%s8874_s1 + $0x9e4] ss:$16 sps:$4 sm:$0xff]  }
  0xd4   : > { %2102 = vmatpush1.bf16.msra.mxu0 %v6420_v34  ;;  %2143 = vmatpush1.bf16.msra.mxu1 %v6423_v35  ;;  %v6507_v34 = vld [vmem:[%s8874_s1 + $0x820] ss:$16 sps:$4 sm:$0xff]   ;;  %v6510_v35 = vld [vmem:[%s8874_s1 + $0x828] ss:$16 sps:$4 sm:$0xff]  }
  0xd5   : > { %2103 = vmatprep.subr.bf16.mxu0 %v6428_v36  ;;  %2144 = vmatprep.subr.bf16.mxu1 %v6431_v37  ;;  %v6515_v36 = vld [vmem:[%s8874_s1 + $0x844] ss:$16 sps:$4 sm:$0xff]   ;;  %v6518_v37 = vld [vmem:[%s8874_s1 + $0x84c] ss:$16 sps:$4 sm:$0xff]  }
  0xd8   : > { %2104 = vmatpush1.bf16.msra.mxu0 %v6426_v38  ;;  %2145 = vmatpush1.bf16.msra.mxu1 %v6429_v39  ;;  %v6513_v38 = vld [vmem:[%s8874_s1 + $0x840] ss:$16 sps:$4 sm:$0xff]   ;;  %v6516_v39 = vld [vmem:[%s8874_s1 + $0x848] ss:$16 sps:$4 sm:$0xff]  }
  0xd9   : > { %2105 = vmatprep.subr.bf16.mxu0 %v6434_v40  ;;  %2146 = vmatprep.subr.bf16.mxu1 %v6437_v41  ;;  %v6521_v40 = vld [vmem:[%s8874_s1 + $0x864] ss:$16 sps:$4 sm:$0xff]   ;;  %v6524_v41 = vld [vmem:[%s8874_s1 + $0x86c] ss:$16 sps:$4 sm:$0xff]  }
  0xdc   : > { %2106 = vmatpush1.bf16.msra.mxu0 %v6432_v42  ;;  %2147 = vmatpush1.bf16.msra.mxu1 %v6435_v43  ;;  %v6519_v42 = vld [vmem:[%s8874_s1 + $0x860] ss:$16 sps:$4 sm:$0xff]   ;;  %v6522_v43 = vld [vmem:[%s8874_s1 + $0x868] ss:$16 sps:$4 sm:$0xff]  }
  0xdd   : > { %2107 = vmatprep.subr.bf16.mxu0 %v6440_v44  ;;  %2148 = vmatprep.subr.bf16.mxu1 %v6443_v45  ;;  %v6527_v44 = vld [vmem:[%s8874_s1 + $0x884] ss:$16 sps:$4 sm:$0xff]   ;;  %v6530_v45 = vld [vmem:[%s8874_s1 + $0x88c] ss:$16 sps:$4 sm:$0xff]  }
  0xe0   : > { %2108 = vmatpush1.bf16.msra.mxu0 %v6438_v47  ;;  %2149 = vmatpush1.bf16.msra.mxu1 %v6441_v48  ;;  %v6525_v47 = vld [vmem:[%s8874_s1 + $0x880] ss:$16 sps:$4 sm:$0xff]   ;;  %v6528_v48 = vld [vmem:[%s8874_s1 + $0x888] ss:$16 sps:$4 sm:$0xff]  }
  0xe1   : > { %2109 = vmatprep.subr.bf16.mxu0 %v6446_v49  ;;  %2150 = vmatprep.subr.bf16.mxu1 %v6449_v50  ;;  %v6533_v49 = vld [vmem:[%s8874_s1 + $0x8a4] ss:$16 sps:$4 sm:$0xff]   ;;  %v6536_v50 = vld [vmem:[%s8874_s1 + $0x8ac] ss:$16 sps:$4 sm:$0xff]  }
  0xe4   : > { %2110 = vmatpush1.bf16.msra.mxu0 %v6444_v51  ;;  %2151 = vmatpush1.bf16.msra.mxu1 %v6447_v52  ;;  %v6531_v51 = vld [vmem:[%s8874_s1 + $0x8a0] ss:$16 sps:$4 sm:$0xff]   ;;  %v6534_v52 = vld [vmem:[%s8874_s1 + $0x8a8] ss:$16 sps:$4 sm:$0xff]  }
  0xe5   : > { %2111 = vmatprep.subr.bf16.mxu0 %v6452_v53  ;;  %2152 = vmatprep.subr.bf16.mxu1 %v6455_v54  ;;  %v6539_v53 = vld [vmem:[%s8874_s1 + $0x8c4] ss:$16 sps:$4 sm:$0xff]   ;;  %v6542_v54 = vld [vmem:[%s8874_s1 + $0x8cc] ss:$16 sps:$4 sm:$0xff]  }
  0xe8   : > { %2112 = vmatpush1.bf16.msra.mxu0 %v6450_v55  ;;  %2153 = vmatpush1.bf16.msra.mxu1 %v6453_v56  ;;  %v6537_v55 = vld [vmem:[%s8874_s1 + $0x8c0] ss:$16 sps:$4 sm:$0xff]   ;;  %v6540_v56 = vld [vmem:[%s8874_s1 + $0x8c8] ss:$16 sps:$4 sm:$0xff]  }
  0xe9   : > { %2113 = vmatprep.subr.bf16.mxu0 %v6458_v57  ;;  %2154 = vmatprep.subr.bf16.mxu1 %v6461_v58  ;;  %v6545_v57 = vld [vmem:[%s8874_s1 + $0x8e4] ss:$16 sps:$4 sm:$0xff]   ;;  %v6548_v58 = vld [vmem:[%s8874_s1 + $0x8ec] ss:$16 sps:$4 sm:$0xff]  }
  0xec   : > { %2114 = vmatpush1.bf16.msra.mxu0 %v6456_v59  ;;  %2155 = vmatpush1.bf16.msra.mxu1 %v6459_v60  ;;  %v6543_v59 = vld [vmem:[%s8874_s1 + $0x8e0] ss:$16 sps:$4 sm:$0xff]   ;;  %v6546_v60 = vld [vmem:[%s8874_s1 + $0x8e8] ss:$16 sps:$4 sm:$0xff]  }
  0xed   : > { %2115 = vmatprep.subr.bf16.mxu0 %v6464_v61  ;;  %2156 = vmatprep.subr.bf16.mxu1 %v6467_v62  ;;  %v6551_v61 = vld [vmem:[%s8874_s1 + $0x904] ss:$16 sps:$4 sm:$0xff]   ;;  %v6554_v62 = vld [vmem:[%s8874_s1 + $0x90c] ss:$16 sps:$4 sm:$0xff]  }
  0xf0   : > { %2116 = vmatpush1.bf16.msra.mxu0 %v6462_v63  ;;  %2157 = vmatpush1.bf16.msra.mxu1 %v6465_v0  ;;  %v6549_v63 = vld [vmem:[%s8874_s1 + $0x900] ss:$16 sps:$4 sm:$0xff]   ;;  %v6552_v0 = vld [vmem:[%s8874_s1 + $0x908] ss:$16 sps:$4 sm:$0xff]  }
  0xf1   : > { %2117 = vmatprep.subr.bf16.mxu0 %v6470_v1  ;;  %2158 = vmatprep.subr.bf16.mxu1 %v6473_v2  ;;  %v6557_v1 = vld [vmem:[%s8874_s1 + $0x924] ss:$16 sps:$4 sm:$0xff]   ;;  %v6560_v2 = vld [vmem:[%s8874_s1 + $0x92c] ss:$16 sps:$4 sm:$0xff]  }
  0xf4   : > { %2118 = vmatpush1.bf16.msra.mxu0 %v6468_v3  ;;  %2159 = vmatpush1.bf16.msra.mxu1 %v6471_v4  ;;  %v6555_v3 = vld [vmem:[%s8874_s1 + $0x920] ss:$16 sps:$4 sm:$0xff]   ;;  %v6558_v4 = vld [vmem:[%s8874_s1 + $0x928] ss:$16 sps:$4 sm:$0xff]  }
  0xf5   : > { %2119 = vmatprep.subr.bf16.mxu0 %v6476_v46  ;;  %2160 = vmatprep.subr.bf16.mxu1 %v6479_v5  ;;  %v6563_v46 = vld [vmem:[%s8874_s1 + $0x944] ss:$16 sps:$4 sm:$0xff]   ;;  %v6566_v5 = vld [vmem:[%s8874_s1 + $0x94c] ss:$16 sps:$4 sm:$0xff]  }
  0xf8   : > { %2120 = vmatpush1.bf16.msra.mxu0 %v6474_v6  ;;  %2161 = vmatpush1.bf16.msra.mxu1 %v6477_v7  ;;  %v6561_v6 = vld [vmem:[%s8874_s1 + $0x940] ss:$16 sps:$4 sm:$0xff]   ;;  %v6564_v7 = vld [vmem:[%s8874_s1 + $0x948] ss:$16 sps:$4 sm:$0xff]  }
  0xf9   : > { %2121 = vmatprep.subr.bf16.mxu0 %v6482_v8  ;;  %2162 = vmatprep.subr.bf16.mxu1 %v6485_v9  ;;  %v6569_v8 = vld [vmem:[%s8874_s1 + $0x964] ss:$16 sps:$4 sm:$0xff]   ;;  %v6572_v9 = vld [vmem:[%s8874_s1 + $0x96c] ss:$16 sps:$4 sm:$0xff]  }
  0xfc   : > { %2122 = vmatpush1.bf16.msra.mxu0 %v6480_v10  ;;  %2163 = vmatpush1.bf16.msra.mxu1 %v6483_v11  ;;  %v6567_v10 = vld [vmem:[%s8874_s1 + $0x960] ss:$16 sps:$4 sm:$0xff]   ;;  %v6570_v11 = vld [vmem:[%s8874_s1 + $0x968] ss:$16 sps:$4 sm:$0xff]  }
  0xfd   : > { %2123 = vmatprep.subr.bf16.mxu0 %v6488_v12  ;;  %2164 = vmatprep.subr.bf16.mxu1 %v6491_v13  ;;  %v6575_v12 = vld [vmem:[%s8874_s1 + $0x984] ss:$16 sps:$4 sm:$0xff]   ;;  %v6578_v13 = vld [vmem:[%s8874_s1 + $0x98c] ss:$16 sps:$4 sm:$0xff]  }
 0x100   : > { %2124 = vmatpush1.bf16.msra.mxu0 %v6486_v15  ;;  %2165 = vmatpush1.bf16.msra.mxu1 %v6489_v16  ;;  %v6576_v15 = vld [vmem:[%s8874_s1 + $0x988] ss:$16 sps:$4 sm:$0xff]   ;;  %v6581_v16 = vld [vmem:[%s8874_s1 + $0x9a4] ss:$16 sps:$4 sm:$0xff]  }
 0x101   : > { %2125 = vmatprep.subr.bf16.mxu0 %v6494_v17  ;;  %2166 = vmatprep.subr.bf16.mxu1 %v6497_v18  ;;  %v6584_v17 = vld [vmem:[%s8874_s1 + $0x9ac] ss:$16 sps:$4 sm:$0xff]   ;;  %v6597_v18 = vld [vmem:[%s7207_s11] ss:$8 sps:$4 sm:$0x7c]  }
 0x104   : > { %2126 = vmatpush1.bf16.msra.mxu0 %v6492_v22  ;;  %2167 = vmatpush1.bf16.msra.mxu1 %v6495_v23  ;;  %v6590_v22 = vld [vmem:[%s8874_s1 + $0x9cc] ss:$16 sps:$4 sm:$0xff]   ;;  %v2265_v23 = vshrl.u32 %v6597_v18, 16 }
 0x105   : > { %2602 = vmatprep.subr.bf16.mxu0 %v6503_v24  ;;  %2643 = vmatprep.subr.bf16.mxu1 %v6506_v25  ;;  %v2268_v24 = vshll.u32 %v6597_v18, 16  ;;  %v6585_v25 = vld [vmem:[%s8874_s1 + $0x9c0] ss:$16 sps:$4 sm:$0xff]  }
 0x106   : > { %v6666_v18 = vld [vmem:[%s8874_s1 + $0xb60] ss:$16 sps:$4 sm:$0xff]  }
 0x107   : > { %2128 = vmatmul.mubr.bf16.vlgmr.msra.gmra.mrb[0].mxu0 %v1771_v28  ;;  %2169 = vmatmul.mubr.bf16.vlgmr.msra.gmra.mrb[0].mxu1 %v1771_v28  ;;  %v6596_v28 = vld [vmem:[%s8874_s1 + $0x9ec] ss:$16 sps:$4 sm:$0xff]  }
 0x108   : > { %2603 = vmatpush1.bf16.msra.mxu0 %v6501_v29  ;;  %2644 = vmatpush1.bf16.msra.mxu1 %v6504_v30  ;;  %v6591_v29 = vld [vmem:[%s8874_s1 + $0x9e0] ss:$16 sps:$4 sm:$0xff]   ;;  %v2267_v30 = vrot.slane %v2265_v23, 2  ;;  %v6675_v23 = vld [vmem:[%s8874_s1 + $0xb88] ss:$16 sps:$4 sm:$0xff]  }
 0x109   : > { %2604 = vmatprep.subr.bf16.mxu0 %v6509_v31  ;;  %2645 = vmatprep.subr.bf16.mxu1 %v6512_v32  ;;  %v2270_v31 = vrot.slane %v2268_v24, 3  ;;  %v6594_v32 = vld [vmem:[%s8874_s1 + $0x9e8] ss:$16 sps:$4 sm:$0xff]   ;;  %v6680_v24 = vld [vmem:[%s8874_s1 + $0xba4] ss:$16 sps:$4 sm:$0xff]  }
 0x10a   : > { %2634 = vmatprep.mubr.bf16.mxu0 %v2279_v33  ;;  %2675 = vmatprep.mubr.bf16.mxu1 %v2279_v33  ;;  %v6602_v33 = vld [vmem:[%s8874_s1 + $0xa04] ss:$16 sps:$4 sm:$0xff]  }
 0x10c   : > { %2605 = vmatpush1.bf16.msra.mxu0 %v6507_v34  ;;  %2646 = vmatpush1.bf16.msra.mxu1 %v6510_v35  ;;  %v6605_v34 = vld [vmem:[%s8874_s1 + $0xa0c] ss:$16 sps:$4 sm:$0xff]  }
 0x10d   : > { %2606 = vmatprep.subr.bf16.mxu0 %v6515_v36  ;;  %2647 = vmatprep.subr.bf16.mxu1 %v6518_v37  ;;  %v6698_v35 = vld [vmem:[%s7207_s11 + $0x4] ss:$8 sps:$4 sm:$0x78]   ;;  %v2271_v36 = vor.u32 %v2270_v31, %v2267_v30  ;;  %v6600_v37 = vld [vmem:[%s8874_s1 + $0xa00] ss:$16 sps:$4 sm:$0xff]  }
 0x10e   : > { %v6684_v30 = vld [vmem:[%s8874_s1 + $0xbc0] ss:$16 sps:$4 sm:$0xff]   ;;  %v6687_v31 = vld [vmem:[%s8874_s1 + $0xbc8] ss:$16 sps:$4 sm:$0xff]  }
 0x110   : > { %2607 = vmatpush1.bf16.msra.mxu0 %v6513_v38  ;;  %2648 = vmatpush1.bf16.msra.mxu1 %v6516_v39  ;;  %v6603_v38 = vld [vmem:[%s8874_s1 + $0xa08] ss:$16 sps:$4 sm:$0xff]   ;;  %v6608_v39 = vld [vmem:[%s8874_s1 + $0xa24] ss:$16 sps:$4 sm:$0xff]  }
 0x111   : > { %2608 = vmatprep.subr.bf16.mxu0 %v6521_v40  ;;  %2649 = vmatprep.subr.bf16.mxu1 %v6524_v41  ;;  %v6611_v40 = vld [vmem:[%s8874_s1 + $0xa2c] ss:$16 sps:$4 sm:$0xff]   ;;  %v2772_v41 = vrot.slane %v6698_v35, 3  ;;  %v6690_v35 = vld [vmem:[%s8874_s1 + $0xbe0] ss:$16 sps:$4 sm:$0xff]  }
 0x114   : > { %2609 = vmatpush1.bf16.msra.mxu0 %v6519_v42  ;;  %2650 = vmatpush1.bf16.msra.mxu1 %v6522_v43  ;;  %v6606_v42 = vld [vmem:[%s8874_s1 + $0xa20] ss:$16 sps:$4 sm:$0xff]   ;;  %v6609_v43 = vld [vmem:[%s8874_s1 + $0xa28] ss:$16 sps:$4 sm:$0xff]  }
 0x115   : > { %2610 = vmatprep.subr.bf16.mxu0 %v6527_v44  ;;  %2651 = vmatprep.subr.bf16.mxu1 %v6530_v45  ;;  %v6614_v44 = vld [vmem:[%s8874_s1 + $0xa44] ss:$16 sps:$4 sm:$0xff]   ;;  %v6617_v45 = vld [vmem:[%s8874_s1 + $0xa4c] ss:$16 sps:$4 sm:$0xff]  }
 0x118   : > { %2611 = vmatpush1.bf16.msra.mxu0 %v6525_v47  ;;  %2652 = vmatpush1.bf16.msra.mxu1 %v6528_v48  ;;  %v6612_v47 = vld [vmem:[%s8874_s1 + $0xa40] ss:$16 sps:$4 sm:$0xff]   ;;  %v6615_v48 = vld [vmem:[%s8874_s1 + $0xa48] ss:$16 sps:$4 sm:$0xff]  }
 0x119   : > { %2612 = vmatprep.subr.bf16.mxu0 %v6533_v49  ;;  %2653 = vmatprep.subr.bf16.mxu1 %v6536_v50  ;;  %v6620_v49 = vld [vmem:[%s8874_s1 + $0xa64] ss:$16 sps:$4 sm:$0xff]   ;;  %v6623_v50 = vld [vmem:[%s8874_s1 + $0xa6c] ss:$16 sps:$4 sm:$0xff]  }
 0x11c   : > { %2613 = vmatpush1.bf16.msra.mxu0 %v6531_v51  ;;  %2654 = vmatpush1.bf16.msra.mxu1 %v6534_v52  ;;  %v6618_v51 = vld [vmem:[%s8874_s1 + $0xa60] ss:$16 sps:$4 sm:$0xff]   ;;  %v6621_v52 = vld [vmem:[%s8874_s1 + $0xa68] ss:$16 sps:$4 sm:$0xff]  }
 0x11d   : > { %2614 = vmatprep.subr.bf16.mxu0 %v6539_v53  ;;  %2655 = vmatprep.subr.bf16.mxu1 %v6542_v54  ;;  %v6626_v53 = vld [vmem:[%s8874_s1 + $0xa84] ss:$16 sps:$4 sm:$0xff]   ;;  %v6629_v54 = vld [vmem:[%s8874_s1 + $0xa8c] ss:$16 sps:$4 sm:$0xff]  }
 0x120   : > { %2615 = vmatpush1.bf16.msra.mxu0 %v6537_v55  ;;  %2656 = vmatpush1.bf16.msra.mxu1 %v6540_v56  ;;  %v6624_v55 = vld [vmem:[%s8874_s1 + $0xa80] ss:$16 sps:$4 sm:$0xff]   ;;  %v6627_v56 = vld [vmem:[%s8874_s1 + $0xa88] ss:$16 sps:$4 sm:$0xff]  }
 0x121   : > { %2616 = vmatprep.subr.bf16.mxu0 %v6545_v57  ;;  %2657 = vmatprep.subr.bf16.mxu1 %v6548_v58  ;;  %v6632_v57 = vld [vmem:[%s8874_s1 + $0xaa4] ss:$16 sps:$4 sm:$0xff]   ;;  %v6635_v58 = vld [vmem:[%s8874_s1 + $0xaac] ss:$16 sps:$4 sm:$0xff]  }
 0x124   : > { %2617 = vmatpush1.bf16.msra.mxu0 %v6543_v59  ;;  %2658 = vmatpush1.bf16.msra.mxu1 %v6546_v60  ;;  %v6630_v59 = vld [vmem:[%s8874_s1 + $0xaa0] ss:$16 sps:$4 sm:$0xff]   ;;  %v6633_v60 = vld [vmem:[%s8874_s1 + $0xaa8] ss:$16 sps:$4 sm:$0xff]  }
 0x125   : > { %2618 = vmatprep.subr.bf16.mxu0 %v6551_v61  ;;  %2659 = vmatprep.subr.bf16.mxu1 %v6554_v62  ;;  %v6638_v61 = vld [vmem:[%s8874_s1 + $0xac4] ss:$16 sps:$4 sm:$0xff]   ;;  %v6641_v62 = vld [vmem:[%s8874_s1 + $0xacc] ss:$16 sps:$4 sm:$0xff]  }
 0x128   : > { %2619 = vmatpush1.bf16.msra.mxu0 %v6549_v63  ;;  %2660 = vmatpush1.bf16.msra.mxu1 %v6552_v0  ;;  %v6636_v63 = vld [vmem:[%s8874_s1 + $0xac0] ss:$16 sps:$4 sm:$0xff]   ;;  %v6639_v0 = vld [vmem:[%s8874_s1 + $0xac8] ss:$16 sps:$4 sm:$0xff]  }
 0x129   : > { %2620 = vmatprep.subr.bf16.mxu0 %v6557_v1  ;;  %2661 = vmatprep.subr.bf16.mxu1 %v6560_v2  ;;  %v6644_v1 = vld [vmem:[%s8874_s1 + $0xae4] ss:$16 sps:$4 sm:$0xff]   ;;  %v6647_v2 = vld [vmem:[%s8874_s1 + $0xaec] ss:$16 sps:$4 sm:$0xff]  }
 0x12c   : > { %2621 = vmatpush1.bf16.msra.mxu0 %v6555_v3  ;;  %2662 = vmatpush1.bf16.msra.mxu1 %v6558_v4  ;;  %v6642_v3 = vld [vmem:[%s8874_s1 + $0xae0] ss:$16 sps:$4 sm:$0xff]   ;;  %v6645_v4 = vld [vmem:[%s8874_s1 + $0xae8] ss:$16 sps:$4 sm:$0xff]  }
 0x12d   : > { %2622 = vmatprep.subr.bf16.mxu0 %v6563_v46  ;;  %2663 = vmatprep.subr.bf16.mxu1 %v6566_v5  ;;  %v6650_v46 = vld [vmem:[%s8874_s1 + $0xb04] ss:$16 sps:$4 sm:$0xff]   ;;  %v6653_v5 = vld [vmem:[%s8874_s1 + $0xb0c] ss:$16 sps:$4 sm:$0xff]  }
 0x130   : > { %2623 = vmatpush1.bf16.msra.mxu0 %v6561_v6  ;;  %2664 = vmatpush1.bf16.msra.mxu1 %v6564_v7  ;;  %v6648_v6 = vld [vmem:[%s8874_s1 + $0xb00] ss:$16 sps:$4 sm:$0xff]   ;;  %v6651_v7 = vld [vmem:[%s8874_s1 + $0xb08] ss:$16 sps:$4 sm:$0xff]  }
 0x131   : > { %2624 = vmatprep.subr.bf16.mxu0 %v6569_v8  ;;  %2665 = vmatprep.subr.bf16.mxu1 %v6572_v9  ;;  %v6656_v8 = vld [vmem:[%s8874_s1 + $0xb24] ss:$16 sps:$4 sm:$0xff]   ;;  %v6659_v9 = vld [vmem:[%s8874_s1 + $0xb2c] ss:$16 sps:$4 sm:$0xff]  }
 0x134   : > { %2625 = vmatpush1.bf16.msra.mxu0 %v6567_v10  ;;  %2666 = vmatpush1.bf16.msra.mxu1 %v6570_v11  ;;  %v6654_v10 = vld [vmem:[%s8874_s1 + $0xb20] ss:$16 sps:$4 sm:$0xff]   ;;  %v6657_v11 = vld [vmem:[%s8874_s1 + $0xb28] ss:$16 sps:$4 sm:$0xff]  }
 0x135   : > { %2626 = vmatprep.subr.bf16.mxu0 %v6575_v12  ;;  %2667 = vmatprep.subr.bf16.mxu1 %v6578_v13  ;;  %v6662_v12 = vld [vmem:[%s8874_s1 + $0xb44] ss:$16 sps:$4 sm:$0xff]   ;;  %v6665_v13 = vld [vmem:[%s8874_s1 + $0xb4c] ss:$16 sps:$4 sm:$0xff]  }
 0x138   : > { %2627 = vmatpush1.bf16.msra.mxu0 %v6573_v14  ;;  %2668 = vmatpush1.bf16.msra.mxu1 %v6576_v15  ;;  %v6660_v14 = vld [vmem:[%s8874_s1 + $0xb40] ss:$16 sps:$4 sm:$0xff]   ;;  %v6663_v15 = vld [vmem:[%s8874_s1 + $0xb48] ss:$16 sps:$4 sm:$0xff]  }
 0x139   : > { %2628 = vmatprep.subr.bf16.mxu0 %v6581_v16  ;;  %2669 = vmatprep.subr.bf16.mxu1 %v6584_v17  ;;  %v6668_v16 = vld [vmem:[%s8874_s1 + $0xb64] ss:$16 sps:$4 sm:$0xff]   ;;  %v6671_v17 = vld [vmem:[%s8874_s1 + $0xb6c] ss:$16 sps:$4 sm:$0xff]  }
 0x13c   : > { %2629 = vmatpush1.bf16.msra.mxu0 %v6579_v19  ;;  %2670 = vmatpush1.bf16.msra.mxu1 %v6582_v20  ;;  %v6669_v19 = vld [vmem:[%s8874_s1 + $0xb68] ss:$16 sps:$4 sm:$0xff]   ;;  %v6674_v20 = vld [vmem:[%s8874_s1 + $0xb84] ss:$16 sps:$4 sm:$0xff]  }
 0x13d   : > { %2630 = vmatprep.subr.bf16.mxu0 %v6587_v21  ;;  %2671 = vmatprep.subr.bf16.mxu1 %v6590_v22  ;;  %v6677_v21 = vld [vmem:[%s8874_s1 + $0xb8c] ss:$16 sps:$4 sm:$0xff]   ;;  %v6672_v22 = vld [vmem:[%s8874_s1 + $0xb80] ss:$16 sps:$4 sm:$0xff]  }
 0x140   : > { %2631 = vmatpush1.bf16.msra.mxu0 %v6585_v25  ;;  %2672 = vmatpush1.bf16.msra.mxu1 %v6588_v26  ;;  %v6683_v25 = vld [vmem:[%s8874_s1 + $0xbac] ss:$16 sps:$4 sm:$0xff]   ;;  %v6678_v26 = vld [vmem:[%s8874_s1 + $0xba0] ss:$16 sps:$4 sm:$0xff]  }
 0x141   : > { %2632 = vmatprep.subr.bf16.mxu0 %v6593_v27  ;;  %2673 = vmatprep.subr.bf16.mxu1 %v6596_v28  ;;  %v6681_v27 = vld [vmem:[%s8874_s1 + $0xba8] ss:$16 sps:$4 sm:$0xff]   ;;  %v6686_v28 = vld [vmem:[%s8874_s1 + $0xbc4] ss:$16 sps:$4 sm:$0xff]  }
 0x144   : > { %2633 = vmatpush1.bf16.msra.mxu0 %v6591_v29  ;;  %2674 = vmatpush1.bf16.msra.mxu1 %v6594_v32  ;;  %v6689_v29 = vld [vmem:[%s8874_s1 + $0xbcc] ss:$16 sps:$4 sm:$0xff]   ;;  %v6692_v32 = vld [vmem:[%s8874_s1 + $0xbe4] ss:$16 sps:$4 sm:$0xff]  }
 0x145   : > { %3095 = vmatprep.subr.bf16.mxu0 %v6602_v33  ;;  %3136 = vmatprep.subr.bf16.mxu1 %v6605_v34  ;;  %v6695_v33 = vld [vmem:[%s8874_s1 + $0xbec] ss:$16 sps:$4 sm:$0xff]   ;;  %v6696_v34 = vld [vmem:[%s7207_s11] ss:$8 sps:$4 sm:$0x78]  }
 0x147   : > { %2635 = vmatmul.mubr.bf16.vlgmr.msra.gmra.mrb[0].mxu0 %v2271_v36  ;;  %2676 = vmatmul.mubr.bf16.vlgmr.msra.gmra.mrb[0].mxu1 %v2271_v36  ;;  %v6693_v36 = vld [vmem:[%s8874_s1 + $0xbe8] ss:$16 sps:$4 sm:$0xff]  }
 0x148   : > { %3096 = vmatpush1.bf16.msra.mxu0 %v6600_v37  ;;  %3137 = vmatpush1.bf16.msra.mxu1 %v6603_v38  ;;  %v6701_v37 = vld [vmem:[%s8874_s1 + $0xc04] ss:$16 sps:$4 sm:$0xff]   ;;  %v6704_v38 = vld [vmem:[%s8874_s1 + $0xc0c] ss:$16 sps:$4 sm:$0xff]  }
 0x149   : > { %3097 = vmatprep.subr.bf16.mxu0 %v6608_v39  ;;  %3138 = vmatprep.subr.bf16.mxu1 %v6611_v40  ;;  %v2771_v39 = vrot.slane %v6696_v34, 3  ;;  %v8258_v40 = vld [vmem:[%s7207_s11 + $0x8] sm:$0xff] }
 0x14a   : > { %3127 = vmatprep.mubr.bf16.mxu0 %v2772_v41  ;;  %3168 = vmatprep.mubr.bf16.mxu1 %v2772_v41  ;;  %v6699_v41 = vld [vmem:[%s8874_s1 + $0xc00] ss:$16 sps:$4 sm:$0xff]   ;;  %v6788_v34 = vld [vmem:[%s8874_s1 + $0xdcc] ss:$16 sps:$4 sm:$0xff]  }
 0x14c   : > { %3098 = vmatpush1.bf16.msra.mxu0 %v6606_v42  ;;  %3139 = vmatpush1.bf16.msra.mxu1 %v6609_v43  ;;  %v6702_v42 = vld [vmem:[%s8874_s1 + $0xc08] ss:$16 sps:$4 sm:$0xff]   ;;  %v6707_v43 = vld [vmem:[%s8874_s1 + $0xc24] ss:$16 sps:$4 sm:$0xff]  }
 0x14d   : > { %3099 = vmatprep.subr.bf16.mxu0 %v6614_v44  ;;  %3140 = vmatprep.subr.bf16.mxu1 %v6617_v45  ;;  %v6710_v44 = vld [vmem:[%s8874_s1 + $0xc2c] ss:$16 sps:$4 sm:$0xff]   ;;  %v5684_v45 = vcombine.high %v8258_v40, %v8258_v40 }
 0x150   : > { %3100 = vmatpush1.bf16.msra.mxu0 %v6612_v47  ;;  %3141 = vmatpush1.bf16.msra.mxu1 %v6615_v48  ;;  %v6705_v47 = vld [vmem:[%s8874_s1 + $0xc20] ss:$16 sps:$4 sm:$0xff]   ;;  %v6708_v48 = vld [vmem:[%s8874_s1 + $0xc28] ss:$16 sps:$4 sm:$0xff]  }
 0x151   : > { %3101 = vmatprep.subr.bf16.mxu0 %v6620_v49  ;;  %3142 = vmatprep.subr.bf16.mxu1 %v6623_v50  ;;  %v6713_v49 = vld [vmem:[%s8874_s1 + $0xc44] ss:$16 sps:$4 sm:$0xff]   ;;  %v6716_v50 = vld [vmem:[%s8874_s1 + $0xc4c] ss:$16 sps:$4 sm:$0xff]  }
 0x154   : > { %3102 = vmatpush1.bf16.msra.mxu0 %v6618_v51  ;;  %3143 = vmatpush1.bf16.msra.mxu1 %v6621_v52  ;;  %v6711_v51 = vld [vmem:[%s8874_s1 + $0xc40] ss:$16 sps:$4 sm:$0xff]   ;;  %v6714_v52 = vld [vmem:[%s8874_s1 + $0xc48] ss:$16 sps:$4 sm:$0xff]  }
 0x155   : > { %3103 = vmatprep.subr.bf16.mxu0 %v6626_v53  ;;  %3144 = vmatprep.subr.bf16.mxu1 %v6629_v54  ;;  %v6719_v53 = vld [vmem:[%s8874_s1 + $0xc64] ss:$16 sps:$4 sm:$0xff]   ;;  %v6722_v54 = vld [vmem:[%s8874_s1 + $0xc6c] ss:$16 sps:$4 sm:$0xff]  }
 0x158   : > { %3104 = vmatpush1.bf16.msra.mxu0 %v6624_v55  ;;  %3145 = vmatpush1.bf16.msra.mxu1 %v6627_v56  ;;  %v6717_v55 = vld [vmem:[%s8874_s1 + $0xc60] ss:$16 sps:$4 sm:$0xff]   ;;  %v6720_v56 = vld [vmem:[%s8874_s1 + $0xc68] ss:$16 sps:$4 sm:$0xff]  }
 0x159   : > { %3105 = vmatprep.subr.bf16.mxu0 %v6632_v57  ;;  %3146 = vmatprep.subr.bf16.mxu1 %v6635_v58  ;;  %v6725_v57 = vld [vmem:[%s8874_s1 + $0xc84] ss:$16 sps:$4 sm:$0xff]   ;;  %v6728_v58 = vld [vmem:[%s8874_s1 + $0xc8c] ss:$16 sps:$4 sm:$0xff]  }
 0x15c   : > { %3106 = vmatpush1.bf16.msra.mxu0 %v6630_v59  ;;  %3147 = vmatpush1.bf16.msra.mxu1 %v6633_v60  ;;  %v6723_v59 = vld [vmem:[%s8874_s1 + $0xc80] ss:$16 sps:$4 sm:$0xff]   ;;  %v6726_v60 = vld [vmem:[%s8874_s1 + $0xc88] ss:$16 sps:$4 sm:$0xff]  }
 0x15d   : > { %3107 = vmatprep.subr.bf16.mxu0 %v6638_v61  ;;  %3148 = vmatprep.subr.bf16.mxu1 %v6641_v62  ;;  %v6731_v61 = vld [vmem:[%s8874_s1 + $0xca4] ss:$16 sps:$4 sm:$0xff]   ;;  %v6734_v62 = vld [vmem:[%s8874_s1 + $0xcac] ss:$16 sps:$4 sm:$0xff]  }
 0x160   : > { %3108 = vmatpush1.bf16.msra.mxu0 %v6636_v63  ;;  %3149 = vmatpush1.bf16.msra.mxu1 %v6639_v0  ;;  %v6729_v63 = vld [vmem:[%s8874_s1 + $0xca0] ss:$16 sps:$4 sm:$0xff]   ;;  %v6732_v0 = vld [vmem:[%s8874_s1 + $0xca8] ss:$16 sps:$4 sm:$0xff]  }
 0x161   : > { %3109 = vmatprep.subr.bf16.mxu0 %v6644_v1  ;;  %3150 = vmatprep.subr.bf16.mxu1 %v6647_v2  ;;  %v6737_v1 = vld [vmem:[%s8874_s1 + $0xcc4] ss:$16 sps:$4 sm:$0xff]   ;;  %v6740_v2 = vld [vmem:[%s8874_s1 + $0xccc] ss:$16 sps:$4 sm:$0xff]  }
 0x164   : > { %3110 = vmatpush1.bf16.msra.mxu0 %v6642_v3  ;;  %3151 = vmatpush1.bf16.msra.mxu1 %v6645_v4  ;;  %v6735_v3 = vld [vmem:[%s8874_s1 + $0xcc0] ss:$16 sps:$4 sm:$0xff]   ;;  %v6738_v4 = vld [vmem:[%s8874_s1 + $0xcc8] ss:$16 sps:$4 sm:$0xff]  }
 0x165   : > { %3111 = vmatprep.subr.bf16.mxu0 %v6650_v46  ;;  %3152 = vmatprep.subr.bf16.mxu1 %v6653_v5  ;;  %v6743_v46 = vld [vmem:[%s8874_s1 + $0xce4] ss:$16 sps:$4 sm:$0xff]   ;;  %v6746_v5 = vld [vmem:[%s8874_s1 + $0xcec] ss:$16 sps:$4 sm:$0xff]  }
 0x168   : > { %3112 = vmatpush1.bf16.msra.mxu0 %v6648_v6  ;;  %3153 = vmatpush1.bf16.msra.mxu1 %v6651_v7  ;;  %v6741_v6 = vld [vmem:[%s8874_s1 + $0xce0] ss:$16 sps:$4 sm:$0xff]   ;;  %v6744_v7 = vld [vmem:[%s8874_s1 + $0xce8] ss:$16 sps:$4 sm:$0xff]  }
 0x169   : > { %3113 = vmatprep.subr.bf16.mxu0 %v6656_v8  ;;  %3154 = vmatprep.subr.bf16.mxu1 %v6659_v9  ;;  %v6749_v8 = vld [vmem:[%s8874_s1 + $0xd04] ss:$16 sps:$4 sm:$0xff]   ;;  %v6752_v9 = vld [vmem:[%s8874_s1 + $0xd0c] ss:$16 sps:$4 sm:$0xff]  }
 0x16c   : > { %3114 = vmatpush1.bf16.msra.mxu0 %v6654_v10  ;;  %3155 = vmatpush1.bf16.msra.mxu1 %v6657_v11  ;;  %v6747_v10 = vld [vmem:[%s8874_s1 + $0xd00] ss:$16 sps:$4 sm:$0xff]   ;;  %v6750_v11 = vld [vmem:[%s8874_s1 + $0xd08] ss:$16 sps:$4 sm:$0xff]  }
 0x16d   : > { %3115 = vmatprep.subr.bf16.mxu0 %v6662_v12  ;;  %3156 = vmatprep.subr.bf16.mxu1 %v6665_v13  ;;  %v6755_v12 = vld [vmem:[%s8874_s1 + $0xd24] ss:$16 sps:$4 sm:$0xff]   ;;  %v6758_v13 = vld [vmem:[%s8874_s1 + $0xd2c] ss:$16 sps:$4 sm:$0xff]  }
 0x170   : > { %3116 = vmatpush1.bf16.msra.mxu0 %v6660_v14  ;;  %3157 = vmatpush1.bf16.msra.mxu1 %v6663_v15  ;;  %v6753_v14 = vld [vmem:[%s8874_s1 + $0xd20] ss:$16 sps:$4 sm:$0xff]   ;;  %v6756_v15 = vld [vmem:[%s8874_s1 + $0xd28] ss:$16 sps:$4 sm:$0xff]  }
 0x171   : > { %3117 = vmatprep.subr.bf16.mxu0 %v6668_v16  ;;  %3158 = vmatprep.subr.bf16.mxu1 %v6671_v17  ;;  %v6761_v16 = vld [vmem:[%s8874_s1 + $0xd44] ss:$16 sps:$4 sm:$0xff]   ;;  %v6764_v17 = vld [vmem:[%s8874_s1 + $0xd4c] ss:$16 sps:$4 sm:$0xff]  }
 0x174   : > { %3118 = vmatpush1.bf16.msra.mxu0 %v6666_v18  ;;  %3159 = vmatpush1.bf16.msra.mxu1 %v6669_v19  ;;  %v6759_v18 = vld [vmem:[%s8874_s1 + $0xd40] ss:$16 sps:$4 sm:$0xff]   ;;  %v6762_v19 = vld [vmem:[%s8874_s1 + $0xd48] ss:$16 sps:$4 sm:$0xff]  }
 0x175   : > { %3119 = vmatprep.subr.bf16.mxu0 %v6674_v20  ;;  %3160 = vmatprep.subr.bf16.mxu1 %v6677_v21  ;;  %v6767_v20 = vld [vmem:[%s8874_s1 + $0xd64] ss:$16 sps:$4 sm:$0xff]   ;;  %v6770_v21 = vld [vmem:[%s8874_s1 + $0xd6c] ss:$16 sps:$4 sm:$0xff]  }
 0x178   : > { %3120 = vmatpush1.bf16.msra.mxu0 %v6672_v22  ;;  %3161 = vmatpush1.bf16.msra.mxu1 %v6675_v23  ;;  %v6765_v22 = vld [vmem:[%s8874_s1 + $0xd60] ss:$16 sps:$4 sm:$0xff]   ;;  %v6768_v23 = vld [vmem:[%s8874_s1 + $0xd68] ss:$16 sps:$4 sm:$0xff]  }
 0x179   : > { %3121 = vmatprep.subr.bf16.mxu0 %v6680_v24  ;;  %3162 = vmatprep.subr.bf16.mxu1 %v6683_v25  ;;  %v6773_v24 = vld [vmem:[%s8874_s1 + $0xd84] ss:$16 sps:$4 sm:$0xff]   ;;  %v6776_v25 = vld [vmem:[%s8874_s1 + $0xd8c] ss:$16 sps:$4 sm:$0xff]  }
 0x17c   : > { %3122 = vmatpush1.bf16.msra.mxu0 %v6678_v26  ;;  %3163 = vmatpush1.bf16.msra.mxu1 %v6681_v27  ;;  %v6771_v26 = vld [vmem:[%s8874_s1 + $0xd80] ss:$16 sps:$4 sm:$0xff]   ;;  %v6774_v27 = vld [vmem:[%s8874_s1 + $0xd88] ss:$16 sps:$4 sm:$0xff]  }
 0x17d   : > { %3123 = vmatprep.subr.bf16.mxu0 %v6686_v28  ;;  %3164 = vmatprep.subr.bf16.mxu1 %v6689_v29  ;;  %v6779_v28 = vld [vmem:[%s8874_s1 + $0xda4] ss:$16 sps:$4 sm:$0xff]   ;;  %v6782_v29 = vld [vmem:[%s8874_s1 + $0xdac] ss:$16 sps:$4 sm:$0xff]  }
 0x180   : > { %3124 = vmatpush1.bf16.msra.mxu0 %v6684_v30  ;;  %3165 = vmatpush1.bf16.msra.mxu1 %v6687_v31  ;;  %v8419_v30 = vld [vmem:[%s7207_s11 + $0x10] sm:$0x11] }
 0x181   : > { %3125 = vmatprep.subr.bf16.mxu0 %v6692_v32  ;;  %3166 = vmatprep.subr.bf16.mxu1 %v6695_v33  ;;  %v6777_v31 = vld [vmem:[%s8874_s1 + $0xda0] ss:$16 sps:$4 sm:$0xff]   ;;  %v6780_v32 = vld [vmem:[%s8874_s1 + $0xda8] ss:$16 sps:$4 sm:$0xff]   ;;  %v6785_v33 = vld [vmem:[%s8874_s1 + $0xdc4] ss:$16 sps:$4 sm:$0xff]  }
 0x184   : > { %3126 = vmatpush1.bf16.msra.mxu0 %v6690_v35  ;;  %3167 = vmatpush1.bf16.msra.mxu1 %v6693_v36  ;;  %v5814_v35 = vcombine.high %v8258_v40, %v8419_v30  ;;  %v6783_v36 = vld [vmem:[%s8874_s1 + $0xdc0] ss:$16 sps:$4 sm:$0xff]  }
 0x185   : > { %3582 = vmatprep.subr.bf16.mxu0 %v6701_v37  ;;  %3623 = vmatprep.subr.bf16.mxu1 %v6704_v38  ;;  %v6786_v37 = vld [vmem:[%s8874_s1 + $0xdc8] ss:$16 sps:$4 sm:$0xff]   ;;  %v6791_v38 = vld [vmem:[%s8874_s1 + $0xde4] ss:$16 sps:$4 sm:$0xff]  }
 0x187   : > { %3128 = vmatmul.mubr.bf16.vlgmr.msra.gmra.mrb[0].mxu0 %v2771_v39  ;;  %3169 = vmatmul.mubr.bf16.vlgmr.msra.gmra.mrb[0].mxu1 %v2771_v39  ;;  %v6794_v39 = vld [vmem:[%s8874_s1 + $0xdec] ss:$16 sps:$4 sm:$0xff]  }
 0x188   : > { %3583 = vmatpush1.bf16.msra.mxu0 %v6699_v41  ;;  %3624 = vmatpush1.bf16.msra.mxu1 %v6702_v42  ;;  %v3761_v41 = vshll.u32 %v5814_v35, 16  ;;  %v6789_v42 = vld [vmem:[%s8874_s1 + $0xde0] ss:$16 sps:$4 sm:$0xff]  }
 0x189   : > { %3584 = vmatprep.subr.bf16.mxu0 %v6707_v43  ;;  %3625 = vmatprep.subr.bf16.mxu1 %v6710_v44  ;;  %v6792_v43 = vld [vmem:[%s8874_s1 + $0xde8] ss:$16 sps:$4 sm:$0xff]   ;;  %v6799_v44 = vld [vmem:[%s8874_s1 + $0xe04] ss:$16 sps:$4 sm:$0xff]  }
 0x18a   : > { %3614 = vmatprep.mubr.bf16.mxu0 %v5684_v45  ;;  %3655 = vmatprep.mubr.bf16.mxu1 %v5684_v45  ;;  %v6802_v45 = vld [vmem:[%s8874_s1 + $0xe0c] ss:$16 sps:$4 sm:$0xff]  }
 0x18c   : > { %3585 = vmatpush1.bf16.msra.mxu0 %v6705_v47  ;;  %3626 = vmatpush1.bf16.msra.mxu1 %v6708_v48  ;;  %v3759_v47 = vshrl.u32 %v5814_v35, 16  ;;  %v3763_v48 = vrot.slane %v3761_v41, 1  ;;  %v6871_v35 = vld [vmem:[%s8874_s1 + $0xf84] ss:$16 sps:$4 sm:$0xff]   ;;  %v6880_v41 = vld [vmem:[%s8874_s1 + $0xfac] ss:$16 sps:$4 sm:$0xff]  }
 0x18d   : > { %3586 = vmatprep.subr.bf16.mxu0 %v6713_v49  ;;  %3627 = vmatprep.subr.bf16.mxu1 %v6716_v50  ;;  %v5683_v49 = vcombine.low %v8258_v40, %v8258_v40  ;;  %v6797_v50 = vld [vmem:[%s8874_s1 + $0xe00] ss:$16 sps:$4 sm:$0xff]  }
 0x190   : > { %3587 = vmatpush1.bf16.msra.mxu0 %v6711_v51  ;;  %3628 = vmatpush1.bf16.msra.mxu1 %v6714_v52  ;;  %v6800_v51 = vld [vmem:[%s8874_s1 + $0xe08] ss:$16 sps:$4 sm:$0xff]   ;;  %v6805_v52 = vld [vmem:[%s8874_s1 + $0xe24] ss:$16 sps:$4 sm:$0xff]  }
 0x191   : > { %3588 = vmatprep.subr.bf16.mxu0 %v6719_v53  ;;  %3629 = vmatprep.subr.bf16.mxu1 %v6722_v54  ;;  %v6808_v53 = vld [vmem:[%s8874_s1 + $0xe2c] ss:$16 sps:$4 sm:$0xff]   ;;  %v3764_v54 = vor.u32 %v3763_v48, %v3759_v47  ;;  %v6881_v47 = vld [vmem:[%s8874_s1 + $0xfc0] ss:$16 sps:$4 sm:$0xff]   ;;  %v6884_v48 = vld [vmem:[%s8874_s1 + $0xfc8] ss:$16 sps:$4 sm:$0xff]  }
 0x194   : > { %3589 = vmatpush1.bf16.msra.mxu0 %v6717_v55  ;;  %3630 = vmatpush1.bf16.msra.mxu1 %v6720_v56  ;;  %v6803_v55 = vld [vmem:[%s8874_s1 + $0xe20] ss:$16 sps:$4 sm:$0xff]   ;;  %v6806_v56 = vld [vmem:[%s8874_s1 + $0xe28] ss:$16 sps:$4 sm:$0xff]  }
 0x195   : > { %3590 = vmatprep.subr.bf16.mxu0 %v6725_v57  ;;  %3631 = vmatprep.subr.bf16.mxu1 %v6728_v58  ;;  %v6811_v57 = vld [vmem:[%s8874_s1 + $0xe44] ss:$16 sps:$4 sm:$0xff]   ;;  %v6814_v58 = vld [vmem:[%s8874_s1 + $0xe4c] ss:$16 sps:$4 sm:$0xff]  }
 0x198   : > { %3591 = vmatpush1.bf16.msra.mxu0 %v6723_v59  ;;  %3632 = vmatpush1.bf16.msra.mxu1 %v6726_v60  ;;  %v7026_v59 = vmov 0   ;;  %v4674_v60 = vld [vmem:[%s8875_s2] sm:$0xff] }
 0x199   : > { %3592 = vmatprep.subr.bf16.mxu0 %v6731_v61  ;;  %3633 = vmatprep.subr.bf16.mxu1 %v6734_v62  ;;  %v6809_v61 = vld [vmem:[%s8874_s1 + $0xe40] ss:$16 sps:$4 sm:$0xff]   ;;  %v6812_v62 = vld [vmem:[%s8874_s1 + $0xe48] ss:$16 sps:$4 sm:$0xff]  }
 0x19a   : > { %6106 = vset.pattern.permute.xlu0 %v7026_v59  ;;  %v6895_v59 = vld [vmem:[%s8874_s1 + $0x1000] ss:$16 sps:$4 sm:$0xff]  }
 0x19b   : > { %4677 = vperm.xlu0 %6106, %v4674_v60   ;;  %v6898_v60 = vld [vmem:[%s8874_s1 + $0x1008] ss:$16 sps:$4 sm:$0xff]  }
 0x19c   : > { %3593 = vmatpush1.bf16.msra.mxu0 %v6729_v63  ;;  %3634 = vmatpush1.bf16.msra.mxu1 %v6732_v0  ;;  %v6817_v63 = vld [vmem:[%s8874_s1 + $0xe64] ss:$16 sps:$4 sm:$0xff]   ;;  %v6820_v0 = vld [vmem:[%s8874_s1 + $0xe6c] ss:$16 sps:$4 sm:$0xff]  }
 0x19d   : > { %3594 = vmatprep.subr.bf16.mxu0 %v6737_v1  ;;  %3635 = vmatprep.subr.bf16.mxu1 %v6740_v2  ;;  %v6815_v1 = vld [vmem:[%s8874_s1 + $0xe60] ss:$16 sps:$4 sm:$0xff]   ;;  %v6818_v2 = vld [vmem:[%s8874_s1 + $0xe68] ss:$16 sps:$4 sm:$0xff]  }
 0x1a0   : > { %3595 = vmatpush1.bf16.msra.mxu0 %v6735_v3  ;;  %3636 = vmatpush1.bf16.msra.mxu1 %v6738_v4  ;;  %v6823_v3 = vld [vmem:[%s8874_s1 + $0xe84] ss:$16 sps:$4 sm:$0xff]   ;;  %v6826_v4 = vld [vmem:[%s8874_s1 + $0xe8c] ss:$16 sps:$4 sm:$0xff]  }
 0x1a1   : > { %3596 = vmatprep.subr.bf16.mxu0 %v6743_v46  ;;  %3637 = vmatprep.subr.bf16.mxu1 %v6746_v5  ;;  %v6821_v46 = vld [vmem:[%s8874_s1 + $0xe80] ss:$16 sps:$4 sm:$0xff]   ;;  %v6824_v5 = vld [vmem:[%s8874_s1 + $0xe88] ss:$16 sps:$4 sm:$0xff]  }
 0x1a4   : > { %3597 = vmatpush1.bf16.msra.mxu0 %v6741_v6  ;;  %3638 = vmatpush1.bf16.msra.mxu1 %v6744_v7  ;;  %v6829_v6 = vld [vmem:[%s8874_s1 + $0xea4] ss:$16 sps:$4 sm:$0xff]   ;;  %v6832_v7 = vld [vmem:[%s8874_s1 + $0xeac] ss:$16 sps:$4 sm:$0xff]  }
 0x1a5   : > { %3598 = vmatprep.subr.bf16.mxu0 %v6749_v8  ;;  %3639 = vmatprep.subr.bf16.mxu1 %v6752_v9  ;;  %v6827_v8 = vld [vmem:[%s8874_s1 + $0xea0] ss:$16 sps:$4 sm:$0xff]   ;;  %v6830_v9 = vld [vmem:[%s8874_s1 + $0xea8] ss:$16 sps:$4 sm:$0xff]  }
 0x1a8   : > { %3599 = vmatpush1.bf16.msra.mxu0 %v6747_v10  ;;  %3640 = vmatpush1.bf16.msra.mxu1 %v6750_v11  ;;  %v6835_v10 = vld [vmem:[%s8874_s1 + $0xec4] ss:$16 sps:$4 sm:$0xff]   ;;  %v6838_v11 = vld [vmem:[%s8874_s1 + $0xecc] ss:$16 sps:$4 sm:$0xff]  }
 0x1a9   : > { %3600 = vmatprep.subr.bf16.mxu0 %v6755_v12  ;;  %3641 = vmatprep.subr.bf16.mxu1 %v6758_v13  ;;  %v6833_v12 = vld [vmem:[%s8874_s1 + $0xec0] ss:$16 sps:$4 sm:$0xff]   ;;  %v6836_v13 = vld [vmem:[%s8874_s1 + $0xec8] ss:$16 sps:$4 sm:$0xff]  }
 0x1ac   : > { %3601 = vmatpush1.bf16.msra.mxu0 %v6753_v14  ;;  %3642 = vmatpush1.bf16.msra.mxu1 %v6756_v15  ;;  %v6841_v14 = vld [vmem:[%s8874_s1 + $0xee4] ss:$16 sps:$4 sm:$0xff]   ;;  %v6844_v15 = vld [vmem:[%s8874_s1 + $0xeec] ss:$16 sps:$4 sm:$0xff]  }
 0x1ad   : > { %3602 = vmatprep.subr.bf16.mxu0 %v6761_v16  ;;  %3643 = vmatprep.subr.bf16.mxu1 %v6764_v17  ;;  %v6839_v16 = vld [vmem:[%s8874_s1 + $0xee0] ss:$16 sps:$4 sm:$0xff]   ;;  %v6842_v17 = vld [vmem:[%s8874_s1 + $0xee8] ss:$16 sps:$4 sm:$0xff]  }
 0x1b0   : > { %3603 = vmatpush1.bf16.msra.mxu0 %v6759_v18  ;;  %3644 = vmatpush1.bf16.msra.mxu1 %v6762_v19  ;;  %v6847_v18 = vld [vmem:[%s8874_s1 + $0xf04] ss:$16 sps:$4 sm:$0xff]   ;;  %v6850_v19 = vld [vmem:[%s8874_s1 + $0xf0c] ss:$16 sps:$4 sm:$0xff]  }
 0x1b1   : > { %3604 = vmatprep.subr.bf16.mxu0 %v6767_v20  ;;  %3645 = vmatprep.subr.bf16.mxu1 %v6770_v21  ;;  %v6845_v20 = vld [vmem:[%s8874_s1 + $0xf00] ss:$16 sps:$4 sm:$0xff]   ;;  %v6848_v21 = vld [vmem:[%s8874_s1 + $0xf08] ss:$16 sps:$4 sm:$0xff]  }
 0x1b4   : > { %3605 = vmatpush1.bf16.msra.mxu0 %v6765_v22  ;;  %3646 = vmatpush1.bf16.msra.mxu1 %v6768_v23  ;;  %v6853_v22 = vld [vmem:[%s8874_s1 + $0xf24] ss:$16 sps:$4 sm:$0xff]   ;;  %v6856_v23 = vld [vmem:[%s8874_s1 + $0xf2c] ss:$16 sps:$4 sm:$0xff]  }
 0x1b5   : > { %3606 = vmatprep.subr.bf16.mxu0 %v6773_v24  ;;  %3647 = vmatprep.subr.bf16.mxu1 %v6776_v25  ;;  %v6851_v24 = vld [vmem:[%s8874_s1 + $0xf20] ss:$16 sps:$4 sm:$0xff]   ;;  %v6854_v25 = vld [vmem:[%s8874_s1 + $0xf28] ss:$16 sps:$4 sm:$0xff]  }
 0x1b8   : > { %3607 = vmatpush1.bf16.msra.mxu0 %v6771_v26  ;;  %3648 = vmatpush1.bf16.msra.mxu1 %v6774_v27  ;;  %v6859_v26 = vld [vmem:[%s8874_s1 + $0xf44] ss:$16 sps:$4 sm:$0xff]   ;;  %v6862_v27 = vld [vmem:[%s8874_s1 + $0xf4c] ss:$16 sps:$4 sm:$0xff]  }
 0x1b9   : > { %3608 = vmatprep.subr.bf16.mxu0 %v6779_v28  ;;  %3649 = vmatprep.subr.bf16.mxu1 %v6782_v29  ;;  %v6857_v28 = vld [vmem:[%s8874_s1 + $0xf40] ss:$16 sps:$4 sm:$0xff]   ;;  %v6860_v29 = vld [vmem:[%s8874_s1 + $0xf48] ss:$16 sps:$4 sm:$0xff]  }
 0x1bc   : > { %3609 = vmatpush1.bf16.msra.mxu0 %v6777_v31  ;;  %3650 = vmatpush1.bf16.msra.mxu1 %v6780_v32  ;;  %v6865_v31 = vld [vmem:[%s8874_s1 + $0xf64] ss:$16 sps:$4 sm:$0xff]   ;;  %v6868_v32 = vld [vmem:[%s8874_s1 + $0xf6c] ss:$16 sps:$4 sm:$0xff]  }
 0x1bd   : > { %3610 = vmatprep.subr.bf16.mxu0 %v6785_v33  ;;  %3651 = vmatprep.subr.bf16.mxu1 %v6788_v34  ;;  %v6863_v33 = vld [vmem:[%s8874_s1 + $0xf60] ss:$16 sps:$4 sm:$0xff]   ;;  %v6866_v34 = vld [vmem:[%s8874_s1 + $0xf68] ss:$16 sps:$4 sm:$0xff]  }
 0x1c0   : > { %3611 = vmatpush1.bf16.msra.mxu0 %v6783_v36  ;;  %3652 = vmatpush1.bf16.msra.mxu1 %v6786_v37  ;;  %v6874_v36 = vld [vmem:[%s8874_s1 + $0xf8c] ss:$16 sps:$4 sm:$0xff]   ;;  %v6869_v37 = vld [vmem:[%s8874_s1 + $0xf80] ss:$16 sps:$4 sm:$0xff]  }
 0x1c1   : > { %3612 = vmatprep.subr.bf16.mxu0 %v6791_v38  ;;  %3653 = vmatprep.subr.bf16.mxu1 %v6794_v39  ;;  %v6872_v38 = vld [vmem:[%s8874_s1 + $0xf88] ss:$16 sps:$4 sm:$0xff]   ;;  %v6877_v39 = vld [vmem:[%s8874_s1 + $0xfa4] ss:$16 sps:$4 sm:$0xff]  }
 0x1c4   : > { %3613 = vmatpush1.bf16.msra.mxu0 %v6789_v42  ;;  %3654 = vmatpush1.bf16.msra.mxu1 %v6792_v43  ;;  %v5813_v42 = vcombine.low %v8258_v40, %v8419_v30  ;;  %v6875_v43 = vld [vmem:[%s8874_s1 + $0xfa0] ss:$16 sps:$4 sm:$0xff]   ;;  %v6886_v40 = vld [vmem:[%s8874_s1 + $0xfcc] ss:$16 sps:$4 sm:$0xff]  }
 0x1c5   : > { %4087 = vmatprep.subr.bf16.mxu0 %v6799_v44  ;;  %4128 = vmatprep.subr.bf16.mxu1 %v6802_v45  ;;  %v6878_v44 = vld [vmem:[%s8874_s1 + $0xfa8] ss:$16 sps:$4 sm:$0xff]   ;;  %v6883_v45 = vld [vmem:[%s8874_s1 + $0xfc4] ss:$16 sps:$4 sm:$0xff]  }
 0x1c6   : > { %v3754_v30 = vshll.u32 %v5813_v42, 16 }
 0x1c7   : > { %3615 = vmatmul.mubr.bf16.vlgmr.msra.gmra.mrb[0].mxu0 %v5683_v49  ;;  %3656 = vmatmul.mubr.bf16.vlgmr.msra.gmra.mrb[0].mxu1 %v5683_v49  ;;  %v6889_v49 = vld [vmem:[%s8874_s1 + $0xfe4] ss:$16 sps:$4 sm:$0xff]  }
 0x1c8   : > { %4088 = vmatpush1.bf16.msra.mxu0 %v6797_v50  ;;  %4129 = vmatpush1.bf16.msra.mxu1 %v6800_v51  ;;  %v6892_v50 = vld [vmem:[%s8874_s1 + $0xfec] ss:$16 sps:$4 sm:$0xff]   ;;  %v3752_v51 = vshrl.u32 %v5813_v42, 16  ;;  %v6964_v42 = vld [vmem:[%s8874_s1 + $0x1168] ss:$16 sps:$4 sm:$0xff]  }
 0x1c9   : > { %4089 = vmatprep.subr.bf16.mxu0 %v6805_v52  ;;  %4130 = vmatprep.subr.bf16.mxu1 %v6808_v53  ;;  %v3756_v52 = vrot.slane %v3754_v30, 1  ;;  %v6887_v53 = vld [vmem:[%s8874_s1 + $0xfe0] ss:$16 sps:$4 sm:$0xff]   ;;  %v6975_v30 = vld [vmem:[%s8874_s1 + $0x11a4] ss:$16 sps:$4 sm:$0xff]  }
 0x1ca   : > { %4119 = vmatprep.mubr.bf16.mxu0 %v3764_v54  ;;  %4160 = vmatprep.mubr.bf16.mxu1 %v3764_v54  ;;  %v6890_v54 = vld [vmem:[%s8874_s1 + $0xfe8] ss:$16 sps:$4 sm:$0xff]  }
 0x1cc   : > { %4090 = vmatpush1.bf16.msra.mxu0 %v6803_v55  ;;  %4131 = vmatpush1.bf16.msra.mxu1 %v6806_v56  ;;  %v6897_v55 = vld [vmem:[%s8874_s1 + $0x1004] ss:$16 sps:$4 sm:$0xff]   ;;  %v6900_v56 = vld [vmem:[%s8874_s1 + $0x100c] ss:$16 sps:$4 sm:$0xff]  }
 0x1cd   : > { %4091 = vmatprep.subr.bf16.mxu0 %v6811_v57  ;;  %4132 = vmatprep.subr.bf16.mxu1 %v6814_v58  ;;  %v6993_v57 = vld [vmem:[%s7207_s11 + $0xc] ss:$8 sps:$4 sm:$0x1e]   ;;  %v3757_v58 = vor.u32 %v3756_v52, %v3752_v51  ;;  %v6979_v52 = vld [vmem:[%s8874_s1 + $0x11c0] ss:$16 sps:$4 sm:$0xff]  }
 0x1ce   : > { %v6984_v51 = vld [vmem:[%s8874_s1 + $0x11cc] ss:$16 sps:$4 sm:$0xff]  }
 0x1d0   : > { %4092 = vmatpush1.bf16.msra.mxu0 %v6809_v61  ;;  %4133 = vmatpush1.bf16.msra.mxu1 %v6812_v62  ;;  %v6903_v61 = vld [vmem:[%s8874_s1 + $0x1024] ss:$16 sps:$4 sm:$0xff]   ;;  %v6906_v62 = vld [vmem:[%s8874_s1 + $0x102c] ss:$16 sps:$4 sm:$0xff]  }
 0x1d1   : > { %4093 = vmatprep.subr.bf16.mxu0 %v6817_v63  ;;  %4134 = vmatprep.subr.bf16.mxu1 %v6820_v0  ;;  %v4257_v63 = vrot.slane %v6993_v57, 1  ;;  %v6901_v0 = vld [vmem:[%s8874_s1 + $0x1020] ss:$16 sps:$4 sm:$0xff]  }
 0x1d2   : > { %v6985_v57 = vld [vmem:[%s8874_s1 + $0x11e0] ss:$16 sps:$4 sm:$0xff]  }
 0x1d4   : > { %4094 = vmatpush1.bf16.msra.mxu0 %v6815_v1  ;;  %4135 = vmatpush1.bf16.msra.mxu1 %v6818_v2  ;;  %v6904_v1 = vld [vmem:[%s8874_s1 + $0x1028] ss:$16 sps:$4 sm:$0xff]   ;;  %v6909_v2 = vld [vmem:[%s8874_s1 + $0x1044] ss:$16 sps:$4 sm:$0xff]  }
 0x1d5   : > { %4095 = vmatprep.subr.bf16.mxu0 %v6823_v3  ;;  %4136 = vmatprep.subr.bf16.mxu1 %v6826_v4  ;;  %v6912_v3 = vld [vmem:[%s8874_s1 + $0x104c] ss:$16 sps:$4 sm:$0xff]   ;;  %v6907_v4 = vld [vmem:[%s8874_s1 + $0x1040] ss:$16 sps:$4 sm:$0xff]  }
 0x1d8   : > { %4096 = vmatpush1.bf16.msra.mxu0 %v6821_v46  ;;  %4137 = vmatpush1.bf16.msra.mxu1 %v6824_v5  ;;  %v6910_v46 = vld [vmem:[%s8874_s1 + $0x1048] ss:$16 sps:$4 sm:$0xff]   ;;  %v6915_v5 = vld [vmem:[%s8874_s1 + $0x1064] ss:$16 sps:$4 sm:$0xff]  }
 0x1d9   : > { %4097 = vmatprep.subr.bf16.mxu0 %v6829_v6  ;;  %4138 = vmatprep.subr.bf16.mxu1 %v6832_v7  ;;  %v6918_v6 = vld [vmem:[%s8874_s1 + $0x106c] ss:$16 sps:$4 sm:$0xff]   ;;  %v6913_v7 = vld [vmem:[%s8874_s1 + $0x1060] ss:$16 sps:$4 sm:$0xff]  }
 0x1dc   : > { %4098 = vmatpush1.bf16.msra.mxu0 %v6827_v8  ;;  %4139 = vmatpush1.bf16.msra.mxu1 %v6830_v9  ;;  %v6916_v8 = vld [vmem:[%s8874_s1 + $0x1068] ss:$16 sps:$4 sm:$0xff]   ;;  %v6921_v9 = vld [vmem:[%s8874_s1 + $0x1084] ss:$16 sps:$4 sm:$0xff]  }
 0x1dd   : > { %4099 = vmatprep.subr.bf16.mxu0 %v6835_v10  ;;  %4140 = vmatprep.subr.bf16.mxu1 %v6838_v11  ;;  %v6924_v10 = vld [vmem:[%s8874_s1 + $0x108c] ss:$16 sps:$4 sm:$0xff]   ;;  %v6919_v11 = vld [vmem:[%s8874_s1 + $0x1080] ss:$16 sps:$4 sm:$0xff]  }
 0x1e0   : > { %4100 = vmatpush1.bf16.msra.mxu0 %v6833_v12  ;;  %4141 = vmatpush1.bf16.msra.mxu1 %v6836_v13  ;;  %v6922_v12 = vld [vmem:[%s8874_s1 + $0x1088] ss:$16 sps:$4 sm:$0xff]   ;;  %v6927_v13 = vld [vmem:[%s8874_s1 + $0x10a4] ss:$16 sps:$4 sm:$0xff]  }
 0x1e1   : > { %4101 = vmatprep.subr.bf16.mxu0 %v6841_v14  ;;  %4142 = vmatprep.subr.bf16.mxu1 %v6844_v15  ;;  %v6930_v14 = vld [vmem:[%s8874_s1 + $0x10ac] ss:$16 sps:$4 sm:$0xff]   ;;  %v6925_v15 = vld [vmem:[%s8874_s1 + $0x10a0] ss:$16 sps:$4 sm:$0xff]  }
 0x1e4   : > { %4102 = vmatpush1.bf16.msra.mxu0 %v6839_v16  ;;  %4143 = vmatpush1.bf16.msra.mxu1 %v6842_v17  ;;  %v6928_v16 = vld [vmem:[%s8874_s1 + $0x10a8] ss:$16 sps:$4 sm:$0xff]   ;;  %v6933_v17 = vld [vmem:[%s8874_s1 + $0x10c4] ss:$16 sps:$4 sm:$0xff]  }
 0x1e5   : > { %4103 = vmatprep.subr.bf16.mxu0 %v6847_v18  ;;  %4144 = vmatprep.subr.bf16.mxu1 %v6850_v19  ;;  %v6936_v18 = vld [vmem:[%s8874_s1 + $0x10cc] ss:$16 sps:$4 sm:$0xff]   ;;  %v6931_v19 = vld [vmem:[%s8874_s1 + $0x10c0] ss:$16 sps:$4 sm:$0xff]  }
 0x1e8   : > { %4104 = vmatpush1.bf16.msra.mxu0 %v6845_v20  ;;  %4145 = vmatpush1.bf16.msra.mxu1 %v6848_v21  ;;  %v6934_v20 = vld [vmem:[%s8874_s1 + $0x10c8] ss:$16 sps:$4 sm:$0xff]   ;;  %v6939_v21 = vld [vmem:[%s8874_s1 + $0x10e4] ss:$16 sps:$4 sm:$0xff]  }
 0x1e9   : > { %4105 = vmatprep.subr.bf16.mxu0 %v6853_v22  ;;  %4146 = vmatprep.subr.bf16.mxu1 %v6856_v23  ;;  %v6942_v22 = vld [vmem:[%s8874_s1 + $0x10ec] ss:$16 sps:$4 sm:$0xff]   ;;  %v6937_v23 = vld [vmem:[%s8874_s1 + $0x10e0] ss:$16 sps:$4 sm:$0xff]  }
 0x1ec   : > { %4106 = vmatpush1.bf16.msra.mxu0 %v6851_v24  ;;  %4147 = vmatpush1.bf16.msra.mxu1 %v6854_v25  ;;  %v6940_v24 = vld [vmem:[%s8874_s1 + $0x10e8] ss:$16 sps:$4 sm:$0xff]   ;;  %v6945_v25 = vld [vmem:[%s8874_s1 + $0x1104] ss:$16 sps:$4 sm:$0xff]  }
 0x1ed   : > { %4107 = vmatprep.subr.bf16.mxu0 %v6859_v26  ;;  %4148 = vmatprep.subr.bf16.mxu1 %v6862_v27  ;;  %v6948_v26 = vld [vmem:[%s8874_s1 + $0x110c] ss:$16 sps:$4 sm:$0xff]   ;;  %v6943_v27 = vld [vmem:[%s8874_s1 + $0x1100] ss:$16 sps:$4 sm:$0xff]  }
 0x1f0   : > { %4108 = vmatpush1.bf16.msra.mxu0 %v6857_v28  ;;  %4149 = vmatpush1.bf16.msra.mxu1 %v6860_v29  ;;  %v6946_v28 = vld [vmem:[%s8874_s1 + $0x1108] ss:$16 sps:$4 sm:$0xff]   ;;  %v6951_v29 = vld [vmem:[%s8874_s1 + $0x1124] ss:$16 sps:$4 sm:$0xff]  }
 0x1f1   : > { %4109 = vmatprep.subr.bf16.mxu0 %v6865_v31  ;;  %4150 = vmatprep.subr.bf16.mxu1 %v6868_v32  ;;  %v6954_v31 = vld [vmem:[%s8874_s1 + $0x112c] ss:$16 sps:$4 sm:$0xff]   ;;  %v6949_v32 = vld [vmem:[%s8874_s1 + $0x1120] ss:$16 sps:$4 sm:$0xff]  }
 0x1f4   : > { %4110 = vmatpush1.bf16.msra.mxu0 %v6863_v33  ;;  %4151 = vmatpush1.bf16.msra.mxu1 %v6866_v34  ;;  %v6952_v33 = vld [vmem:[%s8874_s1 + $0x1128] ss:$16 sps:$4 sm:$0xff]   ;;  %v6957_v34 = vld [vmem:[%s8874_s1 + $0x1144] ss:$16 sps:$4 sm:$0xff]  }
 0x1f5   : > { %4111 = vmatprep.subr.bf16.mxu0 %v6871_v35  ;;  %4152 = vmatprep.subr.bf16.mxu1 %v6874_v36  ;;  %v6960_v35 = vld [vmem:[%s8874_s1 + $0x114c] ss:$16 sps:$4 sm:$0xff]   ;;  %v6955_v36 = vld [vmem:[%s8874_s1 + $0x1140] ss:$16 sps:$4 sm:$0xff]  }
 0x1f8   : > { %4112 = vmatpush1.bf16.msra.mxu0 %v6869_v37  ;;  %4153 = vmatpush1.bf16.msra.mxu1 %v6872_v38  ;;  %v6958_v37 = vld [vmem:[%s8874_s1 + $0x1148] ss:$16 sps:$4 sm:$0xff]   ;;  %v6963_v38 = vld [vmem:[%s8874_s1 + $0x1164] ss:$16 sps:$4 sm:$0xff]  }
 0x1f9   : > { %4113 = vmatprep.subr.bf16.mxu0 %v6877_v39  ;;  %4154 = vmatprep.subr.bf16.mxu1 %v6880_v41  ;;  %v6966_v39 = vld [vmem:[%s8874_s1 + $0x116c] ss:$16 sps:$4 sm:$0xff]   ;;  %v6961_v41 = vld [vmem:[%s8874_s1 + $0x1160] ss:$16 sps:$4 sm:$0xff]  }
 0x1fc   : > { %4114 = vmatpush1.bf16.msra.mxu0 %v6875_v43  ;;  %4155 = vmatpush1.bf16.msra.mxu1 %v6878_v44  ;;  %v6969_v43 = vld [vmem:[%s8874_s1 + $0x1184] ss:$16 sps:$4 sm:$0xff]   ;;  %v6972_v44 = vld [vmem:[%s8874_s1 + $0x118c] ss:$16 sps:$4 sm:$0xff]  }
 0x1fd   : > { %4115 = vmatprep.subr.bf16.mxu0 %v6883_v45  ;;  %4156 = vmatprep.subr.bf16.mxu1 %v6886_v40  ;;  %v6967_v45 = vld [vmem:[%s8874_s1 + $0x1180] ss:$16 sps:$4 sm:$0xff]   ;;  %v6970_v40 = vld [vmem:[%s8874_s1 + $0x1188] ss:$16 sps:$4 sm:$0xff]  }
 0x200   : > { %4116 = vmatpush1.bf16.msra.mxu0 %v6881_v47  ;;  %4157 = vmatpush1.bf16.msra.mxu1 %v6884_v48  ;;  %v6978_v47 = vld [vmem:[%s8874_s1 + $0x11ac] ss:$16 sps:$4 sm:$0xff]   ;;  %v6973_v48 = vld [vmem:[%s8874_s1 + $0x11a0] ss:$16 sps:$4 sm:$0xff]  }
 0x201   : > { %4117 = vmatprep.subr.bf16.mxu0 %v6889_v49  ;;  %4158 = vmatprep.subr.bf16.mxu1 %v6892_v50  ;;  %v6976_v49 = vld [vmem:[%s8874_s1 + $0x11a8] ss:$16 sps:$4 sm:$0xff]   ;;  %v6981_v50 = vld [vmem:[%s8874_s1 + $0x11c4] ss:$16 sps:$4 sm:$0xff]  }
 0x204   : > { %4118 = vmatpush1.bf16.msra.mxu0 %v6887_v53  ;;  %4159 = vmatpush1.bf16.msra.mxu1 %v6890_v54  ;;  %v6982_v53 = vld [vmem:[%s8874_s1 + $0x11c8] ss:$16 sps:$4 sm:$0xff]   ;;  %v6987_v54 = vld [vmem:[%s8874_s1 + $0x11e4] ss:$16 sps:$4 sm:$0xff]  }
 0x205   : > { %4580 = vmatprep.subr.bf16.mxu0 %v6897_v55  ;;  %4621 = vmatprep.subr.bf16.mxu1 %v6900_v56  ;;  %v6990_v55 = vld [vmem:[%s8874_s1 + $0x11ec] ss:$16 sps:$4 sm:$0xff]   ;;  %v6991_v56 = vld [vmem:[%s7207_s11 + $0x8] ss:$8 sps:$4 sm:$0x1e]   ;;  %s6013_s11 = sshll.u32 %s8882_s12, 4 }
 0x206   : > { %s214_s28 = scalar_lea.vmem %s8876_s3, %s6013_s11 }
 0x207   : > { %4120 = vmatmul.mubr.bf16.vlgmr.msra.gmra.mrb[0].mxu0 %v3757_v58  ;;  %4161 = vmatmul.mubr.bf16.vlgmr.msra.gmra.mrb[0].mxu1 %v3757_v58  ;;  %v6988_v58 = vld [vmem:[%s8874_s1 + $0x11e8] ss:$16 sps:$4 sm:$0xff]  }
 0x208   : > { %4581 = vmatpush1.bf16.msra.mxu0 %v6895_v59  ;;  %4622 = vmatpush1.bf16.msra.mxu1 %v6898_v60  ;;  %v4256_v59 = vrot.slane %v6991_v56, 1 }
 0x209   : > { %4582 = vmatprep.subr.bf16.mxu0 %v6903_v61  ;;  %4623 = vmatprep.subr.bf16.mxu1 %v6906_v62 }
 0x20a   : > { %4612 = vmatprep.mubr.bf16.mxu0 %v4257_v63  ;;  %4653 = vmatprep.mubr.bf16.mxu1 %v4257_v63 }
 0x20c   : > { %4583 = vmatpush1.bf16.msra.mxu0 %v6901_v0  ;;  %4624 = vmatpush1.bf16.msra.mxu1 %v6904_v1 }
 0x20d   : > { %4584 = vmatprep.subr.bf16.mxu0 %v6909_v2  ;;  %4625 = vmatprep.subr.bf16.mxu1 %v6912_v3 }
 0x210   : > { %4585 = vmatpush1.bf16.msra.mxu0 %v6907_v4  ;;  %4626 = vmatpush1.bf16.msra.mxu1 %v6910_v46 }
 0x211   : > { %4586 = vmatprep.subr.bf16.mxu0 %v6915_v5  ;;  %4627 = vmatprep.subr.bf16.mxu1 %v6918_v6 }
 0x214   : > { %4587 = vmatpush1.bf16.msra.mxu0 %v6913_v7  ;;  %4628 = vmatpush1.bf16.msra.mxu1 %v6916_v8 }
 0x215   : > { %4588 = vmatprep.subr.bf16.mxu0 %v6921_v9  ;;  %4629 = vmatprep.subr.bf16.mxu1 %v6924_v10 }
 0x218   : > { %4589 = vmatpush1.bf16.msra.mxu0 %v6919_v11  ;;  %4630 = vmatpush1.bf16.msra.mxu1 %v6922_v12 }
 0x219   : > { %4590 = vmatprep.subr.bf16.mxu0 %v6927_v13  ;;  %4631 = vmatprep.subr.bf16.mxu1 %v6930_v14 }
 0x21a   : > { %v8846_v60 = vpop.permute.xlu0 %4677 }
 0x21c   : > { %4591 = vmatpush1.bf16.msra.mxu0 %v6925_v15  ;;  %4632 = vmatpush1.bf16.msra.mxu1 %v6928_v16 }
 0x21d   : > { %4592 = vmatprep.subr.bf16.mxu0 %v6933_v17  ;;  %4633 = vmatprep.subr.bf16.mxu1 %v6936_v18 }
 0x220   : > { %4593 = vmatpush1.bf16.msra.mxu0 %v6931_v19  ;;  %4634 = vmatpush1.bf16.msra.mxu1 %v6934_v20 }
 0x221   : > { %4594 = vmatprep.subr.bf16.mxu0 %v6939_v21  ;;  %4635 = vmatprep.subr.bf16.mxu1 %v6942_v22 }
 0x224   : > { %4595 = vmatpush1.bf16.msra.mxu0 %v6937_v23  ;;  %4636 = vmatpush1.bf16.msra.mxu1 %v6940_v24 }
 0x225   : > { %4596 = vmatprep.subr.bf16.mxu0 %v6945_v25  ;;  %4637 = vmatprep.subr.bf16.mxu1 %v6948_v26 }
 0x228   : > { %4597 = vmatpush1.bf16.msra.mxu0 %v6943_v27  ;;  %4638 = vmatpush1.bf16.msra.mxu1 %v6946_v28 }
 0x229   : > { %4598 = vmatprep.subr.bf16.mxu0 %v6951_v29  ;;  %4639 = vmatprep.subr.bf16.mxu1 %v6954_v31 }
 0x22c   : > { %4599 = vmatpush1.bf16.msra.mxu0 %v6949_v32  ;;  %4640 = vmatpush1.bf16.msra.mxu1 %v6952_v33 }
 0x22d   : > { %4600 = vmatprep.subr.bf16.mxu0 %v6957_v34  ;;  %4641 = vmatprep.subr.bf16.mxu1 %v6960_v35 }
 0x230   : > { %4601 = vmatpush1.bf16.msra.mxu0 %v6955_v36  ;;  %4642 = vmatpush1.bf16.msra.mxu1 %v6958_v37 }
 0x231   : > { %4602 = vmatprep.subr.bf16.mxu0 %v6963_v38  ;;  %4643 = vmatprep.subr.bf16.mxu1 %v6966_v39 }
 0x234   : > { %4603 = vmatpush1.bf16.msra.mxu0 %v6961_v41  ;;  %4644 = vmatpush1.bf16.msra.mxu1 %v6964_v42 }
 0x235   : > { %4604 = vmatprep.subr.bf16.mxu0 %v6969_v43  ;;  %4645 = vmatprep.subr.bf16.mxu1 %v6972_v44 }
 0x238   : > { %4605 = vmatpush1.bf16.msra.mxu0 %v6967_v45  ;;  %4646 = vmatpush1.bf16.msra.mxu1 %v6970_v40 }
 0x239   : > { %4606 = vmatprep.subr.bf16.mxu0 %v6975_v30  ;;  %4647 = vmatprep.subr.bf16.mxu1 %v6978_v47 }
 0x23c   : > { %4607 = vmatpush1.bf16.msra.mxu0 %v6973_v48  ;;  %4648 = vmatpush1.bf16.msra.mxu1 %v6976_v49 }
 0x23d   : > { %4608 = vmatprep.subr.bf16.mxu0 %v6981_v50  ;;  %4649 = vmatprep.subr.bf16.mxu1 %v6984_v51 }
 0x240   : > { %4609 = vmatpush1.bf16.msra.mxu0 %v6979_v52  ;;  %4650 = vmatpush1.bf16.msra.mxu1 %v6982_v53 }
 0x241   : > { %4610 = vmatprep.subr.bf16.mxu0 %v6987_v54  ;;  %4651 = vmatprep.subr.bf16.mxu1 %v6990_v55 }
 0x244   : > { %4611 = vmatpush1.bf16.msra.mxu0 %v6985_v57  ;;  %4652 = vmatpush1.bf16.msra.mxu1 %v6988_v58 }
 0x247   : > { %4613 = vmatmul.mubr.bf16.vlgmr.msra.gmra.mrb[0].mxu0 %v4256_v59  ;;  %4654 = vmatmul.mubr.bf16.vlgmr.msra.gmra.mrb[0].mxu1 %v4256_v59 }
 0x31a   : > { %v4614_v61 = vpop.f32.mrb[0].mxu0  ;;  %v4655_v62 = vpop.f32.mrb[0].mxu1 }
 0x31b   : > { %v4680_v63 = vmul.f32 %v8846_v60, %v4614_v61  ;;  %v4682_v0 = vmul.f32 %v8846_v60, %v4655_v62  ;;  %v4616_v1 = vpop.f32.mrb[1].mxu0  ;;  %v4657_v2 = vpop.f32.mrb[1].mxu1 }
 0x31c   : > { %v4681_v3 = vmul.f32 %v8846_v60, %v4616_v1  ;;  %v4683_v4 = vmul.f32 %v8846_v60, %v4657_v2  ;;  %v4618_v46 = vpop.f32.mrb[2].mxu0  ;;  %v4659_v5 = vpop.f32.mrb[2].mxu1 }
 0x31d   : > { %v4684_v6 = vrot.slane %v4680_v63, 4  ;;  %v4696_v7 = vrot.slane %v4682_v0, 4  ;;  %v4619_v8 = vpop.f32.mrb[3].mxu0  ;;  %v4660_v9 = vpop.f32.mrb[3].mxu1 }
 0x31e   : > { %v4690_v10 = vrot.slane %v4681_v3, 4  ;;  %v4702_v11 = vrot.slane %v4683_v4, 4 }
 0x31f   : > { %v4685_v12 = vadd.f32 %v4684_v6, %v4680_v63  ;;  %v4697_v13 = vadd.f32 %v4696_v7, %v4682_v0 }
 0x320   : > { %v4691_v14 = vadd.f32 %v4690_v10, %v4681_v3  ;;  %v4703_v15 = vadd.f32 %v4702_v11, %v4683_v4 }
 0x321   : > { %v4686_v16 = vrot.slane %v4685_v12, 2  ;;  %v4698_v17 = vrot.slane %v4697_v13, 2 }
 0x322   : > { %v4692_v18 = vrot.slane %v4691_v14, 2  ;;  %v4704_v19 = vrot.slane %v4703_v15, 2 }
 0x323   : > { %v4687_v20 = vadd.f32 %v4686_v16, %v4685_v12  ;;  %v4699_v21 = vadd.f32 %v4698_v17, %v4697_v13 }
 0x324   : > { %v4693_v22 = vadd.f32 %v4692_v18, %v4691_v14  ;;  %v4705_v23 = vadd.f32 %v4704_v19, %v4703_v15 }
 0x325   : > { %v4688_v24 = vrot.slane %v4687_v20, 1  ;;  %v4700_v25 = vrot.slane %v4699_v21, 1 }
 0x326   : > { %v4694_v26 = vrot.slane %v4693_v22, 1  ;;  %v4706_v27 = vrot.slane %v4705_v23, 1 }
 0x327   : > { %v4689_v28 = vadd.f32 %v4688_v24, %v4687_v20  ;;  %v4701_v29 = vadd.f32 %v4700_v25, %v4699_v21 }
 0x328   : > { %v4695_v31 = vadd.f32 %v4694_v26, %v4693_v22  ;;  %v4707_v32 = vadd.f32 %v4706_v27, %v4705_v23 }
 0x329   : > { %v4708_v33 = vmul.f32 0.25, %v4689_v28  ;;  %v4710_v34 = vmul.f32 0.25, %v4701_v29 }
 0x32a   : > { %v4709_v35 = vmul.f32 0.25, %v4695_v31  ;;  %v4711_v36 = vmul.f32 0.25, %v4707_v32 }
 0x32b   : > { %v4712_v37 = vsub.f32 %v4614_v61, %v4708_v33  ;;  %v4714_v38 = vsub.f32 %v4655_v62, %v4710_v34 }
 0x32c   : > { %v4713_v39 = vsub.f32 %v4616_v1, %v4709_v35  ;;  %v4715_v41 = vsub.f32 %v4657_v2, %v4711_v36 }
 0x32d   : > { %v4716_v42 = vmul.f32 %v4712_v37, %v4712_v37  ;;  %v4718_v43 = vmul.f32 %v4714_v38, %v4714_v38 }
 0x32e   : > { %v4717_v44 = vmul.f32 %v4713_v39, %v4713_v39  ;;  %v4719_v45 = vmul.f32 %v4715_v41, %v4715_v41 }
 0x32f   : > { %v4720_v40 = vmul.f32 %v4716_v42, %v8846_v60  ;;  %v4722_v30 = vmul.f32 %v4718_v43, %v8846_v60 }
 0x330   : > { %v4721_v47 = vmul.f32 %v4717_v44, %v8846_v60  ;;  %v4723_v48 = vmul.f32 %v4719_v45, %v8846_v60 }
 0x331   : > { %v4724_v49 = vrot.slane %v4720_v40, 4  ;;  %v4736_v50 = vrot.slane %v4722_v30, 4 }
 0x332   : > { %v4730_v51 = vrot.slane %v4721_v47, 4  ;;  %v4742_v52 = vrot.slane %v4723_v48, 4 }
 0x333   : > { %v4725_v53 = vadd.f32 %v4724_v49, %v4720_v40  ;;  %v4737_v54 = vadd.f32 %v4736_v50, %v4722_v30 }
 0x334   : > { %v4731_v55 = vadd.f32 %v4730_v51, %v4721_v47  ;;  %v4743_v56 = vadd.f32 %v4742_v52, %v4723_v48 }
 0x335   : > { %v4726_v57 = vrot.slane %v4725_v53, 2  ;;  %v4738_v58 = vrot.slane %v4737_v54, 2 }
 0x336   : > { %v4732_v59 = vrot.slane %v4731_v55, 2  ;;  %v4744_v61 = vrot.slane %v4743_v56, 2 }
 0x337   : > { %v4727_v62 = vadd.f32 %v4726_v57, %v4725_v53  ;;  %v4739_v63 = vadd.f32 %v4738_v58, %v4737_v54 }
 0x338   : > { %v4733_v0 = vadd.f32 %v4732_v59, %v4731_v55  ;;  %v4745_v1 = vadd.f32 %v4744_v61, %v4743_v56 }
 0x339   : > { %v4728_v2 = vrot.slane %v4727_v62, 1  ;;  %v4740_v3 = vrot.slane %v4739_v63, 1 }
 0x33a   : > { %v4734_v4 = vrot.slane %v4733_v0, 1  ;;  %v4746_v46 = vrot.slane %v4745_v1, 1 }
 0x33b   : > { %v4729_v5 = vadd.f32 %v4728_v2, %v4727_v62  ;;  %v4741_v6 = vadd.f32 %v4740_v3, %v4739_v63 }
 0x33c   : > { %v4735_v7 = vadd.f32 %v4734_v4, %v4733_v0  ;;  %v4747_v8 = vadd.f32 %v4746_v46, %v4745_v1 }
 0x33d   : > { %v4748_v9 = vmul.f32 0.25, %v4729_v5  ;;  %v4750_v10 = vmul.f32 0.25, %v4741_v6 }
 0x33e   : > { %v4749_v11 = vmul.f32 0.25, %v4735_v7  ;;  %v4751_v12 = vmul.f32 0.25, %v4747_v8 }
 0x33f   : > { %v4752_v13 = vadd.f32 1e-05, %v4748_v9  ;;  %v4754_v14 = vadd.f32 1e-05, %v4750_v10 }
 0x340   : > { %v4753_v15 = vadd.f32 1e-05, %v4749_v11  ;;  %v4755_v16 = vadd.f32 1e-05, %v4751_v12 }
 0x341   : > { %6994 = vrsqrt.f32 %v4752_v13 }
 0x342   : > { %6996 = vrsqrt.f32 %v4754_v14 }
 0x343   : > { %6998 = vrsqrt.f32 %v4753_v15 }
 0x344   : > { %7000 = vrsqrt.f32 %v4755_v16 }
 0x34b   : > { %v6995_v17 = vpop.eup %6994 }
 0x34c   : > { %v6997_v18 = vpop.eup %6996  ;;  %v4760_v19 = vmul.f32 %v6995_v17, %v4712_v37 }
 0x34d   : > { %v6999_v20 = vpop.eup %6998  ;;  %v4762_v21 = vmul.f32 %v6997_v18, %v4714_v38 }
 0x34e   : > { %v7001_v22 = vpop.eup %7000  ;;  %vm4764_vm0 = vcmp.ge.f32.partialorder %v4760_v19, 0.0  ;;  %v4768_v23 = vmul.f32 0.2, %v4760_v19  ;;  %v4761_v24 = vmul.f32 %v6999_v20, %v4713_v39 }
 0x34f   : > { %vm4766_vm1 = vcmp.ge.f32.partialorder %v4762_v21, 0.0  ;;  %v4770_v25 = vmul.f32 0.2, %v4762_v21  ;;  %v4763_v26 = vmul.f32 %v7001_v22, %v4715_v41 }
 0x350   : > { %v4772_v27 = vsel %vm4764_vm0, %v4760_v19, %v4768_v23  ;;  %vm4765_vm2 = vcmp.ge.f32.partialorder %v4761_v24, 0.0  ;;  %v4769_v28 = vmul.f32 0.2, %v4761_v24 }
 0x351   : > { %v4776_v29 = vmul.f32 %v4772_v27, %v8846_v60  ;;  %v4774_v31 = vsel %vm4766_vm1, %v4762_v21, %v4770_v25  ;;  %vm4767_vm3 = vcmp.ge.f32.partialorder %v4763_v26, 0.0  ;;  %v4771_v32 = vmul.f32 0.2, %v4763_v26 }
 0x352   : > { %v4778_v33 = vmul.f32 %v4774_v31, %v8846_v60  ;;  %v4773_v34 = vsel %vm4765_vm2, %v4761_v24, %v4769_v28 }
 0x353   : > { %v4777_v35 = vmul.f32 %v4773_v34, %v8846_v60  ;;  %v4775_v36 = vsel %vm4767_vm3, %v4763_v26, %v4771_v32 }
 0x354   : > { %v4779_v37 = vmul.f32 %v4775_v36, %v8846_v60 }
 0x355   : > { %v6014_v38 = vpack.c.bf16 %v4777_v35, %v4776_v29 }
 0x356   : > { %v6015_v39 = vpack.c.bf16 %v4779_v37, %v4778_v33 }
 0x357   : > { %4796 = vst [vmem:[%s214_s28] sm:$0xff] %v6014_v38 }
 0x358   : > { %4797 = vst [vmem:[%s214_s28 + $0x8] sm:$0xff] %v6015_v39 }
 0x359 PF: > { %s13_s14 = sadd.s32 1, %s7024_s14   ;;  %s8877_s12 = smov %s7020_s13 }
 0x35a   : > { %p10_p5 = scmp.ge.s32.totalorder %s13_s14, 4   ;;  %s8878_s13 = smov %s8880_s15 }
 0x35c   :  { %12 = sbr.rel (!%p10_p5) target bundleno = 2 (0x2), region = 73 }

// kernel: simple_discriminator_forward.9
= control target key start
LH: loop header
LB: loop body
LE: loop exit
PB: predicated region body
PF: predicated region fallthrough
CT: control target
= control target key end

     0   :  { %s5176_s9 = smov 0   ;;  %s6130_s0 = inlined_call_operand.vmem [shape: bf16[2,1,18,512], index: 0, kind: input, shape index: {}]   ;;  %s6131_s1 = inlined_call_operand.vmem [shape: bf16[9,512,128], index: 1, kind: input, shape index: {}]   ;;  %s6132_s2 = inlined_call_operand.vmem [shape: f32[2,8,128], index: 2, kind: output, shape index: {}]  }
   0x1 LB: > { %s3565_s10 = sadd.s32 4294967295, %s5159_s9   ;;  %p3569_p0 = scmp.ge.s32.totalorder %s5159_s9, 1  ;;  %s5159_s9 = sphi %s5176_s9, %s12_s9  }
   0x2   : > { %p112_p1 = scmp.lt.s32.totalorder %s5159_s9, 3 }
   0x4   : > { %p113_p2 = pnand %p3569_p0, %p112_p1 }
   0x5   : > { %v4815_v0 = vld [vmem:[%s6131_s1 + $0x40] sm:$0xff] (!%p113_p2)   ;;  %v4819_v4 = vld [vmem:[%s6131_s1 + $0x48] sm:$0xff] (!%p113_p2)   ;;  %v4823_v8 = vld [vmem:[%s6131_s1 + $0x50] sm:$0xff] (!%p113_p2)   ;;  %p133_p3 = scmp.lt.s32.totalorder (!%p113_p2), %s3565_s10, 1 }
   0x6   : > { %116 = sbr.rel (%p113_p2) target bundleno = 553 (0x229), region = 28  ;;  %v4816_v1 = vld [vmem:[%s6131_s1 + $0xc0] sm:$0xff] (!%p113_p2)   ;;  %4410 = vmatprep.subr.bf16.mxu0 (!%p113_p2), %v4815_v0  ;;  %v4820_v5 = vld [vmem:[%s6131_s1 + $0xc8] sm:$0xff] (!%p113_p2)   ;;  %v4824_v9 = vld [vmem:[%s6131_s1 + $0xd0] sm:$0xff] (!%p113_p2)  }
   0x7   : > { %v4817_v2 = vld [vmem:[%s6131_s1] sm:$0xff] (!%p113_p2)   ;;  %4432 = vmatprep.subr.bf16.mxu1 (!%p113_p2), %v4816_v1  ;;  %v4821_v6 = vld [vmem:[%s6131_s1 + $0x8] sm:$0xff] (!%p113_p2)   ;;  %v4825_v10 = vld [vmem:[%s6131_s1 + $0x10] sm:$0xff] (!%p113_p2)  }
   0x8   : > { %v4818_v3 = vld [vmem:[%s6131_s1 + $0x80] sm:$0xff] (!%p113_p2)   ;;  %4411 = vmatpush3.bf16.msra.mxu0 (!%p113_p2), %v4817_v2  ;;  %v4822_v7 = vld [vmem:[%s6131_s1 + $0x88] sm:$0xff] (!%p113_p2)   ;;  %v4826_v11 = vld [vmem:[%s6131_s1 + $0x90] sm:$0xff] (!%p113_p2)  }
   0x9   : > { %4433 = vmatpush3.bf16.msra.mxu1 (!%p113_p2), %v4818_v3  ;;  %4412 = vmatprep.subr.bf16.mxu0 (!%p113_p2), %v4819_v4  ;;  %v4827_v12 = vld [vmem:[%s6131_s1 + $0x58] sm:$0xff] (!%p113_p2)   ;;  %v4831_v16 = vld [vmem:[%s6131_s1 + $0x60] sm:$0xff] (!%p113_p2)   ;;  %v4835_v20 = vld [vmem:[%s6131_s1 + $0x68] sm:$0xff] (!%p113_p2)  }
   0xa   : > { %4434 = vmatprep.subr.bf16.mxu1 (!%p113_p2), %v4820_v5  ;;  %v4828_v13 = vld [vmem:[%s6131_s1 + $0xd8] sm:$0xff] (!%p113_p2)   ;;  %v4832_v17 = vld [vmem:[%s6131_s1 + $0xe0] sm:$0xff] (!%p113_p2)   ;;  %v4836_v21 = vld [vmem:[%s6131_s1 + $0xe8] sm:$0xff] (!%p113_p2)  }
   0xb   : > { %v4829_v14 = vld [vmem:[%s6131_s1 + $0x18] sm:$0xff] (!%p113_p2)   ;;  %v4833_v18 = vld [vmem:[%s6131_s1 + $0x20] sm:$0xff] (!%p113_p2)   ;;  %v4837_v22 = vld [vmem:[%s6131_s1 + $0x28] sm:$0xff] (!%p113_p2)  }
   0xc   : > { %4413 = vmatpush3.bf16.msra.mxu0 (!%p113_p2), %v4821_v6  ;;  %v4830_v15 = vld [vmem:[%s6131_s1 + $0x98] sm:$0xff] (!%p113_p2)   ;;  %v4834_v19 = vld [vmem:[%s6131_s1 + $0xa0] sm:$0xff] (!%p113_p2)   ;;  %v4838_v23 = vld [vmem:[%s6131_s1 + $0xa8] sm:$0xff] (!%p113_p2)  }
   0xd   : > { %4435 = vmatpush3.bf16.msra.mxu1 %v4822_v7  ;;  %4414 = vmatprep.subr.bf16.mxu0 %v4823_v8  ;;  %s6134_s10 = smov (!%p133_p3, %s3565_s10), 1  ;;  %v4839_v24 = vld [vmem:[%s6131_s1 + $0x70] sm:$0xff]   ;;  %v4843_v28 = vld [vmem:[%s6131_s1 + $0x78] sm:$0xff]   ;;  %v4851_v38 = vld [vmem:[%s6131_s1 + $0x140] sm:$0xff]  }
   0xe   : > { %4436 = vmatprep.subr.bf16.mxu1 %v4824_v9  ;;  %v4840_v25 = vld [vmem:[%s6131_s1 + $0xf0] sm:$0xff]   ;;  %s4806_s11 = smul.u32 48, %s6134_s10  ;;  %v4844_v29 = vld [vmem:[%s6131_s1 + $0xf8] sm:$0xff]   ;;  %v4852_v39 = vld [vmem:[%s6131_s1 + $0x1c0] sm:$0xff]  }
   0xf   : > { %v4841_v26 = vld [vmem:[%s6131_s1 + $0x30] sm:$0xff]   ;;  %v4845_v30 = vld [vmem:[%s6131_s1 + $0x38] sm:$0xff]   ;;  %v4853_v40 = vld [vmem:[%s6131_s1 + $0x100] sm:$0xff]  }
  0x10   : > { %4415 = vmatpush3.bf16.msra.mxu0 %v4825_v10  ;;  %v4842_v27 = vld [vmem:[%s6131_s1 + $0xb0] sm:$0xff]   ;;  %s5284_s22 = scalar_lea.vmem %s6130_s0, %s4806_s11  ;;  %v4846_v31 = vld [vmem:[%s6131_s1 + $0xb8] sm:$0xff]   ;;  %v4854_v41 = vld [vmem:[%s6131_s1 + $0x180] sm:$0xff]  }
  0x11   : > { %4437 = vmatpush3.bf16.msra.mxu1 %v4826_v11  ;;  %4416 = vmatprep.subr.bf16.mxu0 %v4827_v12  ;;  %v5293_v32 = vld [vmem:[%s5284_s22] sm:$0xff]  ;;  %v5296_v33 = vld [vmem:[%s5284_s22 + $0x8] sm:$0xff]  ;;  %v4859_v46 = vld [vmem:[%s6131_s1 + $0x150] sm:$0xff]  }
  0x12   : > { %4438 = vmatprep.subr.bf16.mxu1 %v4828_v13  ;;  %v3572_v34 = vcombine.low %v5293_v32, %v5293_v32  ;;  %v3573_v35 = vcombine.high %v5293_v32, %v5293_v32  ;;  %v3574_v36 = vcombine.low %v5296_v33, %v5296_v33  ;;  %v3575_v37 = vcombine.high %v5296_v33, %v5296_v33  ;;  %v4855_v42 = vld [vmem:[%s6131_s1 + $0x148] sm:$0xff]   ;;  %v4860_v47 = vld [vmem:[%s6131_s1 + $0x1d0] sm:$0xff]   ;;  %v4863_v50 = vld [vmem:[%s6131_s1 + $0x158] sm:$0xff]  }
  0x13   : > { %v4856_v43 = vld [vmem:[%s6131_s1 + $0x1c8] sm:$0xff]   ;;  %v4861_v48 = vld [vmem:[%s6131_s1 + $0x110] sm:$0xff]   ;;  %v4864_v51 = vld [vmem:[%s6131_s1 + $0x1d8] sm:$0xff]  }
  0x14   : > { %4417 = vmatpush3.bf16.msra.mxu0 %v4829_v14  ;;  %447 = vmatprep.mubr.bf16.mxu0 %v3573_v35  ;;  %v4857_v44 = vld [vmem:[%s6131_s1 + $0x108] sm:$0xff]   ;;  %v4862_v49 = vld [vmem:[%s6131_s1 + $0x190] sm:$0xff]   ;;  %v4865_v52 = vld [vmem:[%s6131_s1 + $0x118] sm:$0xff]  }
  0x15   : > { %4439 = vmatpush3.bf16.msra.mxu1 %v4830_v15  ;;  %4418 = vmatprep.subr.bf16.mxu0 %v4831_v16  ;;  %v4858_v45 = vld [vmem:[%s6131_s1 + $0x188] sm:$0xff]   ;;  %v4866_v53 = vld [vmem:[%s6131_s1 + $0x198] sm:$0xff]   ;;  %v4867_v54 = vld [vmem:[%s6131_s1 + $0x160] sm:$0xff]  }
  0x16   : > { %4440 = vmatprep.subr.bf16.mxu1 %v4832_v17  ;;  %487 = vmatprep.mubr.bf16.mxu1 %v3575_v37  ;;  %v4868_v55 = vld [vmem:[%s6131_s1 + $0x1e0] sm:$0xff]   ;;  %v4871_v58 = vld [vmem:[%s6131_s1 + $0x168] sm:$0xff]   ;;  %v4875_v62 = vld [vmem:[%s6131_s1 + $0x170] sm:$0xff]  }
  0x17   : > { %v4869_v56 = vld [vmem:[%s6131_s1 + $0x120] sm:$0xff]   ;;  %v4872_v59 = vld [vmem:[%s6131_s1 + $0x1e8] sm:$0xff]   ;;  %v4876_v63 = vld [vmem:[%s6131_s1 + $0x1f0] sm:$0xff]  }
  0x18   : > { %4419 = vmatpush3.bf16.msra.mxu0 %v4833_v18  ;;  %v4870_v57 = vld [vmem:[%s6131_s1 + $0x1a0] sm:$0xff]   ;;  %v4873_v60 = vld [vmem:[%s6131_s1 + $0x128] sm:$0xff]   ;;  %v4877_v0 = vld [vmem:[%s6131_s1 + $0x130] sm:$0xff]  }
  0x19   : > { %4441 = vmatpush3.bf16.msra.mxu1 %v4834_v19  ;;  %4420 = vmatprep.subr.bf16.mxu0 %v4835_v20  ;;  %v4874_v61 = vld [vmem:[%s6131_s1 + $0x1a8] sm:$0xff]   ;;  %v4878_v1 = vld [vmem:[%s6131_s1 + $0x1b0] sm:$0xff]   ;;  %v4879_v2 = vld [vmem:[%s6131_s1 + $0x178] sm:$0xff]  }
  0x1a   : > { %4442 = vmatprep.subr.bf16.mxu1 %v4836_v21  ;;  %v4880_v3 = vld [vmem:[%s6131_s1 + $0x1f8] sm:$0xff]   ;;  %v498_v6 = vld [vmem:[%s5284_s22 + $0x10] sm:$0x11]  ;;  %v4887_v12 = vld [vmem:[%s6131_s1 + $0x240] sm:$0xff]  }
  0x1b   : > { %v4881_v4 = vld [vmem:[%s6131_s1 + $0x138] sm:$0xff]   ;;  %v3672_v7 = vcombine.low %v5293_v32, %v498_v6  ;;  %v3673_v8 = vcombine.high %v5293_v32, %v498_v6  ;;  %v4888_v17 = vld [vmem:[%s6131_s1 + $0x2c0] sm:$0xff]   ;;  %v4894_v35 = vld [vmem:[%s6131_s1 + $0x288] sm:$0xff]  }
  0x1c   : > { %4421 = vmatpush3.bf16.msra.mxu0 %v4837_v22  ;;  %v4882_v5 = vld [vmem:[%s6131_s1 + $0x1b8] sm:$0xff]   ;;  %v4896_v37 = vld [vmem:[%s6131_s1 + $0x2d0] sm:$0xff]  }
  0x1d   : > { %4443 = vmatpush3.bf16.msra.mxu1 %v4838_v23  ;;  %4422 = vmatprep.subr.bf16.mxu0 %v4839_v24  ;;  %v499_v9 = vld [vmem:[%s5284_s22 + $0x18] sm:$0x11]  ;;  %v590_v13 = vshrl.u32 %v3673_v8, 16  ;;  %v592_v14 = vshll.u32 %v3673_v8, 16  ;;  %v583_v15 = vshrl.u32 %v3672_v7, 16  ;;  %v585_v16 = vshll.u32 %v3672_v7, 16 }
  0x1e   : > { %4444 = vmatprep.subr.bf16.mxu1 %v4840_v25  ;;  %v3674_v10 = vcombine.low %v5296_v33, %v499_v9  ;;  %v3675_v11 = vcombine.high %v5296_v33, %v499_v9  ;;  %v4889_v24 = vld [vmem:[%s6131_s1 + $0x200] sm:$0xff]   ;;  %v4892_v33 = vld [vmem:[%s6131_s1 + $0x2c8] sm:$0xff]  }
  0x1f   : > { %v594_v22 = vrot.slane %v592_v14, 1  ;;  %v587_v23 = vrot.slane %v585_v16, 1  ;;  %v4928_v7 = vld [vmem:[%s6131_s1 + $0x380] sm:$0xff]   ;;  %v4929_v8 = vld [vmem:[%s6131_s1 + $0x348] sm:$0xff]   ;;  %v4935_v14 = vld [vmem:[%s6131_s1 + $0x310] sm:$0xff]  }
  0x20   : > { %4423 = vmatpush3.bf16.msra.mxu0 %v4841_v26  ;;  %v604_v18 = vshrl.u32 %v3675_v11, 16  ;;  %v606_v19 = vshll.u32 %v3675_v11, 16  ;;  %v597_v20 = vshrl.u32 %v3674_v10, 16  ;;  %v599_v21 = vshll.u32 %v3674_v10, 16  ;;  %v4930_v9 = vld [vmem:[%s6131_s1 + $0x3c8] sm:$0xff]   ;;  %v4937_v16 = vld [vmem:[%s6131_s1 + $0x358] sm:$0xff]  }
  0x21   : > { %4445 = vmatpush3.bf16.msra.mxu1 %v4842_v27  ;;  %4424 = vmatprep.subr.bf16.mxu0 %v4843_v28  ;;  %v4890_v27 = vld [vmem:[%s6131_s1 + $0x280] sm:$0xff]   ;;  %v4891_v28 = vld [vmem:[%s6131_s1 + $0x248] sm:$0xff]  }
  0x22   : > { %4446 = vmatprep.subr.bf16.mxu1 %v4844_v29  ;;  %v608_v25 = vrot.slane %v606_v19, 1  ;;  %v601_v26 = vrot.slane %v599_v21, 1  ;;  %v595_v29 = vor.u32 %v594_v22, %v590_v13  ;;  %v4931_v10 = vld [vmem:[%s6131_s1 + $0x308] sm:$0xff]   ;;  %v4934_v13 = vld [vmem:[%s6131_s1 + $0x3d0] sm:$0xff]   ;;  %v4940_v19 = vld [vmem:[%s6131_s1 + $0x398] sm:$0xff]  }
  0x23   : > { %v4932_v11 = vld [vmem:[%s6131_s1 + $0x388] sm:$0xff]   ;;  %v4942_v21 = vld [vmem:[%s6131_s1 + $0x3e0] sm:$0xff]  }
  0x24   : > { %4425 = vmatpush3.bf16.msra.mxu0 %v4845_v30  ;;  %v588_v30 = vor.u32 %v587_v23, %v583_v15  ;;  %v602_v32 = vor.u32 %v601_v26, %v597_v20  ;;  %v4936_v15 = vld [vmem:[%s6131_s1 + $0x390] sm:$0xff]   ;;  %v4941_v20 = vld [vmem:[%s6131_s1 + $0x360] sm:$0xff]   ;;  %v4947_v26 = vld [vmem:[%s6131_s1 + $0x328] sm:$0xff]  }
  0x25   : > { %4447 = vmatpush3.bf16.msra.mxu1 %v4846_v31  ;;  %4454 = vmatprep.subr.bf16.mxu0 %v4851_v38  ;;  %v609_v31 = vor.u32 %v608_v25, %v604_v18  ;;  %v4897_v38 = vld [vmem:[%s6131_s1 + $0x210] sm:$0xff]   ;;  %v4939_v18 = vld [vmem:[%s6131_s1 + $0x318] sm:$0xff]   ;;  %v4943_v22 = vld [vmem:[%s6131_s1 + $0x320] sm:$0xff]  }
  0x26   : > { %4476 = vmatprep.subr.bf16.mxu1 %v4852_v39  ;;  %v4898_v39 = vld [vmem:[%s6131_s1 + $0x290] sm:$0xff]   ;;  %v4944_v23 = vld [vmem:[%s6131_s1 + $0x3a0] sm:$0xff]   ;;  %v4946_v25 = vld [vmem:[%s6131_s1 + $0x3e8] sm:$0xff]  }
  0x27   : > { %448 = vmatmul.mubr.bf16.vlgmr.msra.gmra.mrb[0].mxu0 %v3572_v34  ;;  %v4893_v34 = vld [vmem:[%s6131_s1 + $0x208] sm:$0xff]  }
  0x28   : > { %488 = vmatmul.mubr.bf16.vlgmr.msra.gmra.mrb[0].mxu1 %v3574_v36  ;;  %4455 = vmatpush3.bf16.msra.mxu0 %v4853_v40  ;;  %v4895_v36 = vld [vmem:[%s6131_s1 + $0x250] sm:$0xff]   ;;  %v4899_v40 = vld [vmem:[%s6131_s1 + $0x258] sm:$0xff]  }
  0x29   : > { %4477 = vmatpush3.bf16.msra.mxu1 %v4854_v41  ;;  %4456 = vmatprep.subr.bf16.mxu0 %v4855_v42  ;;  %v4900_v41 = vld [vmem:[%s6131_s1 + $0x2d8] sm:$0xff]  }
  0x2a   : > { %4478 = vmatprep.subr.bf16.mxu1 %v4856_v43  ;;  %838 = vmatprep.mubr.bf16.mxu0 %v595_v29  ;;  %v4901_v42 = vld [vmem:[%s6131_s1 + $0x218] sm:$0xff]   ;;  %v4950_v29 = vld [vmem:[%s6131_s1 + $0x3f0] sm:$0xff]  }
  0x2b   : > { %878 = vmatprep.mubr.bf16.mxu1 %v609_v31  ;;  %v4902_v43 = vld [vmem:[%s6131_s1 + $0x298] sm:$0xff]   ;;  %v4952_v31 = vld [vmem:[%s6131_s1 + $0x3b0] sm:$0xff]  }
  0x2c   : > { %4457 = vmatpush3.bf16.msra.mxu0 %v4857_v44  ;;  %v4903_v44 = vld [vmem:[%s6131_s1 + $0x260] sm:$0xff]  }
  0x2d   : > { %4479 = vmatpush3.bf16.msra.mxu1 %v4858_v45  ;;  %4458 = vmatprep.subr.bf16.mxu0 %v4859_v46  ;;  %v4904_v45 = vld [vmem:[%s6131_s1 + $0x2e0] sm:$0xff]  }
  0x2e   : > { %4480 = vmatprep.subr.bf16.mxu1 %v4860_v47  ;;  %v4905_v46 = vld [vmem:[%s6131_s1 + $0x220] sm:$0xff]  }
  0x2f   : > { %v4906_v47 = vld [vmem:[%s6131_s1 + $0x2a0] sm:$0xff]  }
  0x30   : > { %4459 = vmatpush3.bf16.msra.mxu0 %v4861_v48  ;;  %v4907_v48 = vld [vmem:[%s6131_s1 + $0x268] sm:$0xff]  }
  0x31   : > { %4481 = vmatpush3.bf16.msra.mxu1 %v4862_v49  ;;  %4460 = vmatprep.subr.bf16.mxu0 %v4863_v50  ;;  %v4908_v49 = vld [vmem:[%s6131_s1 + $0x2e8] sm:$0xff]  }
  0x32   : > { %4482 = vmatprep.subr.bf16.mxu1 %v4864_v51  ;;  %v4909_v50 = vld [vmem:[%s6131_s1 + $0x228] sm:$0xff]  }
  0x33   : > { %v4910_v51 = vld [vmem:[%s6131_s1 + $0x2a8] sm:$0xff]  }
  0x34   : > { %4461 = vmatpush3.bf16.msra.mxu0 %v4865_v52  ;;  %v4911_v52 = vld [vmem:[%s6131_s1 + $0x270] sm:$0xff]  }
  0x35   : > { %4483 = vmatpush3.bf16.msra.mxu1 %v4866_v53  ;;  %4462 = vmatprep.subr.bf16.mxu0 %v4867_v54  ;;  %v4912_v53 = vld [vmem:[%s6131_s1 + $0x2f0] sm:$0xff]  }
  0x36   : > { %4484 = vmatprep.subr.bf16.mxu1 %v4868_v55  ;;  %v4913_v54 = vld [vmem:[%s6131_s1 + $0x230] sm:$0xff]  }
  0x37   : > { %v4914_v55 = vld [vmem:[%s6131_s1 + $0x2b0] sm:$0xff]  }
  0x38   : > { %4463 = vmatpush3.bf16.msra.mxu0 %v4869_v56  ;;  %v4915_v56 = vld [vmem:[%s6131_s1 + $0x278] sm:$0xff]  }
  0x39   : > { %4485 = vmatpush3.bf16.msra.mxu1 %v4870_v57  ;;  %4464 = vmatprep.subr.bf16.mxu0 %v4871_v58  ;;  %v4916_v57 = vld [vmem:[%s6131_s1 + $0x2f8] sm:$0xff]  }
  0x3a   : > { %4486 = vmatprep.subr.bf16.mxu1 %v4872_v59  ;;  %v4917_v58 = vld [vmem:[%s6131_s1 + $0x238] sm:$0xff]  }
  0x3b   : > { %v4918_v59 = vld [vmem:[%s6131_s1 + $0x2b8] sm:$0xff]  }
  0x3c   : > { %4465 = vmatpush3.bf16.msra.mxu0 %v4873_v60  ;;  %v4919_v60 = vld [vmem:[%s5284_s22] ss:$16 sps:$4 sm:$0x1e]  }
  0x3d   : > { %4487 = vmatpush3.bf16.msra.mxu1 %v4874_v61  ;;  %4466 = vmatprep.subr.bf16.mxu0 %v4875_v62  ;;  %v4925_v61 = vld [vmem:[%s6131_s1 + $0x340] sm:$0xff]  }
  0x3e   : > { %4488 = vmatprep.subr.bf16.mxu1 %v4876_v63  ;;  %v4921_v62 = vld [vmem:[%s5284_s22 + $0x4] ss:$16 sps:$4 sm:$0x1e]  }
  0x3f   : > { %v4926_v63 = vld [vmem:[%s6131_s1 + $0x3c0] sm:$0xff]  }
  0x40   : > { %4467 = vmatpush3.bf16.msra.mxu0 %v4877_v0  ;;  %v974_v0 = vrot.slane %v4919_v60, 1  ;;  %v4979_v60 = vld [vmem:[%s6131_s1 + $0x460] sm:$0xff]  }
  0x41   : > { %4489 = vmatpush3.bf16.msra.mxu1 %v4878_v1  ;;  %4468 = vmatprep.subr.bf16.mxu0 %v4879_v2  ;;  %v4922_v1 = vld [vmem:[%s5284_s22 + $0x8] ss:$16 sps:$4 sm:$0x1e]   ;;  %v975_v2 = vrot.slane %v4921_v62, 1  ;;  %v4981_v62 = vld [vmem:[%s6131_s1 + $0x420] sm:$0xff]  }
  0x42   : > { %4490 = vmatprep.subr.bf16.mxu1 %v4880_v3  ;;  %v4924_v3 = vld [vmem:[%s5284_s22 + $0xc] ss:$16 sps:$4 sm:$0x1e]  }
  0x43   : > { %v977_v6 = vrot.slane %v4924_v3, 1  ;;  %v4986_v3 = vld [vmem:[%s6131_s1 + $0x4a8] sm:$0xff]  }
  0x44   : > { %4469 = vmatpush3.bf16.msra.mxu0 %v4881_v4  ;;  %v976_v4 = vrot.slane %v4922_v1, 1  ;;  %v4984_v1 = vld [vmem:[%s6131_s1 + $0x4e8] sm:$0xff]  }
  0x45   : > { %4491 = vmatpush3.bf16.msra.mxu1 %v4882_v5  ;;  %4498 = vmatprep.subr.bf16.mxu0 %v4887_v12  ;;  %v4927_v5 = vld [vmem:[%s6131_s1 + $0x300] sm:$0xff]   ;;  %v4933_v12 = vld [vmem:[%s6131_s1 + $0x350] sm:$0xff]  }
  0x46   : > { %4520 = vmatprep.subr.bf16.mxu1 %v4888_v17  ;;  %v4938_v17 = vld [vmem:[%s6131_s1 + $0x3d8] sm:$0xff]  }
  0x47   : > { %839 = vmatmul.mubr.bf16.vlgmr.msra.gmra.mrb[4].mxu0 %v588_v30  ;;  %v4951_v30 = vld [vmem:[%s6131_s1 + $0x330] sm:$0xff]  }
  0x48   : > { %879 = vmatmul.mubr.bf16.vlgmr.msra.gmra.mrb[4].mxu1 %v602_v32  ;;  %4499 = vmatpush3.bf16.msra.mxu0 %v4889_v24  ;;  %v4945_v24 = vld [vmem:[%s6131_s1 + $0x368] sm:$0xff]   ;;  %v4953_v32 = vld [vmem:[%s6131_s1 + $0x378] sm:$0xff]  }
  0x49   : > { %4521 = vmatpush3.bf16.msra.mxu1 %v4890_v27  ;;  %4500 = vmatprep.subr.bf16.mxu0 %v4891_v28  ;;  %v4948_v27 = vld [vmem:[%s6131_s1 + $0x3a8] sm:$0xff]   ;;  %v4949_v28 = vld [vmem:[%s6131_s1 + $0x370] sm:$0xff]  }
  0x4a   : > { %4522 = vmatprep.subr.bf16.mxu1 %v4892_v33  ;;  %1206 = vmatprep.mubr.bf16.mxu0 %v975_v2  ;;  %v4954_v33 = vld [vmem:[%s6131_s1 + $0x3f8] sm:$0xff]   ;;  %v4985_v2 = vld [vmem:[%s6131_s1 + $0x428] sm:$0xff]  }
  0x4b   : > { %1246 = vmatprep.mubr.bf16.mxu1 %v977_v6  ;;  %v4989_v6 = vld [vmem:[%s6131_s1 + $0x430] sm:$0xff]  }
  0x4c   : > { %4501 = vmatpush3.bf16.msra.mxu0 %v4893_v34  ;;  %v4955_v34 = vld [vmem:[%s6131_s1 + $0x338] sm:$0xff]  }
  0x4d   : > { %4523 = vmatpush3.bf16.msra.mxu1 %v4894_v35  ;;  %4502 = vmatprep.subr.bf16.mxu0 %v4895_v36  ;;  %v4956_v35 = vld [vmem:[%s6131_s1 + $0x3b8] sm:$0xff]   ;;  %v4957_v36 = vld [vmem:[%s5284_s22] ss:$16 sps:$4 sm:$0x3c]  }
  0x4e   : > { %4524 = vmatprep.subr.bf16.mxu1 %v4896_v37  ;;  %v4959_v37 = vld [vmem:[%s5284_s22 + $0x4] ss:$16 sps:$4 sm:$0x3c]  }
  0x50   : > { %4503 = vmatpush3.bf16.msra.mxu0 %v4897_v38  ;;  %v4960_v38 = vld [vmem:[%s5284_s22 + $0x8] ss:$16 sps:$4 sm:$0x3c]  }
  0x51   : > { %4525 = vmatpush3.bf16.msra.mxu1 %v4898_v39  ;;  %4504 = vmatprep.subr.bf16.mxu0 %v4899_v40  ;;  %v4963_v39 = vld [vmem:[%s6131_s1 + $0x440] sm:$0xff]   ;;  %v1342_v40 = vrot.slane %v4957_v36, 2 }
  0x52   : > { %4526 = vmatprep.subr.bf16.mxu1 %v4900_v41  ;;  %v1343_v41 = vrot.slane %v4959_v37, 2  ;;  %v5004_v37 = vld [vmem:[%s6131_s1 + $0x580] sm:$0xff]  }
  0x54   : > { %4505 = vmatpush3.bf16.msra.mxu0 %v4901_v42  ;;  %v4962_v42 = vld [vmem:[%s5284_s22 + $0xc] ss:$16 sps:$4 sm:$0x3c]  }
  0x55   : > { %4527 = vmatpush3.bf16.msra.mxu1 %v4902_v43  ;;  %4506 = vmatprep.subr.bf16.mxu0 %v4903_v44  ;;  %v4964_v43 = vld [vmem:[%s6131_s1 + $0x4c0] sm:$0xff]   ;;  %v1344_v44 = vrot.slane %v4960_v38, 2 }
  0x56   : > { %4528 = vmatprep.subr.bf16.mxu1 %v4904_v45  ;;  %v4965_v45 = vld [vmem:[%s6131_s1 + $0x400] sm:$0xff]  }
  0x58   : > { %4507 = vmatpush3.bf16.msra.mxu0 %v4905_v46  ;;  %v1345_v46 = vrot.slane %v4962_v42, 2  ;;  %v5007_v42 = vld [vmem:[%s6131_s1 + $0x508] sm:$0xff]  }
  0x59   : > { %4529 = vmatpush3.bf16.msra.mxu1 %v4906_v47  ;;  %4508 = vmatprep.subr.bf16.mxu0 %v4907_v48  ;;  %v4966_v47 = vld [vmem:[%s6131_s1 + $0x480] sm:$0xff]   ;;  %v4967_v48 = vld [vmem:[%s6131_s1 + $0x448] sm:$0xff]  }
  0x5a   : > { %4530 = vmatprep.subr.bf16.mxu1 %v4908_v49  ;;  %v4968_v49 = vld [vmem:[%s6131_s1 + $0x4c8] sm:$0xff]  }
  0x5c   : > { %4509 = vmatpush3.bf16.msra.mxu0 %v4909_v50  ;;  %v4969_v50 = vld [vmem:[%s6131_s1 + $0x408] sm:$0xff]  }
  0x5d   : > { %4531 = vmatpush3.bf16.msra.mxu1 %v4910_v51  ;;  %4510 = vmatprep.subr.bf16.mxu0 %v4911_v52  ;;  %v4970_v51 = vld [vmem:[%s6131_s1 + $0x488] sm:$0xff]   ;;  %v4971_v52 = vld [vmem:[%s6131_s1 + $0x450] sm:$0xff]  }
  0x5e   : > { %4532 = vmatprep.subr.bf16.mxu1 %v4912_v53  ;;  %v4972_v53 = vld [vmem:[%s6131_s1 + $0x4d0] sm:$0xff]  }
  0x60   : > { %4511 = vmatpush3.bf16.msra.mxu0 %v4913_v54  ;;  %v4973_v54 = vld [vmem:[%s6131_s1 + $0x410] sm:$0xff]  }
  0x61   : > { %4533 = vmatpush3.bf16.msra.mxu1 %v4914_v55  ;;  %4512 = vmatprep.subr.bf16.mxu0 %v4915_v56  ;;  %v4974_v55 = vld [vmem:[%s6131_s1 + $0x490] sm:$0xff]   ;;  %v4975_v56 = vld [vmem:[%s6131_s1 + $0x458] sm:$0xff]  }
  0x62   : > { %4534 = vmatprep.subr.bf16.mxu1 %v4916_v57  ;;  %v4976_v57 = vld [vmem:[%s6131_s1 + $0x4d8] sm:$0xff]  }
  0x64   : > { %4513 = vmatpush3.bf16.msra.mxu0 %v4917_v58  ;;  %v4977_v58 = vld [vmem:[%s6131_s1 + $0x418] sm:$0xff]  }
  0x65   : > { %4535 = vmatpush3.bf16.msra.mxu1 %v4918_v59  ;;  %4542 = vmatprep.subr.bf16.mxu0 %v4925_v61  ;;  %v4978_v59 = vld [vmem:[%s6131_s1 + $0x498] sm:$0xff]   ;;  %v4980_v61 = vld [vmem:[%s6131_s1 + $0x4e0] sm:$0xff]  }
  0x66   : > { %4564 = vmatprep.subr.bf16.mxu1 %v4926_v63  ;;  %v4982_v63 = vld [vmem:[%s6131_s1 + $0x4a0] sm:$0xff]  }
  0x67   : > { %1207 = vmatmul.mubr.bf16.vlgmr.msra.gmra.mrb[8].mxu0 %v974_v0  ;;  %v4983_v0 = vld [vmem:[%s6131_s1 + $0x468] sm:$0xff]  }
  0x68   : > { %1247 = vmatmul.mubr.bf16.vlgmr.msra.gmra.mrb[8].mxu1 %v976_v4  ;;  %4543 = vmatpush3.bf16.msra.mxu0 %v4927_v5  ;;  %v4987_v4 = vld [vmem:[%s6131_s1 + $0x470] sm:$0xff]  }
  0x69   : > { %4565 = vmatpush3.bf16.msra.mxu1 %v4928_v7  ;;  %4544 = vmatprep.subr.bf16.mxu0 %v4929_v8  ;;  %v4988_v5 = vld [vmem:[%s6131_s1 + $0x4f0] sm:$0xff]   ;;  %v4991_v8 = vld [vmem:[%s6131_s1 + $0x478] sm:$0xff]  }
  0x6a   : > { %4566 = vmatprep.subr.bf16.mxu1 %v4930_v9  ;;  %1574 = vmatprep.mubr.bf16.mxu0 %v1343_v41  ;;  %v4990_v7 = vld [vmem:[%s6131_s1 + $0x4b0] sm:$0xff]   ;;  %v4992_v9 = vld [vmem:[%s6131_s1 + $0x4f8] sm:$0xff]   ;;  %v5006_v41 = vld [vmem:[%s6131_s1 + $0x5c8] sm:$0xff]  }
  0x6b   : > { %1614 = vmatprep.mubr.bf16.mxu1 %v1345_v46  ;;  %v5011_v46 = vld [vmem:[%s6131_s1 + $0x510] sm:$0xff]  }
  0x6c   : > { %4545 = vmatpush3.bf16.msra.mxu0 %v4931_v10  ;;  %v4993_v10 = vld [vmem:[%s6131_s1 + $0x438] sm:$0xff]  }
  0x6d   : > { %4567 = vmatpush3.bf16.msra.mxu1 %v4932_v11  ;;  %4546 = vmatprep.subr.bf16.mxu0 %v4933_v12  ;;  %v4994_v11 = vld [vmem:[%s6131_s1 + $0x4b8] sm:$0xff]   ;;  %v4995_v12 = vld [vmem:[%s5284_s22] ss:$16 sps:$4 sm:$0x7c]  }
  0x6e   : > { %4568 = vmatprep.subr.bf16.mxu1 %v4934_v13  ;;  %v4997_v13 = vld [vmem:[%s5284_s22 + $0x4] ss:$16 sps:$4 sm:$0x7c]  }
  0x70   : > { %4547 = vmatpush3.bf16.msra.mxu0 %v4935_v14  ;;  %v1719_v14 = vshrl.u32 %v4997_v13, 16 }
  0x71   : > { %4569 = vmatpush3.bf16.msra.mxu1 %v4936_v15  ;;  %4548 = vmatprep.subr.bf16.mxu0 %v4937_v16  ;;  %v1722_v15 = vshll.u32 %v4997_v13, 16  ;;  %v4998_v16 = vld [vmem:[%s5284_s22 + $0x8] ss:$16 sps:$4 sm:$0x7c]   ;;  %v5041_v13 = vld [vmem:[%s6131_s1 + $0x600] sm:$0xff]  }
  0x72   : > { %4570 = vmatprep.subr.bf16.mxu1 %v4938_v17  ;;  %v1711_v17 = vshrl.u32 %v4995_v12, 16 }
  0x74   : > { %4549 = vmatpush3.bf16.msra.mxu0 %v4939_v18  ;;  %v5000_v18 = vld [vmem:[%s5284_s22 + $0xc] ss:$16 sps:$4 sm:$0x7c]  }
  0x75   : > { %4571 = vmatpush3.bf16.msra.mxu1 %v4940_v19  ;;  %4550 = vmatprep.subr.bf16.mxu0 %v4941_v20  ;;  %v1714_v19 = vshll.u32 %v4995_v12, 16  ;;  %v1721_v20 = vrot.slane %v1719_v14, 2 }
  0x76   : > { %4572 = vmatprep.subr.bf16.mxu1 %v4942_v21  ;;  %v1724_v21 = vrot.slane %v1722_v15, 3  ;;  %v5042_v15 = vld [vmem:[%s6131_s1 + $0x680] sm:$0xff]  }
  0x78   : > { %4551 = vmatpush3.bf16.msra.mxu0 %v4943_v22  ;;  %v1713_v22 = vrot.slane %v1711_v17, 2  ;;  %v5044_v17 = vld [vmem:[%s6131_s1 + $0x6c8] sm:$0xff]  }
  0x79   : > { %4573 = vmatpush3.bf16.msra.mxu1 %v4944_v23  ;;  %4552 = vmatprep.subr.bf16.mxu0 %v4945_v24  ;;  %v1727_v23 = vshrl.u32 %v4998_v16, 16  ;;  %v5001_v24 = vld [vmem:[%s6131_s1 + $0x540] sm:$0xff]  }
  0x7a   : > { %4574 = vmatprep.subr.bf16.mxu1 %v4946_v25  ;;  %v5002_v25 = vld [vmem:[%s6131_s1 + $0x5c0] sm:$0xff]  }
  0x7c   : > { %4553 = vmatpush3.bf16.msra.mxu0 %v4947_v26  ;;  %v1735_v26 = vshrl.u32 %v5000_v18, 16 }
  0x7d   : > { %4575 = vmatpush3.bf16.msra.mxu1 %v4948_v27  ;;  %4554 = vmatprep.subr.bf16.mxu0 %v4949_v28  ;;  %v1738_v27 = vshll.u32 %v5000_v18, 16  ;;  %v1716_v28 = vrot.slane %v1714_v19, 3  ;;  %v5045_v18 = vld [vmem:[%s6131_s1 + $0x608] sm:$0xff]  }
  0x7e   : > { %4576 = vmatprep.subr.bf16.mxu1 %v4950_v29  ;;  %v1730_v29 = vshll.u32 %v4998_v16, 16  ;;  %v5043_v16 = vld [vmem:[%s6131_s1 + $0x648] sm:$0xff]  }
  0x7f   : > { %v5046_v19 = vld [vmem:[%s6131_s1 + $0x688] sm:$0xff]  }
  0x80   : > { %4555 = vmatpush3.bf16.msra.mxu0 %v4951_v30  ;;  %v1725_v30 = vor.u32 %v1724_v21, %v1721_v20  ;;  %v1732_v36 = vrot.slane %v1730_v29, 3  ;;  %v5047_v20 = vld [vmem:[%s6131_s1 + $0x650] sm:$0xff]   ;;  %v5056_v29 = vld [vmem:[%s6131_s1 + $0x6e0] sm:$0xff]  }
  0x81   : > { %4577 = vmatpush3.bf16.msra.mxu1 %v4952_v31  ;;  %4556 = vmatprep.subr.bf16.mxu0 %v4953_v32  ;;  %v1729_v31 = vrot.slane %v1727_v23, 2  ;;  %v5003_v32 = vld [vmem:[%s6131_s1 + $0x500] sm:$0xff]   ;;  %v5048_v21 = vld [vmem:[%s6131_s1 + $0x6d0] sm:$0xff]  }
  0x82   : > { %4578 = vmatprep.subr.bf16.mxu1 %v4954_v33  ;;  %v1737_v33 = vrot.slane %v1735_v26, 2  ;;  %v5050_v23 = vld [vmem:[%s6131_s1 + $0x690] sm:$0xff]   ;;  %v5053_v26 = vld [vmem:[%s6131_s1 + $0x618] sm:$0xff]  }
  0x84   : > { %4557 = vmatpush3.bf16.msra.mxu0 %v4955_v34  ;;  %v1740_v34 = vrot.slane %v1738_v27, 3  ;;  %v5054_v27 = vld [vmem:[%s6131_s1 + $0x698] sm:$0xff]  }
  0x85   : > { %4579 = vmatpush3.bf16.msra.mxu1 %v4956_v35  ;;  %4586 = vmatprep.subr.bf16.mxu0 %v4963_v39  ;;  %v1717_v35 = vor.u32 %v1716_v28, %v1713_v22  ;;  %v1733_v39 = vor.u32 %v1732_v36, %v1729_v31  ;;  %v5049_v22 = vld [vmem:[%s6131_s1 + $0x610] sm:$0xff]   ;;  %v5055_v28 = vld [vmem:[%s6131_s1 + $0x660] sm:$0xff]  }
  0x86   : > { %4608 = vmatprep.subr.bf16.mxu1 %v4964_v43  ;;  %v1741_v38 = vor.u32 %v1740_v34, %v1737_v33  ;;  %v5008_v43 = vld [vmem:[%s6131_s1 + $0x588] sm:$0xff]   ;;  %v5058_v31 = vld [vmem:[%s6131_s1 + $0x6a0] sm:$0xff]   ;;  %v5063_v36 = vld [vmem:[%s6131_s1 + $0x670] sm:$0xff]  }
  0x87   : > { %1575 = vmatmul.mubr.bf16.vlgmr.msra.gmra.mrb[12].mxu0 %v1342_v40  ;;  %v5005_v40 = vld [vmem:[%s6131_s1 + $0x548] sm:$0xff]  }
  0x88   : > { %4587 = vmatpush3.bf16.msra.mxu0 %v4965_v45  ;;  %1615 = vmatmul.mubr.bf16.vlgmr.msra.gmra.mrb[12].mxu1 %v1344_v44  ;;  %v5009_v44 = vld [vmem:[%s6131_s1 + $0x550] sm:$0xff]   ;;  %v5060_v33 = vld [vmem:[%s6131_s1 + $0x6e8] sm:$0xff]  }
  0x89   : > { %4609 = vmatpush3.bf16.msra.mxu1 %v4966_v47  ;;  %4588 = vmatprep.subr.bf16.mxu0 %v4967_v48  ;;  %v5010_v45 = vld [vmem:[%s6131_s1 + $0x5d0] sm:$0xff]   ;;  %v5013_v48 = vld [vmem:[%s6131_s1 + $0x558] sm:$0xff]   ;;  %v5061_v34 = vld [vmem:[%s6131_s1 + $0x628] sm:$0xff]  }
  0x8a   : > { %4610 = vmatprep.subr.bf16.mxu1 %v4968_v49  ;;  %1970 = vmatprep.mubr.bf16.mxu0 %v1725_v30  ;;  %v5012_v47 = vld [vmem:[%s6131_s1 + $0x590] sm:$0xff]   ;;  %v5014_v49 = vld [vmem:[%s6131_s1 + $0x5d8] sm:$0xff]   ;;  %v5057_v30 = vld [vmem:[%s6131_s1 + $0x620] sm:$0xff]  }
  0x8b   : > { %2010 = vmatprep.mubr.bf16.mxu1 %v1741_v38  ;;  %v5065_v38 = vld [vmem:[%s6131_s1 + $0x630] sm:$0xff]  }
  0x8c   : > { %4589 = vmatpush3.bf16.msra.mxu0 %v4969_v50  ;;  %v5015_v50 = vld [vmem:[%s6131_s1 + $0x518] sm:$0xff]  }
  0x8d   : > { %4611 = vmatpush3.bf16.msra.mxu1 %v4970_v51  ;;  %4590 = vmatprep.subr.bf16.mxu0 %v4971_v52  ;;  %v5016_v51 = vld [vmem:[%s6131_s1 + $0x598] sm:$0xff]   ;;  %v5017_v52 = vld [vmem:[%s6131_s1 + $0x560] sm:$0xff]  }
  0x8e   : > { %4612 = vmatprep.subr.bf16.mxu1 %v4972_v53  ;;  %v5018_v53 = vld [vmem:[%s6131_s1 + $0x5e0] sm:$0xff]  }
  0x90   : > { %4591 = vmatpush3.bf16.msra.mxu0 %v4973_v54  ;;  %v5019_v54 = vld [vmem:[%s6131_s1 + $0x520] sm:$0xff]  }
  0x91   : > { %4613 = vmatpush3.bf16.msra.mxu1 %v4974_v55  ;;  %4592 = vmatprep.subr.bf16.mxu0 %v4975_v56  ;;  %v5020_v55 = vld [vmem:[%s6131_s1 + $0x5a0] sm:$0xff]   ;;  %v5021_v56 = vld [vmem:[%s6131_s1 + $0x568] sm:$0xff]  }
  0x92   : > { %4614 = vmatprep.subr.bf16.mxu1 %v4976_v57  ;;  %v5022_v57 = vld [vmem:[%s6131_s1 + $0x5e8] sm:$0xff]  }
  0x94   : > { %4593 = vmatpush3.bf16.msra.mxu0 %v4977_v58  ;;  %v5023_v58 = vld [vmem:[%s6131_s1 + $0x528] sm:$0xff]  }
  0x95   : > { %4615 = vmatpush3.bf16.msra.mxu1 %v4978_v59  ;;  %4594 = vmatprep.subr.bf16.mxu0 %v4979_v60  ;;  %v5024_v59 = vld [vmem:[%s6131_s1 + $0x5a8] sm:$0xff]   ;;  %v5025_v60 = vld [vmem:[%s6131_s1 + $0x570] sm:$0xff]  }
  0x96   : > { %4616 = vmatprep.subr.bf16.mxu1 %v4980_v61  ;;  %v5026_v61 = vld [vmem:[%s6131_s1 + $0x5f0] sm:$0xff]  }
  0x98   : > { %4595 = vmatpush3.bf16.msra.mxu0 %v4981_v62  ;;  %v5027_v62 = vld [vmem:[%s6131_s1 + $0x530] sm:$0xff]  }
  0x99   : > { %4617 = vmatpush3.bf16.msra.mxu1 %v4982_v63  ;;  %4596 = vmatprep.subr.bf16.mxu0 %v4983_v0  ;;  %v5028_v63 = vld [vmem:[%s6131_s1 + $0x5b0] sm:$0xff]   ;;  %v5029_v0 = vld [vmem:[%s6131_s1 + $0x578] sm:$0xff]  }
  0x9a   : > { %4618 = vmatprep.subr.bf16.mxu1 %v4984_v1  ;;  %v5030_v1 = vld [vmem:[%s6131_s1 + $0x5f8] sm:$0xff]  }
  0x9c   : > { %4597 = vmatpush3.bf16.msra.mxu0 %v4985_v2  ;;  %v5031_v2 = vld [vmem:[%s6131_s1 + $0x538] sm:$0xff]  }
  0x9d   : > { %4619 = vmatpush3.bf16.msra.mxu1 %v4986_v3  ;;  %4598 = vmatprep.subr.bf16.mxu0 %v4987_v4  ;;  %v5032_v3 = vld [vmem:[%s6131_s1 + $0x5b8] sm:$0xff]   ;;  %v5033_v4 = vld [vmem:[%s5284_s22] ss:$16 sps:$4 sm:$0x78]  }
  0x9e   : > { %4620 = vmatprep.subr.bf16.mxu1 %v4988_v5  ;;  %v5039_v5 = vld [vmem:[%s6131_s1 + $0x640] sm:$0xff]  }
  0xa0   : > { %4599 = vmatpush3.bf16.msra.mxu0 %v4989_v6  ;;  %v5035_v6 = vld [vmem:[%s5284_s22 + $0x4] ss:$16 sps:$4 sm:$0x78]  }
  0xa1   : > { %4621 = vmatpush3.bf16.msra.mxu1 %v4990_v7  ;;  %4600 = vmatprep.subr.bf16.mxu0 %v4991_v8  ;;  %v5040_v7 = vld [vmem:[%s6131_s1 + $0x6c0] sm:$0xff]   ;;  %v2106_v8 = vrot.slane %v5033_v4, 3  ;;  %v5085_v4 = vld [vmem:[%s6131_s1 + $0x710] sm:$0xff]  }
  0xa2   : > { %4622 = vmatprep.subr.bf16.mxu1 %v4992_v9  ;;  %v5036_v9 = vld [vmem:[%s5284_s22 + $0x8] ss:$16 sps:$4 sm:$0x78]  }
  0xa3   : > { %v2108_v12 = vrot.slane %v5036_v9, 3  ;;  %v5087_v9 = vld [vmem:[%s6131_s1 + $0x758] sm:$0xff]  }
  0xa4   : > { %4601 = vmatpush3.bf16.msra.mxu0 %v4993_v10  ;;  %v2107_v10 = vrot.slane %v5035_v6, 3 }
  0xa5   : > { %4623 = vmatpush3.bf16.msra.mxu1 %v4994_v11  ;;  %4630 = vmatprep.subr.bf16.mxu0 %v5001_v24  ;;  %v5038_v11 = vld [vmem:[%s5284_s22 + $0xc] ss:$16 sps:$4 sm:$0x78]  }
  0xa6   : > { %4652 = vmatprep.subr.bf16.mxu1 %v5002_v25  ;;  %v2109_v14 = vrot.slane %v5038_v11, 3  ;;  %v5051_v24 = vld [vmem:[%s6131_s1 + $0x658] sm:$0xff]  }
  0xa7   : > { %1971 = vmatmul.mubr.bf16.vlgmr.msra.gmra.mrb[16].mxu0 %v1717_v35  ;;  %v5052_v25 = vld [vmem:[%s6131_s1 + $0x6d8] sm:$0xff]   ;;  %v5062_v35 = vld [vmem:[%s6131_s1 + $0x6a8] sm:$0xff]  }
  0xa8   : > { %4631 = vmatpush3.bf16.msra.mxu0 %v5003_v32  ;;  %2011 = vmatmul.mubr.bf16.vlgmr.msra.gmra.mrb[16].mxu1 %v1733_v39  ;;  %v5059_v32 = vld [vmem:[%s6131_s1 + $0x668] sm:$0xff]   ;;  %v5066_v39 = vld [vmem:[%s6131_s1 + $0x6b0] sm:$0xff]   ;;  %v5089_v11 = vld [vmem:[%s6131_s1 + $0x718] sm:$0xff]  }
  0xa9   : > { %4632 = vmatprep.subr.bf16.mxu0 %v5005_v40  ;;  %4653 = vmatpush3.bf16.msra.mxu1 %v5004_v37  ;;  %v5064_v37 = vld [vmem:[%s6131_s1 + $0x6f0] sm:$0xff]   ;;  %v5067_v40 = vld [vmem:[%s6131_s1 + $0x678] sm:$0xff]  }
  0xaa   : > { %4654 = vmatprep.subr.bf16.mxu1 %v5006_v41  ;;  %2338 = vmatprep.mubr.bf16.mxu0 %v2107_v10  ;;  %v5068_v41 = vld [vmem:[%s6131_s1 + $0x6f8] sm:$0xff]  }
  0xab   : > { %2378 = vmatprep.mubr.bf16.mxu1 %v2109_v14  ;;  %v5088_v10 = vld [vmem:[%s6131_s1 + $0x7d8] sm:$0xff]   ;;  %v5092_v14 = vld [vmem:[%s6131_s1 + $0x7e0] sm:$0xff]  }
  0xac   : > { %4633 = vmatpush3.bf16.msra.mxu0 %v5007_v42  ;;  %v5069_v42 = vld [vmem:[%s6131_s1 + $0x638] sm:$0xff]  }
  0xad   : > { %4634 = vmatprep.subr.bf16.mxu0 %v5009_v44  ;;  %4655 = vmatpush3.bf16.msra.mxu1 %v5008_v43  ;;  %v5070_v43 = vld [vmem:[%s6131_s1 + $0x6b8] sm:$0xff]   ;;  %v5905_v44 = vld [vmem:[%s5284_s22 + $0x10] sm:$0xff] }
  0xae   : > { %4656 = vmatprep.subr.bf16.mxu1 %v5010_v45  ;;  %v5908_v45 = vld [vmem:[%s5284_s22 + $0x18] sm:$0xff] }
  0xb0   : > { %4635 = vmatpush3.bf16.msra.mxu0 %v5011_v46  ;;  %v4172_v46 = vcombine.low %v5905_v44, %v5905_v44 }
  0xb1   : > { %4636 = vmatprep.subr.bf16.mxu0 %v5013_v48  ;;  %4657 = vmatpush3.bf16.msra.mxu1 %v5012_v47  ;;  %v4173_v47 = vcombine.high %v5905_v44, %v5905_v44  ;;  %v4174_v48 = vcombine.low %v5908_v45, %v5908_v45 }
  0xb2   : > { %4658 = vmatprep.subr.bf16.mxu1 %v5014_v49  ;;  %v4175_v49 = vcombine.high %v5908_v45, %v5908_v45 }
  0xb4   : > { %4637 = vmatpush3.bf16.msra.mxu0 %v5015_v50  ;;  %v5075_v50 = vld [vmem:[%s6131_s1 + $0x740] sm:$0xff]  }
  0xb5   : > { %4638 = vmatprep.subr.bf16.mxu0 %v5017_v52  ;;  %4659 = vmatpush3.bf16.msra.mxu1 %v5016_v51  ;;  %v5076_v51 = vld [vmem:[%s6131_s1 + $0x7c0] sm:$0xff]  }
  0xb6   : > { %4660 = vmatprep.subr.bf16.mxu1 %v5018_v53  ;;  %v5077_v52 = vld [vmem:[%s6131_s1 + $0x700] sm:$0xff]  }
  0xb7   : > { %v5078_v53 = vld [vmem:[%s6131_s1 + $0x780] sm:$0xff]  }
  0xb8   : > { %4639 = vmatpush3.bf16.msra.mxu0 %v5019_v54  ;;  %v5079_v54 = vld [vmem:[%s6131_s1 + $0x748] sm:$0xff]  }
  0xb9   : > { %4640 = vmatprep.subr.bf16.mxu0 %v5021_v56  ;;  %4661 = vmatpush3.bf16.msra.mxu1 %v5020_v55  ;;  %v5080_v56 = vld [vmem:[%s6131_s1 + $0x7c8] sm:$0xff]  }
  0xba   : > { %4662 = vmatprep.subr.bf16.mxu1 %v5022_v57 }
  0xbc   : > { %4641 = vmatpush3.bf16.msra.mxu0 %v5023_v58  ;;  %v5081_v58 = vld [vmem:[%s6131_s1 + $0x708] sm:$0xff]  }
  0xbd   : > { %4642 = vmatprep.subr.bf16.mxu0 %v5025_v60  ;;  %4663 = vmatpush3.bf16.msra.mxu1 %v5024_v59  ;;  %v5082_v60 = vld [vmem:[%s6131_s1 + $0x788] sm:$0xff]  }
  0xbe   : > { %4664 = vmatprep.subr.bf16.mxu1 %v5026_v61 }
  0xc0   : > { %4643 = vmatpush3.bf16.msra.mxu0 %v5027_v62 }
  0xc1   : > { %4644 = vmatprep.subr.bf16.mxu0 %v5029_v0  ;;  %4665 = vmatpush3.bf16.msra.mxu1 %v5028_v63  ;;  %v5083_v63 = vld [vmem:[%s6131_s1 + $0x750] sm:$0xff]  }
  0xc2   : > { %4666 = vmatprep.subr.bf16.mxu1 %v5030_v1 }
  0xc4   : > { %4645 = vmatpush3.bf16.msra.mxu0 %v5031_v2  ;;  %v5084_v2 = vld [vmem:[%s6131_s1 + $0x7d0] sm:$0xff]  }
  0xc5   : > { %4674 = vmatprep.subr.bf16.mxu0 %v5039_v5  ;;  %4667 = vmatpush3.bf16.msra.mxu1 %v5032_v3 }
  0xc6   : > { %4696 = vmatprep.subr.bf16.mxu1 %v5040_v7  ;;  %v5086_v7 = vld [vmem:[%s6131_s1 + $0x790] sm:$0xff]  }
  0xc7   : > { %2339 = vmatmul.mubr.bf16.vlgmr.msra.gmra.mrb[20].mxu0 %v2106_v8 }
  0xc8   : > { %4675 = vmatpush3.bf16.msra.mxu0 %v5041_v13  ;;  %2379 = vmatmul.mubr.bf16.vlgmr.msra.gmra.mrb[20].mxu1 %v2108_v12  ;;  %v5090_v12 = vld [vmem:[%s6131_s1 + $0x798] sm:$0xff]   ;;  %v5091_v13 = vld [vmem:[%s6131_s1 + $0x760] sm:$0xff]  }
  0xc9   : > { %4697 = vmatpush3.bf16.msra.mxu1 %v5042_v15  ;;  %4676 = vmatprep.subr.bf16.mxu0 %v5043_v16  ;;  %v5093_v15 = vld [vmem:[%s6131_s1 + $0x720] sm:$0xff]  }
  0xca   : > { %4698 = vmatprep.subr.bf16.mxu1 %v5044_v17  ;;  %2694 = vmatprep.mubr.bf16.mxu0 %v4173_v47  ;;  %v5094_v16 = vld [vmem:[%s6131_s1 + $0x7a0] sm:$0xff]   ;;  %v5095_v17 = vld [vmem:[%s6131_s1 + $0x768] sm:$0xff]  }
  0xcb   : > { %2734 = vmatprep.mubr.bf16.mxu1 %v4175_v49  ;;  %v5113_v49 = vld [vmem:[%s6131_s1 + $0x800] sm:$0xff]  }
  0xcc   : > { %4677 = vmatpush3.bf16.msra.mxu0 %v5045_v18  ;;  %v5096_v18 = vld [vmem:[%s6131_s1 + $0x7e8] sm:$0xff]  }
  0xcd   : > { %4699 = vmatpush3.bf16.msra.mxu1 %v5046_v19  ;;  %4678 = vmatprep.subr.bf16.mxu0 %v5047_v20  ;;  %v5097_v19 = vld [vmem:[%s6131_s1 + $0x728] sm:$0xff]  }
  0xce   : > { %4700 = vmatprep.subr.bf16.mxu1 %v5048_v21  ;;  %v5098_v20 = vld [vmem:[%s6131_s1 + $0x7a8] sm:$0xff]   ;;  %v5099_v21 = vld [vmem:[%s6131_s1 + $0x770] sm:$0xff]  }
  0xd0   : > { %4679 = vmatpush3.bf16.msra.mxu0 %v5049_v22  ;;  %v5100_v22 = vld [vmem:[%s6131_s1 + $0x7f0] sm:$0xff]  }
  0xd1   : > { %4701 = vmatpush3.bf16.msra.mxu1 %v5050_v23  ;;  %4680 = vmatprep.subr.bf16.mxu0 %v5051_v24  ;;  %v5101_v23 = vld [vmem:[%s6131_s1 + $0x730] sm:$0xff]  }
  0xd2   : > { %4702 = vmatprep.subr.bf16.mxu1 %v5052_v25  ;;  %v5102_v24 = vld [vmem:[%s6131_s1 + $0x7b0] sm:$0xff]   ;;  %v5103_v25 = vld [vmem:[%s6131_s1 + $0x778] sm:$0xff]  }
  0xd4   : > { %4681 = vmatpush3.bf16.msra.mxu0 %v5053_v26  ;;  %v5104_v26 = vld [vmem:[%s6131_s1 + $0x7f8] sm:$0xff]  }
  0xd5   : > { %4703 = vmatpush3.bf16.msra.mxu1 %v5054_v27  ;;  %4682 = vmatprep.subr.bf16.mxu0 %v5055_v28  ;;  %v5105_v27 = vld [vmem:[%s6131_s1 + $0x738] sm:$0xff]  }
  0xd6   : > { %4704 = vmatprep.subr.bf16.mxu1 %v5056_v29  ;;  %v5106_v28 = vld [vmem:[%s6131_s1 + $0x7b8] sm:$0xff]   ;;  %v2746_v29 = vld [vmem:[%s5284_s22 + $0x20] sm:$0x11] }
  0xd8   : > { %4683 = vmatpush3.bf16.msra.mxu0 %v5057_v30  ;;  %v4272_v30 = vcombine.low %v5905_v44, %v2746_v29 }
  0xd9   : > { %4705 = vmatpush3.bf16.msra.mxu1 %v5058_v31  ;;  %4684 = vmatprep.subr.bf16.mxu0 %v5059_v32  ;;  %v4273_v31 = vcombine.high %v5905_v44, %v2746_v29  ;;  %v2747_v32 = vld [vmem:[%s5284_s22 + $0x28] sm:$0x11]  ;;  %v5141_v29 = vld [vmem:[%s6131_s1 + $0x838] sm:$0xff]  }
  0xda   : > { %4706 = vmatprep.subr.bf16.mxu1 %v5060_v33  ;;  %v4274_v33 = vcombine.low %v5908_v45, %v2747_v32 }
  0xdc   : > { %4685 = vmatpush3.bf16.msra.mxu0 %v5061_v34  ;;  %v4275_v34 = vcombine.high %v5908_v45, %v2747_v32  ;;  %v2847_v44 = vshll.u32 %v4274_v33, 16  ;;  %v5145_v32 = vld [vmem:[%s5284_s22 + $0x14] ss:$16 sps:$4 sm:$0x1e]  }
  0xdd   : > { %4707 = vmatpush3.bf16.msra.mxu1 %v5062_v35  ;;  %4686 = vmatprep.subr.bf16.mxu0 %v5063_v36  ;;  %v5111_v35 = vld [vmem:[%s6131_s1 + $0x840] sm:$0xff]   ;;  %v2838_v36 = vshrl.u32 %v4273_v31, 16 }
  0xde   : > { %4708 = vmatprep.subr.bf16.mxu1 %v5064_v37  ;;  %v2840_v37 = vshll.u32 %v4273_v31, 16  ;;  %v5142_v31 = vld [vmem:[%s6131_s1 + $0x8b8] sm:$0xff]  }
  0xe0   : > { %4687 = vmatpush3.bf16.msra.mxu0 %v5065_v38  ;;  %v2831_v38 = vshrl.u32 %v4272_v30, 16 }
  0xe1   : > { %4709 = vmatpush3.bf16.msra.mxu1 %v5066_v39  ;;  %4688 = vmatprep.subr.bf16.mxu0 %v5067_v40  ;;  %v2833_v39 = vshll.u32 %v4272_v30, 16  ;;  %v5112_v40 = vld [vmem:[%s6131_s1 + $0x8c0] sm:$0xff]  }
  0xe2   : > { %4710 = vmatprep.subr.bf16.mxu1 %v5068_v41  ;;  %v2852_v41 = vshrl.u32 %v4275_v34, 16  ;;  %v5143_v30 = vld [vmem:[%s5284_s22 + $0x10] ss:$16 sps:$4 sm:$0x1e]  }
  0xe3   : > { %v2835_v47 = vrot.slane %v2833_v39, 1 }
  0xe4   : > { %4689 = vmatpush3.bf16.msra.mxu0 %v5069_v42  ;;  %v2854_v42 = vshll.u32 %v4275_v34, 16  ;;  %v3222_v34 = vrot.slane %v5143_v30, 1 }
  0xe5   : > { %4711 = vmatpush3.bf16.msra.mxu1 %v5070_v43  ;;  %4718 = vmatprep.subr.bf16.mxu0 %v5075_v50  ;;  %v2845_v43 = vshrl.u32 %v4274_v33, 16  ;;  %v5114_v50 = vld [vmem:[%s6131_s1 + $0x880] sm:$0xff]   ;;  %v5146_v33 = vld [vmem:[%s5284_s22 + $0x18] ss:$16 sps:$4 sm:$0x1e]  }
  0xe6   : > { %4740 = vmatprep.subr.bf16.mxu1 %v5076_v51  ;;  %v2856_v45 = vrot.slane %v2854_v42, 1 }
  0xe7   : > { %2695 = vmatmul.mubr.bf16.vlgmr.msra.gmra.mrb[24].mxu0 %v4172_v46  ;;  %v2842_v46 = vrot.slane %v2840_v37, 1  ;;  %v3224_v37 = vrot.slane %v5146_v33, 1 }
  0xe8   : > { %2735 = vmatmul.mubr.bf16.vlgmr.msra.gmra.mrb[24].mxu1 %v4174_v48  ;;  %4719 = vmatpush3.bf16.msra.mxu0 %v5077_v52  ;;  %v2849_v48 = vrot.slane %v2847_v44, 1  ;;  %v2836_v52 = vor.u32 %v2835_v47, %v2831_v38 }
  0xe9   : > { %4741 = vmatpush3.bf16.msra.mxu1 %v5078_v53  ;;  %4720 = vmatprep.subr.bf16.mxu0 %v5079_v54  ;;  %v2843_v51 = vor.u32 %v2842_v46, %v2838_v36  ;;  %v2857_v53 = vor.u32 %v2856_v45, %v2852_v41  ;;  %v5148_v36 = vld [vmem:[%s5284_s22 + $0x1c] ss:$16 sps:$4 sm:$0x1e]   ;;  %s3571_s22 = sshll.u32 %s6134_s10, 3 }
  0xea   : > { %4742 = vmatprep.subr.bf16.mxu1 %v5080_v56  ;;  %v2850_v54 = vor.u32 %v2849_v48, %v2845_v43  ;;  %v5116_v56 = vld [vmem:[%s6131_s1 + $0x8c8] sm:$0xff]   ;;  %v3225_v38 = vrot.slane %v5148_v36, 1  ;;  %s141_s15 = scalar_lea.vmem %s6132_s2, %s3571_s22 }
  0xeb   : > { %3086 = vmatprep.mubr.bf16.mxu0 %v2843_v51  ;;  %3126 = vmatprep.mubr.bf16.mxu1 %v2857_v53 }
  0xec   : > { %4721 = vmatpush3.bf16.msra.mxu0 %v5081_v58  ;;  %v5118_v58 = vld [vmem:[%s6131_s1 + $0x888] sm:$0xff]  }
  0xed   : > { %4743 = vmatpush3.bf16.msra.mxu1 %v5082_v60  ;;  %4722 = vmatprep.subr.bf16.mxu0 %v5083_v63  ;;  %v5119_v60 = vld [vmem:[%s6131_s1 + $0x850] sm:$0xff]  }
  0xee   : > { %4744 = vmatprep.subr.bf16.mxu1 %v5084_v2 }
  0xf0   : > { %4723 = vmatpush3.bf16.msra.mxu0 %v5085_v4 }
  0xf1   : > { %4745 = vmatpush3.bf16.msra.mxu1 %v5086_v7  ;;  %4724 = vmatprep.subr.bf16.mxu0 %v5087_v9  ;;  %v5123_v7 = vld [vmem:[%s6131_s1 + $0x858] sm:$0xff]  }
  0xf2   : > { %4746 = vmatprep.subr.bf16.mxu1 %v5088_v10  ;;  %v5124_v9 = vld [vmem:[%s6131_s1 + $0x8d8] sm:$0xff]  }
  0xf4   : > { %4725 = vmatpush3.bf16.msra.mxu0 %v5089_v11 }
  0xf5   : > { %4747 = vmatpush3.bf16.msra.mxu1 %v5090_v12  ;;  %4726 = vmatprep.subr.bf16.mxu0 %v5091_v13  ;;  %v5125_v12 = vld [vmem:[%s6131_s1 + $0x818] sm:$0xff]  }
  0xf6   : > { %4748 = vmatprep.subr.bf16.mxu1 %v5092_v14  ;;  %v5126_v14 = vld [vmem:[%s6131_s1 + $0x898] sm:$0xff]  }
  0xf8   : > { %4727 = vmatpush3.bf16.msra.mxu0 %v5093_v15 }
  0xf9   : > { %4749 = vmatpush3.bf16.msra.mxu1 %v5094_v16  ;;  %4728 = vmatprep.subr.bf16.mxu0 %v5095_v17  ;;  %v5127_v16 = vld [vmem:[%s6131_s1 + $0x860] sm:$0xff]  }
  0xfa   : > { %v4426_v55 = vpop.f32.mrb[0].mxu0  ;;  %4750 = vmatprep.subr.bf16.mxu1 %v5096_v18  ;;  %v5128_v17 = vld [vmem:[%s6131_s1 + $0x8e0] sm:$0xff]  }
  0xfb   : > { %v4448_v57 = vpop.f32.mrb[0].mxu1  ;;  %v4427_v59 = vpop.f32.mrb[1].mxu0  ;;  %v5129_v18 = vld [vmem:[%s6131_s1 + $0x820] sm:$0xff]  }
  0xfc   : > { %v4428_v61 = vadd.f32 %v4427_v59, %v4426_v55  ;;  %v4449_v62 = vpop.f32.mrb[1].mxu1  ;;  %v4429_v1 = vpop.f32.mrb[2].mxu0  ;;  %4729 = vmatpush3.bf16.msra.mxu0 %v5097_v19  ;;  %v5115_v55 = vld [vmem:[%s6131_s1 + $0x848] sm:$0xff]  }
  0xfd   : > { %v4450_v0 = vadd.f32 %v4449_v62, %v4448_v57  ;;  %v4451_v3 = vpop.f32.mrb[2].mxu1  ;;  %v4430_v6 = vpop.f32.mrb[3].mxu0  ;;  %4751 = vmatpush3.bf16.msra.mxu1 %v5098_v20  ;;  %4730 = vmatprep.subr.bf16.mxu0 %v5099_v21  ;;  %v5117_v57 = vld [vmem:[%s6131_s1 + $0x808] sm:$0xff]   ;;  %v5120_v62 = vld [vmem:[%s6131_s1 + $0x8d0] sm:$0xff]  }
  0xfe   : > { %v4452_v8 = vpop.f32.mrb[3].mxu1  ;;  %4752 = vmatprep.subr.bf16.mxu1 %v5100_v22  ;;  %v5122_v3 = vld [vmem:[%s6131_s1 + $0x890] sm:$0xff]   ;;  %v5131_v19 = vld [vmem:[%s6131_s1 + $0x868] sm:$0xff]  }
  0xff   : > { %v5951_v5 = vadd.f32 %v4450_v0, %v4428_v61  ;;  %v5121_v0 = vld [vmem:[%s6131_s1 + $0x810] sm:$0xff]   ;;  %v5132_v20 = vld [vmem:[%s6131_s1 + $0x8e8] sm:$0xff]  }
 0x100   : > { %4731 = vmatpush3.bf16.msra.mxu0 %v5101_v23  ;;  %v5133_v21 = vld [vmem:[%s6131_s1 + $0x828] sm:$0xff]   ;;  %v5135_v23 = vld [vmem:[%s6131_s1 + $0x870] sm:$0xff]  }
 0x101   : > { %4753 = vmatpush3.bf16.msra.mxu1 %v5102_v24  ;;  %4732 = vmatprep.subr.bf16.mxu0 %v5103_v25  ;;  %v5134_v22 = vld [vmem:[%s6131_s1 + $0x8a8] sm:$0xff]   ;;  %v5136_v24 = vld [vmem:[%s6131_s1 + $0x8f0] sm:$0xff]  }
 0x102   : > { %4754 = vmatprep.subr.bf16.mxu1 %v5104_v26  ;;  %v5137_v25 = vld [vmem:[%s6131_s1 + $0x830] sm:$0xff]  }
 0x103   : > { %v5138_v26 = vld [vmem:[%s6131_s1 + $0x8b0] sm:$0xff]  }
 0x104   : > { %4733 = vmatpush3.bf16.msra.mxu0 %v5105_v27  ;;  %v5139_v27 = vld [vmem:[%s6131_s1 + $0x878] sm:$0xff]  }
 0x105   : > { %4755 = vmatpush3.bf16.msra.mxu1 %v5106_v28  ;;  %4762 = vmatprep.subr.bf16.mxu0 %v5111_v35  ;;  %v5140_v28 = vld [vmem:[%s6131_s1 + $0x8f8] sm:$0xff]   ;;  %v3223_v35 = vrot.slane %v5145_v32, 1 }
 0x106   : > { %4784 = vmatprep.subr.bf16.mxu1 %v5112_v40 }
 0x107   : > { %3087 = vmatmul.mubr.bf16.vlgmr.msra.gmra.mrb[28].mxu0 %v2836_v52 }
 0x108   : > { %3127 = vmatmul.mubr.bf16.vlgmr.msra.gmra.mrb[28].mxu1 %v2850_v54  ;;  %4763 = vmatpush3.bf16.msra.mxu0 %v5113_v49 }
 0x109   : > { %4785 = vmatpush3.bf16.msra.mxu1 %v5114_v50  ;;  %4764 = vmatprep.subr.bf16.mxu0 %v5115_v55 }
 0x10a   : > { %4786 = vmatprep.subr.bf16.mxu1 %v5116_v56  ;;  %3454 = vmatprep.mubr.bf16.mxu0 %v3223_v35 }
 0x10b   : > { %3494 = vmatprep.mubr.bf16.mxu1 %v3225_v38 }
 0x10c   : > { %4765 = vmatpush3.bf16.msra.mxu0 %v5117_v57 }
 0x10d   : > { %4787 = vmatpush3.bf16.msra.mxu1 %v5118_v58  ;;  %4766 = vmatprep.subr.bf16.mxu0 %v5119_v60 }
 0x10e   : > { %4788 = vmatprep.subr.bf16.mxu1 %v5120_v62 }
 0x110   : > { %4767 = vmatpush3.bf16.msra.mxu0 %v5121_v0 }
 0x111   : > { %4789 = vmatpush3.bf16.msra.mxu1 %v5122_v3  ;;  %4768 = vmatprep.subr.bf16.mxu0 %v5123_v7 }
 0x112   : > { %4790 = vmatprep.subr.bf16.mxu1 %v5124_v9 }
 0x114   : > { %4769 = vmatpush3.bf16.msra.mxu0 %v5125_v12 }
 0x115   : > { %4791 = vmatpush3.bf16.msra.mxu1 %v5126_v14  ;;  %4770 = vmatprep.subr.bf16.mxu0 %v5127_v16 }
 0x116   : > { %4792 = vmatprep.subr.bf16.mxu1 %v5128_v17 }
 0x118   : > { %4771 = vmatpush3.bf16.msra.mxu0 %v5129_v18 }
 0x119   : > { %4772 = vmatprep.subr.bf16.mxu0 %v5131_v19 }
 0x11a   : > { %v4470_v59 = vpop.f32.mrb[4].mxu0 }
 0x11b   : > { %v4492_v61 = vpop.f32.mrb[4].mxu1  ;;  %v4471_v63 = vpop.f32.mrb[5].mxu0 }
 0x11c   : > { %v4472_v1 = vadd.f32 %v4471_v63, %v4470_v59  ;;  %v4493_v2 = vpop.f32.mrb[5].mxu1  ;;  %v4473_v6 = vpop.f32.mrb[6].mxu0  ;;  %4773 = vmatpush3.bf16.msra.mxu0 %v5133_v21 }
 0x11d   : > { %v4494_v4 = vadd.f32 %v4493_v2, %v4492_v61  ;;  %v4495_v8 = vpop.f32.mrb[6].mxu1  ;;  %v4474_v11 = vpop.f32.mrb[7].mxu0  ;;  %4774 = vmatprep.subr.bf16.mxu0 %v5135_v23 }
 0x11e   : > { %v4496_v13 = vpop.f32.mrb[7].mxu1 }
 0x11f   : > { %v881_v10 = vadd.f32 %v4494_v4, %v4472_v1 }
 0x120   : > { %4775 = vmatpush3.bf16.msra.mxu0 %v5137_v25 }
 0x121   : > { %v886_v15 = vadd.f32 %v881_v10, %v5951_v5  ;;  %v5130_v5 = vld [vmem:[%s6131_s1 + $0x8a0] sm:$0xff]   ;;  %4776 = vmatprep.subr.bf16.mxu0 %v5139_v27 }
 0x122   : > { %4793 = vmatpush3.bf16.msra.mxu1 %v5130_v5 }
 0x123   : > { %4794 = vmatprep.subr.bf16.mxu1 %v5132_v20 }
 0x124   : > { %4777 = vmatpush3.bf16.msra.mxu0 %v5141_v29 }
 0x126   : > { %4795 = vmatpush3.bf16.msra.mxu1 %v5134_v22 }
 0x127   : > { %4796 = vmatprep.subr.bf16.mxu1 %v5136_v24  ;;  %3455 = vmatmul.mubr.bf16.vlgmr.msra.gmra.mrb[32].mxu0 %v3222_v34 }
 0x12a   : > { %4797 = vmatpush3.bf16.msra.mxu1 %v5138_v26 }
 0x12b   : > { %4798 = vmatprep.subr.bf16.mxu1 %v5140_v28 }
 0x12e   : > { %4799 = vmatpush3.bf16.msra.mxu1 %v5142_v31 }
 0x131   : > { %3495 = vmatmul.mubr.bf16.vlgmr.msra.gmra.mrb[32].mxu1 %v3224_v37 }
 0x13a   : > { %v4514_v39 = vpop.f32.mrb[8].mxu0 }
 0x13b   : > { %v4536_v40 = vpop.f32.mrb[8].mxu1  ;;  %v4515_v41 = vpop.f32.mrb[9].mxu0 }
 0x13c   : > { %v4516_v42 = vadd.f32 %v4515_v41, %v4514_v39  ;;  %v4537_v43 = vpop.f32.mrb[9].mxu1  ;;  %v4517_v44 = vpop.f32.mrb[10].mxu0 }
 0x13d   : > { %v4538_v46 = vadd.f32 %v4537_v43, %v4536_v40  ;;  %v4539_v47 = vpop.f32.mrb[10].mxu1  ;;  %v4518_v45 = vpop.f32.mrb[11].mxu0 }
 0x13e   : > { %v4540_v48 = vpop.f32.mrb[11].mxu1 }
 0x13f   : > { %v1249_v49 = vadd.f32 %v4538_v46, %v4516_v42 }
 0x141   : > { %v1254_v50 = vadd.f32 %v1249_v49, %v886_v15 }
 0x15a   : > { %v4558_v51 = vpop.f32.mrb[12].mxu0 }
 0x15b   : > { %v4559_v52 = vpop.f32.mrb[13].mxu0  ;;  %v4580_v53 = vpop.f32.mrb[12].mxu1 }
 0x15c   : > { %v4560_v54 = vadd.f32 %v4559_v52, %v4558_v51  ;;  %v4561_v55 = vpop.f32.mrb[14].mxu0  ;;  %v4581_v56 = vpop.f32.mrb[13].mxu1 }
 0x15d   : > { %v4562_v57 = vpop.f32.mrb[15].mxu0  ;;  %v4582_v58 = vadd.f32 %v4581_v56, %v4580_v53  ;;  %v4583_v59 = vpop.f32.mrb[14].mxu1 }
 0x15e   : > { %v4584_v60 = vpop.f32.mrb[15].mxu1 }
 0x15f   : > { %v1617_v61 = vadd.f32 %v4582_v58, %v4560_v54 }
 0x161   : > { %v1622_v62 = vadd.f32 %v1617_v61, %v1254_v50 }
 0x17a   : > { %v4602_v63 = vpop.f32.mrb[16].mxu0 }
 0x17b   : > { %v4603_v0 = vpop.f32.mrb[17].mxu0  ;;  %v4624_v3 = vpop.f32.mrb[16].mxu1 }
 0x17c   : > { %v4604_v1 = vadd.f32 %v4603_v0, %v4602_v63  ;;  %v4605_v2 = vpop.f32.mrb[18].mxu0  ;;  %v4625_v6 = vpop.f32.mrb[17].mxu1 }
 0x17d   : > { %v4606_v4 = vpop.f32.mrb[19].mxu0  ;;  %v4626_v7 = vadd.f32 %v4625_v6, %v4624_v3  ;;  %v4627_v8 = vpop.f32.mrb[18].mxu1 }
 0x17e   : > { %v4628_v9 = vpop.f32.mrb[19].mxu1 }
 0x17f   : > { %v2013_v10 = vadd.f32 %v4626_v7, %v4604_v1 }
 0x181   : > { %v2018_v11 = vadd.f32 %v2013_v10, %v1622_v62 }
 0x19a   : > { %v4646_v12 = vpop.f32.mrb[20].mxu0 }
 0x19b   : > { %v4647_v13 = vpop.f32.mrb[21].mxu0  ;;  %v4668_v14 = vpop.f32.mrb[20].mxu1 }
 0x19c   : > { %v4648_v15 = vadd.f32 %v4647_v13, %v4646_v12  ;;  %v4649_v16 = vpop.f32.mrb[22].mxu0  ;;  %v4669_v17 = vpop.f32.mrb[21].mxu1 }
 0x19d   : > { %v4650_v18 = vpop.f32.mrb[23].mxu0  ;;  %v4670_v5 = vadd.f32 %v4669_v17, %v4668_v14  ;;  %v4671_v19 = vpop.f32.mrb[22].mxu1 }
 0x19e   : > { %v4672_v20 = vpop.f32.mrb[23].mxu1 }
 0x19f   : > { %v2381_v21 = vadd.f32 %v4670_v5, %v4648_v15 }
 0x1a1   : > { %v2386_v22 = vadd.f32 %v2381_v21, %v2018_v11 }
 0x1ba   : > { %v4690_v23 = vpop.f32.mrb[24].mxu0 }
 0x1bb   : > { %v4712_v24 = vpop.f32.mrb[24].mxu1  ;;  %v4691_v25 = vpop.f32.mrb[25].mxu0 }
 0x1bc   : > { %v4692_v26 = vadd.f32 %v4691_v25, %v4690_v23  ;;  %v4713_v27 = vpop.f32.mrb[25].mxu1  ;;  %v4693_v28 = vpop.f32.mrb[26].mxu0 }
 0x1bd   : > { %v4714_v29 = vadd.f32 %v4713_v27, %v4712_v24  ;;  %v4715_v30 = vpop.f32.mrb[26].mxu1  ;;  %v4694_v31 = vpop.f32.mrb[27].mxu0 }
 0x1be   : > { %v4716_v32 = vpop.f32.mrb[27].mxu1 }
 0x1bf   : > { %v2737_v33 = vadd.f32 %v4714_v29, %v4692_v26 }
 0x1c1   : > { %v2742_v34 = vadd.f32 %v2737_v33, %v2386_v22 }
 0x1da   : > { %v4734_v35 = vpop.f32.mrb[28].mxu0 }
 0x1db   : > { %v4756_v36 = vpop.f32.mrb[28].mxu1  ;;  %v4735_v37 = vpop.f32.mrb[29].mxu0 }
 0x1dc   : > { %v4736_v38 = vadd.f32 %v4735_v37, %v4734_v35  ;;  %v4757_v39 = vpop.f32.mrb[29].mxu1  ;;  %v4737_v40 = vpop.f32.mrb[30].mxu0 }
 0x1dd   : > { %v4758_v41 = vadd.f32 %v4757_v39, %v4756_v36  ;;  %v4759_v42 = vpop.f32.mrb[30].mxu1  ;;  %v4738_v43 = vpop.f32.mrb[31].mxu0 }
 0x1de   : > { %v4760_v44 = vpop.f32.mrb[31].mxu1 }
 0x1df   : > { %v3129_v46 = vadd.f32 %v4758_v41, %v4736_v38 }
 0x1e1   : > { %v3134_v47 = vadd.f32 %v3129_v46, %v2742_v34 }
 0x1fa   : > { %v4778_v45 = vpop.f32.mrb[32].mxu0 }
 0x1fb   : > { %v4779_v49 = vpop.f32.mrb[33].mxu0 }
 0x1fc   : > { %v4780_v50 = vadd.f32 %v4779_v49, %v4778_v45  ;;  %v4781_v52 = vpop.f32.mrb[34].mxu0 }
 0x1fd   : > { %v4782_v55 = vpop.f32.mrb[35].mxu0 }
 0x204   : > { %v4800_v48 = vpop.f32.mrb[32].mxu1 }
 0x205   : > { %v4801_v51 = vpop.f32.mrb[33].mxu1 }
 0x206   : > { %v4802_v53 = vadd.f32 %v4801_v51, %v4800_v48  ;;  %v4803_v54 = vpop.f32.mrb[34].mxu1 }
 0x207   : > { %v4804_v56 = vpop.f32.mrb[35].mxu1 }
 0x208   : > { %v3497_v57 = vadd.f32 %v4802_v53, %v4780_v50 }
 0x20a   : > { %v3502_v58 = vadd.f32 %v3497_v57, %v3134_v47 }
 0x20c   : > { %v3505_v59 = vsub.f32 0.0, %v3502_v58 }
 0x20e   : > { %v3506_v60 = vmul.f32 1.442695, %v3505_v59 }
 0x210   : > { %5149 = vpow2.f32 %v3506_v60 }
 0x21a   : > { %v5150_v61 = vpop.eup %5149 }
 0x21b   : > { %v3508_v62 = vadd.f32 1.0, %v5150_v61 }
 0x21d   : > { %5151 = vrcp.f32 %v3508_v62 }
 0x227   : > { %v5152_v63 = vpop.eup %5151 }
 0x228   : > { %3511 = vst [vmem:[%s141_s15] sm:$0xff] %v5152_v63 }
 0x229 PF: > { %s12_s9 = sadd.s32 1, %s5159_s9  }
 0x22a   : > { %p9_p4 = scmp.ge.s32.totalorder %s12_s9, 4  }
 0x22c   :  { %11 = sbr.rel (!%p9_p4) target bundleno = 1 (0x1), region = 66 }

</bundles_post_ra>
